<compile_context>
chip_gen: v7x
topology: tpu7x:2x2x1
jax: 0.10.0
libtpu: 0.0.40
codegen_flags: <defaults>
</compile_context>

<pallas_src>
from functools import partial

import jax
import jax.numpy as jnp
from jax import lax
from jax.experimental import pallas as pl
from jax.experimental.pallas import tpu as pltpu


# ----------------------------- model constants ----------------------------- #

N_FILTERS   = 32
IN_CHANNELS = 1
KSIZE       = 3
IM_SHAPE    = (14, 14)
FC_NODES    = 64
N_CLASSES   = 10

C1 = N_FILTERS // 2          # conv1 output channels (16)
C2 = N_FILTERS               # conv2 output channels (32)
NEG_SLOPE = 0.01             # PyTorch LeakyReLU default


# ------------------------------ fused kernel ------------------------------- #

def _make_fused_kernel(B, H, W):
    """Build the fused forward kernel + scratch shapes for batch B, image HxW."""
    K = KSIZE
    HW = H * W
    R = B * HW                                  # rows of the full-resolution grid
    H2, W2 = H - 2 * (K - 1), W - 2 * (K - 1)   # conv2 spatial output (10x10)
    assert H2 % 2 == 0 and W2 % 2 == 0
    HP, WP = H2 // 2, W2 // 2                   # pooled spatial output (5x5)
    FC_IN = C2 * HP * WP                        # 800

    max_shift = (K - 1) * W + (K - 1)           # 30
    R1 = R + 32                                 # conv1 rows computed (>= R + max_shift)
    XPAD = R1 + 32                              # zero-padded input rows

    def kernel(x_ref, w1_ref, b1_ref, w2_ref, b2_ref,
               wf1_ref, bf1_ref, wf2_ref, bf2_ref,
               o_ref, xpad_ref, h1_ref, c2_ref, fcin_ref):
        # ---- stage 0: input into zero-padded scratch (rows = b*H*W + i*W + j) ----
        xpad_ref[...] = jnp.zeros(xpad_ref.shape, xpad_ref.dtype)
        xpad_ref[0:R, :] = x_ref[...]

        # ---- conv1 (3x3, Cin=1 -> C1): 9-tap VPU broadcast-MAC -------------------
        acc1 = jnp.zeros((R1, C1), jnp.float32)
        for kh in range(K):
            for kw in range(K):
                t, s = kh * K + kw, kh * W + kw
                # (R1, 1) * (1, C1) -> (R1, C1)
                acc1 = acc1 + xpad_ref[s:s + R1, :] * w1_ref[t]
        h1 = acc1 + b1_ref[...]
        h1_ref[...] = jnp.where(h1 >= 0, h1, NEG_SLOPE * h1)

        # ---- conv2 (3x3, C1 -> C2): 9 accumulated MXU GEMMs (bf16 x bf16 -> f32) -
        acc2 = jnp.zeros((R, C2), jnp.float32)
        for kh in range(K):
            for kw in range(K):
                t, s = kh * K + kw, kh * W + kw
                lhs = h1_ref[s:s + R, :].astype(jnp.bfloat16)        # (R, C1)
                acc2 = acc2 + jnp.dot(lhs, w2_ref[t],                # (C1, C2)
                                      preferred_element_type=jnp.float32)
        c2 = acc2 + b2_ref[...]
        c2_ref[...] = jnp.where(c2 >= 0, c2, NEG_SLOPE * c2)

        # ---- maxpool 2x2 (stride 2) fused with flatten into FC input scratch ----
        # fcin[b, (pi*WP + pj)*C2 + c] = max over the 2x2 window; the matching
        # permutation of the PyTorch NCHW flatten order is folded into wf1.
        for b in range(B):
            base = b * HW
            for pi in range(HP):
                for pj in range(WP):
                    r0 = base + (2 * pi) * W + 2 * pj
                    m = jnp.maximum(
                        jnp.maximum(c2_ref[r0:r0 + 1, :],
                                    c2_ref[r0 + 1:r0 + 2, :]),
                        jnp.maximum(c2_ref[r0 + W:r0 + W + 1, :],
                                    c2_ref[r0 + W + 1:r0 + W + 2, :]))
                    f = pi * WP + pj
                    fcin_ref[b:b + 1, f * C2:(f + 1) * C2] = m

        # ---- FC1 + LeakyReLU + FC2 (bf16 MXU operands, f32 accumulation) ---------
        flat = fcin_ref[...].astype(jnp.bfloat16)                    # (B, FC_IN)
        hfc = jnp.dot(flat, wf1_ref[...], preferred_element_type=jnp.float32)
        hfc = hfc + bf1_ref[...]
        hfc = jnp.where(hfc >= 0, hfc, NEG_SLOPE * hfc)
        out = jnp.dot(hfc.astype(jnp.bfloat16), wf2_ref[...],
                      preferred_element_type=jnp.float32) + bf2_ref[...]
        o_ref[...] = out.astype(o_ref.dtype)

    scratch = [
        pltpu.VMEM((XPAD, IN_CHANNELS), jnp.float32),   # zero-padded input
        pltpu.VMEM((R1, C1), jnp.float32),              # conv1 output (full grid)
        pltpu.VMEM((R, C2), jnp.float32),               # conv2 output (full grid)
        pltpu.VMEM((B, FC_IN), jnp.float32),            # pooled + flattened FC input
    ]
    return kernel, scratch


def _full_spec(shape):
    rank = len(shape)
    return pl.BlockSpec(shape, lambda i, _r=rank: (0,) * _r)


def block_conv_net_forward(x_nchw, kp):
    """Fused forward matching BlockConvNet.forward (eval-mode dropout)."""
    B, Cin, H, W = x_nchw.shape
    assert Cin == IN_CHANNELS == 1 and (H, W) == IM_SHAPE
    kernel, scratch = _make_fused_kernel(B, H, W)

    # NCHW with Cin=1: flattening per image gives rows b*H*W + i*W + j (metadata only).
    x_flat = x_nchw.reshape(B * H * W, 1)

    in_arrays = (x_flat, kp["w1"], kp["b1"], kp["w2"], kp["b2"],
                 kp["wf1"], kp["bf1"], kp["wf2"], kp["bf2"])
    return pl.pallas_call(
        kernel,
        grid=(1,),
        in_specs=[_full_spec(a.shape) for a in in_arrays],
        out_specs=_full_spec((B, N_CLASSES)),
        out_shape=jax.ShapeDtypeStruct((B, N_CLASSES), jnp.float32),
        scratch_shapes=scratch,
        compiler_params=pltpu.CompilerParams(
            dimension_semantics=("arbitrary",)),
    )(*in_arrays)


# ------------------------- parameters & reference -------------------------- #

def init_torch_layout_params(key):
    """Random params in PyTorch layout (Conv2d: (Cout,Cin,kh,kw); Linear: (out,in))."""
    fc_in = N_FILTERS // 4 * (IM_SHAPE[0] - 2 * (KSIZE - 1)) ** 2    # 800
    k = jax.random.split(key, 8)
    s = 0.1
    return dict(
        conv1_w=s * jax.random.normal(k[0], (C1, IN_CHANNELS, KSIZE, KSIZE), jnp.float32),
        conv1_b=s * jax.random.normal(k[1], (C1,), jnp.float32),
        conv2_w=s * jax.random.normal(k[2], (C2, C1, KSIZE, KSIZE), jnp.float32),
        conv2_b=s * jax.random.normal(k[3], (C2,), jnp.float32),
        fc1_w=s * jax.random.normal(k[4], (FC_NODES, fc_in), jnp.float32),
        fc1_b=s * jax.random.normal(k[5], (FC_NODES,), jnp.float32),
        fc2_w=s * jax.random.normal(k[6], (N_CLASSES, FC_NODES), jnp.float32),
        fc2_b=s * jax.random.normal(k[7], (N_CLASSES,), jnp.float32),
    )


def prepare_params(tp):
    """One-time (outside jit) conversion of PyTorch-layout params to kernel layout.

    * conv weights -> (tap, Cin, Cout) with tap = kh*K + kw
    * fc1 weight rows permuted from the NCHW flatten order (c*25 + pi*5 + pj)
      to the kernel's (pi, pj, c) order
    * MXU-side weights pre-cast to bf16
    """
    K = KSIZE
    HP = (IM_SHAPE[0] - 2 * (K - 1)) // 2
    WP = (IM_SHAPE[1] - 2 * (K - 1)) // 2

    w1 = jnp.transpose(tp["conv1_w"], (2, 3, 1, 0)).reshape(K * K, IN_CHANNELS, C1)
    w2 = jnp.transpose(tp["conv2_w"], (2, 3, 1, 0)).reshape(K * K, C1, C2)

    wf1 = tp["fc1_w"].T                                    # (800, 64), rows = c*25+pi*5+pj
    wf1 = wf1.reshape(C2, HP, WP, FC_NODES)                # [c, pi, pj, n]
    wf1 = jnp.transpose(wf1, (1, 2, 0, 3)).reshape(C2 * HP * WP, FC_NODES)

    return dict(
        w1=w1.astype(jnp.float32),
        b1=tp["conv1_b"].reshape(1, C1).astype(jnp.float32),
        w2=w2.astype(jnp.bfloat16),
        b2=tp["conv2_b"].reshape(1, C2).astype(jnp.float32),
        wf1=wf1.astype(jnp.bfloat16),
        bf1=tp["fc1_b"].reshape(1, FC_NODES).astype(jnp.float32),
        wf2=tp["fc2_w"].T.astype(jnp.bfloat16),
        bf2=tp["fc2_b"].reshape(1, N_CLASSES).astype(jnp.float32),
    )


def reference_forward(x_nchw, tp):
    """Pure-JAX (XLA) f32 reference of BlockConvNet.forward (eval-mode dropout)."""
    dn = ("NCHW", "OIHW", "NCHW")
    y = lax.conv_general_dilated(x_nchw, tp["conv1_w"], (1, 1), "VALID",
                                 dimension_numbers=dn)
    y = y + tp["conv1_b"][None, :, None, None]
    y = jnp.where(y >= 0, y, NEG_SLOPE * y)
    y = lax.conv_general_dilated(y, tp["conv2_w"], (1, 1), "VALID",
                                 dimension_numbers=dn)
    y = y + tp["conv2_b"][None, :, None, None]
    y = jnp.where(y >= 0, y, NEG_SLOPE * y)
    y = lax.reduce_window(y, -jnp.inf, lax.max, (1, 1, 2, 2), (1, 1, 2, 2), "VALID")
    flat = y.reshape(x_nchw.shape[0], -1)
    h = flat @ tp["fc1_w"].T + tp["fc1_b"]
    h = jnp.where(h >= 0, h, NEG_SLOPE * h)
    return h @ tp["fc2_w"].T + tp["fc2_b"]


# ---------------------------------- main ------------------------------------ #

if __name__ == "__main__":
    key = jax.random.PRNGKey(0)
    pkey, xkey = jax.random.split(key)

    torch_params = init_torch_layout_params(pkey)
    kparams = prepare_params(torch_params)               # one-time layout / bf16 prep

    # Input matching the module defaults: batch=2, 1 channel, 14x14 images (NCHW).
    x = jax.random.normal(xkey, (2, IN_CHANNELS, *IM_SHAPE), jnp.float32)

    fwd = jax.jit(lambda xx: block_conv_net_forward(xx, kparams))
    out = jax.block_until_ready(fwd(x))

    assert out.shape == (2, N_CLASSES), out.shape
    assert out.dtype == jnp.float32
    assert bool(jnp.all(jnp.isfinite(out)))

    # Loose tolerance: kernel uses bf16 MXU operands / f32 accumulation.
    ref = reference_forward(x, torch_params)
    assert bool(jnp.allclose(out, ref, rtol=1e-1, atol=1e-1)), (out, ref)

    print("KERNEL_OK")
</pallas_src>

<mosaic_0001>
module attributes {stable_mosaic.version = 11 : i64} {
  func.func @kernel(%arg0: i32, %arg1: memref<392x1xf32, #tpu.memory_space<vmem>>, %arg2: memref<9x1x16xf32, #tpu.memory_space<vmem>>, %arg3: memref<1x16xf32, #tpu.memory_space<vmem>>, %arg4: memref<9x16x32xbf16, #tpu.memory_space<vmem>>, %arg5: memref<1x32xf32, #tpu.memory_space<vmem>>, %arg6: memref<800x64xbf16, #tpu.memory_space<vmem>>, %arg7: memref<1x64xf32, #tpu.memory_space<vmem>>, %arg8: memref<64x10xbf16, #tpu.memory_space<vmem>>, %arg9: memref<1x10xf32, #tpu.memory_space<vmem>>, %arg10: memref<2x10xf32, #tpu.memory_space<vmem>>, %arg11: memref<456x1xf32, #tpu.memory_space<vmem>>, %arg12: memref<424x16xf32, #tpu.memory_space<vmem>>, %arg13: memref<392x32xf32, #tpu.memory_space<vmem>>, %arg14: memref<2x800xf32, #tpu.memory_space<vmem>>) attributes {dimension_semantics = [#tpu.dimension_semantics<arbitrary>], iteration_bounds = array<i64: 1>, scalar_prefetch = 0 : i64, scratch_operands = 4 : i64, tpu.core_type = #tpu.core_type<tc>, window_params = [{pipeline_mode = #tpu.pipeline_mode<synchronous>, transform_indices = @transform_0, window_bounds = array<i64: 392, 1>}, {pipeline_mode = #tpu.pipeline_mode<synchronous>, transform_indices = @transform_1, window_bounds = array<i64: 9, 1, 16>}, {pipeline_mode = #tpu.pipeline_mode<synchronous>, transform_indices = @transform_2, window_bounds = array<i64: 1, 16>}, {pipeline_mode = #tpu.pipeline_mode<synchronous>, transform_indices = @transform_3, window_bounds = array<i64: 9, 16, 32>}, {pipeline_mode = #tpu.pipeline_mode<synchronous>, transform_indices = @transform_4, window_bounds = array<i64: 1, 32>}, {pipeline_mode = #tpu.pipeline_mode<synchronous>, transform_indices = @transform_5, window_bounds = array<i64: 800, 64>}, {pipeline_mode = #tpu.pipeline_mode<synchronous>, transform_indices = @transform_6, window_bounds = array<i64: 1, 64>}, {pipeline_mode = #tpu.pipeline_mode<synchronous>, transform_indices = @transform_7, window_bounds = array<i64: 64, 10>}, {pipeline_mode = #tpu.pipeline_mode<synchronous>, transform_indices = @transform_8, window_bounds = array<i64: 1, 10>}, {pipeline_mode = #tpu.pipeline_mode<synchronous>, transform_indices = @transform_9, window_bounds = array<i64: 2, 10>}]} {
    %cst = arith.constant 0.000000e+00 : f32
    %0 = vector.broadcast %cst : f32 to vector<456x1xf32>
    %c0 = arith.constant 0 : index
    %c0_0 = arith.constant 0 : index
    %1 = vector.load %arg11[%c0, %c0_0] : memref<456x1xf32, #tpu.memory_space<vmem>>, vector<456x1xf32>
    tpu.vector_store %arg11[%c0, %c0_0], %0 {strides = array<i32>} : memref<456x1xf32, #tpu.memory_space<vmem>>, vector<456x1xf32>,
    %c0_1 = arith.constant 0 : index
    %c0_2 = arith.constant 0 : index
    %2 = vector.load %arg1[%c0_1, %c0_2] : memref<392x1xf32, #tpu.memory_space<vmem>>, vector<392x1xf32>
    %c0_3 = arith.constant 0 : index
    %c0_4 = arith.constant 0 : index
    %3 = vector.load %arg11[%c0_3, %c0_4] : memref<456x1xf32, #tpu.memory_space<vmem>>, vector<392x1xf32>
    tpu.vector_store %arg11[%c0_3, %c0_4], %2 {strides = array<i32>} : memref<456x1xf32, #tpu.memory_space<vmem>>, vector<392x1xf32>,
    %cst_5 = arith.constant 0.000000e+00 : f32
    %4 = vector.broadcast %cst_5 : f32 to vector<424x16xf32>
    %c0_6 = arith.constant 0 : index
    %c0_7 = arith.constant 0 : index
    %5 = vector.load %arg11[%c0_6, %c0_7] : memref<456x1xf32, #tpu.memory_space<vmem>>, vector<424x1xf32>
    %c0_8 = arith.constant 0 : index
    %c0_9 = arith.constant 0 : index
    %c0_10 = arith.constant 0 : index
    %6 = vector.load %arg2[%c0_8, %c0_9, %c0_10] : memref<9x1x16xf32, #tpu.memory_space<vmem>>, vector<1x1x16xf32>
    %7 = vector.shape_cast %6 : vector<1x1x16xf32> to vector<1x16xf32>
    %8 = vector.broadcast %5 : vector<424x1xf32> to vector<424x16xf32>
    %9 = vector.broadcast %7 : vector<1x16xf32> to vector<424x16xf32>
    %10 = arith.mulf %8, %9 : vector<424x16xf32>
    %11 = arith.addf %4, %10 : vector<424x16xf32>
    %c1 = arith.constant 1 : index
    %c0_11 = arith.constant 0 : index
    %12 = vector.load %arg11[%c1, %c0_11] : memref<456x1xf32, #tpu.memory_space<vmem>>, vector<424x1xf32>
    %c1_12 = arith.constant 1 : index
    %c0_13 = arith.constant 0 : index
    %c0_14 = arith.constant 0 : index
    %13 = vector.load %arg2[%c1_12, %c0_13, %c0_14] : memref<9x1x16xf32, #tpu.memory_space<vmem>>, vector<1x1x16xf32>
    %14 = vector.shape_cast %13 : vector<1x1x16xf32> to vector<1x16xf32>
    %15 = vector.broadcast %12 : vector<424x1xf32> to vector<424x16xf32>
    %16 = vector.broadcast %14 : vector<1x16xf32> to vector<424x16xf32>
    %17 = arith.mulf %15, %16 : vector<424x16xf32>
    %18 = arith.addf %11, %17 : vector<424x16xf32>
    %c2 = arith.constant 2 : index
    %c0_15 = arith.constant 0 : index
    %19 = vector.load %arg11[%c2, %c0_15] : memref<456x1xf32, #tpu.memory_space<vmem>>, vector<424x1xf32>
    %c2_16 = arith.constant 2 : index
    %c0_17 = arith.constant 0 : index
    %c0_18 = arith.constant 0 : index
    %20 = vector.load %arg2[%c2_16, %c0_17, %c0_18] : memref<9x1x16xf32, #tpu.memory_space<vmem>>, vector<1x1x16xf32>
    %21 = vector.shape_cast %20 : vector<1x1x16xf32> to vector<1x16xf32>
    %22 = vector.broadcast %19 : vector<424x1xf32> to vector<424x16xf32>
    %23 = vector.broadcast %21 : vector<1x16xf32> to vector<424x16xf32>
    %24 = arith.mulf %22, %23 : vector<424x16xf32>
    %25 = arith.addf %18, %24 : vector<424x16xf32>
    %c14 = arith.constant 14 : index
    %c0_19 = arith.constant 0 : index
    %26 = vector.load %arg11[%c14, %c0_19] : memref<456x1xf32, #tpu.memory_space<vmem>>, vector<424x1xf32>
    %c3 = arith.constant 3 : index
    %c0_20 = arith.constant 0 : index
    %c0_21 = arith.constant 0 : index
    %27 = vector.load %arg2[%c3, %c0_20, %c0_21] : memref<9x1x16xf32, #tpu.memory_space<vmem>>, vector<1x1x16xf32>
    %28 = vector.shape_cast %27 : vector<1x1x16xf32> to vector<1x16xf32>
    %29 = vector.broadcast %26 : vector<424x1xf32> to vector<424x16xf32>
    %30 = vector.broadcast %28 : vector<1x16xf32> to vector<424x16xf32>
    %31 = arith.mulf %29, %30 : vector<424x16xf32>
    %32 = arith.addf %25, %31 : vector<424x16xf32>
    %c15 = arith.constant 15 : index
    %c0_22 = arith.constant 0 : index
    %33 = vector.load %arg11[%c15, %c0_22] : memref<456x1xf32, #tpu.memory_space<vmem>>, vector<424x1xf32>
    %c4 = arith.constant 4 : index
    %c0_23 = arith.constant 0 : index
    %c0_24 = arith.constant 0 : index
    %34 = vector.load %arg2[%c4, %c0_23, %c0_24] : memref<9x1x16xf32, #tpu.memory_space<vmem>>, vector<1x1x16xf32>
    %35 = vector.shape_cast %34 : vector<1x1x16xf32> to vector<1x16xf32>
    %36 = vector.broadcast %33 : vector<424x1xf32> to vector<424x16xf32>
    %37 = vector.broadcast %35 : vector<1x16xf32> to vector<424x16xf32>
    %38 = arith.mulf %36, %37 : vector<424x16xf32>
    %39 = arith.addf %32, %38 : vector<424x16xf32>
    %c16 = arith.constant 16 : index
    %c0_25 = arith.constant 0 : index
    %40 = vector.load %arg11[%c16, %c0_25] : memref<456x1xf32, #tpu.memory_space<vmem>>, vector<424x1xf32>
    %c5 = arith.constant 5 : index
    %c0_26 = arith.constant 0 : index
    %c0_27 = arith.constant 0 : index
    %41 = vector.load %arg2[%c5, %c0_26, %c0_27] : memref<9x1x16xf32, #tpu.memory_space<vmem>>, vector<1x1x16xf32>
    %42 = vector.shape_cast %41 : vector<1x1x16xf32> to vector<1x16xf32>
    %43 = vector.broadcast %40 : vector<424x1xf32> to vector<424x16xf32>
    %44 = vector.broadcast %42 : vector<1x16xf32> to vector<424x16xf32>
    %45 = arith.mulf %43, %44 : vector<424x16xf32>
    %46 = arith.addf %39, %45 : vector<424x16xf32>
    %c28 = arith.constant 28 : index
    %c0_28 = arith.constant 0 : index
    %47 = vector.load %arg11[%c28, %c0_28] : memref<456x1xf32, #tpu.memory_space<vmem>>, vector<424x1xf32>
    %c6 = arith.constant 6 : index
    %c0_29 = arith.constant 0 : index
    %c0_30 = arith.constant 0 : index
    %48 = vector.load %arg2[%c6, %c0_29, %c0_30] : memref<9x1x16xf32, #tpu.memory_space<vmem>>, vector<1x1x16xf32>
    %49 = vector.shape_cast %48 : vector<1x1x16xf32> to vector<1x16xf32>
    %50 = vector.broadcast %47 : vector<424x1xf32> to vector<424x16xf32>
    %51 = vector.broadcast %49 : vector<1x16xf32> to vector<424x16xf32>
    %52 = arith.mulf %50, %51 : vector<424x16xf32>
    %53 = arith.addf %46, %52 : vector<424x16xf32>
    %c29 = arith.constant 29 : index
    %c0_31 = arith.constant 0 : index
    %54 = vector.load %arg11[%c29, %c0_31] : memref<456x1xf32, #tpu.memory_space<vmem>>, vector<424x1xf32>
    %c7 = arith.constant 7 : index
    %c0_32 = arith.constant 0 : index
    %c0_33 = arith.constant 0 : index
    %55 = vector.load %arg2[%c7, %c0_32, %c0_33] : memref<9x1x16xf32, #tpu.memory_space<vmem>>, vector<1x1x16xf32>
    %56 = vector.shape_cast %55 : vector<1x1x16xf32> to vector<1x16xf32>
    %57 = vector.broadcast %54 : vector<424x1xf32> to vector<424x16xf32>
    %58 = vector.broadcast %56 : vector<1x16xf32> to vector<424x16xf32>
    %59 = arith.mulf %57, %58 : vector<424x16xf32>
    %60 = arith.addf %53, %59 : vector<424x16xf32>
    %c30 = arith.constant 30 : index
    %c0_34 = arith.constant 0 : index
    %61 = vector.load %arg11[%c30, %c0_34] : memref<456x1xf32, #tpu.memory_space<vmem>>, vector<424x1xf32>
    %c8 = arith.constant 8 : index
    %c0_35 = arith.constant 0 : index
    %c0_36 = arith.constant 0 : index
    %62 = vector.load %arg2[%c8, %c0_35, %c0_36] : memref<9x1x16xf32, #tpu.memory_space<vmem>>, vector<1x1x16xf32>
    %63 = vector.shape_cast %62 : vector<1x1x16xf32> to vector<1x16xf32>
    %64 = vector.broadcast %61 : vector<424x1xf32> to vector<424x16xf32>
    %65 = vector.broadcast %63 : vector<1x16xf32> to vector<424x16xf32>
    %66 = arith.mulf %64, %65 : vector<424x16xf32>
    %67 = arith.addf %60, %66 : vector<424x16xf32>
    %c0_37 = arith.constant 0 : index
    %c0_38 = arith.constant 0 : index
    %68 = vector.load %arg3[%c0_37, %c0_38] : memref<1x16xf32, #tpu.memory_space<vmem>>, vector<1x16xf32>
    %69 = vector.broadcast %68 : vector<1x16xf32> to vector<424x16xf32>
    %70 = arith.addf %67, %69 : vector<424x16xf32>
    %cst_39 = arith.constant 0.000000e+00 : f32
    %71 = vector.broadcast %cst_39 : f32 to vector<424x16xf32>
    %72 = arith.cmpf oge, %70, %71 : vector<424x16xf32>
    %cst_40 = arith.constant 0.00999999977 : f32
    %73 = vector.broadcast %cst_40 : f32 to vector<424x16xf32>
    %74 = arith.mulf %73, %70 : vector<424x16xf32>
    %75 = arith.select %72, %70, %74 : vector<424x16xi1>, vector<424x16xf32>
    %c0_41 = arith.constant 0 : index
    %c0_42 = arith.constant 0 : index
    %76 = vector.load %arg12[%c0_41, %c0_42] : memref<424x16xf32, #tpu.memory_space<vmem>>, vector<424x16xf32>
    tpu.vector_store %arg12[%c0_41, %c0_42], %75 {strides = array<i32>} : memref<424x16xf32, #tpu.memory_space<vmem>>, vector<424x16xf32>,
    %cst_43 = arith.constant 0.000000e+00 : f32
    %77 = vector.broadcast %cst_43 : f32 to vector<392x32xf32>
    %c0_44 = arith.constant 0 : index
    %c0_45 = arith.constant 0 : index
    %78 = vector.load %arg12[%c0_44, %c0_45] : memref<424x16xf32, #tpu.memory_space<vmem>>, vector<392x16xf32>
    %79 = arith.truncf %78 : vector<392x16xf32> to vector<392x16xbf16>
    %c0_46 = arith.constant 0 : index
    %c0_47 = arith.constant 0 : index
    %c0_48 = arith.constant 0 : index
    %80 = vector.load %arg4[%c0_46, %c0_47, %c0_48] : memref<9x16x32xbf16, #tpu.memory_space<vmem>>, vector<1x16x32xbf16>
    %81 = vector.shape_cast %80 : vector<1x16x32xbf16> to vector<16x32xbf16>
    %cst_49 = arith.constant dense<0.000000e+00> : vector<392x32xf32>
    %82 = tpu.matmul %79, %81, %cst_49 {dimension_numbers = #tpu.dot_dimension_numbers<[1], [0], [0], [1], [0, 0, 1, 1], [], []>} : vector<392x16xbf16>, vector<16x32xbf16>, vector<392x32xf32> -> vector<392x32xf32>
    %83 = arith.addf %77, %82 : vector<392x32xf32>
    %c1_50 = arith.constant 1 : index
    %c0_51 = arith.constant 0 : index
    %84 = vector.load %arg12[%c1_50, %c0_51] : memref<424x16xf32, #tpu.memory_space<vmem>>, vector<392x16xf32>
    %85 = arith.truncf %84 : vector<392x16xf32> to vector<392x16xbf16>
    %c1_52 = arith.constant 1 : index
    %c0_53 = arith.constant 0 : index
    %c0_54 = arith.constant 0 : index
    %86 = vector.load %arg4[%c1_52, %c0_53, %c0_54] : memref<9x16x32xbf16, #tpu.memory_space<vmem>>, vector<1x16x32xbf16>
    %87 = vector.shape_cast %86 : vector<1x16x32xbf16> to vector<16x32xbf16>
    %cst_55 = arith.constant dense<0.000000e+00> : vector<392x32xf32>
    %88 = tpu.matmul %85, %87, %cst_55 {dimension_numbers = #tpu.dot_dimension_numbers<[1], [0], [0], [1], [0, 0, 1, 1], [], []>} : vector<392x16xbf16>, vector<16x32xbf16>, vector<392x32xf32> -> vector<392x32xf32>
    %89 = arith.addf %83, %88 : vector<392x32xf32>
    %c2_56 = arith.constant 2 : index
    %c0_57 = arith.constant 0 : index
    %90 = vector.load %arg12[%c2_56, %c0_57] : memref<424x16xf32, #tpu.memory_space<vmem>>, vector<392x16xf32>
    %91 = arith.truncf %90 : vector<392x16xf32> to vector<392x16xbf16>
    %c2_58 = arith.constant 2 : index
    %c0_59 = arith.constant 0 : index
    %c0_60 = arith.constant 0 : index
    %92 = vector.load %arg4[%c2_58, %c0_59, %c0_60] : memref<9x16x32xbf16, #tpu.memory_space<vmem>>, vector<1x16x32xbf16>
    %93 = vector.shape_cast %92 : vector<1x16x32xbf16> to vector<16x32xbf16>
    %cst_61 = arith.constant dense<0.000000e+00> : vector<392x32xf32>
    %94 = tpu.matmul %91, %93, %cst_61 {dimension_numbers = #tpu.dot_dimension_numbers<[1], [0], [0], [1], [0, 0, 1, 1], [], []>} : vector<392x16xbf16>, vector<16x32xbf16>, vector<392x32xf32> -> vector<392x32xf32>
    %95 = arith.addf %89, %94 : vector<392x32xf32>
    %c14_62 = arith.constant 14 : index
    %c0_63 = arith.constant 0 : index
    %96 = vector.load %arg12[%c14_62, %c0_63] : memref<424x16xf32, #tpu.memory_space<vmem>>, vector<392x16xf32>
    %97 = arith.truncf %96 : vector<392x16xf32> to vector<392x16xbf16>
    %c3_64 = arith.constant 3 : index
    %c0_65 = arith.constant 0 : index
    %c0_66 = arith.constant 0 : index
    %98 = vector.load %arg4[%c3_64, %c0_65, %c0_66] : memref<9x16x32xbf16, #tpu.memory_space<vmem>>, vector<1x16x32xbf16>
    %99 = vector.shape_cast %98 : vector<1x16x32xbf16> to vector<16x32xbf16>
    %cst_67 = arith.constant dense<0.000000e+00> : vector<392x32xf32>
    %100 = tpu.matmul %97, %99, %cst_67 {dimension_numbers = #tpu.dot_dimension_numbers<[1], [0], [0], [1], [0, 0, 1, 1], [], []>} : vector<392x16xbf16>, vector<16x32xbf16>, vector<392x32xf32> -> vector<392x32xf32>
    %101 = arith.addf %95, %100 : vector<392x32xf32>
    %c15_68 = arith.constant 15 : index
    %c0_69 = arith.constant 0 : index
    %102 = vector.load %arg12[%c15_68, %c0_69] : memref<424x16xf32, #tpu.memory_space<vmem>>, vector<392x16xf32>
    %103 = arith.truncf %102 : vector<392x16xf32> to vector<392x16xbf16>
    %c4_70 = arith.constant 4 : index
    %c0_71 = arith.constant 0 : index
    %c0_72 = arith.constant 0 : index
    %104 = vector.load %arg4[%c4_70, %c0_71, %c0_72] : memref<9x16x32xbf16, #tpu.memory_space<vmem>>, vector<1x16x32xbf16>
    %105 = vector.shape_cast %104 : vector<1x16x32xbf16> to vector<16x32xbf16>
    %cst_73 = arith.constant dense<0.000000e+00> : vector<392x32xf32>
    %106 = tpu.matmul %103, %105, %cst_73 {dimension_numbers = #tpu.dot_dimension_numbers<[1], [0], [0], [1], [0, 0, 1, 1], [], []>} : vector<392x16xbf16>, vector<16x32xbf16>, vector<392x32xf32> -> vector<392x32xf32>
    %107 = arith.addf %101, %106 : vector<392x32xf32>
    %c16_74 = arith.constant 16 : index
    %c0_75 = arith.constant 0 : index
    %108 = vector.load %arg12[%c16_74, %c0_75] : memref<424x16xf32, #tpu.memory_space<vmem>>, vector<392x16xf32>
    %109 = arith.truncf %108 : vector<392x16xf32> to vector<392x16xbf16>
    %c5_76 = arith.constant 5 : index
    %c0_77 = arith.constant 0 : index
    %c0_78 = arith.constant 0 : index
    %110 = vector.load %arg4[%c5_76, %c0_77, %c0_78] : memref<9x16x32xbf16, #tpu.memory_space<vmem>>, vector<1x16x32xbf16>
    %111 = vector.shape_cast %110 : vector<1x16x32xbf16> to vector<16x32xbf16>
    %cst_79 = arith.constant dense<0.000000e+00> : vector<392x32xf32>
    %112 = tpu.matmul %109, %111, %cst_79 {dimension_numbers = #tpu.dot_dimension_numbers<[1], [0], [0], [1], [0, 0, 1, 1], [], []>} : vector<392x16xbf16>, vector<16x32xbf16>, vector<392x32xf32> -> vector<392x32xf32>
    %113 = arith.addf %107, %112 : vector<392x32xf32>
    %c28_80 = arith.constant 28 : index
    %c0_81 = arith.constant 0 : index
    %114 = vector.load %arg12[%c28_80, %c0_81] : memref<424x16xf32, #tpu.memory_space<vmem>>, vector<392x16xf32>
    %115 = arith.truncf %114 : vector<392x16xf32> to vector<392x16xbf16>
    %c6_82 = arith.constant 6 : index
    %c0_83 = arith.constant 0 : index
    %c0_84 = arith.constant 0 : index
    %116 = vector.load %arg4[%c6_82, %c0_83, %c0_84] : memref<9x16x32xbf16, #tpu.memory_space<vmem>>, vector<1x16x32xbf16>
    %117 = vector.shape_cast %116 : vector<1x16x32xbf16> to vector<16x32xbf16>
    %cst_85 = arith.constant dense<0.000000e+00> : vector<392x32xf32>
    %118 = tpu.matmul %115, %117, %cst_85 {dimension_numbers = #tpu.dot_dimension_numbers<[1], [0], [0], [1], [0, 0, 1, 1], [], []>} : vector<392x16xbf16>, vector<16x32xbf16>, vector<392x32xf32> -> vector<392x32xf32>
    %119 = arith.addf %113, %118 : vector<392x32xf32>
    %c29_86 = arith.constant 29 : index
    %c0_87 = arith.constant 0 : index
    %120 = vector.load %arg12[%c29_86, %c0_87] : memref<424x16xf32, #tpu.memory_space<vmem>>, vector<392x16xf32>
    %121 = arith.truncf %120 : vector<392x16xf32> to vector<392x16xbf16>
    %c7_88 = arith.constant 7 : index
    %c0_89 = arith.constant 0 : index
    %c0_90 = arith.constant 0 : index
    %122 = vector.load %arg4[%c7_88, %c0_89, %c0_90] : memref<9x16x32xbf16, #tpu.memory_space<vmem>>, vector<1x16x32xbf16>
    %123 = vector.shape_cast %122 : vector<1x16x32xbf16> to vector<16x32xbf16>
    %cst_91 = arith.constant dense<0.000000e+00> : vector<392x32xf32>
    %124 = tpu.matmul %121, %123, %cst_91 {dimension_numbers = #tpu.dot_dimension_numbers<[1], [0], [0], [1], [0, 0, 1, 1], [], []>} : vector<392x16xbf16>, vector<16x32xbf16>, vector<392x32xf32> -> vector<392x32xf32>
    %125 = arith.addf %119, %124 : vector<392x32xf32>
    %c30_92 = arith.constant 30 : index
    %c0_93 = arith.constant 0 : index
    %126 = vector.load %arg12[%c30_92, %c0_93] : memref<424x16xf32, #tpu.memory_space<vmem>>, vector<392x16xf32>
    %127 = arith.truncf %126 : vector<392x16xf32> to vector<392x16xbf16>
    %c8_94 = arith.constant 8 : index
    %c0_95 = arith.constant 0 : index
    %c0_96 = arith.constant 0 : index
    %128 = vector.load %arg4[%c8_94, %c0_95, %c0_96] : memref<9x16x32xbf16, #tpu.memory_space<vmem>>, vector<1x16x32xbf16>
    %129 = vector.shape_cast %128 : vector<1x16x32xbf16> to vector<16x32xbf16>
    %cst_97 = arith.constant dense<0.000000e+00> : vector<392x32xf32>
    %130 = tpu.matmul %127, %129, %cst_97 {dimension_numbers = #tpu.dot_dimension_numbers<[1], [0], [0], [1], [0, 0, 1, 1], [], []>} : vector<392x16xbf16>, vector<16x32xbf16>, vector<392x32xf32> -> vector<392x32xf32>
    %131 = arith.addf %125, %130 : vector<392x32xf32>
    %c0_98 = arith.constant 0 : index
    %c0_99 = arith.constant 0 : index
    %132 = vector.load %arg5[%c0_98, %c0_99] : memref<1x32xf32, #tpu.memory_space<vmem>>, vector<1x32xf32>
    %133 = vector.broadcast %132 : vector<1x32xf32> to vector<392x32xf32>
    %134 = arith.addf %131, %133 : vector<392x32xf32>
    %cst_100 = arith.constant 0.000000e+00 : f32
    %135 = vector.broadcast %cst_100 : f32 to vector<392x32xf32>
    %136 = arith.cmpf oge, %134, %135 : vector<392x32xf32>
    %cst_101 = arith.constant 0.00999999977 : f32
    %137 = vector.broadcast %cst_101 : f32 to vector<392x32xf32>
    %138 = arith.mulf %137, %134 : vector<392x32xf32>
    %139 = arith.select %136, %134, %138 : vector<392x32xi1>, vector<392x32xf32>
    %c0_102 = arith.constant 0 : index
    %c0_103 = arith.constant 0 : index
    %140 = vector.load %arg13[%c0_102, %c0_103] : memref<392x32xf32, #tpu.memory_space<vmem>>, vector<392x32xf32>
    tpu.vector_store %arg13[%c0_102, %c0_103], %139 {strides = array<i32>} : memref<392x32xf32, #tpu.memory_space<vmem>>, vector<392x32xf32>,
    %c0_104 = arith.constant 0 : index
    %c0_105 = arith.constant 0 : index
    %141 = vector.load %arg13[%c0_104, %c0_105] : memref<392x32xf32, #tpu.memory_space<vmem>>, vector<1x32xf32>
    %c1_106 = arith.constant 1 : index
    %c0_107 = arith.constant 0 : index
    %142 = vector.load %arg13[%c1_106, %c0_107] : memref<392x32xf32, #tpu.memory_space<vmem>>, vector<1x32xf32>
    %143 = arith.maximumf %141, %142 : vector<1x32xf32>
    %c14_108 = arith.constant 14 : index
    %c0_109 = arith.constant 0 : index
    %144 = vector.load %arg13[%c14_108, %c0_109] : memref<392x32xf32, #tpu.memory_space<vmem>>, vector<1x32xf32>
    %c15_110 = arith.constant 15 : index
    %c0_111 = arith.constant 0 : index
    %145 = vector.load %arg13[%c15_110, %c0_111] : memref<392x32xf32, #tpu.memory_space<vmem>>, vector<1x32xf32>
    %146 = arith.maximumf %144, %145 : vector<1x32xf32>
    %147 = arith.maximumf %143, %146 : vector<1x32xf32>
    %c0_112 = arith.constant 0 : index
    %c0_113 = arith.constant 0 : index
    %148 = vector.load %arg14[%c0_112, %c0_113] : memref<2x800xf32, #tpu.memory_space<vmem>>, vector<1x32xf32>
    tpu.vector_store %arg14[%c0_112, %c0_113], %147 {strides = array<i32>} : memref<2x800xf32, #tpu.memory_space<vmem>>, vector<1x32xf32>,
    %c2_114 = arith.constant 2 : index
    %c0_115 = arith.constant 0 : index
    %149 = vector.load %arg13[%c2_114, %c0_115] : memref<392x32xf32, #tpu.memory_space<vmem>>, vector<1x32xf32>
    %c3_116 = arith.constant 3 : index
    %c0_117 = arith.constant 0 : index
    %150 = vector.load %arg13[%c3_116, %c0_117] : memref<392x32xf32, #tpu.memory_space<vmem>>, vector<1x32xf32>
    %151 = arith.maximumf %149, %150 : vector<1x32xf32>
    %c16_118 = arith.constant 16 : index
    %c0_119 = arith.constant 0 : index
    %152 = vector.load %arg13[%c16_118, %c0_119] : memref<392x32xf32, #tpu.memory_space<vmem>>, vector<1x32xf32>
    %c17 = arith.constant 17 : index
    %c0_120 = arith.constant 0 : index
    %153 = vector.load %arg13[%c17, %c0_120] : memref<392x32xf32, #tpu.memory_space<vmem>>, vector<1x32xf32>
    %154 = arith.maximumf %152, %153 : vector<1x32xf32>
    %155 = arith.maximumf %151, %154 : vector<1x32xf32>
    %c0_121 = arith.constant 0 : index
    %c32 = arith.constant 32 : index
    %156 = vector.load %arg14[%c0_121, %c32] : memref<2x800xf32, #tpu.memory_space<vmem>>, vector<1x32xf32>
    tpu.vector_store %arg14[%c0_121, %c32], %155 {strides = array<i32>} : memref<2x800xf32, #tpu.memory_space<vmem>>, vector<1x32xf32>,
    %c4_122 = arith.constant 4 : index
    %c0_123 = arith.constant 0 : index
    %157 = vector.load %arg13[%c4_122, %c0_123] : memref<392x32xf32, #tpu.memory_space<vmem>>, vector<1x32xf32>
    %c5_124 = arith.constant 5 : index
    %c0_125 = arith.constant 0 : index
    %158 = vector.load %arg13[%c5_124, %c0_125] : memref<392x32xf32, #tpu.memory_space<vmem>>, vector<1x32xf32>
    %159 = arith.maximumf %157, %158 : vector<1x32xf32>
    %c18 = arith.constant 18 : index
    %c0_126 = arith.constant 0 : index
    %160 = vector.load %arg13[%c18, %c0_126] : memref<392x32xf32, #tpu.memory_space<vmem>>, vector<1x32xf32>
    %c19 = arith.constant 19 : index
    %c0_127 = arith.constant 0 : index
    %161 = vector.load %arg13[%c19, %c0_127] : memref<392x32xf32, #tpu.memory_space<vmem>>, vector<1x32xf32>
    %162 = arith.maximumf %160, %161 : vector<1x32xf32>
    %163 = arith.maximumf %159, %162 : vector<1x32xf32>
    %c0_128 = arith.constant 0 : index
    %c64 = arith.constant 64 : index
    %164 = vector.load %arg14[%c0_128, %c64] : memref<2x800xf32, #tpu.memory_space<vmem>>, vector<1x32xf32>
    tpu.vector_store %arg14[%c0_128, %c64], %163 {strides = array<i32>} : memref<2x800xf32, #tpu.memory_space<vmem>>, vector<1x32xf32>,
    %c6_129 = arith.constant 6 : index
    %c0_130 = arith.constant 0 : index
    %165 = vector.load %arg13[%c6_129, %c0_130] : memref<392x32xf32, #tpu.memory_space<vmem>>, vector<1x32xf32>
    %c7_131 = arith.constant 7 : index
    %c0_132 = arith.constant 0 : index
    %166 = vector.load %arg13[%c7_131, %c0_132] : memref<392x32xf32, #tpu.memory_space<vmem>>, vector<1x32xf32>
    %167 = arith.maximumf %165, %166 : vector<1x32xf32>
    %c20 = arith.constant 20 : index
    %c0_133 = arith.constant 0 : index
    %168 = vector.load %arg13[%c20, %c0_133] : memref<392x32xf32, #tpu.memory_space<vmem>>, vector<1x32xf32>
    %c21 = arith.constant 21 : index
    %c0_134 = arith.constant 0 : index
    %169 = vector.load %arg13[%c21, %c0_134] : memref<392x32xf32, #tpu.memory_space<vmem>>, vector<1x32xf32>
    %170 = arith.maximumf %168, %169 : vector<1x32xf32>
    %171 = arith.maximumf %167, %170 : vector<1x32xf32>
    %c0_135 = arith.constant 0 : index
    %c96 = arith.constant 96 : index
    %172 = vector.load %arg14[%c0_135, %c96] : memref<2x800xf32, #tpu.memory_space<vmem>>, vector<1x32xf32>
    tpu.vector_store %arg14[%c0_135, %c96], %171 {strides = array<i32>} : memref<2x800xf32, #tpu.memory_space<vmem>>, vector<1x32xf32>,
    %c8_136 = arith.constant 8 : index
    %c0_137 = arith.constant 0 : index
    %173 = vector.load %arg13[%c8_136, %c0_137] : memref<392x32xf32, #tpu.memory_space<vmem>>, vector<1x32xf32>
    %c9 = arith.constant 9 : index
    %c0_138 = arith.constant 0 : index
    %174 = vector.load %arg13[%c9, %c0_138] : memref<392x32xf32, #tpu.memory_space<vmem>>, vector<1x32xf32>
    %175 = arith.maximumf %173, %174 : vector<1x32xf32>
    %c22 = arith.constant 22 : index
    %c0_139 = arith.constant 0 : index
    %176 = vector.load %arg13[%c22, %c0_139] : memref<392x32xf32, #tpu.memory_space<vmem>>, vector<1x32xf32>
    %c23 = arith.constant 23 : index
    %c0_140 = arith.constant 0 : index
    %177 = vector.load %arg13[%c23, %c0_140] : memref<392x32xf32, #tpu.memory_space<vmem>>, vector<1x32xf32>
    %178 = arith.maximumf %176, %177 : vector<1x32xf32>
    %179 = arith.maximumf %175, %178 : vector<1x32xf32>
    %c0_141 = arith.constant 0 : index
    %c128 = arith.constant 128 : index
    %180 = vector.load %arg14[%c0_141, %c128] : memref<2x800xf32, #tpu.memory_space<vmem>>, vector<1x32xf32>
    tpu.vector_store %arg14[%c0_141, %c128], %179 {strides = array<i32>} : memref<2x800xf32, #tpu.memory_space<vmem>>, vector<1x32xf32>,
    %c28_142 = arith.constant 28 : index
    %c0_143 = arith.constant 0 : index
    %181 = vector.load %arg13[%c28_142, %c0_143] : memref<392x32xf32, #tpu.memory_space<vmem>>, vector<1x32xf32>
    %c29_144 = arith.constant 29 : index
    %c0_145 = arith.constant 0 : index
    %182 = vector.load %arg13[%c29_144, %c0_145] : memref<392x32xf32, #tpu.memory_space<vmem>>, vector<1x32xf32>
    %183 = arith.maximumf %181, %182 : vector<1x32xf32>
    %c42 = arith.constant 42 : index
    %c0_146 = arith.constant 0 : index
    %184 = vector.load %arg13[%c42, %c0_146] : memref<392x32xf32, #tpu.memory_space<vmem>>, vector<1x32xf32>
    %c43 = arith.constant 43 : index
    %c0_147 = arith.constant 0 : index
    %185 = vector.load %arg13[%c43, %c0_147] : memref<392x32xf32, #tpu.memory_space<vmem>>, vector<1x32xf32>
    %186 = arith.maximumf %184, %185 : vector<1x32xf32>
    %187 = arith.maximumf %183, %186 : vector<1x32xf32>
    %c0_148 = arith.constant 0 : index
    %c160 = arith.constant 160 : index
    %188 = vector.load %arg14[%c0_148, %c160] : memref<2x800xf32, #tpu.memory_space<vmem>>, vector<1x32xf32>
    tpu.vector_store %arg14[%c0_148, %c160], %187 {strides = array<i32>} : memref<2x800xf32, #tpu.memory_space<vmem>>, vector<1x32xf32>,
    %c30_149 = arith.constant 30 : index
    %c0_150 = arith.constant 0 : index
    %189 = vector.load %arg13[%c30_149, %c0_150] : memref<392x32xf32, #tpu.memory_space<vmem>>, vector<1x32xf32>
    %c31 = arith.constant 31 : index
    %c0_151 = arith.constant 0 : index
    %190 = vector.load %arg13[%c31, %c0_151] : memref<392x32xf32, #tpu.memory_space<vmem>>, vector<1x32xf32>
    %191 = arith.maximumf %189, %190 : vector<1x32xf32>
    %c44 = arith.constant 44 : index
    %c0_152 = arith.constant 0 : index
    %192 = vector.load %arg13[%c44, %c0_152] : memref<392x32xf32, #tpu.memory_space<vmem>>, vector<1x32xf32>
    %c45 = arith.constant 45 : index
    %c0_153 = arith.constant 0 : index
    %193 = vector.load %arg13[%c45, %c0_153] : memref<392x32xf32, #tpu.memory_space<vmem>>, vector<1x32xf32>
    %194 = arith.maximumf %192, %193 : vector<1x32xf32>
    %195 = arith.maximumf %191, %194 : vector<1x32xf32>
    %c0_154 = arith.constant 0 : index
    %c192 = arith.constant 192 : index
    %196 = vector.load %arg14[%c0_154, %c192] : memref<2x800xf32, #tpu.memory_space<vmem>>, vector<1x32xf32>
    tpu.vector_store %arg14[%c0_154, %c192], %195 {strides = array<i32>} : memref<2x800xf32, #tpu.memory_space<vmem>>, vector<1x32xf32>,
    %c32_155 = arith.constant 32 : index
    %c0_156 = arith.constant 0 : index
    %197 = vector.load %arg13[%c32_155, %c0_156] : memref<392x32xf32, #tpu.memory_space<vmem>>, vector<1x32xf32>
    %c33 = arith.constant 33 : index
    %c0_157 = arith.constant 0 : index
    %198 = vector.load %arg13[%c33, %c0_157] : memref<392x32xf32, #tpu.memory_space<vmem>>, vector<1x32xf32>
    %199 = arith.maximumf %197, %198 : vector<1x32xf32>
    %c46 = arith.constant 46 : index
    %c0_158 = arith.constant 0 : index
    %200 = vector.load %arg13[%c46, %c0_158] : memref<392x32xf32, #tpu.memory_space<vmem>>, vector<1x32xf32>
    %c47 = arith.constant 47 : index
    %c0_159 = arith.constant 0 : index
    %201 = vector.load %arg13[%c47, %c0_159] : memref<392x32xf32, #tpu.memory_space<vmem>>, vector<1x32xf32>
    %202 = arith.maximumf %200, %201 : vector<1x32xf32>
    %203 = arith.maximumf %199, %202 : vector<1x32xf32>
    %c0_160 = arith.constant 0 : index
    %c224 = arith.constant 224 : index
    %204 = vector.load %arg14[%c0_160, %c224] : memref<2x800xf32, #tpu.memory_space<vmem>>, vector<1x32xf32>
    tpu.vector_store %arg14[%c0_160, %c224], %203 {strides = array<i32>} : memref<2x800xf32, #tpu.memory_space<vmem>>, vector<1x32xf32>,
    %c34 = arith.constant 34 : index
    %c0_161 = arith.constant 0 : index
    %205 = vector.load %arg13[%c34, %c0_161] : memref<392x32xf32, #tpu.memory_space<vmem>>, vector<1x32xf32>
    %c35 = arith.constant 35 : index
    %c0_162 = arith.constant 0 : index
    %206 = vector.load %arg13[%c35, %c0_162] : memref<392x32xf32, #tpu.memory_space<vmem>>, vector<1x32xf32>
    %207 = arith.maximumf %205, %206 : vector<1x32xf32>
    %c48 = arith.constant 48 : index
    %c0_163 = arith.constant 0 : index
    %208 = vector.load %arg13[%c48, %c0_163] : memref<392x32xf32, #tpu.memory_space<vmem>>, vector<1x32xf32>
    %c49 = arith.constant 49 : index
    %c0_164 = arith.constant 0 : index
    %209 = vector.load %arg13[%c49, %c0_164] : memref<392x32xf32, #tpu.memory_space<vmem>>, vector<1x32xf32>
    %210 = arith.maximumf %208, %209 : vector<1x32xf32>
    %211 = arith.maximumf %207, %210 : vector<1x32xf32>
    %c0_165 = arith.constant 0 : index
    %c256 = arith.constant 256 : index
    %212 = vector.load %arg14[%c0_165, %c256] : memref<2x800xf32, #tpu.memory_space<vmem>>, vector<1x32xf32>
    tpu.vector_store %arg14[%c0_165, %c256], %211 {strides = array<i32>} : memref<2x800xf32, #tpu.memory_space<vmem>>, vector<1x32xf32>,
    %c36 = arith.constant 36 : index
    %c0_166 = arith.constant 0 : index
    %213 = vector.load %arg13[%c36, %c0_166] : memref<392x32xf32, #tpu.memory_space<vmem>>, vector<1x32xf32>
    %c37 = arith.constant 37 : index
    %c0_167 = arith.constant 0 : index
    %214 = vector.load %arg13[%c37, %c0_167] : memref<392x32xf32, #tpu.memory_space<vmem>>, vector<1x32xf32>
    %215 = arith.maximumf %213, %214 : vector<1x32xf32>
    %c50 = arith.constant 50 : index
    %c0_168 = arith.constant 0 : index
    %216 = vector.load %arg13[%c50, %c0_168] : memref<392x32xf32, #tpu.memory_space<vmem>>, vector<1x32xf32>
    %c51 = arith.constant 51 : index
    %c0_169 = arith.constant 0 : index
    %217 = vector.load %arg13[%c51, %c0_169] : memref<392x32xf32, #tpu.memory_space<vmem>>, vector<1x32xf32>
    %218 = arith.maximumf %216, %217 : vector<1x32xf32>
    %219 = arith.maximumf %215, %218 : vector<1x32xf32>
    %c0_170 = arith.constant 0 : index
    %c288 = arith.constant 288 : index
    %220 = vector.load %arg14[%c0_170, %c288] : memref<2x800xf32, #tpu.memory_space<vmem>>, vector<1x32xf32>
    tpu.vector_store %arg14[%c0_170, %c288], %219 {strides = array<i32>} : memref<2x800xf32, #tpu.memory_space<vmem>>, vector<1x32xf32>,
    %c56 = arith.constant 56 : index
    %c0_171 = arith.constant 0 : index
    %221 = vector.load %arg13[%c56, %c0_171] : memref<392x32xf32, #tpu.memory_space<vmem>>, vector<1x32xf32>
    %c57 = arith.constant 57 : index
    %c0_172 = arith.constant 0 : index
    %222 = vector.load %arg13[%c57, %c0_172] : memref<392x32xf32, #tpu.memory_space<vmem>>, vector<1x32xf32>
    %223 = arith.maximumf %221, %222 : vector<1x32xf32>
    %c70 = arith.constant 70 : index
    %c0_173 = arith.constant 0 : index
    %224 = vector.load %arg13[%c70, %c0_173] : memref<392x32xf32, #tpu.memory_space<vmem>>, vector<1x32xf32>
    %c71 = arith.constant 71 : index
    %c0_174 = arith.constant 0 : index
    %225 = vector.load %arg13[%c71, %c0_174] : memref<392x32xf32, #tpu.memory_space<vmem>>, vector<1x32xf32>
    %226 = arith.maximumf %224, %225 : vector<1x32xf32>
    %227 = arith.maximumf %223, %226 : vector<1x32xf32>
    %c0_175 = arith.constant 0 : index
    %c320 = arith.constant 320 : index
    %228 = vector.load %arg14[%c0_175, %c320] : memref<2x800xf32, #tpu.memory_space<vmem>>, vector<1x32xf32>
    tpu.vector_store %arg14[%c0_175, %c320], %227 {strides = array<i32>} : memref<2x800xf32, #tpu.memory_space<vmem>>, vector<1x32xf32>,
    %c58 = arith.constant 58 : index
    %c0_176 = arith.constant 0 : index
    %229 = vector.load %arg13[%c58, %c0_176] : memref<392x32xf32, #tpu.memory_space<vmem>>, vector<1x32xf32>
    %c59 = arith.constant 59 : index
    %c0_177 = arith.constant 0 : index
    %230 = vector.load %arg13[%c59, %c0_177] : memref<392x32xf32, #tpu.memory_space<vmem>>, vector<1x32xf32>
    %231 = arith.maximumf %229, %230 : vector<1x32xf32>
    %c72 = arith.constant 72 : index
    %c0_178 = arith.constant 0 : index
    %232 = vector.load %arg13[%c72, %c0_178] : memref<392x32xf32, #tpu.memory_space<vmem>>, vector<1x32xf32>
    %c73 = arith.constant 73 : index
    %c0_179 = arith.constant 0 : index
    %233 = vector.load %arg13[%c73, %c0_179] : memref<392x32xf32, #tpu.memory_space<vmem>>, vector<1x32xf32>
    %234 = arith.maximumf %232, %233 : vector<1x32xf32>
    %235 = arith.maximumf %231, %234 : vector<1x32xf32>
    %c0_180 = arith.constant 0 : index
    %c352 = arith.constant 352 : index
    %236 = vector.load %arg14[%c0_180, %c352] : memref<2x800xf32, #tpu.memory_space<vmem>>, vector<1x32xf32>
    tpu.vector_store %arg14[%c0_180, %c352], %235 {strides = array<i32>} : memref<2x800xf32, #tpu.memory_space<vmem>>, vector<1x32xf32>,
    %c60 = arith.constant 60 : index
    %c0_181 = arith.constant 0 : index
    %237 = vector.load %arg13[%c60, %c0_181] : memref<392x32xf32, #tpu.memory_space<vmem>>, vector<1x32xf32>
    %c61 = arith.constant 61 : index
    %c0_182 = arith.constant 0 : index
    %238 = vector.load %arg13[%c61, %c0_182] : memref<392x32xf32, #tpu.memory_space<vmem>>, vector<1x32xf32>
    %239 = arith.maximumf %237, %238 : vector<1x32xf32>
    %c74 = arith.constant 74 : index
    %c0_183 = arith.constant 0 : index
    %240 = vector.load %arg13[%c74, %c0_183] : memref<392x32xf32, #tpu.memory_space<vmem>>, vector<1x32xf32>
    %c75 = arith.constant 75 : index
    %c0_184 = arith.constant 0 : index
    %241 = vector.load %arg13[%c75, %c0_184] : memref<392x32xf32, #tpu.memory_space<vmem>>, vector<1x32xf32>
    %242 = arith.maximumf %240, %241 : vector<1x32xf32>
    %243 = arith.maximumf %239, %242 : vector<1x32xf32>
    %c0_185 = arith.constant 0 : index
    %c384 = arith.constant 384 : index
    %244 = vector.load %arg14[%c0_185, %c384] : memref<2x800xf32, #tpu.memory_space<vmem>>, vector<1x32xf32>
    tpu.vector_store %arg14[%c0_185, %c384], %243 {strides = array<i32>} : memref<2x800xf32, #tpu.memory_space<vmem>>, vector<1x32xf32>,
    %c62 = arith.constant 62 : index
    %c0_186 = arith.constant 0 : index
    %245 = vector.load %arg13[%c62, %c0_186] : memref<392x32xf32, #tpu.memory_space<vmem>>, vector<1x32xf32>
    %c63 = arith.constant 63 : index
    %c0_187 = arith.constant 0 : index
    %246 = vector.load %arg13[%c63, %c0_187] : memref<392x32xf32, #tpu.memory_space<vmem>>, vector<1x32xf32>
    %247 = arith.maximumf %245, %246 : vector<1x32xf32>
    %c76 = arith.constant 76 : index
    %c0_188 = arith.constant 0 : index
    %248 = vector.load %arg13[%c76, %c0_188] : memref<392x32xf32, #tpu.memory_space<vmem>>, vector<1x32xf32>
    %c77 = arith.constant 77 : index
    %c0_189 = arith.constant 0 : index
    %249 = vector.load %arg13[%c77, %c0_189] : memref<392x32xf32, #tpu.memory_space<vmem>>, vector<1x32xf32>
    %250 = arith.maximumf %248, %249 : vector<1x32xf32>
    %251 = arith.maximumf %247, %250 : vector<1x32xf32>
    %c0_190 = arith.constant 0 : index
    %c416 = arith.constant 416 : index
    %252 = vector.load %arg14[%c0_190, %c416] : memref<2x800xf32, #tpu.memory_space<vmem>>, vector<1x32xf32>
    tpu.vector_store %arg14[%c0_190, %c416], %251 {strides = array<i32>} : memref<2x800xf32, #tpu.memory_space<vmem>>, vector<1x32xf32>,
    %c64_191 = arith.constant 64 : index
    %c0_192 = arith.constant 0 : index
    %253 = vector.load %arg13[%c64_191, %c0_192] : memref<392x32xf32, #tpu.memory_space<vmem>>, vector<1x32xf32>
    %c65 = arith.constant 65 : index
    %c0_193 = arith.constant 0 : index
    %254 = vector.load %arg13[%c65, %c0_193] : memref<392x32xf32, #tpu.memory_space<vmem>>, vector<1x32xf32>
    %255 = arith.maximumf %253, %254 : vector<1x32xf32>
    %c78 = arith.constant 78 : index
    %c0_194 = arith.constant 0 : index
    %256 = vector.load %arg13[%c78, %c0_194] : memref<392x32xf32, #tpu.memory_space<vmem>>, vector<1x32xf32>
    %c79 = arith.constant 79 : index
    %c0_195 = arith.constant 0 : index
    %257 = vector.load %arg13[%c79, %c0_195] : memref<392x32xf32, #tpu.memory_space<vmem>>, vector<1x32xf32>
    %258 = arith.maximumf %256, %257 : vector<1x32xf32>
    %259 = arith.maximumf %255, %258 : vector<1x32xf32>
    %c0_196 = arith.constant 0 : index
    %c448 = arith.constant 448 : index
    %260 = vector.load %arg14[%c0_196, %c448] : memref<2x800xf32, #tpu.memory_space<vmem>>, vector<1x32xf32>
    tpu.vector_store %arg14[%c0_196, %c448], %259 {strides = array<i32>} : memref<2x800xf32, #tpu.memory_space<vmem>>, vector<1x32xf32>,
    %c84 = arith.constant 84 : index
    %c0_197 = arith.constant 0 : index
    %261 = vector.load %arg13[%c84, %c0_197] : memref<392x32xf32, #tpu.memory_space<vmem>>, vector<1x32xf32>
    %c85 = arith.constant 85 : index
    %c0_198 = arith.constant 0 : index
    %262 = vector.load %arg13[%c85, %c0_198] : memref<392x32xf32, #tpu.memory_space<vmem>>, vector<1x32xf32>
    %263 = arith.maximumf %261, %262 : vector<1x32xf32>
    %c98 = arith.constant 98 : index
    %c0_199 = arith.constant 0 : index
    %264 = vector.load %arg13[%c98, %c0_199] : memref<392x32xf32, #tpu.memory_space<vmem>>, vector<1x32xf32>
    %c99 = arith.constant 99 : index
    %c0_200 = arith.constant 0 : index
    %265 = vector.load %arg13[%c99, %c0_200] : memref<392x32xf32, #tpu.memory_space<vmem>>, vector<1x32xf32>
    %266 = arith.maximumf %264, %265 : vector<1x32xf32>
    %267 = arith.maximumf %263, %266 : vector<1x32xf32>
    %c0_201 = arith.constant 0 : index
    %c480 = arith.constant 480 : index
    %268 = vector.load %arg14[%c0_201, %c480] : memref<2x800xf32, #tpu.memory_space<vmem>>, vector<1x32xf32>
    tpu.vector_store %arg14[%c0_201, %c480], %267 {strides = array<i32>} : memref<2x800xf32, #tpu.memory_space<vmem>>, vector<1x32xf32>,
    %c86 = arith.constant 86 : index
    %c0_202 = arith.constant 0 : index
    %269 = vector.load %arg13[%c86, %c0_202] : memref<392x32xf32, #tpu.memory_space<vmem>>, vector<1x32xf32>
    %c87 = arith.constant 87 : index
    %c0_203 = arith.constant 0 : index
    %270 = vector.load %arg13[%c87, %c0_203] : memref<392x32xf32, #tpu.memory_space<vmem>>, vector<1x32xf32>
    %271 = arith.maximumf %269, %270 : vector<1x32xf32>
    %c100 = arith.constant 100 : index
    %c0_204 = arith.constant 0 : index
    %272 = vector.load %arg13[%c100, %c0_204] : memref<392x32xf32, #tpu.memory_space<vmem>>, vector<1x32xf32>
    %c101 = arith.constant 101 : index
    %c0_205 = arith.constant 0 : index
    %273 = vector.load %arg13[%c101, %c0_205] : memref<392x32xf32, #tpu.memory_space<vmem>>, vector<1x32xf32>
    %274 = arith.maximumf %272, %273 : vector<1x32xf32>
    %275 = arith.maximumf %271, %274 : vector<1x32xf32>
    %c0_206 = arith.constant 0 : index
    %c512 = arith.constant 512 : index
    %276 = vector.load %arg14[%c0_206, %c512] : memref<2x800xf32, #tpu.memory_space<vmem>>, vector<1x32xf32>
    tpu.vector_store %arg14[%c0_206, %c512], %275 {strides = array<i32>} : memref<2x800xf32, #tpu.memory_space<vmem>>, vector<1x32xf32>,
    %c88 = arith.constant 88 : index
    %c0_207 = arith.constant 0 : index
    %277 = vector.load %arg13[%c88, %c0_207] : memref<392x32xf32, #tpu.memory_space<vmem>>, vector<1x32xf32>
    %c89 = arith.constant 89 : index
    %c0_208 = arith.constant 0 : index
    %278 = vector.load %arg13[%c89, %c0_208] : memref<392x32xf32, #tpu.memory_space<vmem>>, vector<1x32xf32>
    %279 = arith.maximumf %277, %278 : vector<1x32xf32>
    %c102 = arith.constant 102 : index
    %c0_209 = arith.constant 0 : index
    %280 = vector.load %arg13[%c102, %c0_209] : memref<392x32xf32, #tpu.memory_space<vmem>>, vector<1x32xf32>
    %c103 = arith.constant 103 : index
    %c0_210 = arith.constant 0 : index
    %281 = vector.load %arg13[%c103, %c0_210] : memref<392x32xf32, #tpu.memory_space<vmem>>, vector<1x32xf32>
    %282 = arith.maximumf %280, %281 : vector<1x32xf32>
    %283 = arith.maximumf %279, %282 : vector<1x32xf32>
    %c0_211 = arith.constant 0 : index
    %c544 = arith.constant 544 : index
    %284 = vector.load %arg14[%c0_211, %c544] : memref<2x800xf32, #tpu.memory_space<vmem>>, vector<1x32xf32>
    tpu.vector_store %arg14[%c0_211, %c544], %283 {strides = array<i32>} : memref<2x800xf32, #tpu.memory_space<vmem>>, vector<1x32xf32>,
    %c90 = arith.constant 90 : index
    %c0_212 = arith.constant 0 : index
    %285 = vector.load %arg13[%c90, %c0_212] : memref<392x32xf32, #tpu.memory_space<vmem>>, vector<1x32xf32>
    %c91 = arith.constant 91 : index
    %c0_213 = arith.constant 0 : index
    %286 = vector.load %arg13[%c91, %c0_213] : memref<392x32xf32, #tpu.memory_space<vmem>>, vector<1x32xf32>
    %287 = arith.maximumf %285, %286 : vector<1x32xf32>
    %c104 = arith.constant 104 : index
    %c0_214 = arith.constant 0 : index
    %288 = vector.load %arg13[%c104, %c0_214] : memref<392x32xf32, #tpu.memory_space<vmem>>, vector<1x32xf32>
    %c105 = arith.constant 105 : index
    %c0_215 = arith.constant 0 : index
    %289 = vector.load %arg13[%c105, %c0_215] : memref<392x32xf32, #tpu.memory_space<vmem>>, vector<1x32xf32>
    %290 = arith.maximumf %288, %289 : vector<1x32xf32>
    %291 = arith.maximumf %287, %290 : vector<1x32xf32>
    %c0_216 = arith.constant 0 : index
    %c576 = arith.constant 576 : index
    %292 = vector.load %arg14[%c0_216, %c576] : memref<2x800xf32, #tpu.memory_space<vmem>>, vector<1x32xf32>
    tpu.vector_store %arg14[%c0_216, %c576], %291 {strides = array<i32>} : memref<2x800xf32, #tpu.memory_space<vmem>>, vector<1x32xf32>,
    %c92 = arith.constant 92 : index
    %c0_217 = arith.constant 0 : index
    %293 = vector.load %arg13[%c92, %c0_217] : memref<392x32xf32, #tpu.memory_space<vmem>>, vector<1x32xf32>
    %c93 = arith.constant 93 : index
    %c0_218 = arith.constant 0 : index
    %294 = vector.load %arg13[%c93, %c0_218] : memref<392x32xf32, #tpu.memory_space<vmem>>, vector<1x32xf32>
    %295 = arith.maximumf %293, %294 : vector<1x32xf32>
    %c106 = arith.constant 106 : index
    %c0_219 = arith.constant 0 : index
    %296 = vector.load %arg13[%c106, %c0_219] : memref<392x32xf32, #tpu.memory_space<vmem>>, vector<1x32xf32>
    %c107 = arith.constant 107 : index
    %c0_220 = arith.constant 0 : index
    %297 = vector.load %arg13[%c107, %c0_220] : memref<392x32xf32, #tpu.memory_space<vmem>>, vector<1x32xf32>
    %298 = arith.maximumf %296, %297 : vector<1x32xf32>
    %299 = arith.maximumf %295, %298 : vector<1x32xf32>
    %c0_221 = arith.constant 0 : index
    %c608 = arith.constant 608 : index
    %300 = vector.load %arg14[%c0_221, %c608] : memref<2x800xf32, #tpu.memory_space<vmem>>, vector<1x32xf32>
    tpu.vector_store %arg14[%c0_221, %c608], %299 {strides = array<i32>} : memref<2x800xf32, #tpu.memory_space<vmem>>, vector<1x32xf32>,
    %c112 = arith.constant 112 : index
    %c0_222 = arith.constant 0 : index
    %301 = vector.load %arg13[%c112, %c0_222] : memref<392x32xf32, #tpu.memory_space<vmem>>, vector<1x32xf32>
    %c113 = arith.constant 113 : index
    %c0_223 = arith.constant 0 : index
    %302 = vector.load %arg13[%c113, %c0_223] : memref<392x32xf32, #tpu.memory_space<vmem>>, vector<1x32xf32>
    %303 = arith.maximumf %301, %302 : vector<1x32xf32>
    %c126 = arith.constant 126 : index
    %c0_224 = arith.constant 0 : index
    %304 = vector.load %arg13[%c126, %c0_224] : memref<392x32xf32, #tpu.memory_space<vmem>>, vector<1x32xf32>
    %c127 = arith.constant 127 : index
    %c0_225 = arith.constant 0 : index
    %305 = vector.load %arg13[%c127, %c0_225] : memref<392x32xf32, #tpu.memory_space<vmem>>, vector<1x32xf32>
    %306 = arith.maximumf %304, %305 : vector<1x32xf32>
    %307 = arith.maximumf %303, %306 : vector<1x32xf32>
    %c0_226 = arith.constant 0 : index
    %c640 = arith.constant 640 : index
    %308 = vector.load %arg14[%c0_226, %c640] : memref<2x800xf32, #tpu.memory_space<vmem>>, vector<1x32xf32>
    tpu.vector_store %arg14[%c0_226, %c640], %307 {strides = array<i32>} : memref<2x800xf32, #tpu.memory_space<vmem>>, vector<1x32xf32>,
    %c114 = arith.constant 114 : index
    %c0_227 = arith.constant 0 : index
    %309 = vector.load %arg13[%c114, %c0_227] : memref<392x32xf32, #tpu.memory_space<vmem>>, vector<1x32xf32>
    %c115 = arith.constant 115 : index
    %c0_228 = arith.constant 0 : index
    %310 = vector.load %arg13[%c115, %c0_228] : memref<392x32xf32, #tpu.memory_space<vmem>>, vector<1x32xf32>
    %311 = arith.maximumf %309, %310 : vector<1x32xf32>
    %c128_229 = arith.constant 128 : index
    %c0_230 = arith.constant 0 : index
    %312 = vector.load %arg13[%c128_229, %c0_230] : memref<392x32xf32, #tpu.memory_space<vmem>>, vector<1x32xf32>
    %c129 = arith.constant 129 : index
    %c0_231 = arith.constant 0 : index
    %313 = vector.load %arg13[%c129, %c0_231] : memref<392x32xf32, #tpu.memory_space<vmem>>, vector<1x32xf32>
    %314 = arith.maximumf %312, %313 : vector<1x32xf32>
    %315 = arith.maximumf %311, %314 : vector<1x32xf32>
    %c0_232 = arith.constant 0 : index
    %c672 = arith.constant 672 : index
    %316 = vector.load %arg14[%c0_232, %c672] : memref<2x800xf32, #tpu.memory_space<vmem>>, vector<1x32xf32>
    tpu.vector_store %arg14[%c0_232, %c672], %315 {strides = array<i32>} : memref<2x800xf32, #tpu.memory_space<vmem>>, vector<1x32xf32>,
    %c116 = arith.constant 116 : index
    %c0_233 = arith.constant 0 : index
    %317 = vector.load %arg13[%c116, %c0_233] : memref<392x32xf32, #tpu.memory_space<vmem>>, vector<1x32xf32>
    %c117 = arith.constant 117 : index
    %c0_234 = arith.constant 0 : index
    %318 = vector.load %arg13[%c117, %c0_234] : memref<392x32xf32, #tpu.memory_space<vmem>>, vector<1x32xf32>
    %319 = arith.maximumf %317, %318 : vector<1x32xf32>
    %c130 = arith.constant 130 : index
    %c0_235 = arith.constant 0 : index
    %320 = vector.load %arg13[%c130, %c0_235] : memref<392x32xf32, #tpu.memory_space<vmem>>, vector<1x32xf32>
    %c131 = arith.constant 131 : index
    %c0_236 = arith.constant 0 : index
    %321 = vector.load %arg13[%c131, %c0_236] : memref<392x32xf32, #tpu.memory_space<vmem>>, vector<1x32xf32>
    %322 = arith.maximumf %320, %321 : vector<1x32xf32>
    %323 = arith.maximumf %319, %322 : vector<1x32xf32>
    %c0_237 = arith.constant 0 : index
    %c704 = arith.constant 704 : index
    %324 = vector.load %arg14[%c0_237, %c704] : memref<2x800xf32, #tpu.memory_space<vmem>>, vector<1x32xf32>
    tpu.vector_store %arg14[%c0_237, %c704], %323 {strides = array<i32>} : memref<2x800xf32, #tpu.memory_space<vmem>>, vector<1x32xf32>,
    %c118 = arith.constant 118 : index
    %c0_238 = arith.constant 0 : index
    %325 = vector.load %arg13[%c118, %c0_238] : memref<392x32xf32, #tpu.memory_space<vmem>>, vector<1x32xf32>
    %c119 = arith.constant 119 : index
    %c0_239 = arith.constant 0 : index
    %326 = vector.load %arg13[%c119, %c0_239] : memref<392x32xf32, #tpu.memory_space<vmem>>, vector<1x32xf32>
    %327 = arith.maximumf %325, %326 : vector<1x32xf32>
    %c132 = arith.constant 132 : index
    %c0_240 = arith.constant 0 : index
    %328 = vector.load %arg13[%c132, %c0_240] : memref<392x32xf32, #tpu.memory_space<vmem>>, vector<1x32xf32>
    %c133 = arith.constant 133 : index
    %c0_241 = arith.constant 0 : index
    %329 = vector.load %arg13[%c133, %c0_241] : memref<392x32xf32, #tpu.memory_space<vmem>>, vector<1x32xf32>
    %330 = arith.maximumf %328, %329 : vector<1x32xf32>
    %331 = arith.maximumf %327, %330 : vector<1x32xf32>
    %c0_242 = arith.constant 0 : index
    %c736 = arith.constant 736 : index
    %332 = vector.load %arg14[%c0_242, %c736] : memref<2x800xf32, #tpu.memory_space<vmem>>, vector<1x32xf32>
    tpu.vector_store %arg14[%c0_242, %c736], %331 {strides = array<i32>} : memref<2x800xf32, #tpu.memory_space<vmem>>, vector<1x32xf32>,
    %c120 = arith.constant 120 : index
    %c0_243 = arith.constant 0 : index
    %333 = vector.load %arg13[%c120, %c0_243] : memref<392x32xf32, #tpu.memory_space<vmem>>, vector<1x32xf32>
    %c121 = arith.constant 121 : index
    %c0_244 = arith.constant 0 : index
    %334 = vector.load %arg13[%c121, %c0_244] : memref<392x32xf32, #tpu.memory_space<vmem>>, vector<1x32xf32>
    %335 = arith.maximumf %333, %334 : vector<1x32xf32>
    %c134 = arith.constant 134 : index
    %c0_245 = arith.constant 0 : index
    %336 = vector.load %arg13[%c134, %c0_245] : memref<392x32xf32, #tpu.memory_space<vmem>>, vector<1x32xf32>
    %c135 = arith.constant 135 : index
    %c0_246 = arith.constant 0 : index
    %337 = vector.load %arg13[%c135, %c0_246] : memref<392x32xf32, #tpu.memory_space<vmem>>, vector<1x32xf32>
    %338 = arith.maximumf %336, %337 : vector<1x32xf32>
    %339 = arith.maximumf %335, %338 : vector<1x32xf32>
    %c0_247 = arith.constant 0 : index
    %c768 = arith.constant 768 : index
    %340 = vector.load %arg14[%c0_247, %c768] : memref<2x800xf32, #tpu.memory_space<vmem>>, vector<1x32xf32>
    tpu.vector_store %arg14[%c0_247, %c768], %339 {strides = array<i32>} : memref<2x800xf32, #tpu.memory_space<vmem>>, vector<1x32xf32>,
    %c196 = arith.constant 196 : index
    %c0_248 = arith.constant 0 : index
    %341 = vector.load %arg13[%c196, %c0_248] : memref<392x32xf32, #tpu.memory_space<vmem>>, vector<1x32xf32>
    %c197 = arith.constant 197 : index
    %c0_249 = arith.constant 0 : index
    %342 = vector.load %arg13[%c197, %c0_249] : memref<392x32xf32, #tpu.memory_space<vmem>>, vector<1x32xf32>
    %343 = arith.maximumf %341, %342 : vector<1x32xf32>
    %c210 = arith.constant 210 : index
    %c0_250 = arith.constant 0 : index
    %344 = vector.load %arg13[%c210, %c0_250] : memref<392x32xf32, #tpu.memory_space<vmem>>, vector<1x32xf32>
    %c211 = arith.constant 211 : index
    %c0_251 = arith.constant 0 : index
    %345 = vector.load %arg13[%c211, %c0_251] : memref<392x32xf32, #tpu.memory_space<vmem>>, vector<1x32xf32>
    %346 = arith.maximumf %344, %345 : vector<1x32xf32>
    %347 = arith.maximumf %343, %346 : vector<1x32xf32>
    %c1_252 = arith.constant 1 : index
    %c0_253 = arith.constant 0 : index
    %348 = vector.load %arg14[%c1_252, %c0_253] : memref<2x800xf32, #tpu.memory_space<vmem>>, vector<1x32xf32>
    tpu.vector_store %arg14[%c1_252, %c0_253], %347 {strides = array<i32>} : memref<2x800xf32, #tpu.memory_space<vmem>>, vector<1x32xf32>,
    %c198 = arith.constant 198 : index
    %c0_254 = arith.constant 0 : index
    %349 = vector.load %arg13[%c198, %c0_254] : memref<392x32xf32, #tpu.memory_space<vmem>>, vector<1x32xf32>
    %c199 = arith.constant 199 : index
    %c0_255 = arith.constant 0 : index
    %350 = vector.load %arg13[%c199, %c0_255] : memref<392x32xf32, #tpu.memory_space<vmem>>, vector<1x32xf32>
    %351 = arith.maximumf %349, %350 : vector<1x32xf32>
    %c212 = arith.constant 212 : index
    %c0_256 = arith.constant 0 : index
    %352 = vector.load %arg13[%c212, %c0_256] : memref<392x32xf32, #tpu.memory_space<vmem>>, vector<1x32xf32>
    %c213 = arith.constant 213 : index
    %c0_257 = arith.constant 0 : index
    %353 = vector.load %arg13[%c213, %c0_257] : memref<392x32xf32, #tpu.memory_space<vmem>>, vector<1x32xf32>
    %354 = arith.maximumf %352, %353 : vector<1x32xf32>
    %355 = arith.maximumf %351, %354 : vector<1x32xf32>
    %c1_258 = arith.constant 1 : index
    %c32_259 = arith.constant 32 : index
    %356 = vector.load %arg14[%c1_258, %c32_259] : memref<2x800xf32, #tpu.memory_space<vmem>>, vector<1x32xf32>
    tpu.vector_store %arg14[%c1_258, %c32_259], %355 {strides = array<i32>} : memref<2x800xf32, #tpu.memory_space<vmem>>, vector<1x32xf32>,
    %c200 = arith.constant 200 : index
    %c0_260 = arith.constant 0 : index
    %357 = vector.load %arg13[%c200, %c0_260] : memref<392x32xf32, #tpu.memory_space<vmem>>, vector<1x32xf32>
    %c201 = arith.constant 201 : index
    %c0_261 = arith.constant 0 : index
    %358 = vector.load %arg13[%c201, %c0_261] : memref<392x32xf32, #tpu.memory_space<vmem>>, vector<1x32xf32>
    %359 = arith.maximumf %357, %358 : vector<1x32xf32>
    %c214 = arith.constant 214 : index
    %c0_262 = arith.constant 0 : index
    %360 = vector.load %arg13[%c214, %c0_262] : memref<392x32xf32, #tpu.memory_space<vmem>>, vector<1x32xf32>
    %c215 = arith.constant 215 : index
    %c0_263 = arith.constant 0 : index
    %361 = vector.load %arg13[%c215, %c0_263] : memref<392x32xf32, #tpu.memory_space<vmem>>, vector<1x32xf32>
    %362 = arith.maximumf %360, %361 : vector<1x32xf32>
    %363 = arith.maximumf %359, %362 : vector<1x32xf32>
    %c1_264 = arith.constant 1 : index
    %c64_265 = arith.constant 64 : index
    %364 = vector.load %arg14[%c1_264, %c64_265] : memref<2x800xf32, #tpu.memory_space<vmem>>, vector<1x32xf32>
    tpu.vector_store %arg14[%c1_264, %c64_265], %363 {strides = array<i32>} : memref<2x800xf32, #tpu.memory_space<vmem>>, vector<1x32xf32>,
    %c202 = arith.constant 202 : index
    %c0_266 = arith.constant 0 : index
    %365 = vector.load %arg13[%c202, %c0_266] : memref<392x32xf32, #tpu.memory_space<vmem>>, vector<1x32xf32>
    %c203 = arith.constant 203 : index
    %c0_267 = arith.constant 0 : index
    %366 = vector.load %arg13[%c203, %c0_267] : memref<392x32xf32, #tpu.memory_space<vmem>>, vector<1x32xf32>
    %367 = arith.maximumf %365, %366 : vector<1x32xf32>
    %c216 = arith.constant 216 : index
    %c0_268 = arith.constant 0 : index
    %368 = vector.load %arg13[%c216, %c0_268] : memref<392x32xf32, #tpu.memory_space<vmem>>, vector<1x32xf32>
    %c217 = arith.constant 217 : index
    %c0_269 = arith.constant 0 : index
    %369 = vector.load %arg13[%c217, %c0_269] : memref<392x32xf32, #tpu.memory_space<vmem>>, vector<1x32xf32>
    %370 = arith.maximumf %368, %369 : vector<1x32xf32>
    %371 = arith.maximumf %367, %370 : vector<1x32xf32>
    %c1_270 = arith.constant 1 : index
    %c96_271 = arith.constant 96 : index
    %372 = vector.load %arg14[%c1_270, %c96_271] : memref<2x800xf32, #tpu.memory_space<vmem>>, vector<1x32xf32>
    tpu.vector_store %arg14[%c1_270, %c96_271], %371 {strides = array<i32>} : memref<2x800xf32, #tpu.memory_space<vmem>>, vector<1x32xf32>,
    %c204 = arith.constant 204 : index
    %c0_272 = arith.constant 0 : index
    %373 = vector.load %arg13[%c204, %c0_272] : memref<392x32xf32, #tpu.memory_space<vmem>>, vector<1x32xf32>
    %c205 = arith.constant 205 : index
    %c0_273 = arith.constant 0 : index
    %374 = vector.load %arg13[%c205, %c0_273] : memref<392x32xf32, #tpu.memory_space<vmem>>, vector<1x32xf32>
    %375 = arith.maximumf %373, %374 : vector<1x32xf32>
    %c218 = arith.constant 218 : index
    %c0_274 = arith.constant 0 : index
    %376 = vector.load %arg13[%c218, %c0_274] : memref<392x32xf32, #tpu.memory_space<vmem>>, vector<1x32xf32>
    %c219 = arith.constant 219 : index
    %c0_275 = arith.constant 0 : index
    %377 = vector.load %arg13[%c219, %c0_275] : memref<392x32xf32, #tpu.memory_space<vmem>>, vector<1x32xf32>
    %378 = arith.maximumf %376, %377 : vector<1x32xf32>
    %379 = arith.maximumf %375, %378 : vector<1x32xf32>
    %c1_276 = arith.constant 1 : index
    %c128_277 = arith.constant 128 : index
    %380 = vector.load %arg14[%c1_276, %c128_277] : memref<2x800xf32, #tpu.memory_space<vmem>>, vector<1x32xf32>
    tpu.vector_store %arg14[%c1_276, %c128_277], %379 {strides = array<i32>} : memref<2x800xf32, #tpu.memory_space<vmem>>, vector<1x32xf32>,
    %c224_278 = arith.constant 224 : index
    %c0_279 = arith.constant 0 : index
    %381 = vector.load %arg13[%c224_278, %c0_279] : memref<392x32xf32, #tpu.memory_space<vmem>>, vector<1x32xf32>
    %c225 = arith.constant 225 : index
    %c0_280 = arith.constant 0 : index
    %382 = vector.load %arg13[%c225, %c0_280] : memref<392x32xf32, #tpu.memory_space<vmem>>, vector<1x32xf32>
    %383 = arith.maximumf %381, %382 : vector<1x32xf32>
    %c238 = arith.constant 238 : index
    %c0_281 = arith.constant 0 : index
    %384 = vector.load %arg13[%c238, %c0_281] : memref<392x32xf32, #tpu.memory_space<vmem>>, vector<1x32xf32>
    %c239 = arith.constant 239 : index
    %c0_282 = arith.constant 0 : index
    %385 = vector.load %arg13[%c239, %c0_282] : memref<392x32xf32, #tpu.memory_space<vmem>>, vector<1x32xf32>
    %386 = arith.maximumf %384, %385 : vector<1x32xf32>
    %387 = arith.maximumf %383, %386 : vector<1x32xf32>
    %c1_283 = arith.constant 1 : index
    %c160_284 = arith.constant 160 : index
    %388 = vector.load %arg14[%c1_283, %c160_284] : memref<2x800xf32, #tpu.memory_space<vmem>>, vector<1x32xf32>
    tpu.vector_store %arg14[%c1_283, %c160_284], %387 {strides = array<i32>} : memref<2x800xf32, #tpu.memory_space<vmem>>, vector<1x32xf32>,
    %c226 = arith.constant 226 : index
    %c0_285 = arith.constant 0 : index
    %389 = vector.load %arg13[%c226, %c0_285] : memref<392x32xf32, #tpu.memory_space<vmem>>, vector<1x32xf32>
    %c227 = arith.constant 227 : index
    %c0_286 = arith.constant 0 : index
    %390 = vector.load %arg13[%c227, %c0_286] : memref<392x32xf32, #tpu.memory_space<vmem>>, vector<1x32xf32>
    %391 = arith.maximumf %389, %390 : vector<1x32xf32>
    %c240 = arith.constant 240 : index
    %c0_287 = arith.constant 0 : index
    %392 = vector.load %arg13[%c240, %c0_287] : memref<392x32xf32, #tpu.memory_space<vmem>>, vector<1x32xf32>
    %c241 = arith.constant 241 : index
    %c0_288 = arith.constant 0 : index
    %393 = vector.load %arg13[%c241, %c0_288] : memref<392x32xf32, #tpu.memory_space<vmem>>, vector<1x32xf32>
    %394 = arith.maximumf %392, %393 : vector<1x32xf32>
    %395 = arith.maximumf %391, %394 : vector<1x32xf32>
    %c1_289 = arith.constant 1 : index
    %c192_290 = arith.constant 192 : index
    %396 = vector.load %arg14[%c1_289, %c192_290] : memref<2x800xf32, #tpu.memory_space<vmem>>, vector<1x32xf32>
    tpu.vector_store %arg14[%c1_289, %c192_290], %395 {strides = array<i32>} : memref<2x800xf32, #tpu.memory_space<vmem>>, vector<1x32xf32>,
    %c228 = arith.constant 228 : index
    %c0_291 = arith.constant 0 : index
    %397 = vector.load %arg13[%c228, %c0_291] : memref<392x32xf32, #tpu.memory_space<vmem>>, vector<1x32xf32>
    %c229 = arith.constant 229 : index
    %c0_292 = arith.constant 0 : index
    %398 = vector.load %arg13[%c229, %c0_292] : memref<392x32xf32, #tpu.memory_space<vmem>>, vector<1x32xf32>
    %399 = arith.maximumf %397, %398 : vector<1x32xf32>
    %c242 = arith.constant 242 : index
    %c0_293 = arith.constant 0 : index
    %400 = vector.load %arg13[%c242, %c0_293] : memref<392x32xf32, #tpu.memory_space<vmem>>, vector<1x32xf32>
    %c243 = arith.constant 243 : index
    %c0_294 = arith.constant 0 : index
    %401 = vector.load %arg13[%c243, %c0_294] : memref<392x32xf32, #tpu.memory_space<vmem>>, vector<1x32xf32>
    %402 = arith.maximumf %400, %401 : vector<1x32xf32>
    %403 = arith.maximumf %399, %402 : vector<1x32xf32>
    %c1_295 = arith.constant 1 : index
    %c224_296 = arith.constant 224 : index
    %404 = vector.load %arg14[%c1_295, %c224_296] : memref<2x800xf32, #tpu.memory_space<vmem>>, vector<1x32xf32>
    tpu.vector_store %arg14[%c1_295, %c224_296], %403 {strides = array<i32>} : memref<2x800xf32, #tpu.memory_space<vmem>>, vector<1x32xf32>,
    %c230 = arith.constant 230 : index
    %c0_297 = arith.constant 0 : index
    %405 = vector.load %arg13[%c230, %c0_297] : memref<392x32xf32, #tpu.memory_space<vmem>>, vector<1x32xf32>
    %c231 = arith.constant 231 : index
    %c0_298 = arith.constant 0 : index
    %406 = vector.load %arg13[%c231, %c0_298] : memref<392x32xf32, #tpu.memory_space<vmem>>, vector<1x32xf32>
    %407 = arith.maximumf %405, %406 : vector<1x32xf32>
    %c244 = arith.constant 244 : index
    %c0_299 = arith.constant 0 : index
    %408 = vector.load %arg13[%c244, %c0_299] : memref<392x32xf32, #tpu.memory_space<vmem>>, vector<1x32xf32>
    %c245 = arith.constant 245 : index
    %c0_300 = arith.constant 0 : index
    %409 = vector.load %arg13[%c245, %c0_300] : memref<392x32xf32, #tpu.memory_space<vmem>>, vector<1x32xf32>
    %410 = arith.maximumf %408, %409 : vector<1x32xf32>
    %411 = arith.maximumf %407, %410 : vector<1x32xf32>
    %c1_301 = arith.constant 1 : index
    %c256_302 = arith.constant 256 : index
    %412 = vector.load %arg14[%c1_301, %c256_302] : memref<2x800xf32, #tpu.memory_space<vmem>>, vector<1x32xf32>
    tpu.vector_store %arg14[%c1_301, %c256_302], %411 {strides = array<i32>} : memref<2x800xf32, #tpu.memory_space<vmem>>, vector<1x32xf32>,
    %c232 = arith.constant 232 : index
    %c0_303 = arith.constant 0 : index
    %413 = vector.load %arg13[%c232, %c0_303] : memref<392x32xf32, #tpu.memory_space<vmem>>, vector<1x32xf32>
    %c233 = arith.constant 233 : index
    %c0_304 = arith.constant 0 : index
    %414 = vector.load %arg13[%c233, %c0_304] : memref<392x32xf32, #tpu.memory_space<vmem>>, vector<1x32xf32>
    %415 = arith.maximumf %413, %414 : vector<1x32xf32>
    %c246 = arith.constant 246 : index
    %c0_305 = arith.constant 0 : index
    %416 = vector.load %arg13[%c246, %c0_305] : memref<392x32xf32, #tpu.memory_space<vmem>>, vector<1x32xf32>
    %c247 = arith.constant 247 : index
    %c0_306 = arith.constant 0 : index
    %417 = vector.load %arg13[%c247, %c0_306] : memref<392x32xf32, #tpu.memory_space<vmem>>, vector<1x32xf32>
    %418 = arith.maximumf %416, %417 : vector<1x32xf32>
    %419 = arith.maximumf %415, %418 : vector<1x32xf32>
    %c1_307 = arith.constant 1 : index
    %c288_308 = arith.constant 288 : index
    %420 = vector.load %arg14[%c1_307, %c288_308] : memref<2x800xf32, #tpu.memory_space<vmem>>, vector<1x32xf32>
    tpu.vector_store %arg14[%c1_307, %c288_308], %419 {strides = array<i32>} : memref<2x800xf32, #tpu.memory_space<vmem>>, vector<1x32xf32>,
    %c252 = arith.constant 252 : index
    %c0_309 = arith.constant 0 : index
    %421 = vector.load %arg13[%c252, %c0_309] : memref<392x32xf32, #tpu.memory_space<vmem>>, vector<1x32xf32>
    %c253 = arith.constant 253 : index
    %c0_310 = arith.constant 0 : index
    %422 = vector.load %arg13[%c253, %c0_310] : memref<392x32xf32, #tpu.memory_space<vmem>>, vector<1x32xf32>
    %423 = arith.maximumf %421, %422 : vector<1x32xf32>
    %c266 = arith.constant 266 : index
    %c0_311 = arith.constant 0 : index
    %424 = vector.load %arg13[%c266, %c0_311] : memref<392x32xf32, #tpu.memory_space<vmem>>, vector<1x32xf32>
    %c267 = arith.constant 267 : index
    %c0_312 = arith.constant 0 : index
    %425 = vector.load %arg13[%c267, %c0_312] : memref<392x32xf32, #tpu.memory_space<vmem>>, vector<1x32xf32>
    %426 = arith.maximumf %424, %425 : vector<1x32xf32>
    %427 = arith.maximumf %423, %426 : vector<1x32xf32>
    %c1_313 = arith.constant 1 : index
    %c320_314 = arith.constant 320 : index
    %428 = vector.load %arg14[%c1_313, %c320_314] : memref<2x800xf32, #tpu.memory_space<vmem>>, vector<1x32xf32>
    tpu.vector_store %arg14[%c1_313, %c320_314], %427 {strides = array<i32>} : memref<2x800xf32, #tpu.memory_space<vmem>>, vector<1x32xf32>,
    %c254 = arith.constant 254 : index
    %c0_315 = arith.constant 0 : index
    %429 = vector.load %arg13[%c254, %c0_315] : memref<392x32xf32, #tpu.memory_space<vmem>>, vector<1x32xf32>
    %c255 = arith.constant 255 : index
    %c0_316 = arith.constant 0 : index
    %430 = vector.load %arg13[%c255, %c0_316] : memref<392x32xf32, #tpu.memory_space<vmem>>, vector<1x32xf32>
    %431 = arith.maximumf %429, %430 : vector<1x32xf32>
    %c268 = arith.constant 268 : index
    %c0_317 = arith.constant 0 : index
    %432 = vector.load %arg13[%c268, %c0_317] : memref<392x32xf32, #tpu.memory_space<vmem>>, vector<1x32xf32>
    %c269 = arith.constant 269 : index
    %c0_318 = arith.constant 0 : index
    %433 = vector.load %arg13[%c269, %c0_318] : memref<392x32xf32, #tpu.memory_space<vmem>>, vector<1x32xf32>
    %434 = arith.maximumf %432, %433 : vector<1x32xf32>
    %435 = arith.maximumf %431, %434 : vector<1x32xf32>
    %c1_319 = arith.constant 1 : index
    %c352_320 = arith.constant 352 : index
    %436 = vector.load %arg14[%c1_319, %c352_320] : memref<2x800xf32, #tpu.memory_space<vmem>>, vector<1x32xf32>
    tpu.vector_store %arg14[%c1_319, %c352_320], %435 {strides = array<i32>} : memref<2x800xf32, #tpu.memory_space<vmem>>, vector<1x32xf32>,
    %c256_321 = arith.constant 256 : index
    %c0_322 = arith.constant 0 : index
    %437 = vector.load %arg13[%c256_321, %c0_322] : memref<392x32xf32, #tpu.memory_space<vmem>>, vector<1x32xf32>
    %c257 = arith.constant 257 : index
    %c0_323 = arith.constant 0 : index
    %438 = vector.load %arg13[%c257, %c0_323] : memref<392x32xf32, #tpu.memory_space<vmem>>, vector<1x32xf32>
    %439 = arith.maximumf %437, %438 : vector<1x32xf32>
    %c270 = arith.constant 270 : index
    %c0_324 = arith.constant 0 : index
    %440 = vector.load %arg13[%c270, %c0_324] : memref<392x32xf32, #tpu.memory_space<vmem>>, vector<1x32xf32>
    %c271 = arith.constant 271 : index
    %c0_325 = arith.constant 0 : index
    %441 = vector.load %arg13[%c271, %c0_325] : memref<392x32xf32, #tpu.memory_space<vmem>>, vector<1x32xf32>
    %442 = arith.maximumf %440, %441 : vector<1x32xf32>
    %443 = arith.maximumf %439, %442 : vector<1x32xf32>
    %c1_326 = arith.constant 1 : index
    %c384_327 = arith.constant 384 : index
    %444 = vector.load %arg14[%c1_326, %c384_327] : memref<2x800xf32, #tpu.memory_space<vmem>>, vector<1x32xf32>
    tpu.vector_store %arg14[%c1_326, %c384_327], %443 {strides = array<i32>} : memref<2x800xf32, #tpu.memory_space<vmem>>, vector<1x32xf32>,
    %c258 = arith.constant 258 : index
    %c0_328 = arith.constant 0 : index
    %445 = vector.load %arg13[%c258, %c0_328] : memref<392x32xf32, #tpu.memory_space<vmem>>, vector<1x32xf32>
    %c259 = arith.constant 259 : index
    %c0_329 = arith.constant 0 : index
    %446 = vector.load %arg13[%c259, %c0_329] : memref<392x32xf32, #tpu.memory_space<vmem>>, vector<1x32xf32>
    %447 = arith.maximumf %445, %446 : vector<1x32xf32>
    %c272 = arith.constant 272 : index
    %c0_330 = arith.constant 0 : index
    %448 = vector.load %arg13[%c272, %c0_330] : memref<392x32xf32, #tpu.memory_space<vmem>>, vector<1x32xf32>
    %c273 = arith.constant 273 : index
    %c0_331 = arith.constant 0 : index
    %449 = vector.load %arg13[%c273, %c0_331] : memref<392x32xf32, #tpu.memory_space<vmem>>, vector<1x32xf32>
    %450 = arith.maximumf %448, %449 : vector<1x32xf32>
    %451 = arith.maximumf %447, %450 : vector<1x32xf32>
    %c1_332 = arith.constant 1 : index
    %c416_333 = arith.constant 416 : index
    %452 = vector.load %arg14[%c1_332, %c416_333] : memref<2x800xf32, #tpu.memory_space<vmem>>, vector<1x32xf32>
    tpu.vector_store %arg14[%c1_332, %c416_333], %451 {strides = array<i32>} : memref<2x800xf32, #tpu.memory_space<vmem>>, vector<1x32xf32>,
    %c260 = arith.constant 260 : index
    %c0_334 = arith.constant 0 : index
    %453 = vector.load %arg13[%c260, %c0_334] : memref<392x32xf32, #tpu.memory_space<vmem>>, vector<1x32xf32>
    %c261 = arith.constant 261 : index
    %c0_335 = arith.constant 0 : index
    %454 = vector.load %arg13[%c261, %c0_335] : memref<392x32xf32, #tpu.memory_space<vmem>>, vector<1x32xf32>
    %455 = arith.maximumf %453, %454 : vector<1x32xf32>
    %c274 = arith.constant 274 : index
    %c0_336 = arith.constant 0 : index
    %456 = vector.load %arg13[%c274, %c0_336] : memref<392x32xf32, #tpu.memory_space<vmem>>, vector<1x32xf32>
    %c275 = arith.constant 275 : index
    %c0_337 = arith.constant 0 : index
    %457 = vector.load %arg13[%c275, %c0_337] : memref<392x32xf32, #tpu.memory_space<vmem>>, vector<1x32xf32>
    %458 = arith.maximumf %456, %457 : vector<1x32xf32>
    %459 = arith.maximumf %455, %458 : vector<1x32xf32>
    %c1_338 = arith.constant 1 : index
    %c448_339 = arith.constant 448 : index
    %460 = vector.load %arg14[%c1_338, %c448_339] : memref<2x800xf32, #tpu.memory_space<vmem>>, vector<1x32xf32>
    tpu.vector_store %arg14[%c1_338, %c448_339], %459 {strides = array<i32>} : memref<2x800xf32, #tpu.memory_space<vmem>>, vector<1x32xf32>,
    %c280 = arith.constant 280 : index
    %c0_340 = arith.constant 0 : index
    %461 = vector.load %arg13[%c280, %c0_340] : memref<392x32xf32, #tpu.memory_space<vmem>>, vector<1x32xf32>
    %c281 = arith.constant 281 : index
    %c0_341 = arith.constant 0 : index
    %462 = vector.load %arg13[%c281, %c0_341] : memref<392x32xf32, #tpu.memory_space<vmem>>, vector<1x32xf32>
    %463 = arith.maximumf %461, %462 : vector<1x32xf32>
    %c294 = arith.constant 294 : index
    %c0_342 = arith.constant 0 : index
    %464 = vector.load %arg13[%c294, %c0_342] : memref<392x32xf32, #tpu.memory_space<vmem>>, vector<1x32xf32>
    %c295 = arith.constant 295 : index
    %c0_343 = arith.constant 0 : index
    %465 = vector.load %arg13[%c295, %c0_343] : memref<392x32xf32, #tpu.memory_space<vmem>>, vector<1x32xf32>
    %466 = arith.maximumf %464, %465 : vector<1x32xf32>
    %467 = arith.maximumf %463, %466 : vector<1x32xf32>
    %c1_344 = arith.constant 1 : index
    %c480_345 = arith.constant 480 : index
    %468 = vector.load %arg14[%c1_344, %c480_345] : memref<2x800xf32, #tpu.memory_space<vmem>>, vector<1x32xf32>
    tpu.vector_store %arg14[%c1_344, %c480_345], %467 {strides = array<i32>} : memref<2x800xf32, #tpu.memory_space<vmem>>, vector<1x32xf32>,
    %c282 = arith.constant 282 : index
    %c0_346 = arith.constant 0 : index
    %469 = vector.load %arg13[%c282, %c0_346] : memref<392x32xf32, #tpu.memory_space<vmem>>, vector<1x32xf32>
    %c283 = arith.constant 283 : index
    %c0_347 = arith.constant 0 : index
    %470 = vector.load %arg13[%c283, %c0_347] : memref<392x32xf32, #tpu.memory_space<vmem>>, vector<1x32xf32>
    %471 = arith.maximumf %469, %470 : vector<1x32xf32>
    %c296 = arith.constant 296 : index
    %c0_348 = arith.constant 0 : index
    %472 = vector.load %arg13[%c296, %c0_348] : memref<392x32xf32, #tpu.memory_space<vmem>>, vector<1x32xf32>
    %c297 = arith.constant 297 : index
    %c0_349 = arith.constant 0 : index
    %473 = vector.load %arg13[%c297, %c0_349] : memref<392x32xf32, #tpu.memory_space<vmem>>, vector<1x32xf32>
    %474 = arith.maximumf %472, %473 : vector<1x32xf32>
    %475 = arith.maximumf %471, %474 : vector<1x32xf32>
    %c1_350 = arith.constant 1 : index
    %c512_351 = arith.constant 512 : index
    %476 = vector.load %arg14[%c1_350, %c512_351] : memref<2x800xf32, #tpu.memory_space<vmem>>, vector<1x32xf32>
    tpu.vector_store %arg14[%c1_350, %c512_351], %475 {strides = array<i32>} : memref<2x800xf32, #tpu.memory_space<vmem>>, vector<1x32xf32>,
    %c284 = arith.constant 284 : index
    %c0_352 = arith.constant 0 : index
    %477 = vector.load %arg13[%c284, %c0_352] : memref<392x32xf32, #tpu.memory_space<vmem>>, vector<1x32xf32>
    %c285 = arith.constant 285 : index
    %c0_353 = arith.constant 0 : index
    %478 = vector.load %arg13[%c285, %c0_353] : memref<392x32xf32, #tpu.memory_space<vmem>>, vector<1x32xf32>
    %479 = arith.maximumf %477, %478 : vector<1x32xf32>
    %c298 = arith.constant 298 : index
    %c0_354 = arith.constant 0 : index
    %480 = vector.load %arg13[%c298, %c0_354] : memref<392x32xf32, #tpu.memory_space<vmem>>, vector<1x32xf32>
    %c299 = arith.constant 299 : index
    %c0_355 = arith.constant 0 : index
    %481 = vector.load %arg13[%c299, %c0_355] : memref<392x32xf32, #tpu.memory_space<vmem>>, vector<1x32xf32>
    %482 = arith.maximumf %480, %481 : vector<1x32xf32>
    %483 = arith.maximumf %479, %482 : vector<1x32xf32>
    %c1_356 = arith.constant 1 : index
    %c544_357 = arith.constant 544 : index
    %484 = vector.load %arg14[%c1_356, %c544_357] : memref<2x800xf32, #tpu.memory_space<vmem>>, vector<1x32xf32>
    tpu.vector_store %arg14[%c1_356, %c544_357], %483 {strides = array<i32>} : memref<2x800xf32, #tpu.memory_space<vmem>>, vector<1x32xf32>,
    %c286 = arith.constant 286 : index
    %c0_358 = arith.constant 0 : index
    %485 = vector.load %arg13[%c286, %c0_358] : memref<392x32xf32, #tpu.memory_space<vmem>>, vector<1x32xf32>
    %c287 = arith.constant 287 : index
    %c0_359 = arith.constant 0 : index
    %486 = vector.load %arg13[%c287, %c0_359] : memref<392x32xf32, #tpu.memory_space<vmem>>, vector<1x32xf32>
    %487 = arith.maximumf %485, %486 : vector<1x32xf32>
    %c300 = arith.constant 300 : index
    %c0_360 = arith.constant 0 : index
    %488 = vector.load %arg13[%c300, %c0_360] : memref<392x32xf32, #tpu.memory_space<vmem>>, vector<1x32xf32>
    %c301 = arith.constant 301 : index
    %c0_361 = arith.constant 0 : index
    %489 = vector.load %arg13[%c301, %c0_361] : memref<392x32xf32, #tpu.memory_space<vmem>>, vector<1x32xf32>
    %490 = arith.maximumf %488, %489 : vector<1x32xf32>
    %491 = arith.maximumf %487, %490 : vector<1x32xf32>
    %c1_362 = arith.constant 1 : index
    %c576_363 = arith.constant 576 : index
    %492 = vector.load %arg14[%c1_362, %c576_363] : memref<2x800xf32, #tpu.memory_space<vmem>>, vector<1x32xf32>
    tpu.vector_store %arg14[%c1_362, %c576_363], %491 {strides = array<i32>} : memref<2x800xf32, #tpu.memory_space<vmem>>, vector<1x32xf32>,
    %c288_364 = arith.constant 288 : index
    %c0_365 = arith.constant 0 : index
    %493 = vector.load %arg13[%c288_364, %c0_365] : memref<392x32xf32, #tpu.memory_space<vmem>>, vector<1x32xf32>
    %c289 = arith.constant 289 : index
    %c0_366 = arith.constant 0 : index
    %494 = vector.load %arg13[%c289, %c0_366] : memref<392x32xf32, #tpu.memory_space<vmem>>, vector<1x32xf32>
    %495 = arith.maximumf %493, %494 : vector<1x32xf32>
    %c302 = arith.constant 302 : index
    %c0_367 = arith.constant 0 : index
    %496 = vector.load %arg13[%c302, %c0_367] : memref<392x32xf32, #tpu.memory_space<vmem>>, vector<1x32xf32>
    %c303 = arith.constant 303 : index
    %c0_368 = arith.constant 0 : index
    %497 = vector.load %arg13[%c303, %c0_368] : memref<392x32xf32, #tpu.memory_space<vmem>>, vector<1x32xf32>
    %498 = arith.maximumf %496, %497 : vector<1x32xf32>
    %499 = arith.maximumf %495, %498 : vector<1x32xf32>
    %c1_369 = arith.constant 1 : index
    %c608_370 = arith.constant 608 : index
    %500 = vector.load %arg14[%c1_369, %c608_370] : memref<2x800xf32, #tpu.memory_space<vmem>>, vector<1x32xf32>
    tpu.vector_store %arg14[%c1_369, %c608_370], %499 {strides = array<i32>} : memref<2x800xf32, #tpu.memory_space<vmem>>, vector<1x32xf32>,
    %c308 = arith.constant 308 : index
    %c0_371 = arith.constant 0 : index
    %501 = vector.load %arg13[%c308, %c0_371] : memref<392x32xf32, #tpu.memory_space<vmem>>, vector<1x32xf32>
    %c309 = arith.constant 309 : index
    %c0_372 = arith.constant 0 : index
    %502 = vector.load %arg13[%c309, %c0_372] : memref<392x32xf32, #tpu.memory_space<vmem>>, vector<1x32xf32>
    %503 = arith.maximumf %501, %502 : vector<1x32xf32>
    %c322 = arith.constant 322 : index
    %c0_373 = arith.constant 0 : index
    %504 = vector.load %arg13[%c322, %c0_373] : memref<392x32xf32, #tpu.memory_space<vmem>>, vector<1x32xf32>
    %c323 = arith.constant 323 : index
    %c0_374 = arith.constant 0 : index
    %505 = vector.load %arg13[%c323, %c0_374] : memref<392x32xf32, #tpu.memory_space<vmem>>, vector<1x32xf32>
    %506 = arith.maximumf %504, %505 : vector<1x32xf32>
    %507 = arith.maximumf %503, %506 : vector<1x32xf32>
    %c1_375 = arith.constant 1 : index
    %c640_376 = arith.constant 640 : index
    %508 = vector.load %arg14[%c1_375, %c640_376] : memref<2x800xf32, #tpu.memory_space<vmem>>, vector<1x32xf32>
    tpu.vector_store %arg14[%c1_375, %c640_376], %507 {strides = array<i32>} : memref<2x800xf32, #tpu.memory_space<vmem>>, vector<1x32xf32>,
    %c310 = arith.constant 310 : index
    %c0_377 = arith.constant 0 : index
    %509 = vector.load %arg13[%c310, %c0_377] : memref<392x32xf32, #tpu.memory_space<vmem>>, vector<1x32xf32>
    %c311 = arith.constant 311 : index
    %c0_378 = arith.constant 0 : index
    %510 = vector.load %arg13[%c311, %c0_378] : memref<392x32xf32, #tpu.memory_space<vmem>>, vector<1x32xf32>
    %511 = arith.maximumf %509, %510 : vector<1x32xf32>
    %c324 = arith.constant 324 : index
    %c0_379 = arith.constant 0 : index
    %512 = vector.load %arg13[%c324, %c0_379] : memref<392x32xf32, #tpu.memory_space<vmem>>, vector<1x32xf32>
    %c325 = arith.constant 325 : index
    %c0_380 = arith.constant 0 : index
    %513 = vector.load %arg13[%c325, %c0_380] : memref<392x32xf32, #tpu.memory_space<vmem>>, vector<1x32xf32>
    %514 = arith.maximumf %512, %513 : vector<1x32xf32>
    %515 = arith.maximumf %511, %514 : vector<1x32xf32>
    %c1_381 = arith.constant 1 : index
    %c672_382 = arith.constant 672 : index
    %516 = vector.load %arg14[%c1_381, %c672_382] : memref<2x800xf32, #tpu.memory_space<vmem>>, vector<1x32xf32>
    tpu.vector_store %arg14[%c1_381, %c672_382], %515 {strides = array<i32>} : memref<2x800xf32, #tpu.memory_space<vmem>>, vector<1x32xf32>,
    %c312 = arith.constant 312 : index
    %c0_383 = arith.constant 0 : index
    %517 = vector.load %arg13[%c312, %c0_383] : memref<392x32xf32, #tpu.memory_space<vmem>>, vector<1x32xf32>
    %c313 = arith.constant 313 : index
    %c0_384 = arith.constant 0 : index
    %518 = vector.load %arg13[%c313, %c0_384] : memref<392x32xf32, #tpu.memory_space<vmem>>, vector<1x32xf32>
    %519 = arith.maximumf %517, %518 : vector<1x32xf32>
    %c326 = arith.constant 326 : index
    %c0_385 = arith.constant 0 : index
    %520 = vector.load %arg13[%c326, %c0_385] : memref<392x32xf32, #tpu.memory_space<vmem>>, vector<1x32xf32>
    %c327 = arith.constant 327 : index
    %c0_386 = arith.constant 0 : index
    %521 = vector.load %arg13[%c327, %c0_386] : memref<392x32xf32, #tpu.memory_space<vmem>>, vector<1x32xf32>
    %522 = arith.maximumf %520, %521 : vector<1x32xf32>
    %523 = arith.maximumf %519, %522 : vector<1x32xf32>
    %c1_387 = arith.constant 1 : index
    %c704_388 = arith.constant 704 : index
    %524 = vector.load %arg14[%c1_387, %c704_388] : memref<2x800xf32, #tpu.memory_space<vmem>>, vector<1x32xf32>
    tpu.vector_store %arg14[%c1_387, %c704_388], %523 {strides = array<i32>} : memref<2x800xf32, #tpu.memory_space<vmem>>, vector<1x32xf32>,
    %c314 = arith.constant 314 : index
    %c0_389 = arith.constant 0 : index
    %525 = vector.load %arg13[%c314, %c0_389] : memref<392x32xf32, #tpu.memory_space<vmem>>, vector<1x32xf32>
    %c315 = arith.constant 315 : index
    %c0_390 = arith.constant 0 : index
    %526 = vector.load %arg13[%c315, %c0_390] : memref<392x32xf32, #tpu.memory_space<vmem>>, vector<1x32xf32>
    %527 = arith.maximumf %525, %526 : vector<1x32xf32>
    %c328 = arith.constant 328 : index
    %c0_391 = arith.constant 0 : index
    %528 = vector.load %arg13[%c328, %c0_391] : memref<392x32xf32, #tpu.memory_space<vmem>>, vector<1x32xf32>
    %c329 = arith.constant 329 : index
    %c0_392 = arith.constant 0 : index
    %529 = vector.load %arg13[%c329, %c0_392] : memref<392x32xf32, #tpu.memory_space<vmem>>, vector<1x32xf32>
    %530 = arith.maximumf %528, %529 : vector<1x32xf32>
    %531 = arith.maximumf %527, %530 : vector<1x32xf32>
    %c1_393 = arith.constant 1 : index
    %c736_394 = arith.constant 736 : index
    %532 = vector.load %arg14[%c1_393, %c736_394] : memref<2x800xf32, #tpu.memory_space<vmem>>, vector<1x32xf32>
    tpu.vector_store %arg14[%c1_393, %c736_394], %531 {strides = array<i32>} : memref<2x800xf32, #tpu.memory_space<vmem>>, vector<1x32xf32>,
    %c316 = arith.constant 316 : index
    %c0_395 = arith.constant 0 : index
    %533 = vector.load %arg13[%c316, %c0_395] : memref<392x32xf32, #tpu.memory_space<vmem>>, vector<1x32xf32>
    %c317 = arith.constant 317 : index
    %c0_396 = arith.constant 0 : index
    %534 = vector.load %arg13[%c317, %c0_396] : memref<392x32xf32, #tpu.memory_space<vmem>>, vector<1x32xf32>
    %535 = arith.maximumf %533, %534 : vector<1x32xf32>
    %c330 = arith.constant 330 : index
    %c0_397 = arith.constant 0 : index
    %536 = vector.load %arg13[%c330, %c0_397] : memref<392x32xf32, #tpu.memory_space<vmem>>, vector<1x32xf32>
    %c331 = arith.constant 331 : index
    %c0_398 = arith.constant 0 : index
    %537 = vector.load %arg13[%c331, %c0_398] : memref<392x32xf32, #tpu.memory_space<vmem>>, vector<1x32xf32>
    %538 = arith.maximumf %536, %537 : vector<1x32xf32>
    %539 = arith.maximumf %535, %538 : vector<1x32xf32>
    %c1_399 = arith.constant 1 : index
    %c768_400 = arith.constant 768 : index
    %540 = vector.load %arg14[%c1_399, %c768_400] : memref<2x800xf32, #tpu.memory_space<vmem>>, vector<1x32xf32>
    tpu.vector_store %arg14[%c1_399, %c768_400], %539 {strides = array<i32>} : memref<2x800xf32, #tpu.memory_space<vmem>>, vector<1x32xf32>,
    %c0_401 = arith.constant 0 : index
    %c0_402 = arith.constant 0 : index
    %541 = vector.load %arg14[%c0_401, %c0_402] : memref<2x800xf32, #tpu.memory_space<vmem>>, vector<2x800xf32>
    %542 = arith.truncf %541 : vector<2x800xf32> to vector<2x800xbf16>
    %c0_403 = arith.constant 0 : index
    %c0_404 = arith.constant 0 : index
    %543 = vector.load %arg6[%c0_403, %c0_404] : memref<800x64xbf16, #tpu.memory_space<vmem>>, vector<800x64xbf16>
    %cst_405 = arith.constant dense<0.000000e+00> : vector<2x64xf32>
    %544 = tpu.matmul %542, %543, %cst_405 {dimension_numbers = #tpu.dot_dimension_numbers<[1], [0], [0], [1], [0, 0, 1, 1], [], []>} : vector<2x800xbf16>, vector<800x64xbf16>, vector<2x64xf32> -> vector<2x64xf32>
    %c0_406 = arith.constant 0 : index
    %c0_407 = arith.constant 0 : index
    %545 = vector.load %arg7[%c0_406, %c0_407] : memref<1x64xf32, #tpu.memory_space<vmem>>, vector<1x64xf32>
    %546 = vector.broadcast %545 : vector<1x64xf32> to vector<2x64xf32>
    %547 = arith.addf %544, %546 : vector<2x64xf32>
    %cst_408 = arith.constant 0.000000e+00 : f32
    %548 = vector.broadcast %cst_408 : f32 to vector<2x64xf32>
    %549 = arith.cmpf oge, %547, %548 : vector<2x64xf32>
    %cst_409 = arith.constant 0.00999999977 : f32
    %550 = vector.broadcast %cst_409 : f32 to vector<2x64xf32>
    %551 = arith.mulf %550, %547 : vector<2x64xf32>
    %552 = arith.select %549, %547, %551 : vector<2x64xi1>, vector<2x64xf32>
    %553 = arith.truncf %552 : vector<2x64xf32> to vector<2x64xbf16>
    %c0_410 = arith.constant 0 : index
    %c0_411 = arith.constant 0 : index
    %554 = vector.load %arg8[%c0_410, %c0_411] : memref<64x10xbf16, #tpu.memory_space<vmem>>, vector<64x10xbf16>
    %cst_412 = arith.constant dense<0.000000e+00> : vector<2x10xf32>
    %555 = tpu.matmul %553, %554, %cst_412 {dimension_numbers = #tpu.dot_dimension_numbers<[1], [0], [0], [1], [0, 0, 1, 1], [], []>} : vector<2x64xbf16>, vector<64x10xbf16>, vector<2x10xf32> -> vector<2x10xf32>
    %c0_413 = arith.constant 0 : index
    %c0_414 = arith.constant 0 : index
    %556 = vector.load %arg9[%c0_413, %c0_414] : memref<1x10xf32, #tpu.memory_space<vmem>>, vector<1x10xf32>
    %557 = vector.broadcast %556 : vector<1x10xf32> to vector<2x10xf32>
    %558 = arith.addf %555, %557 : vector<2x10xf32>
    %c0_415 = arith.constant 0 : index
    %c0_416 = arith.constant 0 : index
    %559 = vector.load %arg10[%c0_415, %c0_416] : memref<2x10xf32, #tpu.memory_space<vmem>>, vector<2x10xf32>
    tpu.vector_store %arg10[%c0_415, %c0_416], %558 {strides = array<i32>} : memref<2x10xf32, #tpu.memory_space<vmem>>, vector<2x10xf32>,
    return
  }
  func.func @transform_0(%arg0: i32) -> (i32, i32) {
    %c0_i32 = arith.constant 0 : i32
    %c0_i32_0 = arith.constant 0 : i32
    %c0_i32_1 = arith.constant 0 : i32
    return %c0_i32, %c0_i32_0 : i32, i32
  }
  func.func @transform_1(%arg0: i32) -> (i32, i32, i32) {
    %c0_i32 = arith.constant 0 : i32
    %c0_i32_0 = arith.constant 0 : i32
    %c0_i32_1 = arith.constant 0 : i32
    %c0_i32_2 = arith.constant 0 : i32
    return %c0_i32, %c0_i32_0, %c0_i32_1 : i32, i32, i32
  }
  func.func @transform_2(%arg0: i32) -> (i32, i32) {
    %c0_i32 = arith.constant 0 : i32
    %c0_i32_0 = arith.constant 0 : i32
    %c0_i32_1 = arith.constant 0 : i32
    return %c0_i32, %c0_i32_0 : i32, i32
  }
  func.func @transform_3(%arg0: i32) -> (i32, i32, i32) {
    %c0_i32 = arith.constant 0 : i32
    %c0_i32_0 = arith.constant 0 : i32
    %c0_i32_1 = arith.constant 0 : i32
    %c0_i32_2 = arith.constant 0 : i32
    return %c0_i32, %c0_i32_0, %c0_i32_1 : i32, i32, i32
  }
  func.func @transform_4(%arg0: i32) -> (i32, i32) {
    %c0_i32 = arith.constant 0 : i32
    %c0_i32_0 = arith.constant 0 : i32
    %c0_i32_1 = arith.constant 0 : i32
    return %c0_i32, %c0_i32_0 : i32, i32
  }
  func.func @transform_5(%arg0: i32) -> (i32, i32) {
    %c0_i32 = arith.constant 0 : i32
    %c0_i32_0 = arith.constant 0 : i32
    %c0_i32_1 = arith.constant 0 : i32
    return %c0_i32, %c0_i32_0 : i32, i32
  }
  func.func @transform_6(%arg0: i32) -> (i32, i32) {
    %c0_i32 = arith.constant 0 : i32
    %c0_i32_0 = arith.constant 0 : i32
    %c0_i32_1 = arith.constant 0 : i32
    return %c0_i32, %c0_i32_0 : i32, i32
  }
  func.func @transform_7(%arg0: i32) -> (i32, i32) {
    %c0_i32 = arith.constant 0 : i32
    %c0_i32_0 = arith.constant 0 : i32
    %c0_i32_1 = arith.constant 0 : i32
    return %c0_i32, %c0_i32_0 : i32, i32
  }
  func.func @transform_8(%arg0: i32) -> (i32, i32) {
    %c0_i32 = arith.constant 0 : i32
    %c0_i32_0 = arith.constant 0 : i32
    %c0_i32_1 = arith.constant 0 : i32
    return %c0_i32, %c0_i32_0 : i32, i32
  }
  func.func @transform_9(%arg0: i32) -> (i32, i32) {
    %c0_i32 = arith.constant 0 : i32
    %c0_i32_0 = arith.constant 0 : i32
    %c0_i32_1 = arith.constant 0 : i32
    return %c0_i32, %c0_i32_0 : i32, i32
  }
}

</mosaic_0001>

<bundles_post_ra>
// kernel: _lambda_.1
= control target key start
LH: loop header
LB: loop body
LE: loop exit
PB: predicated region body
PF: predicated region fallthrough
CT: control target
= control target key end

     0   :  { %vm34_vm0 = vcmask 7168   ;;  %v11694_v3 = vmov 0   ;;  %v15533_v4 = vmov 0.0   ;;  %s15523_s0 = inlined_call_operand.vmem [shape: f32[392,1], index: 0, kind: input, shape index: {}]   ;;  %s15524_s1 = inlined_call_operand.vmem [shape: f32[9,1,16], index: 1, kind: input, shape index: {}]   ;;  %s15525_s2 = inlined_call_operand.vmem [shape: f32[1,16], index: 2, kind: input, shape index: {}]   ;;  %s15526_s3 = inlined_call_operand.vmem [shape: bf16[9,16,32], index: 3, kind: input, shape index: {}]   ;;  %s15527_s4 = inlined_call_operand.vmem [shape: f32[1,32], index: 4, kind: input, shape index: {}]   ;;  %s15528_s5 = inlined_call_operand.vmem [shape: bf16[800,64], index: 5, kind: input, shape index: {}]   ;;  %s15529_s6 = inlined_call_operand.vmem [shape: f32[1,64], index: 6, kind: input, shape index: {}]   ;;  %s15530_s7 = inlined_call_operand.vmem [shape: bf16[64,10], index: 7, kind: input, shape index: {}]   ;;  %s15531_s8 = inlined_call_operand.vmem [shape: f32[1,10], index: 8, kind: input, shape index: {}]   ;;  %s15532_s9 = inlined_call_operand.hbm [shape: f32[2,10], index: 9, kind: output, shape index: {}]  }
   0x1   :  { %v11755_v0 = vld [vmem:[%s15523_s0 + $0x10] sm:$0xff]  ;;  %v11760_v1 = vld [vmem:[%s15523_s0] sm:$0xff]  ;;  %v11765_v2 = vld [vmem:[%s15523_s0 + $0x18] sm:$0xff]  ;;  %11563 = vset.pattern.permute.xlu1 %v11694_v3  ;;  %11562 = vset.pattern.permute.xlu0 %v11694_v3  ;;  %37 = vst.msk [vmem:[#allocation2 + $0x10] sm:$0xff] %vm34_vm0, %v15533_v4 }
   0x2   :  { %35 = vst.msk [vmem:[#allocation2] sm:$0xff] %vm34_vm0, %v15533_v4  ;;  %36 = vst.msk [vmem:[#allocation2 + $0x8] sm:$0xff] %vm34_vm0, %v15533_v4  ;;  %v93_v5 = vld [vmem:[%s15523_s0 + $0x8] sm:$0xff]  ;;  %v96_v7 = vld [vmem:[%s15523_s0 + $0x20] sm:$0xff]  ;;  %10614 = vmatprep.subr.bf16.mxu0 %v15533_v4  ;;  %11552 = vmatprep.subr.bf16.mxu1 %v15533_v4 }
   0x3   :  { %38 = vst.msk [vmem:[#allocation2 + $0x18] sm:$0xff] %vm34_vm0, %v15533_v4  ;;  %39 = vst.msk [vmem:[#allocation2 + $0x20] sm:$0xff] %vm34_vm0, %v15533_v4  ;;  %v97_v6 = vld [vmem:[%s15523_s0 + $0x28] sm:$0xff]  ;;  %v99_v8 = vld [vmem:[%s15523_s0 + $0x38] sm:$0xff] }
   0x4   :  { %40 = vst.msk [vmem:[#allocation2 + $0x28] sm:$0xff] %vm34_vm0, %v15533_v4  ;;  %41 = vst.msk [vmem:[#allocation2 + $0x30] sm:$0xff] %vm34_vm0, %v15533_v4  ;;  %v98_v9 = vld [vmem:[%s15523_s0 + $0x30] sm:$0xff]  ;;  %v101_v10 = vld [vmem:[%s15523_s0 + $0x48] sm:$0xff] }
   0x5   :  { %42 = vst.msk [vmem:[#allocation2 + $0x38] sm:$0xff] %vm34_vm0, %v15533_v4  ;;  %43 = vst.msk [vmem:[#allocation2 + $0x40] sm:$0xff] %vm34_vm0, %v15533_v4  ;;  %v100_v11 = vld [vmem:[%s15523_s0 + $0x40] sm:$0xff]  ;;  %v103_v12 = vld [vmem:[%s15523_s0 + $0x58] sm:$0xff] }
   0x6   :  { %44 = vst.msk [vmem:[#allocation2 + $0x48] sm:$0xff] %vm34_vm0, %v15533_v4  ;;  %45 = vst.msk [vmem:[#allocation2 + $0x50] sm:$0xff] %vm34_vm0, %v15533_v4  ;;  %v102_v13 = vld [vmem:[%s15523_s0 + $0x50] sm:$0xff]  ;;  %v105_v14 = vld [vmem:[%s15523_s0 + $0x68] sm:$0xff] }
   0x7   :  { %46 = vst.msk [vmem:[#allocation2 + $0x58] sm:$0xff] %vm34_vm0, %v15533_v4  ;;  %47 = vst.msk [vmem:[#allocation2 + $0x60] sm:$0xff] %vm34_vm0, %v15533_v4  ;;  %v104_v15 = vld [vmem:[%s15523_s0 + $0x60] sm:$0xff]  ;;  %v107_v16 = vld [vmem:[%s15523_s0 + $0x78] sm:$0xff] }
   0x8   :  { %48 = vst.msk [vmem:[#allocation2 + $0x68] sm:$0xff] %vm34_vm0, %v15533_v4  ;;  %49 = vst.msk [vmem:[#allocation2 + $0x70] sm:$0xff] %vm34_vm0, %v15533_v4  ;;  %v106_v17 = vld [vmem:[%s15523_s0 + $0x70] sm:$0xff]  ;;  %v109_v18 = vld [vmem:[%s15523_s0 + $0x88] sm:$0xff] }
   0x9   :  { %50 = vst.msk [vmem:[#allocation2 + $0x78] sm:$0xff] %vm34_vm0, %v15533_v4  ;;  %51 = vst.msk [vmem:[#allocation2 + $0x80] sm:$0xff] %vm34_vm0, %v15533_v4  ;;  %v108_v19 = vld [vmem:[%s15523_s0 + $0x80] sm:$0xff]  ;;  %v111_v20 = vld [vmem:[%s15523_s0 + $0x98] sm:$0xff] }
   0xa   :  { %52 = vst.msk [vmem:[#allocation2 + $0x88] sm:$0xff] %vm34_vm0, %v15533_v4  ;;  %53 = vst.msk [vmem:[#allocation2 + $0x90] sm:$0xff] %vm34_vm0, %v15533_v4  ;;  %v110_v21 = vld [vmem:[%s15523_s0 + $0x90] sm:$0xff]  ;;  %v113_v22 = vld [vmem:[%s15523_s0 + $0xa8] sm:$0xff] }
   0xb   :  { %54 = vst.msk [vmem:[#allocation2 + $0x98] sm:$0xff] %vm34_vm0, %v15533_v4  ;;  %55 = vst.msk [vmem:[#allocation2 + $0xa0] sm:$0xff] %vm34_vm0, %v15533_v4  ;;  %v112_v23 = vld [vmem:[%s15523_s0 + $0xa0] sm:$0xff]  ;;  %v115_v24 = vld [vmem:[%s15523_s0 + $0xb8] sm:$0xff] }
   0xc   :  { %56 = vst.msk [vmem:[#allocation2 + $0xa8] sm:$0xff] %vm34_vm0, %v15533_v4  ;;  %57 = vst.msk [vmem:[#allocation2 + $0xb0] sm:$0xff] %vm34_vm0, %v15533_v4  ;;  %v114_v25 = vld [vmem:[%s15523_s0 + $0xb0] sm:$0xff]  ;;  %v117_v26 = vld [vmem:[%s15523_s0 + $0xc8] sm:$0xff] }
   0xd   :  { %58 = vst.msk [vmem:[#allocation2 + $0xb8] sm:$0xff] %vm34_vm0, %v15533_v4  ;;  %59 = vst.msk [vmem:[#allocation2 + $0xc0] sm:$0xff] %vm34_vm0, %v15533_v4  ;;  %v116_v27 = vld [vmem:[%s15523_s0 + $0xc0] sm:$0xff]  ;;  %v119_v28 = vld [vmem:[%s15523_s0 + $0xd8] sm:$0xff] }
   0xe   :  { %60 = vst.msk [vmem:[#allocation2 + $0xc8] sm:$0xff] %vm34_vm0, %v15533_v4  ;;  %61 = vst.msk [vmem:[#allocation2 + $0xd0] sm:$0xff] %vm34_vm0, %v15533_v4  ;;  %v118_v37 = vld [vmem:[%s15523_s0 + $0xd0] sm:$0xff]  ;;  %v121_v38 = vld [vmem:[%s15523_s0 + $0xe8] sm:$0xff] }
   0xf   :  { %62 = vst.msk [vmem:[#allocation2 + $0xd8] sm:$0xff] %vm34_vm0, %v15533_v4  ;;  %63 = vst.msk [vmem:[#allocation2 + $0xe0] sm:$0xff] %vm34_vm0, %v15533_v4  ;;  %v120_v39 = vld [vmem:[%s15523_s0 + $0xe0] sm:$0xff]  ;;  %v123_v40 = vld [vmem:[%s15523_s0 + $0xf8] sm:$0xff] }
  0x10   :  { %64 = vst.msk [vmem:[#allocation2 + $0xe8] sm:$0xff] %vm34_vm0, %v15533_v4  ;;  %65 = vst.msk [vmem:[#allocation2 + $0xf0] sm:$0xff] %vm34_vm0, %v15533_v4  ;;  %v122_v41 = vld [vmem:[%s15523_s0 + $0xf0] sm:$0xff]  ;;  %v125_v42 = vld [vmem:[%s15523_s0 + $0x108] sm:$0xff] }
  0x11   :  { %66 = vst.msk [vmem:[#allocation2 + $0xf8] sm:$0xff] %vm34_vm0, %v15533_v4  ;;  %67 = vst.msk [vmem:[#allocation2 + $0x100] sm:$0xff] %vm34_vm0, %v15533_v4  ;;  %v124_v43 = vld [vmem:[%s15523_s0 + $0x100] sm:$0xff]  ;;  %v127_v44 = vld [vmem:[%s15523_s0 + $0x118] sm:$0xff] }
  0x12   :  { %68 = vst.msk [vmem:[#allocation2 + $0x108] sm:$0xff] %vm34_vm0, %v15533_v4  ;;  %69 = vst.msk [vmem:[#allocation2 + $0x110] sm:$0xff] %vm34_vm0, %v15533_v4  ;;  %v126_v45 = vld [vmem:[%s15523_s0 + $0x110] sm:$0xff]  ;;  %v129_v47 = vld [vmem:[%s15523_s0 + $0x128] sm:$0xff] }
  0x13   :  { %70 = vst.msk [vmem:[#allocation2 + $0x118] sm:$0xff] %vm34_vm0, %v15533_v4  ;;  %71 = vst.msk [vmem:[#allocation2 + $0x120] sm:$0xff] %vm34_vm0, %v15533_v4  ;;  %v128_v48 = vld [vmem:[%s15523_s0 + $0x120] sm:$0xff]  ;;  %v131_v49 = vld [vmem:[%s15523_s0 + $0x138] sm:$0xff] }
  0x14   :  { %72 = vst.msk [vmem:[#allocation2 + $0x128] sm:$0xff] %vm34_vm0, %v15533_v4  ;;  %73 = vst.msk [vmem:[#allocation2 + $0x130] sm:$0xff] %vm34_vm0, %v15533_v4  ;;  %v130_v50 = vld [vmem:[%s15523_s0 + $0x130] sm:$0xff]  ;;  %v133_v51 = vld [vmem:[%s15523_s0 + $0x148] sm:$0xff] }
  0x15   :  { %74 = vst.msk [vmem:[#allocation2 + $0x138] sm:$0xff] %vm34_vm0, %v15533_v4  ;;  %75 = vst.msk [vmem:[#allocation2 + $0x140] sm:$0xff] %vm34_vm0, %v15533_v4  ;;  %v132_v52 = vld [vmem:[%s15523_s0 + $0x140] sm:$0xff]  ;;  %v135_v54 = vld [vmem:[%s15523_s0 + $0x158] sm:$0xff] }
  0x16   :  { %76 = vst.msk [vmem:[#allocation2 + $0x148] sm:$0xff] %vm34_vm0, %v15533_v4  ;;  %77 = vst.msk [vmem:[#allocation2 + $0x150] sm:$0xff] %vm34_vm0, %v15533_v4  ;;  %v134_v55 = vld [vmem:[%s15523_s0 + $0x150] sm:$0xff] }
  0x17   :  { %78 = vst.msk [vmem:[#allocation2 + $0x158] sm:$0xff] %vm34_vm0, %v15533_v4  ;;  %79 = vst.msk [vmem:[#allocation2 + $0x160] sm:$0xff] %vm34_vm0, %v15533_v4 }
  0x18   :  { %80 = vst.msk [vmem:[#allocation2 + $0x168] sm:$0xff] %vm34_vm0, %v15533_v4  ;;  %81 = vst.msk [vmem:[#allocation2 + $0x170] sm:$0xff] %vm34_vm0, %v15533_v4 }
  0x19   :  { %82 = vst.msk [vmem:[#allocation2 + $0x178] sm:$0xff] %vm34_vm0, %v15533_v4  ;;  %83 = vst.msk [vmem:[#allocation2 + $0x180] sm:$0xff] %vm34_vm0, %v15533_v4 }
  0x1a   :  { %84 = vst.msk [vmem:[#allocation2 + $0x188] sm:$0xff] %vm34_vm0, %v15533_v4  ;;  %85 = vst.msk [vmem:[#allocation2 + $0x190] sm:$0xff] %vm34_vm0, %v15533_v4 }
  0x1b   :  { %86 = vst.msk [vmem:[#allocation2 + $0x198] sm:$0xff] %vm34_vm0, %v15533_v4  ;;  %87 = vst.msk [vmem:[#allocation2 + $0x1a0] sm:$0xff] %vm34_vm0, %v15533_v4 }
  0x1c   :  { %88 = vst.msk [vmem:[#allocation2 + $0x1a8] sm:$0xff] %vm34_vm0, %v15533_v4  ;;  %89 = vst.msk [vmem:[#allocation2 + $0x1b0] sm:$0xff] %vm34_vm0, %v15533_v4 }
  0x1d   :  { %90 = vst.msk [vmem:[#allocation2 + $0x1b8] sm:$0xff] %vm34_vm0, %v15533_v4  ;;  %91 = vst.msk [vmem:[#allocation2 + $0x1c0] sm:$0xff] %vm34_vm0, %v15533_v4 }
  0x1e   :  { %143 = vst.msk [vmem:[#allocation2 + $0x10] sm:$0xff] %vm34_vm0, %v11755_v0  ;;  %141 = vst.msk [vmem:[#allocation2] sm:$0xff] %vm34_vm0, %v11760_v1 }
  0x1f   :  { %144 = vst.msk [vmem:[#allocation2 + $0x18] sm:$0xff] %vm34_vm0, %v11765_v2  ;;  %142 = vst.msk [vmem:[#allocation2 + $0x8] sm:$0xff] %vm34_vm0, %v93_v5 }
  0x20   :  { %146 = vst.msk [vmem:[#allocation2 + $0x28] sm:$0xff] %vm34_vm0, %v97_v6  ;;  %145 = vst.msk [vmem:[#allocation2 + $0x20] sm:$0xff] %vm34_vm0, %v96_v7 }
  0x21   :  { %148 = vst.msk [vmem:[#allocation2 + $0x38] sm:$0xff] %vm34_vm0, %v99_v8  ;;  %147 = vst.msk [vmem:[#allocation2 + $0x30] sm:$0xff] %vm34_vm0, %v98_v9 }
  0x22   :  { %150 = vst.msk [vmem:[#allocation2 + $0x48] sm:$0xff] %vm34_vm0, %v101_v10  ;;  %149 = vst.msk [vmem:[#allocation2 + $0x40] sm:$0xff] %vm34_vm0, %v100_v11 }
  0x23   :  { %152 = vst.msk [vmem:[#allocation2 + $0x58] sm:$0xff] %vm34_vm0, %v103_v12  ;;  %151 = vst.msk [vmem:[#allocation2 + $0x50] sm:$0xff] %vm34_vm0, %v102_v13 }
  0x24   :  { %154 = vst.msk [vmem:[#allocation2 + $0x68] sm:$0xff] %vm34_vm0, %v105_v14  ;;  %153 = vst.msk [vmem:[#allocation2 + $0x60] sm:$0xff] %vm34_vm0, %v104_v15 }
  0x25   :  { %156 = vst.msk [vmem:[#allocation2 + $0x78] sm:$0xff] %vm34_vm0, %v107_v16  ;;  %155 = vst.msk [vmem:[#allocation2 + $0x70] sm:$0xff] %vm34_vm0, %v106_v17  ;;  %v11982_v29 = vld [vmem:[#allocation2 + $0x10] sm:$0xff]  ;;  %v190_v30 = vld [vmem:[#allocation2] sm:$0xff] }
  0x26   :  { %158 = vst.msk [vmem:[#allocation2 + $0x88] sm:$0xff] %vm34_vm0, %v109_v18  ;;  %157 = vst.msk [vmem:[#allocation2 + $0x80] sm:$0xff] %vm34_vm0, %v108_v19  ;;  %256 = vperm.xlu1 %11563, %v11982_v29   ;;  %246 = vperm.xlu0 %11562, %v190_v30   ;;  %v11988_v31 = vld [vmem:[#allocation2 + $0x18] sm:$0xff]  ;;  %v191_v32 = vld [vmem:[#allocation2 + $0x8] sm:$0xff] }
  0x27   :  { %160 = vst.msk [vmem:[#allocation2 + $0x98] sm:$0xff] %vm34_vm0, %v111_v20  ;;  %159 = vst.msk [vmem:[#allocation2 + $0x90] sm:$0xff] %vm34_vm0, %v110_v21  ;;  %v11991_v33 = vld [vmem:[#allocation2 + $0x28] sm:$0xff]  ;;  %v11993_v34 = vld [vmem:[#allocation2 + $0x20] sm:$0xff] }
  0x28   :  { %162 = vst.msk [vmem:[#allocation2 + $0xa8] sm:$0xff] %vm34_vm0, %v113_v22  ;;  %161 = vst.msk [vmem:[#allocation2 + $0xa0] sm:$0xff] %vm34_vm0, %v112_v23  ;;  %v11995_v35 = vld [vmem:[#allocation2 + $0x38] sm:$0xff]  ;;  %v11997_v36 = vld [vmem:[#allocation2 + $0x30] sm:$0xff] }
  0x29   :  { %164 = vst.msk [vmem:[#allocation2 + $0xb8] sm:$0xff] %vm34_vm0, %v115_v24  ;;  %163 = vst.msk [vmem:[#allocation2 + $0xb0] sm:$0xff] %vm34_vm0, %v114_v25  ;;  %v12034_v46 = vld [vmem:[#allocation2 + $0x48] sm:$0xff]  ;;  %v12062_v53 = vld [vmem:[#allocation2 + $0x40] sm:$0xff] }
  0x2a   :  { %166 = vst.msk [vmem:[#allocation2 + $0xc8] sm:$0xff] %vm34_vm0, %v117_v26  ;;  %165 = vst.msk [vmem:[#allocation2 + $0xc0] sm:$0xff] %vm34_vm0, %v116_v27  ;;  %261 = vperm.xlu1 %11563, %v11988_v31   ;;  %251 = vperm.xlu0 %11562, %v191_v32   ;;  %v12077_v56 = vld [vmem:[#allocation2 + $0x58] sm:$0xff]  ;;  %v12079_v57 = vld [vmem:[#allocation2 + $0x50] sm:$0xff] }
  0x2b   :  { %168 = vst.msk [vmem:[#allocation2 + $0xd8] sm:$0xff] %vm34_vm0, %v119_v28  ;;  %167 = vst.msk [vmem:[#allocation2 + $0xd0] sm:$0xff] %vm34_vm0, %v118_v37  ;;  %v203_v58 = vld [vmem:[#allocation2 + $0x68] sm:$0xff]  ;;  %v12083_v59 = vld [vmem:[#allocation2 + $0x60] sm:$0xff] }
  0x2c   :  { %170 = vst.msk [vmem:[#allocation2 + $0xe8] sm:$0xff] %vm34_vm0, %v121_v38  ;;  %169 = vst.msk [vmem:[#allocation2 + $0xe0] sm:$0xff] %vm34_vm0, %v120_v39  ;;  %v205_v60 = vld [vmem:[#allocation2 + $0x78] sm:$0xff]  ;;  %v204_v61 = vld [vmem:[#allocation2 + $0x70] sm:$0xff] }
  0x2d   :  { %172 = vst.msk [vmem:[#allocation2 + $0xf8] sm:$0xff] %vm34_vm0, %v123_v40  ;;  %171 = vst.msk [vmem:[#allocation2 + $0xf0] sm:$0xff] %vm34_vm0, %v122_v41  ;;  %v207_v62 = vld [vmem:[#allocation2 + $0x88] sm:$0xff]  ;;  %v206_v63 = vld [vmem:[#allocation2 + $0x80] sm:$0xff] }
  0x2e   :  { %271 = vperm.xlu1 %11563, %v11991_v33   ;;  %266 = vperm.xlu0 %11562, %v11993_v34   ;;  %174 = vst.msk [vmem:[#allocation2 + $0x108] sm:$0xff] %vm34_vm0, %v125_v42  ;;  %173 = vst.msk [vmem:[#allocation2 + $0x100] sm:$0xff] %vm34_vm0, %v124_v43  ;;  %v209_v0 = vld [vmem:[#allocation2 + $0x98] sm:$0xff]  ;;  %v208_v1 = vld [vmem:[#allocation2 + $0x90] sm:$0xff] }
  0x2f   :  { %176 = vst.msk [vmem:[#allocation2 + $0x118] sm:$0xff] %vm34_vm0, %v127_v44  ;;  %175 = vst.msk [vmem:[#allocation2 + $0x110] sm:$0xff] %vm34_vm0, %v126_v45  ;;  %v211_v2 = vld [vmem:[#allocation2 + $0xa8] sm:$0xff]  ;;  %v210_v3 = vld [vmem:[#allocation2 + $0xa0] sm:$0xff] }
  0x30   :  { %178 = vst.msk [vmem:[#allocation2 + $0x128] sm:$0xff] %vm34_vm0, %v129_v47  ;;  %177 = vst.msk [vmem:[#allocation2 + $0x120] sm:$0xff] %vm34_vm0, %v128_v48  ;;  %v213_v5 = vld [vmem:[#allocation2 + $0xb8] sm:$0xff]  ;;  %v212_v6 = vld [vmem:[#allocation2 + $0xb0] sm:$0xff] }
  0x31   :  { %180 = vst.msk [vmem:[#allocation2 + $0x138] sm:$0xff] %vm34_vm0, %v131_v49  ;;  %179 = vst.msk [vmem:[#allocation2 + $0x130] sm:$0xff] %vm34_vm0, %v130_v50  ;;  %v215_v7 = vld [vmem:[#allocation2 + $0xc8] sm:$0xff]  ;;  %v214_v8 = vld [vmem:[#allocation2 + $0xc0] sm:$0xff] }
  0x32   :  { %281 = vperm.xlu1 %11563, %v11995_v35   ;;  %276 = vperm.xlu0 %11562, %v11997_v36   ;;  %182 = vst.msk [vmem:[#allocation2 + $0x148] sm:$0xff] %vm34_vm0, %v133_v51  ;;  %181 = vst.msk [vmem:[#allocation2 + $0x140] sm:$0xff] %vm34_vm0, %v132_v52  ;;  %v217_v9 = vld [vmem:[#allocation2 + $0xd8] sm:$0xff]  ;;  %v216_v10 = vld [vmem:[#allocation2 + $0xd0] sm:$0xff] }
  0x33   :  { %184 = vst.msk [vmem:[#allocation2 + $0x158] sm:$0xff] %vm34_vm0, %v135_v54  ;;  %183 = vst.msk [vmem:[#allocation2 + $0x150] sm:$0xff] %vm34_vm0, %v134_v55  ;;  %v219_v11 = vld [vmem:[#allocation2 + $0xe8] sm:$0xff]  ;;  %v218_v12 = vld [vmem:[#allocation2 + $0xe0] sm:$0xff] }
  0x34   :  { %v221_v13 = vld [vmem:[#allocation2 + $0xf8] sm:$0xff]  ;;  %v220_v14 = vld [vmem:[#allocation2 + $0xf0] sm:$0xff] }
  0x35   :  { %v223_v15 = vld [vmem:[#allocation2 + $0x108] sm:$0xff]  ;;  %v222_v16 = vld [vmem:[#allocation2 + $0x100] sm:$0xff] }
  0x36   :  { %291 = vperm.xlu1 %11563, %v12034_v46   ;;  %286 = vperm.xlu0 %11562, %v12062_v53   ;;  %v225_v17 = vld [vmem:[#allocation2 + $0x118] sm:$0xff]  ;;  %v224_v18 = vld [vmem:[#allocation2 + $0x110] sm:$0xff] }
  0x37   :  { %v227_v19 = vld [vmem:[#allocation2 + $0x128] sm:$0xff]  ;;  %v226_v20 = vld [vmem:[#allocation2 + $0x120] sm:$0xff] }
  0x38   :  { %v229_v21 = vld [vmem:[#allocation2 + $0x138] sm:$0xff]  ;;  %v228_v22 = vld [vmem:[#allocation2 + $0x130] sm:$0xff] }
  0x39   :  { %v231_v23 = vld [vmem:[#allocation2 + $0x148] sm:$0xff]  ;;  %v230_v24 = vld [vmem:[#allocation2 + $0x140] sm:$0xff] }
  0x3a   :  { %301 = vperm.xlu1 %11563, %v12077_v56   ;;  %296 = vperm.xlu0 %11562, %v12079_v57  }
  0x3e   :  { %311 = vperm.xlu1 %11563, %v203_v58   ;;  %306 = vperm.xlu0 %11562, %v12083_v59  }
  0x42   :  { %321 = vperm.xlu1 %11563, %v205_v60   ;;  %316 = vperm.xlu0 %11562, %v204_v61  }
  0x46   :  { %331 = vperm.xlu1 %11563, %v207_v62   ;;  %326 = vperm.xlu0 %11562, %v206_v63  }
  0x4a   :  { %341 = vperm.xlu1 %11563, %v209_v0   ;;  %336 = vperm.xlu0 %11562, %v208_v1  }
  0x4e   :  { %351 = vperm.xlu1 %11563, %v211_v2   ;;  %346 = vperm.xlu0 %11562, %v210_v3  }
  0x52   :  { %361 = vperm.xlu1 %11563, %v213_v5   ;;  %356 = vperm.xlu0 %11562, %v212_v6  }
  0x56   :  { %371 = vperm.xlu1 %11563, %v215_v7   ;;  %366 = vperm.xlu0 %11562, %v214_v8  }
  0x5a   :  { %381 = vperm.xlu1 %11563, %v217_v9   ;;  %376 = vperm.xlu0 %11562, %v216_v10  }
  0x5e   :  { %391 = vperm.xlu1 %11563, %v219_v11   ;;  %386 = vperm.xlu0 %11562, %v218_v12  }
  0x62   :  { %401 = vperm.xlu1 %11563, %v221_v13   ;;  %396 = vperm.xlu0 %11562, %v220_v14  }
  0x66   :  { %411 = vperm.xlu1 %11563, %v223_v15   ;;  %406 = vperm.xlu0 %11562, %v222_v16  }
  0x6a   :  { %421 = vperm.xlu1 %11563, %v225_v17   ;;  %416 = vperm.xlu0 %11562, %v224_v18  }
  0x6e   :  { %431 = vperm.xlu1 %11563, %v227_v19   ;;  %426 = vperm.xlu0 %11562, %v226_v20  }
  0x72   :  { %441 = vperm.xlu1 %11563, %v229_v21   ;;  %436 = vperm.xlu0 %11562, %v228_v22  }
  0x73   :  { %14 = vsyncpa [#allocation7], 0  ;;  %v233_v25 = vld [vmem:[#allocation2 + $0x158] sm:$0xff]  ;;  %v232_v26 = vld [vmem:[#allocation2 + $0x150] sm:$0xff]  ;;  %vm11696_vm1 = vmmov 0   ;;  %vm4296_vm2 = vcmask 130048  }
  0x74   :  { %v622_v27 = vld [vmem:[#allocation2 + $0x9] sm:$0xff]  ;;  %v621_v28 = vld [vmem:[#allocation2 + $0x1] sm:$0xff]  ;;  %v623_v32 = vld [vmem:[#allocation2 + $0x11] sm:$0xff]  ;;  %10616 = vmatprep.mubr.msk.bf16.mxu0 %vm11696_vm1, %v15533_v4  ;;  %10692 = vmatprep.mubr.msk.bf16.mxu1 %vm11696_vm1, %v15533_v4  ;;  %s11699_s21 = smov 64   ;;  %s11700_s22 = smov 96  }
  0x75   :  { %v1053_v30 = vld [vmem:[#allocation2 + $0x2] sm:$0xff]  ;;  %v1055_v37 = vld [vmem:[#allocation2 + $0x12] sm:$0xff]  ;;  %v1054_v38 = vld [vmem:[#allocation2 + $0xa] sm:$0xff]  ;;  %s11701_s20 = smov [#allocation6]  }
  0x76   :  { %451 = vperm.xlu1 %11563, %v231_v23   ;;  %446 = vperm.xlu0 %11562, %v230_v24   ;;  %v1486_v39 = vld [vmem:[#allocation2 + $0x16] sm:$0xff]  ;;  %v1485_v40 = vld [vmem:[#allocation2 + $0xe] sm:$0xff]  ;;  %v1487_v42 = vld [vmem:[#allocation2 + $0x1e] sm:$0xff] }
  0x77   :  { %v1917_v41 = vld [vmem:[#allocation2 + $0xf] sm:$0xff]  ;;  %v1919_v43 = vld [vmem:[#allocation2 + $0x1f] sm:$0xff]  ;;  %v1918_v44 = vld [vmem:[#allocation2 + $0x17] sm:$0xff] }
  0x78   :  { %v625_v45 = vld [vmem:[#allocation2 + $0x21] sm:$0xff]  ;;  %v624_v47 = vld [vmem:[#allocation2 + $0x19] sm:$0xff]  ;;  %v2783_v51 = vld [vmem:[#allocation2 + $0x2c] sm:$0xff] }
  0x79   :  { %v1056_v48 = vld [vmem:[#allocation2 + $0x1a] sm:$0xff]  ;;  %v1057_v50 = vld [vmem:[#allocation2 + $0x22] sm:$0xff]  ;;  %v1489_v58 = vld [vmem:[#allocation2 + $0x2e] sm:$0xff] }
  0x7a   :  { %461 = vperm.xlu1 %11563, %v233_v25   ;;  %456 = vperm.xlu0 %11562, %v232_v26   ;;  %v2781_v49 = vld [vmem:[#allocation2 + $0x1c] sm:$0xff]  ;;  %v2782_v52 = vld [vmem:[#allocation2 + $0x24] sm:$0xff]  ;;  %v3215_v1 = vld [vmem:[#allocation2 + $0x2d] sm:$0xff] }
  0x7b   :  { %v3213_v61 = vld [vmem:[#allocation2 + $0x1d] sm:$0xff]  ;;  %v1920_v0 = vld [vmem:[#allocation2 + $0x27] sm:$0xff]  ;;  %v1921_v5 = vld [vmem:[#allocation2 + $0x2f] sm:$0xff] }
  0x7c   :  { %v627_v10 = vld [vmem:[#allocation2 + $0x31] sm:$0xff]  ;;  %v626_v11 = vld [vmem:[#allocation2 + $0x29] sm:$0xff]  ;;  %v2785_v20 = vld [vmem:[#allocation2 + $0x3c] sm:$0xff] }
  0x7d   :  { %v1059_v16 = vld [vmem:[#allocation2 + $0x32] sm:$0xff]  ;;  %v1058_v17 = vld [vmem:[#allocation2 + $0x2a] sm:$0xff] }
  0x7e   :  { %683 = vperm.xlu1 %11563, %v622_v27   ;;  %678 = vperm.xlu0 %11562, %v621_v28   ;;  %v2784_v21 = vld [vmem:[#allocation2 + $0x34] sm:$0xff]  ;;  %v3217_v27 = vld [vmem:[#allocation2 + $0x3d] sm:$0xff] }
  0x7f   :  { %v1490_v24 = vld [vmem:[#allocation2 + $0x36] sm:$0xff] }
  0x80   :  { %v3216_v28 = vld [vmem:[#allocation2 + $0x35] sm:$0xff] }
  0x82   :  { %1110 = vperm.xlu1 %11563, %v1053_v30   ;;  %688 = vperm.xlu0 %11562, %v623_v32  }
  0x86   :  { %1120 = vperm.xlu1 %11563, %v1055_v37   ;;  %1115 = vperm.xlu0 %11562, %v1054_v38   ;;  %v1923_v37 = vld [vmem:[#allocation2 + $0x3f] sm:$0xff]  ;;  %v1922_v38 = vld [vmem:[#allocation2 + $0x37] sm:$0xff] }
  0x8a   :  { %1547 = vperm.xlu1 %11563, %v1486_v39   ;;  %1542 = vperm.xlu0 %11562, %v1485_v40  }
  0x8e   :  { %1974 = vperm.xlu1 %11563, %v1917_v41   ;;  %1552 = vperm.xlu0 %11562, %v1487_v42  }
  0x92   :  { %1984 = vperm.xlu1 %11563, %v1919_v43   ;;  %1979 = vperm.xlu0 %11562, %v1918_v44   ;;  %v629_v43 = vld [vmem:[#allocation2 + $0x41] sm:$0xff]  ;;  %v628_v44 = vld [vmem:[#allocation2 + $0x39] sm:$0xff] }
  0x96   :  { %698 = vperm.xlu1 %11563, %v625_v45   ;;  %693 = vperm.xlu0 %11562, %v624_v47  }
  0x9a   :  { %2411 = vperm.xlu1 %11563, %v11988_v31   ;;  %2406 = vperm.xlu0 %11562, %v11982_v29   ;;  %v1488_v31 = vld [vmem:[#allocation2 + $0x26] sm:$0xff] }
  0x9e   :  { %1125 = vperm.xlu1 %11563, %v1056_v48   ;;  %2416 = vperm.xlu0 %11562, %v11993_v34   ;;  %v3214_v34 = vld [vmem:[#allocation2 + $0x25] sm:$0xff] }
  0xa2   :  { %2838 = vperm.xlu1 %11563, %v2781_v49   ;;  %1130 = vperm.xlu0 %11562, %v1057_v50   ;;  %v1061_v50 = vld [vmem:[#allocation2 + $0x42] sm:$0xff] }
  0xa5   :  { %v12089_v54 = vpop.permute.xlu1 %256  ;;  %v12091_v55 = vpop.permute.xlu0 %246 }
  0xa6   :  { %2848 = vperm.xlu1 %11563, %v2783_v51   ;;  %2843 = vperm.xlu0 %11562, %v2782_v52   ;;  %v1060_v51 = vld [vmem:[#allocation2 + $0x3a] sm:$0xff] }
  0xa9   :  { %v12093_v60 = vpop.permute.xlu1 %261  ;;  %v12095_v29 = vpop.permute.xlu0 %251 }
  0xaa   :  { %1562 = vperm.xlu1 %11563, %v1489_v58   ;;  %1557 = vperm.xlu0 %11562, %v1488_v31  }
  0xad   :  { %v12097_v62 = vpop.permute.xlu1 %271  ;;  %v12099_v63 = vpop.permute.xlu0 %266 }
  0xae   :  { %3275 = vperm.xlu1 %11563, %v3214_v34   ;;  %3270 = vperm.xlu0 %11562, %v3213_v61   ;;  %v2786_v34 = vld [vmem:[#allocation2 + $0x44] sm:$0xff] }
  0xb1   :  { %v12101_v2 = vpop.permute.xlu1 %281  ;;  %v12103_v3 = vpop.permute.xlu0 %276 }
  0xb2   :  { %1989 = vperm.xlu1 %11563, %v1920_v0   ;;  %3280 = vperm.xlu0 %11562, %v3215_v1   ;;  %v1493_v1 = vld [vmem:[#allocation2 + $0x4e] sm:$0xff] }
  0xb5   :  { %v12105_v6 = vpop.permute.xlu1 %291  ;;  %v12107_v7 = vpop.permute.xlu0 %286 }
  0xb6   :  { %3702 = vperm.xlu1 %11563, %v1487_v42   ;;  %1994 = vperm.xlu0 %11562, %v1921_v5  }
  0xb9   :  { %v12109_v8 = vpop.permute.xlu1 %301  ;;  %v12111_v9 = vpop.permute.xlu0 %296 }
  0xba   :  { %3712 = vperm.xlu1 %11563, %v1489_v58   ;;  %3707 = vperm.xlu0 %11562, %v1488_v31   ;;  %v2787_v31 = vld [vmem:[#allocation2 + $0x4c] sm:$0xff] }
  0xbd   :  { %v12113_v12 = vpop.permute.xlu1 %311  ;;  %v12115_v13 = vpop.permute.xlu0 %306 }
  0xbe   :  { %708 = vperm.xlu1 %11563, %v627_v10   ;;  %703 = vperm.xlu0 %11562, %v626_v11   ;;  %v3219_v10 = vld [vmem:[#allocation2 + $0x4d] sm:$0xff]  ;;  %v3218_v11 = vld [vmem:[#allocation2 + $0x45] sm:$0xff] }
  0xc1   :  { %v12117_v14 = vpop.permute.xlu1 %321  ;;  %v12119_v15 = vpop.permute.xlu0 %316 }
  0xc2   :  { %2426 = vperm.xlu1 %11563, %v11997_v36   ;;  %2421 = vperm.xlu0 %11562, %v11991_v33   ;;  %v11564_v36 = vld [vmem:[%s15526_s3 + $0x8] sm:$0xff]   ;;  %v1491_v33 = vld [vmem:[#allocation2 + $0x3e] sm:$0xff] }
  0xc3   :  { %10615 = vmatpush3.bf16.msra.mxu0 %v11564_v36  ;;  %11553 = vmatpush3.bf16.msra.mxu1 %v11564_v36 }
  0xc4   :  { %10818 = vmatprep.subr.bf16.mxu0 %v15533_v4  ;;  %10716 = vmatprep.subr.bf16.mxu1 %v15533_v4  ;;  %v3220_v4 = vld [vmem:[#allocation2 + $0x55] sm:$0xff] }
  0xc5   :  { %v12123_v18 = vpop.permute.xlu1 %331  ;;  %v12125_v19 = vpop.permute.xlu0 %326 }
  0xc6   :  { %1140 = vperm.xlu1 %11563, %v1059_v16   ;;  %1135 = vperm.xlu0 %11562, %v1058_v17  }
  0xc9   :  { %v12127_v22 = vpop.permute.xlu1 %341  ;;  %v12129_v23 = vpop.permute.xlu0 %336 }
  0xca   :  { %2858 = vperm.xlu1 %11563, %v2785_v20   ;;  %2853 = vperm.xlu0 %11562, %v2784_v21   ;;  %v1925_v20 = vld [vmem:[#allocation2 + $0x4f] sm:$0xff]  ;;  %v1924_v21 = vld [vmem:[#allocation2 + $0x47] sm:$0xff] }
  0xcd   :  { %v12136_v25 = vpop.permute.xlu1 %351  ;;  %v12138_v26 = vpop.permute.xlu0 %346 }
  0xce   :  { %15535 = vst [vmem:[#allocation9_spill] sm:$0xff] %v12136_v25  ;;  %1572 = vperm.xlu1 %11563, %v1491_v33   ;;  %1567 = vperm.xlu0 %11562, %v1490_v24  }
  0xd1   :  { %v12144_v30 = vpop.permute.xlu1 %361  ;;  %v12146_v32 = vpop.permute.xlu0 %356 }
  0xd2   :  { %15536 = vst [vmem:[#allocation10_spill] sm:$0xff] %v12144_v30  ;;  %3290 = vperm.xlu1 %11563, %v3217_v27   ;;  %3285 = vperm.xlu0 %11562, %v3216_v28   ;;  %v631_v28 = vld [vmem:[#allocation2 + $0x51] sm:$0xff] }
  0xd5   :  { %v12148_v39 = vpop.permute.xlu1 %371  ;;  %v12150_v40 = vpop.permute.xlu0 %366 }
  0xd6   :  { %15537 = vst [vmem:[#allocation11_spill] sm:$0xff] %v12148_v39  ;;  %15538 = vst [vmem:[#allocation12_spill] sm:$0xff] %v12150_v40  ;;  %2004 = vperm.xlu1 %11563, %v1923_v37   ;;  %1999 = vperm.xlu0 %11562, %v1922_v38   ;;  %v630_v37 = vld [vmem:[#allocation2 + $0x49] sm:$0xff] }
  0xd9   :  { %v12152_v41 = vpop.permute.xlu1 %381  ;;  %v12154_v42 = vpop.permute.xlu0 %376 }
  0xda   :  { %15539 = vst [vmem:[#allocation13_spill] sm:$0xff] %v12152_v41  ;;  %15540 = vst [vmem:[#allocation14_spill] sm:$0xff] %v12154_v42  ;;  %3722 = vperm.xlu1 %11563, %v1491_v33   ;;  %3717 = vperm.xlu0 %11562, %v1490_v24  }
  0xdd   :  { %v12156_v45 = vpop.permute.xlu1 %391  ;;  %v12158_v47 = vpop.permute.xlu0 %386 }
  0xde   :  { %15541 = vst [vmem:[#allocation15_spill] sm:$0xff] %v12156_v45  ;;  %15542 = vst [vmem:[#allocation16_spill] sm:$0xff] %v12158_v47  ;;  %718 = vperm.xlu1 %11563, %v629_v43   ;;  %713 = vperm.xlu0 %11562, %v628_v44   ;;  %v2791_v45 = vld [vmem:[#allocation2 + $0x6c] sm:$0xff] }
  0xe1   :  { %v12160_v48 = vpop.permute.xlu1 %401  ;;  %v12162_v49 = vpop.permute.xlu0 %396 }
  0xe2   :  { %15543 = vst [vmem:[#allocation17_spill] sm:$0xff] %v12160_v48  ;;  %15544 = vst [vmem:[#allocation18_spill] sm:$0xff] %v12162_v49  ;;  %2436 = vperm.xlu1 %11563, %v12062_v53   ;;  %2431 = vperm.xlu0 %11562, %v11995_v35   ;;  %v1492_v53 = vld [vmem:[#allocation2 + $0x46] sm:$0xff]  ;;  %v12241_v49 = vld [vmem:[%s15524_s1 + $0x3] ss:$0 sm:$0xff] }
  0xe5   :  { %v12166_v52 = vpop.permute.xlu1 %411  ;;  %v12168_v58 = vpop.permute.xlu0 %406 }
  0xe6   :  { %15545 = vst [vmem:[#allocation19_spill] sm:$0xff] %v12166_v52  ;;  %15546 = vst [vmem:[#allocation20_spill] sm:$0xff] %v12168_v58  ;;  %1150 = vperm.xlu1 %11563, %v1061_v50   ;;  %1145 = vperm.xlu0 %11562, %v1060_v51   ;;  %v1063_v51 = vld [vmem:[#allocation2 + $0x52] sm:$0xff]  ;;  %v633_v52 = vld [vmem:[#allocation2 + $0x61] sm:$0xff] }
  0xe7   :  { %v632_v58 = vld [vmem:[#allocation2 + $0x59] sm:$0xff] }
  0xe9   :  { %v12170_v61 = vpop.permute.xlu1 %421  ;;  %v12172_v0 = vpop.permute.xlu0 %416 }
  0xea   :  { %15547 = vst [vmem:[#allocation21_spill] sm:$0xff] %v12170_v61  ;;  %15548 = vst [vmem:[#allocation22_spill] sm:$0xff] %v12172_v0  ;;  %2868 = vperm.xlu1 %11563, %v2787_v31   ;;  %2863 = vperm.xlu0 %11562, %v2786_v34   ;;  %v1062_v31 = vld [vmem:[#allocation2 + $0x4a] sm:$0xff] }
  0xed   :  { %v12174_v5 = vpop.permute.xlu1 %431  ;;  %v12176_v35 = vpop.permute.xlu0 %426 }
  0xee   :  { %15549 = vst [vmem:[#allocation23_spill] sm:$0xff] %v12174_v5  ;;  %15550 = vst [vmem:[#allocation24_spill] sm:$0xff] %v12176_v35  ;;  %1582 = vperm.xlu1 %11563, %v1493_v1   ;;  %1577 = vperm.xlu0 %11562, %v1492_v53   ;;  %v1926_v35 = vld [vmem:[#allocation2 + $0x57] sm:$0xff] }
  0xf1   :  { %v12178_v16 = vpop.permute.xlu1 %441  ;;  %v12180_v17 = vpop.permute.xlu0 %436 }
  0xf2   :  { %15551 = vst [vmem:[#allocation25_spill] sm:$0xff] %v12178_v16  ;;  %15552 = vst [vmem:[#allocation26_spill] sm:$0xff] %v12180_v17  ;;  %3300 = vperm.xlu1 %11563, %v3219_v10   ;;  %3295 = vperm.xlu0 %11562, %v3218_v11   ;;  %v2788_v10 = vld [vmem:[#allocation2 + $0x54] sm:$0xff] }
  0xf5   :  { %v12182_v36 = vpop.permute.xlu1 %451  ;;  %v12184_v33 = vpop.permute.xlu0 %446 }
  0xf6   :  { %15553 = vst [vmem:[#allocation27_spill] sm:$0xff] %v12182_v36  ;;  %15554 = vst [vmem:[#allocation28_spill] sm:$0xff] %v12184_v33  ;;  %2014 = vperm.xlu1 %11563, %v1925_v20   ;;  %2009 = vperm.xlu0 %11562, %v1924_v21   ;;  %v1495_v21 = vld [vmem:[#allocation2 + $0x5e] sm:$0xff] }
  0xf9   :  { %v12186_v24 = vpop.permute.xlu1 %461  ;;  %v12188_v27 = vpop.permute.xlu0 %456 }
  0xfa   :  { %15555 = vst [vmem:[#allocation29_spill] sm:$0xff] %v12186_v24  ;;  %15556 = vst [vmem:[#allocation30_spill] sm:$0xff] %v12188_v27  ;;  %3732 = vperm.xlu1 %11563, %v1493_v1   ;;  %3727 = vperm.xlu0 %11562, %v1492_v53   ;;  %v2789_v53 = vld [vmem:[#allocation2 + $0x5c] sm:$0xff]  ;;  %v2790_v27 = vld [vmem:[#allocation2 + $0x64] sm:$0xff] }
  0xfd   :  { %v12190_v38 = vpop.permute.xlu1 %683  ;;  %v679_v43 = vpop.permute.xlu0 %678 }
  0xfe   :  { %728 = vperm.xlu1 %11563, %v631_v28   ;;  %723 = vperm.xlu0 %11562, %v630_v37   ;;  %v1494_v28 = vld [vmem:[#allocation2 + $0x56] sm:$0xff] }
 0x101   :  { %v1111_v44 = vpop.permute.xlu1 %1110  ;;  %v12192_v50 = vpop.permute.xlu0 %688 }
 0x102   :  { %2446 = vperm.xlu1 %11563, %v12079_v57   ;;  %2441 = vperm.xlu0 %11562, %v12034_v46   ;;  %v3221_v46 = vld [vmem:[#allocation2 + $0x5d] sm:$0xff] }
 0x105   :  { %v12196_v34 = vpop.permute.xlu1 %1120  ;;  %v12198_v1 = vpop.permute.xlu0 %1115 }
 0x106   :  { %1160 = vperm.xlu1 %11563, %v1063_v51   ;;  %1155 = vperm.xlu0 %11562, %v1062_v31   ;;  %v1927_v31 = vld [vmem:[#allocation2 + $0x5f] sm:$0xff] }
 0x109   :  { %v12200_v11 = vpop.permute.xlu1 %1547  ;;  %v1543_v20 = vpop.permute.xlu0 %1542 }
 0x10a   :  { %2878 = vperm.xlu1 %11563, %v2789_v53   ;;  %2873 = vperm.xlu0 %11562, %v2788_v10  }
 0x10d   :  { %v1975_v57 = vpop.permute.xlu1 %1974  ;;  %v12202_v37 = vpop.permute.xlu0 %1552 }
 0x10e   :  { %1592 = vperm.xlu1 %11563, %v1495_v21   ;;  %1587 = vperm.xlu0 %11562, %v1494_v28  }
 0x111   :  { %v12204_v5 = vpop.permute.xlu1 %1984  ;;  %v12206_v51 = vpop.permute.xlu0 %1979 }
 0x112   :  { %3310 = vperm.xlu1 %11563, %v3221_v46   ;;  %3305 = vperm.xlu0 %11562, %v3220_v4  }
 0x115   :  { %v12208_v61 = vpop.permute.xlu1 %698  ;;  %v12210_v53 = vpop.permute.xlu0 %693 }
 0x116   :  { %2024 = vperm.xlu1 %11563, %v1927_v31   ;;  %2019 = vperm.xlu0 %11562, %v1926_v35   ;;  %v12225_v35 = vld [vmem:[%s15524_s1 + $0x1] ss:$0 sm:$0xff]  ;;  %v12230_v31 = vld [vmem:[%s15524_s1] ss:$0 sm:$0xff] }
 0x117   :  { %v515_v36 = vmul.f32 %v12230_v31, %v12091_v55  ;;  %v948_v41 = vmul.f32 %v12225_v35, %v12190_v38  ;;  %v1811_v55 = vmul.f32 %v12241_v49, %v1543_v20  ;;  %v517_v38 = vmul.f32 %v12230_v31, %v12089_v54  ;;  %v12273_v20 = vld [vmem:[#allocation2 + $0x6e] sm:$0xff] }
 0x119   :  { %v12212_v10 = vpop.permute.xlu1 %2411  ;;  %v2407_v0 = vpop.permute.xlu0 %2406 }
 0x11a   :  { %3742 = vperm.xlu1 %11563, %v1495_v21   ;;  %3737 = vperm.xlu0 %11562, %v1494_v28   ;;  %v1065_v21 = vld [vmem:[#allocation2 + $0x62] sm:$0xff]  ;;  %v1064_v28 = vld [vmem:[#allocation2 + $0x5a] sm:$0xff] }
 0x11d   :  { %v12214_v48 = vpop.permute.xlu1 %1125  ;;  %v12216_v24 = vpop.permute.xlu0 %2416 }
 0x11e   :  { %738 = vperm.xlu1 %11563, %v633_v52   ;;  %733 = vperm.xlu0 %11562, %v632_v58   ;;  %v12235_v52 = vld [vmem:[%s15524_s1 + $0x2] ss:$0 sm:$0xff] }
 0x11f   :  { %v1379_v47 = vmul.f32 %v12235_v52, %v1111_v44  ;;  %v516_v44 = vmul.f32 %v12230_v31, %v12095_v29  ;;  %v1380_v17 = vmul.f32 %v12235_v52, %v12198_v1  ;;  %v1812_v29 = vmul.f32 %v12241_v49, %v12200_v11  ;;  %v12283_v1 = vld [vmem:[%s15524_s1 + $0x6] ss:$0 sm:$0xff] }
 0x121   :  { %v2839_v4 = vpop.permute.xlu1 %2838  ;;  %v12218_v46 = vpop.permute.xlu0 %1130 }
 0x122   :  { %2456 = vperm.xlu1 %11563, %v12083_v59   ;;  %2451 = vperm.xlu0 %11562, %v12077_v56   ;;  %v947_v56 = vmul.f32 %v12225_v35, %v679_v43  ;;  %v949_v43 = vmul.f32 %v12225_v35, %v12192_v50  ;;  %v1381_v50 = vmul.f32 %v12235_v52, %v12196_v34 }
 0x123   :  { %v1813_v34 = vmul.f32 %v12241_v49, %v12202_v37  ;;  %v12294_v37 = vld [vmem:[%s15524_s1 + $0x7] ss:$0 sm:$0xff] }
 0x124   :  { %v1000_v33 = vadd.f32 %v947_v56, %v515_v36  ;;  %v12271_v36 = vld [vmem:[%s15524_s1 + $0x5] ss:$0 sm:$0xff]  ;;  %v1001_v56 = vadd.f32 %v948_v41, %v516_v44  ;;  %v1002_v42 = vadd.f32 %v949_v43, %v517_v38  ;;  %v3223_v43 = vld [vmem:[#allocation2 + $0x6d] sm:$0xff] }
 0x125   :  { %v2849_v59 = vpop.permute.xlu1 %2848  ;;  %v2844_v58 = vpop.permute.xlu0 %2843 }
 0x126   :  { %1170 = vperm.xlu1 %11563, %v1065_v21   ;;  %1165 = vperm.xlu0 %11562, %v1064_v28   ;;  %v12253_v21 = vld [vmem:[%s15524_s1 + $0x4] ss:$0 sm:$0xff]  ;;  %v1434_v41 = vadd.f32 %v1381_v50, %v1002_v42  ;;  %v2676_v42 = vmul.f32 %v12271_v36, %v12212_v10  ;;  %v12309_v10 = vld [vmem:[%s15524_s1 + $0x8] ss:$0 sm:$0xff] }
 0x127   :  { %v2243_v54 = vmul.f32 %v12253_v21, %v1975_v57  ;;  %v2245_v11 = vmul.f32 %v12253_v21, %v12204_v5  ;;  %v2244_v57 = vmul.f32 %v12253_v21, %v12206_v51  ;;  %v2677_v5 = vmul.f32 %v12271_v36, %v12216_v24  ;;  %v1929_v24 = vld [vmem:[#allocation2 + $0x6f] sm:$0xff] }
 0x129   :  { %v12255_v28 = vpop.permute.xlu1 %1562  ;;  %v12257_v16 = vpop.permute.xlu0 %1557 }
 0x12a   :  { %2888 = vperm.xlu1 %11563, %v2791_v45   ;;  %2883 = vperm.xlu0 %11562, %v2790_v27   ;;  %v1496_v45 = vld [vmem:[#allocation2 + $0x66] sm:$0xff]  ;;  %v1432_v27 = vadd.f32 %v1379_v47, %v1000_v33  ;;  %v2675_v47 = vmul.f32 %v12271_v36, %v2407_v0  ;;  %v1433_v33 = vadd.f32 %v1380_v17, %v1001_v56 }
 0x12b   :  { %v3107_v0 = vmul.f32 %v12283_v1, %v2839_v4  ;;  %v3109_v4 = vmul.f32 %v12283_v1, %v2849_v59 }
 0x12c   :  { %v1864_v30 = vadd.f32 %v1811_v55, %v1432_v27  ;;  %v3222_v55 = vld [vmem:[#allocation2 + $0x65] sm:$0xff]  ;;  %v1865_v44 = vadd.f32 %v1812_v29, %v1433_v33  ;;  %v1866_v27 = vadd.f32 %v1813_v34, %v1434_v41 }
 0x12d   :  { %v3276_v39 = vpop.permute.xlu1 %3275  ;;  %v3271_v40 = vpop.permute.xlu0 %3270  ;;  %v1928_v29 = vld [vmem:[#allocation2 + $0x67] sm:$0xff] }
 0x12e   :  { %1602 = vperm.xlu1 %11563, %v12273_v20   ;;  %1597 = vperm.xlu0 %11562, %v1496_v45   ;;  %v2296_v38 = vadd.f32 %v2243_v54, %v1864_v30  ;;  %v3539_v56 = vmul.f32 %v12294_v37, %v3271_v40  ;;  %v2298_v25 = vadd.f32 %v2245_v11, %v1866_v27 }
 0x12f   :  { %v2297_v30 = vadd.f32 %v2244_v57, %v1865_v44  ;;  %v3108_v54 = vmul.f32 %v12283_v1, %v2844_v58  ;;  %v3540_v40 = vmul.f32 %v12294_v37, %v3276_v39 }
 0x130   :  { %v2728_v50 = vadd.f32 %v2675_v47, %v2296_v38  ;;  %v2730_v47 = vadd.f32 %v2677_v5, %v2298_v25  ;;  %v12319_v38 = vld [vmem:[%s15525_s2] ss:$0 sm:$0xff] }
 0x131   :  { %v12301_v17 = vpop.permute.xlu1 %1989  ;;  %v3281_v51 = vpop.permute.xlu0 %3280  ;;  %v2729_v41 = vadd.f32 %v2676_v42, %v2297_v30 }
 0x132   :  { %3320 = vperm.xlu1 %11563, %v3223_v43   ;;  %3315 = vperm.xlu0 %11562, %v3222_v55   ;;  %v3160_v34 = vadd.f32 %v3107_v0, %v2728_v50  ;;  %v3541_v33 = vmul.f32 %v12294_v37, %v3281_v51  ;;  %v3162_v43 = vadd.f32 %v3109_v4, %v2730_v47  ;;  %v635_v50 = vld [vmem:[#allocation2 + $0x71] sm:$0xff] }
 0x133   :  { %v3161_v55 = vadd.f32 %v3108_v54, %v2729_v41  ;;  %v634_v54 = vld [vmem:[#allocation2 + $0x69] sm:$0xff] }
 0x134   :  { %v3592_v59 = vadd.f32 %v3539_v56, %v3160_v34  ;;  %v3594_v39 = vadd.f32 %v3541_v33, %v3162_v43 }
 0x135   :  { %v3703_v11 = vpop.permute.xlu1 %3702  ;;  %v12313_v57 = vpop.permute.xlu0 %1994  ;;  %v3593_v0 = vadd.f32 %v3540_v40, %v3161_v55  ;;  %v1067_v55 = vld [vmem:[#allocation2 + $0x72] sm:$0xff] }
 0x136   :  { %v3971_v58 = vmul.f32 %v12309_v10, %v3703_v11  ;;  %2034 = vperm.xlu1 %11563, %v1929_v24   ;;  %2029 = vperm.xlu0 %11562, %v1928_v29  }
 0x138   :  { %v4024_v25 = vadd.f32 %v3971_v58, %v3592_v59 }
 0x139   :  { %v3713_v44 = vpop.permute.xlu1 %3712  ;;  %v3708_v27 = vpop.permute.xlu0 %3707 }
 0x13a   :  { %v4084_v42 = vadd.f32 %v12319_v38, %v4024_v25  ;;  %v3973_v5 = vmul.f32 %v12309_v10, %v3713_v44  ;;  %v3972_v51 = vmul.f32 %v12309_v10, %v3708_v27  ;;  %3752 = vperm.xlu1 %11563, %v12273_v20   ;;  %3747 = vperm.xlu0 %11562, %v1496_v45   ;;  %v2361_v20 = vld [vmem:[#allocation2 + $0x70] sm:$0xff]  ;;  %v2360_v45 = vld [vmem:[#allocation2 + $0x68] sm:$0xff]  ;;  %v2793_v44 = vld [vmem:[#allocation2 + $0x7c] sm:$0xff] }
 0x13b   :  { %v1066_v25 = vld [vmem:[#allocation2 + $0x6a] sm:$0xff]  ;;  %v2792_v27 = vld [vmem:[#allocation2 + $0x74] sm:$0xff] }
 0x13c   :  { %vm4137_vm3 = vcmp.ge.f32.partialorder %v4084_v42, 0.0  ;;  %v4190_v56 = vmul.f32 0.01, %v4084_v42  ;;  %v4026_v30 = vadd.f32 %v3973_v5, %v3594_v39  ;;  %v4025_v4 = vadd.f32 %v3972_v51, %v3593_v0 }
 0x13d   :  { %v12325_v24 = vpop.permute.xlu1 %708  ;;  %v12327_v29 = vpop.permute.xlu0 %703 }
 0x13e   :  { %v4243_v34 = vsel %vm4137_vm3, %v4084_v42, %v4190_v56  ;;  %v4086_v41 = vadd.f32 %v12319_v38, %v4026_v30  ;;  %v4085_v47 = vadd.f32 %v12319_v38, %v4025_v4  ;;  %748 = vperm.xlu1 %11563, %v635_v50   ;;  %743 = vperm.xlu0 %11562, %v634_v54  }
 0x13f   :  { %4297 = vst.msk [vmem:[#allocation3] sm:$0xff] %vm4296_vm2, %v4243_v34  ;;  %v951_v42 = vmul.f32 %v12225_v35, %v12208_v61  ;;  %v950_v50 = vmul.f32 %v12225_v35, %v12210_v53  ;;  %v519_v4 = vmul.f32 %v12230_v31, %v12099_v63  ;;  %v1499_v34 = vld [vmem:[#allocation2 + $0x7e] sm:$0xff]  ;;  %v1382_v61 = vmul.f32 %v12235_v52, %v12214_v48 }
 0x140   :  { %vm4139_vm4 = vcmp.ge.f32.partialorder %v4086_v41, 0.0  ;;  %v4192_v40 = vmul.f32 0.01, %v4086_v41  ;;  %vm4138_vm5 = vcmp.ge.f32.partialorder %v4085_v47, 0.0  ;;  %v4191_v33 = vmul.f32 0.01, %v4085_v47 }
 0x141   :  { %v2427_v11 = vpop.permute.xlu1 %2426  ;;  %v2422_v59 = vpop.permute.xlu0 %2421  ;;  %v1004_v53 = vadd.f32 %v951_v42, %v519_v4  ;;  %v15557_v48 = vmov 0.0  }
 0x142   :  { %v4245_v58 = vsel %vm4139_vm4, %v4086_v41, %v4192_v40  ;;  %v4244_v43 = vsel %vm4138_vm5, %v4085_v47, %v4191_v33  ;;  %2466 = vperm.xlu1 %11563, %v2361_v20   ;;  %2461 = vperm.xlu0 %11562, %v2360_v45   ;;  %v518_v41 = vmul.f32 %v12230_v31, %v12093_v60  ;;  %v1498_v20 = vld [vmem:[#allocation2 + $0x76] sm:$0xff] }
 0x143   :  { %4299 = vst.msk [vmem:[#allocation3 + $0x10] sm:$0xff] %vm4296_vm2, %v4245_v58  ;;  %4298 = vst.msk [vmem:[#allocation3 + $0x8] sm:$0xff] %vm4296_vm2, %v4244_v43  ;;  %v1383_v47 = vmul.f32 %v12235_v52, %v12218_v46  ;;  %v1815_v33 = vmul.f32 %v12241_v49, %v12255_v28  ;;  %v1814_v60 = vmul.f32 %v12241_v49, %v12257_v16  ;;  %v3225_v46 = vld [vmem:[#allocation2 + $0x7d] sm:$0xff] }
 0x144   :  { %v1003_v63 = vadd.f32 %v950_v50, %v518_v41  ;;  %v2679_v16 = vmul.f32 %v12271_v36, %v2427_v11 }
 0x145   :  { %v12334_v0 = vpop.permute.xlu1 %1140  ;;  %v12336_v39 = vpop.permute.xlu0 %1135  ;;  %v1436_v43 = vadd.f32 %v1383_v47, %v1004_v53 }
 0x146   :  { %1180 = vperm.xlu1 %11563, %v1067_v55   ;;  %1175 = vperm.xlu0 %11562, %v1066_v25   ;;  %v1435_v58 = vadd.f32 %v1382_v61, %v1003_v63  ;;  %v2246_v55 = vmul.f32 %v12253_v21, %v12301_v17  ;;  %v2247_v25 = vmul.f32 %v12253_v21, %v12313_v57  ;;  %v1930_v61 = vld [vmem:[#allocation2 + $0x77] sm:$0xff] }
 0x147   :  { %v1868_v42 = vadd.f32 %v1815_v33, %v1436_v43 }
 0x148   :  { %v1867_v50 = vadd.f32 %v1814_v60, %v1435_v58 }
 0x149   :  { %v2859_v5 = vpop.permute.xlu1 %2858  ;;  %v2854_v51 = vpop.permute.xlu0 %2853 }
 0x14a   :  { %2898 = vperm.xlu1 %11563, %v2793_v44   ;;  %v4426_v56 = vld [vmem:[#allocation3 + $0x1] sm:$0xff]  ;;  %v4427_v30 = vld [vmem:[#allocation3 + $0x9] sm:$0xff]  ;;  %2893 = vperm.xlu0 %11562, %v2792_v27   ;;  %v2299_v4 = vadd.f32 %v2246_v55, %v1867_v50  ;;  %v3111_v41 = vmul.f32 %v12283_v1, %v2859_v5  ;;  %v3110_v17 = vmul.f32 %v12283_v1, %v2854_v51 }
 0x14b   :  { %v4475_v54 = vpack.c.bf16 %v4427_v30, %v4426_v56  ;;  %v3224_v44 = vld [vmem:[#allocation2 + $0x75] sm:$0xff]  ;;  %v2678_v56 = vmul.f32 %v12271_v36, %v2422_v59  ;;  %v1931_v30 = vld [vmem:[#allocation2 + $0x7f] sm:$0xff] }
 0x14d   :  { %v12350_v45 = vpop.permute.xlu1 %1572  ;;  %10617 = vmatmul.mubr.msk.bf16.vlgmr.msra.gmra.mrb[0].mxu0 %vm4296_vm2, %v4475_v54  ;;  %v12353_v40 = vpop.permute.xlu0 %1567  ;;  %v2300_v54 = vadd.f32 %v2247_v25, %v1868_v42  ;;  %v2731_v63 = vadd.f32 %v2678_v56, %v2299_v4  ;;  %v637_v25 = vld [vmem:[#allocation2 + $0x81] sm:$0xff]  ;;  %v2362_v4 = vld [vmem:[#allocation2 + $0x78] sm:$0xff] }
 0x14e   :  { %1612 = vperm.xlu1 %11563, %v1499_v34   ;;  %10620 = vmatprep.mubr.msk.bf16.mxu0 %vm11696_vm1, %v15557_v48 }
 0x14f   :  { %1607 = vperm.xlu0 %11562, %v1498_v20   ;;  %v2732_v53 = vadd.f32 %v2679_v16, %v2300_v54  ;;  %v3163_v60 = vadd.f32 %v3110_v17, %v2731_v63  ;;  %v1068_v63 = vld [vmem:[#allocation2 + $0x7a] sm:$0xff] }
 0x151   :  { %v3291_v27 = vpop.permute.xlu1 %3290  ;;  %v3286_v28 = vpop.permute.xlu0 %3285  ;;  %v3164_v33 = vadd.f32 %v3111_v41, %v2732_v53  ;;  %v1069_v53 = vld [vmem:[#allocation2 + $0x82] sm:$0xff] }
 0x152   :  { %3330 = vperm.xlu1 %11563, %v3225_v46   ;;  %v3543_v11 = vmul.f32 %v12294_v37, %v3291_v27  ;;  %v3542_v59 = vmul.f32 %v12294_v37, %v3286_v28  ;;  %v636_v27 = vld [vmem:[#allocation2 + $0x79] sm:$0xff] }
 0x153   :  { %3325 = vperm.xlu0 %11562, %v3224_v44  }
 0x154   :  { %v3596_v5 = vadd.f32 %v3543_v11, %v3164_v33  ;;  %v3595_v43 = vadd.f32 %v3542_v59, %v3163_v60  ;;  %v2795_v33 = vld [vmem:[#allocation2 + $0x8c] sm:$0xff]  ;;  %v2794_v60 = vld [vmem:[#allocation2 + $0x84] sm:$0xff] }
 0x155   :  { %v12369_v57 = vpop.permute.xlu1 %2004  ;;  %v12371_v47 = vpop.permute.xlu0 %1999 }
 0x156   :  { %2044 = vperm.xlu1 %11563, %v1931_v30   ;;  %v2363_v30 = vld [vmem:[#allocation2 + $0x80] sm:$0xff] }
 0x157   :  { %2039 = vperm.xlu0 %11562, %v1930_v61  }
 0x159   :  { %v3723_v46 = vpop.permute.xlu1 %3722  ;;  %v3718_v58 = vpop.permute.xlu0 %3717 }
 0x15a   :  { %v3975_v51 = vmul.f32 %v12309_v10, %v3723_v46  ;;  %v3974_v55 = vmul.f32 %v12309_v10, %v3718_v58  ;;  %3762 = vperm.xlu1 %11563, %v1499_v34   ;;  %v953_v46 = vmul.f32 %v12225_v35, %v12325_v24  ;;  %v1384_v24 = vmul.f32 %v12235_v52, %v12336_v39 }
 0x15b   :  { %3757 = vperm.xlu0 %11562, %v1498_v20  }
 0x15c   :  { %v4028_v44 = vadd.f32 %v3975_v51, %v3596_v5  ;;  %v4027_v42 = vadd.f32 %v3974_v55, %v3595_v43  ;;  %v952_v43 = vmul.f32 %v12225_v35, %v12327_v29  ;;  %v521_v51 = vmul.f32 %v12230_v31, %v12103_v3 }
 0x15d   :  { %v12377_v50 = vpop.permute.xlu1 %718  ;;  %v12379_v28 = vpop.permute.xlu0 %713 }
 0x15e   :  { %v4088_v16 = vadd.f32 %v12319_v38, %v4028_v44  ;;  %v4087_v56 = vadd.f32 %v12319_v38, %v4027_v42  ;;  %758 = vperm.xlu1 %11563, %v637_v25   ;;  %v1501_v44 = vld [vmem:[#allocation2 + $0x8e] sm:$0xff]  ;;  %v520_v42 = vmul.f32 %v12230_v31, %v12097_v62  ;;  %v1006_v29 = vadd.f32 %v953_v46, %v521_v51 }
 0x15f   :  { %753 = vperm.xlu0 %11562, %v636_v27   ;;  %v1385_v27 = vmul.f32 %v12235_v52, %v12334_v0  ;;  %v1816_v62 = vmul.f32 %v12241_v49, %v12353_v40  ;;  %v3227_v0 = vld [vmem:[#allocation2 + $0x8d] sm:$0xff] }
 0x160   :  { %vm4141_vm6 = vcmp.ge.f32.partialorder %v4088_v16, 0.0  ;;  %v4194_v54 = vmul.f32 0.01, %v4088_v16  ;;  %vm4140_vm7 = vcmp.ge.f32.partialorder %v4087_v56, 0.0  ;;  %v4193_v34 = vmul.f32 0.01, %v4087_v56 }
 0x161   :  { %v2437_v20 = vpop.permute.xlu1 %2436  ;;  %v2432_v41 = vpop.permute.xlu0 %2431  ;;  %v1005_v3 = vadd.f32 %v952_v43, %v520_v42  ;;  %v1438_v39 = vadd.f32 %v1385_v27, %v1006_v29  ;;  %v1933_v43 = vld [vmem:[#allocation2 + $0x8f] sm:$0xff]  ;;  %v1932_v42 = vld [vmem:[#allocation2 + $0x87] sm:$0xff] }
 0x162   :  { %v4247_v17 = vsel %vm4141_vm6, %v4088_v16, %v4194_v54  ;;  %v4246_v61 = vsel %vm4140_vm7, %v4087_v56, %v4193_v34  ;;  %2476 = vperm.xlu1 %11563, %v2363_v30   ;;  %v1500_v56 = vld [vmem:[#allocation2 + $0x86] sm:$0xff]  ;;  %v1817_v54 = vmul.f32 %v12241_v49, %v12350_v45  ;;  %v2680_v46 = vmul.f32 %v12271_v36, %v2432_v41 }
 0x163   :  { %4301 = vst.msk [vmem:[#allocation3 + $0x20] sm:$0xff] %vm4296_vm2, %v4247_v17  ;;  %4300 = vst.msk [vmem:[#allocation3 + $0x18] sm:$0xff] %vm4296_vm2, %v4246_v61  ;;  %2471 = vperm.xlu0 %11562, %v2362_v4   ;;  %v1437_v34 = vadd.f32 %v1384_v24, %v1005_v3  ;;  %v2249_v17 = vmul.f32 %v12253_v21, %v12369_v57  ;;  %v2248_v61 = vmul.f32 %v12253_v21, %v12371_v47  ;;  %v3226_v45 = vld [vmem:[#allocation2 + $0x85] sm:$0xff] }
 0x164   :  { %v1870_v40 = vadd.f32 %v1817_v54, %v1438_v39 }
 0x165   :  { %v12385_v11 = vpop.permute.xlu1 %1150  ;;  %v12387_v59 = vpop.permute.xlu0 %1145 }
 0x166   :  { %1190 = vperm.xlu1 %11563, %v1069_v53   ;;  %v2302_v51 = vadd.f32 %v2249_v17, %v1870_v40 }
 0x167   :  { %1185 = vperm.xlu0 %11562, %v1068_v63  }
 0x169   :  { %v2869_v58 = vpop.permute.xlu1 %2868  ;;  %v2864_v5 = vpop.permute.xlu0 %2863 }
 0x16a   :  { %2908 = vperm.xlu1 %11563, %v2795_v33   ;;  %v4428_v55 = vld [vmem:[#allocation3 + $0x11] sm:$0xff]  ;;  %v4429_v25 = vld [vmem:[#allocation3 + $0x19] sm:$0xff]  ;;  %v1869_v33 = vadd.f32 %v1816_v62, %v1437_v34  ;;  %v3112_v57 = vmul.f32 %v12283_v1, %v2864_v5  ;;  %v639_v34 = vld [vmem:[#allocation2 + $0x91] sm:$0xff] }
 0x16b   :  { %2903 = vperm.xlu0 %11562, %v2794_v60   ;;  %v4476_v16 = vpack.c.bf16 %v4429_v25, %v4428_v55  ;;  %v2681_v60 = vmul.f32 %v12271_v36, %v2437_v20  ;;  %v3113_v25 = vmul.f32 %v12283_v1, %v2869_v58 }
 0x16c   :  { %v2301_v55 = vadd.f32 %v2248_v61, %v1869_v33 }
 0x16d   :  { %v12401_v30 = vpop.permute.xlu1 %1582  ;;  %v12403_v4 = vpop.permute.xlu0 %1577  ;;  %10621 = vmatmul.mubr.msk.bf16.gmra.mrb[4].mxu0 %vm4296_vm2, %v4476_v16  ;;  %v2734_v24 = vadd.f32 %v2681_v60, %v2302_v51  ;;  %v2365_v60 = vld [vmem:[#allocation2 + $0x90] sm:$0xff] }
 0x16e   :  { %1622 = vperm.xlu1 %11563, %v1501_v44   ;;  %10624 = vmatprep.mubr.msk.bf16.mxu0 %vm11696_vm1, %v15557_v48  ;;  %v2733_v16 = vadd.f32 %v2680_v46, %v2301_v55  ;;  %v2364_v46 = vld [vmem:[#allocation2 + $0x88] sm:$0xff] }
 0x16f   :  { %1617 = vperm.xlu0 %11562, %v1500_v56   ;;  %v3166_v29 = vadd.f32 %v3113_v25, %v2734_v24 }
 0x170   :  { %v3165_v3 = vadd.f32 %v3112_v57, %v2733_v16  ;;  %v1071_v57 = vld [vmem:[#allocation2 + $0x92] sm:$0xff] }
 0x171   :  { %v3301_v53 = vpop.permute.xlu1 %3300  ;;  %v3296_v63 = vpop.permute.xlu0 %3295 }
 0x172   :  { %3340 = vperm.xlu1 %11563, %v3227_v0   ;;  %v3545_v20 = vmul.f32 %v12294_v37, %v3301_v53  ;;  %v3544_v41 = vmul.f32 %v12294_v37, %v3296_v63 }
 0x173   :  { %3335 = vperm.xlu0 %11562, %v3226_v45   ;;  %v638_v45 = vld [vmem:[#allocation2 + $0x89] sm:$0xff] }
 0x174   :  { %v3598_v58 = vadd.f32 %v3545_v20, %v3166_v29  ;;  %v3597_v0 = vadd.f32 %v3544_v41, %v3165_v3  ;;  %v2797_v20 = vld [vmem:[#allocation2 + $0x9c] sm:$0xff]  ;;  %v2796_v41 = vld [vmem:[#allocation2 + $0x94] sm:$0xff]  ;;  %v955_v29 = vmul.f32 %v12225_v35, %v12377_v50  ;;  %v1386_v50 = vmul.f32 %v12235_v52, %v12387_v59 }
 0x175   :  { %v12420_v47 = vpop.permute.xlu1 %2014  ;;  %v12422_v27 = vpop.permute.xlu0 %2009 }
 0x176   :  { %2054 = vperm.xlu1 %11563, %v1933_v43  }
 0x177   :  { %2049 = vperm.xlu0 %11562, %v1932_v42   ;;  %v1070_v42 = vld [vmem:[#allocation2 + $0x8a] sm:$0xff] }
 0x179   :  { %v3733_v54 = vpop.permute.xlu1 %3732  ;;  %v3728_v62 = vpop.permute.xlu0 %3727 }
 0x17a   :  { %v3977_v5 = vmul.f32 %v12309_v10, %v3733_v54  ;;  %v3976_v39 = vmul.f32 %v12309_v10, %v3728_v62  ;;  %3772 = vperm.xlu1 %11563, %v1501_v44   ;;  %v954_v62 = vmul.f32 %v12225_v35, %v12379_v28 }
 0x17b   :  { %3767 = vperm.xlu0 %11562, %v1500_v56  }
 0x17c   :  { %v4030_v17 = vadd.f32 %v3977_v5, %v3598_v58  ;;  %v4029_v61 = vadd.f32 %v3976_v39, %v3597_v0  ;;  %v523_v58 = vmul.f32 %v12230_v31, %v12107_v7  ;;  %v1503_v39 = vld [vmem:[#allocation2 + $0x9e] sm:$0xff] }
 0x17d   :  { %v12428_v53 = vpop.permute.xlu1 %728  ;;  %v12430_v63 = vpop.permute.xlu0 %723 }
 0x17e   :  { %v4090_v40 = vadd.f32 %v12319_v38, %v4030_v17  ;;  %v4089_v33 = vadd.f32 %v12319_v38, %v4029_v61  ;;  %768 = vperm.xlu1 %11563, %v639_v34   ;;  %v522_v34 = vmul.f32 %v12230_v31, %v12101_v2  ;;  %v1387_v17 = vmul.f32 %v12235_v52, %v12385_v11  ;;  %v3229_v11 = vld [vmem:[#allocation2 + $0x9d] sm:$0xff] }
 0x17f   :  { %763 = vperm.xlu0 %11562, %v638_v45   ;;  %v1502_v45 = vld [vmem:[#allocation2 + $0x96] sm:$0xff]  ;;  %v1008_v28 = vadd.f32 %v955_v29, %v523_v58  ;;  %v1818_v2 = vmul.f32 %v12241_v49, %v12403_v4 }
 0x180   :  { %vm4143_vm8 = vcmp.ge.f32.partialorder %v4090_v40, 0.0  ;;  %v4196_v43 = vmul.f32 0.01, %v4090_v40  ;;  %vm4142_vm9 = vcmp.ge.f32.partialorder %v4089_v33, 0.0  ;;  %v4195_v44 = vmul.f32 0.01, %v4089_v33 }
 0x181   :  { %v2447_v56 = vpop.permute.xlu1 %2446  ;;  %v2442_v51 = vpop.permute.xlu0 %2441  ;;  %v1007_v7 = vadd.f32 %v954_v62, %v522_v34  ;;  %v1440_v59 = vadd.f32 %v1387_v17, %v1008_v28 }
 0x182   :  { %v4249_v55 = vsel %vm4143_vm8, %v4090_v40, %v4196_v43  ;;  %v4248_v25 = vsel %vm4142_vm9, %v4089_v33, %v4195_v44  ;;  %2486 = vperm.xlu1 %11563, %v2365_v60   ;;  %v1819_v60 = vmul.f32 %v12241_v49, %v12401_v30  ;;  %v2251_v43 = vmul.f32 %v12253_v21, %v12420_v47  ;;  %v3228_v30 = vld [vmem:[#allocation2 + $0x95] sm:$0xff] }
 0x183   :  { %4303 = vst.msk [vmem:[#allocation3 + $0x30] sm:$0xff] %vm4296_vm2, %v4249_v55  ;;  %4302 = vst.msk [vmem:[#allocation3 + $0x28] sm:$0xff] %vm4296_vm2, %v4248_v25  ;;  %2481 = vperm.xlu0 %11562, %v2364_v46   ;;  %v1439_v46 = vadd.f32 %v1386_v50, %v1007_v7  ;;  %v2250_v44 = vmul.f32 %v12253_v21, %v12422_v27 }
 0x184   :  { %v1872_v4 = vadd.f32 %v1819_v60, %v1440_v59 }
 0x185   :  { %v12436_v24 = vpop.permute.xlu1 %1160  ;;  %v12438_v16 = vpop.permute.xlu0 %1155 }
 0x186   :  { %1200 = vperm.xlu1 %11563, %v1071_v57   ;;  %v1871_v57 = vadd.f32 %v1818_v2, %v1439_v46  ;;  %v2304_v29 = vadd.f32 %v2251_v43, %v1872_v4  ;;  %v640_v43 = vld [vmem:[#allocation2 + $0x99] sm:$0xff] }
 0x187   :  { %1195 = vperm.xlu0 %11562, %v1070_v42   ;;  %v2683_v42 = vmul.f32 %v12271_v36, %v2447_v56  ;;  %v2367_v4 = vld [vmem:[#allocation2 + $0xa0] sm:$0xff] }
 0x188   :  { %v2303_v62 = vadd.f32 %v2250_v44, %v1871_v57  ;;  %v2366_v57 = vld [vmem:[#allocation2 + $0x98] sm:$0xff] }
 0x189   :  { %v2879_v3 = vpop.permute.xlu1 %2878  ;;  %v2874_v54 = vpop.permute.xlu0 %2873  ;;  %v2736_v34 = vadd.f32 %v2683_v42, %v2304_v29 }
 0x18a   :  { %2918 = vperm.xlu1 %11563, %v2797_v20   ;;  %v4430_v0 = vld [vmem:[#allocation3 + $0x21] sm:$0xff]  ;;  %v4431_v5 = vld [vmem:[#allocation3 + $0x29] sm:$0xff]  ;;  %v2682_v20 = vmul.f32 %v12271_v36, %v2442_v51  ;;  %v3115_v58 = vmul.f32 %v12283_v1, %v2879_v3  ;;  %v3114_v47 = vmul.f32 %v12283_v1, %v2874_v54 }
 0x18b   :  { %2913 = vperm.xlu0 %11562, %v2796_v41   ;;  %v4477_v61 = vpack.c.bf16 %v4431_v5, %v4430_v0  ;;  %v1935_v41 = vld [vmem:[#allocation2 + $0x9f] sm:$0xff]  ;;  %v1934_v0 = vld [vmem:[#allocation2 + $0x97] sm:$0xff] }
 0x18c   :  { %v2735_v17 = vadd.f32 %v2682_v20, %v2303_v62  ;;  %v3168_v50 = vadd.f32 %v3115_v58, %v2736_v34  ;;  %v1073_v62 = vld [vmem:[#allocation2 + $0xa2] sm:$0xff]  ;;  %v1072_v58 = vld [vmem:[#allocation2 + $0x9a] sm:$0xff]  ;;  %v2799_v34 = vld [vmem:[#allocation2 + $0xac] sm:$0xff] }
 0x18d   :  { %v12452_v40 = vpop.permute.xlu1 %1592  ;;  %v12454_v33 = vpop.permute.xlu0 %1587  ;;  %10625 = vmatmul.mubr.msk.bf16.gmra.mrb[8].mxu0 %vm4296_vm2, %v4477_v61 }
 0x18e   :  { %1632 = vperm.xlu1 %11563, %v1503_v39   ;;  %10628 = vmatprep.mubr.msk.bf16.mxu0 %vm11696_vm1, %v15557_v48  ;;  %v3167_v61 = vadd.f32 %v3114_v47, %v2735_v17  ;;  %v2798_v17 = vld [vmem:[#allocation2 + $0xa4] sm:$0xff] }
 0x18f   :  { %1627 = vperm.xlu0 %11562, %v1502_v45  }
 0x191   :  { %v3311_v55 = vpop.permute.xlu1 %3310  ;;  %v3306_v25 = vpop.permute.xlu0 %3305 }
 0x192   :  { %3350 = vperm.xlu1 %11563, %v3229_v11   ;;  %v3547_v56 = vmul.f32 %v12294_v37, %v3311_v55  ;;  %v3546_v51 = vmul.f32 %v12294_v37, %v3306_v25  ;;  %v641_v11 = vld [vmem:[#allocation2 + $0xa1] sm:$0xff] }
 0x193   :  { %3345 = vperm.xlu0 %11562, %v3228_v30  }
 0x194   :  { %v3600_v3 = vadd.f32 %v3547_v56, %v3168_v50  ;;  %v3599_v60 = vadd.f32 %v3546_v51, %v3167_v61  ;;  %v957_v56 = vmul.f32 %v12225_v35, %v12428_v53  ;;  %v956_v61 = vmul.f32 %v12225_v35, %v12430_v63 }
 0x195   :  { %v12471_v27 = vpop.permute.xlu1 %2024  ;;  %v12473_v5 = vpop.permute.xlu0 %2019  ;;  %v1389_v53 = vmul.f32 %v12235_v52, %v12436_v24 }
 0x196   :  { %2064 = vperm.xlu1 %11563, %v1935_v41  }
 0x197   :  { %2059 = vperm.xlu0 %11562, %v1934_v0  }
 0x199   :  { %v3743_v28 = vpop.permute.xlu1 %3742  ;;  %v3738_v7 = vpop.permute.xlu0 %3737 }
 0x19a   :  { %v3979_v54 = vmul.f32 %v12309_v10, %v3743_v28  ;;  %v3978_v2 = vmul.f32 %v12309_v10, %v3738_v7  ;;  %3782 = vperm.xlu1 %11563, %v1503_v39  }
 0x19b   :  { %3777 = vperm.xlu0 %11562, %v1502_v45  }
 0x19c   :  { %v4032_v59 = vadd.f32 %v3979_v54, %v3600_v3  ;;  %v4031_v46 = vadd.f32 %v3978_v2, %v3599_v60  ;;  %v525_v3 = vmul.f32 %v12230_v31, %v12111_v9  ;;  %v1505_v54 = vld [vmem:[#allocation2 + $0xae] sm:$0xff]  ;;  %v524_v2 = vmul.f32 %v12230_v31, %v12105_v6 }
 0x19d   :  { %v12479_v44 = vpop.permute.xlu1 %738  ;;  %v12481_v30 = vpop.permute.xlu0 %733  ;;  %v1820_v6 = vmul.f32 %v12241_v49, %v12454_v33  ;;  %v3231_v31 = vld [vmem:[#allocation2 + $0xad] sm:$0xff] }
 0x19e   :  { %v4092_v55 = vadd.f32 %v12319_v38, %v4032_v59  ;;  %v4091_v25 = vadd.f32 %v12319_v38, %v4031_v46  ;;  %778 = vperm.xlu1 %11563, %v641_v11   ;;  %v1388_v11 = vmul.f32 %v12235_v52, %v12438_v16  ;;  %v1504_v59 = vld [vmem:[#allocation2 + $0xa6] sm:$0xff]  ;;  %v1010_v35 = vadd.f32 %v957_v56, %v525_v3  ;;  %v643_v3 = vld [vmem:[#allocation2 + $0xb1] sm:$0xff] }
 0x19f   :  { %773 = vperm.xlu0 %11562, %v640_v43   ;;  %v1009_v9 = vadd.f32 %v956_v61, %v524_v2  ;;  %v1821_v43 = vmul.f32 %v12241_v49, %v12452_v40  ;;  %v2253_v16 = vmul.f32 %v12253_v21, %v12471_v27 }
 0x1a0   :  { %vm4145_vm10 = vcmp.ge.f32.partialorder %v4092_v55, 0.0  ;;  %v4198_v42 = vmul.f32 0.01, %v4092_v55  ;;  %vm4144_vm11 = vcmp.ge.f32.partialorder %v4091_v25, 0.0  ;;  %v4197_v39 = vmul.f32 0.01, %v4091_v25 }
 0x1a1   :  { %v2457_v45 = vpop.permute.xlu1 %2456  ;;  %v2452_v20 = vpop.permute.xlu0 %2451  ;;  %v1442_v52 = vadd.f32 %v1389_v53, %v1010_v35  ;;  %v1441_v24 = vadd.f32 %v1388_v11, %v1009_v9  ;;  %v642_v53 = vld [vmem:[#allocation2 + $0xa9] sm:$0xff] }
 0x1a2   :  { %v4251_v41 = vsel %vm4145_vm10, %v4092_v55, %v4198_v42  ;;  %v4250_v29 = vsel %vm4144_vm11, %v4091_v25, %v4197_v39  ;;  %2496 = vperm.xlu1 %11563, %v2367_v4   ;;  %v2252_v55 = vmul.f32 %v12253_v21, %v12473_v5  ;;  %v3230_v25 = vld [vmem:[#allocation2 + $0xa5] sm:$0xff]  ;;  %v2685_v49 = vmul.f32 %v12271_v36, %v2457_v45  ;;  %v1937_v39 = vld [vmem:[#allocation2 + $0xaf] sm:$0xff] }
 0x1a3   :  { %4305 = vst.msk [vmem:[#allocation3 + $0x40] sm:$0xff] %vm4296_vm2, %v4251_v41  ;;  %4304 = vst.msk [vmem:[#allocation3 + $0x38] sm:$0xff] %vm4296_vm2, %v4250_v29  ;;  %2491 = vperm.xlu0 %11562, %v2366_v57   ;;  %v1874_v57 = vadd.f32 %v1821_v43, %v1442_v52  ;;  %v1873_v42 = vadd.f32 %v1820_v6, %v1441_v24  ;;  %v2684_v33 = vmul.f32 %v12271_v36, %v2452_v20  ;;  %v2369_v6 = vld [vmem:[#allocation2 + $0xb0] sm:$0xff] }
 0x1a5   :  { %v12487_v47 = vpop.permute.xlu1 %1170  ;;  %v12489_v0 = vpop.permute.xlu0 %1165  ;;  %v2306_v41 = vadd.f32 %v2253_v16, %v1874_v57  ;;  %v2305_v29 = vadd.f32 %v2252_v55, %v1873_v42  ;;  %v2801_v42 = vld [vmem:[#allocation2 + $0xbc] sm:$0xff] }
 0x1a6   :  { %1210 = vperm.xlu1 %11563, %v1073_v62  }
 0x1a7   :  { %1205 = vperm.xlu0 %11562, %v1072_v58   ;;  %v1936_v58 = vld [vmem:[#allocation2 + $0xa7] sm:$0xff] }
 0x1a9   :  { %v2889_v51 = vpop.permute.xlu1 %2888  ;;  %v2884_v50 = vpop.permute.xlu0 %2883 }
 0x1aa   :  { %2928 = vperm.xlu1 %11563, %v2799_v34   ;;  %v4432_v28 = vld [vmem:[#allocation3 + $0x31] sm:$0xff]  ;;  %v4433_v7 = vld [vmem:[#allocation3 + $0x39] sm:$0xff]  ;;  %v3117_v62 = vmul.f32 %v12283_v1, %v2889_v51  ;;  %v3116_v27 = vmul.f32 %v12283_v1, %v2884_v50  ;;  %v2738_v34 = vadd.f32 %v2685_v49, %v2306_v41 }
 0x1ab   :  { %2923 = vperm.xlu0 %11562, %v2798_v17   ;;  %v4478_v60 = vpack.c.bf16 %v4433_v7, %v4432_v28  ;;  %v2737_v17 = vadd.f32 %v2684_v33, %v2305_v29  ;;  %v2800_v49 = vld [vmem:[#allocation2 + $0xb4] sm:$0xff] }
 0x1ac   :  { %v3170_v20 = vadd.f32 %v3117_v62, %v2738_v34 }
 0x1ad   :  { %v12503_v63 = vpop.permute.xlu1 %1602  ;;  %10629 = vmatmul.mubr.msk.bf16.gmra.mrb[12].mxu0 %vm4296_vm2, %v4478_v60  ;;  %v12506_v46 = vpop.permute.xlu0 %1597  ;;  %v3169_v56 = vadd.f32 %v3116_v27, %v2737_v17  ;;  %v1507_v17 = vld [vmem:[#allocation2 + $0xbe] sm:$0xff] }
 0x1ae   :  { %1642 = vperm.xlu1 %11563, %v1505_v54   ;;  %10632 = vmatprep.mubr.msk.bf16.mxu0 %vm11696_vm1, %v15557_v48 }
 0x1af   :  { %1637 = vperm.xlu0 %11562, %v1504_v59  }
 0x1b1   :  { %v3321_v4 = vpop.permute.xlu1 %3320  ;;  %v3316_v40 = vpop.permute.xlu0 %3315 }
 0x1b2   :  { %3360 = vperm.xlu1 %11563, %v3231_v31   ;;  %v3549_v45 = vmul.f32 %v12294_v37, %v3321_v4  ;;  %v3548_v36 = vmul.f32 %v12294_v37, %v3316_v40  ;;  %v2368_v31 = vld [vmem:[#allocation2 + $0xa8] sm:$0xff] }
 0x1b3   :  { %3355 = vperm.xlu0 %11562, %v3230_v25   ;;  %v1075_v25 = vld [vmem:[#allocation2 + $0xb2] sm:$0xff]  ;;  %v1074_v4 = vld [vmem:[#allocation2 + $0xaa] sm:$0xff] }
 0x1b4   :  { %v3602_v51 = vadd.f32 %v3549_v45, %v3170_v20  ;;  %v3601_v7 = vadd.f32 %v3548_v36, %v3169_v56  ;;  %v12554_v45 = vld [vmem:[%s15524_s1] ss:$0 sm:$0xff] }
 0x1b5   :  { %v12522_v21 = vpop.permute.xlu1 %2034  ;;  %v12524_v5 = vpop.permute.xlu0 %2029  ;;  %v527_v36 = vmul.f32 %v12554_v45, %v12115_v13  ;;  %v526_v56 = vmul.f32 %v12554_v45, %v12109_v8 }
 0x1b6   :  { %2074 = vperm.xlu1 %11563, %v1937_v39   ;;  %v12545_v39 = vld [vmem:[%s15524_s1 + $0x1] ss:$0 sm:$0xff] }
 0x1b7   :  { %2069 = vperm.xlu0 %11562, %v1936_v58   ;;  %v959_v41 = vmul.f32 %v12545_v39, %v12479_v44  ;;  %v958_v58 = vmul.f32 %v12545_v39, %v12481_v30  ;;  %v12561_v44 = vld [vmem:[%s15524_s1 + $0x2] ss:$0 sm:$0xff]  ;;  %v1506_v30 = vld [vmem:[#allocation2 + $0xb6] sm:$0xff] }
 0x1b8   :  { %v1391_v20 = vmul.f32 %v12561_v44, %v12487_v47 }
 0x1b9   :  { %v3753_v61 = vpop.permute.xlu1 %3752  ;;  %v3748_v28 = vpop.permute.xlu0 %3747  ;;  %v1012_v13 = vadd.f32 %v959_v41, %v527_v36  ;;  %v1011_v8 = vadd.f32 %v958_v58, %v526_v56 }
 0x1ba   :  { %v3981_v1 = vmul.f32 %v12309_v10, %v3753_v61  ;;  %v3980_v50 = vmul.f32 %v12309_v10, %v3748_v28  ;;  %3792 = vperm.xlu1 %11563, %v1505_v54   ;;  %v1390_v61 = vmul.f32 %v12561_v44, %v12489_v0 }
 0x1bb   :  { %3787 = vperm.xlu0 %11562, %v1504_v59  }
 0x1bc   :  { %v4034_v60 = vadd.f32 %v3981_v1, %v3602_v51  ;;  %v4033_v2 = vadd.f32 %v3980_v50, %v3601_v7  ;;  %v12575_v51 = vld [vmem:[%s15524_s1 + $0x3] ss:$0 sm:$0xff]  ;;  %v1444_v50 = vadd.f32 %v1391_v20, %v1012_v13 }
 0x1bd   :  { %v12530_v11 = vpop.permute.xlu1 %748  ;;  %v12534_v43 = vpop.permute.xlu0 %743  ;;  %v1823_v47 = vmul.f32 %v12575_v51, %v12503_v63  ;;  %v1822_v0 = vmul.f32 %v12575_v51, %v12506_v46  ;;  %v3233_v1 = vld [vmem:[#allocation2 + $0xbd] sm:$0xff]  ;;  %v12597_v46 = vld [vmem:[%s15524_s1 + $0x5] ss:$0 sm:$0xff] }
 0x1be   :  { %v4094_v35 = vadd.f32 %v12319_v38, %v4034_v60  ;;  %v4093_v9 = vadd.f32 %v12319_v38, %v4033_v2  ;;  %788 = vperm.xlu1 %11563, %v643_v3   ;;  %v12588_v3 = vld [vmem:[%s15524_s1 + $0x4] ss:$0 sm:$0xff]  ;;  %v3232_v60 = vld [vmem:[#allocation2 + $0xb5] sm:$0xff]  ;;  %v1443_v2 = vadd.f32 %v1390_v61, %v1011_v8 }
 0x1bf   :  { %783 = vperm.xlu0 %11562, %v642_v53   ;;  %v2255_v63 = vmul.f32 %v12588_v3, %v12522_v21  ;;  %v2254_v53 = vmul.f32 %v12588_v3, %v12524_v5  ;;  %v1939_v21 = vld [vmem:[#allocation2 + $0xbf] sm:$0xff] }
 0x1c0   :  { %vm4147_vm12 = vcmp.ge.f32.partialorder %v4094_v35, 0.0  ;;  %v4200_v52 = vmul.f32 0.01, %v4094_v35  ;;  %vm4146_vm13 = vcmp.ge.f32.partialorder %v4093_v9, 0.0  ;;  %v4199_v54 = vmul.f32 0.01, %v4093_v9 }
 0x1c1   :  { %v2467_v59 = vpop.permute.xlu1 %2466  ;;  %v2462_v55 = vpop.permute.xlu0 %2461  ;;  %v12604_v5 = vld [vmem:[%s15524_s1 + $0x6] ss:$0 sm:$0xff]  ;;  %v644_v8 = vld [vmem:[#allocation2 + $0xb9] sm:$0xff] }
 0x1c2   :  { %v4253_v24 = vsel %vm4147_vm12, %v4094_v35, %v4200_v52  ;;  %v4252_v16 = vsel %vm4146_vm13, %v4093_v9, %v4199_v54  ;;  %2506 = vperm.xlu1 %11563, %v2369_v6   ;;  %v1876_v9 = vadd.f32 %v1823_v47, %v1444_v50  ;;  %v2687_v6 = vmul.f32 %v12597_v46, %v2467_v59  ;;  %v645_v13 = vld [vmem:[#allocation2 + $0xc1] sm:$0xff] }
 0x1c3   :  { %4307 = vst.msk [vmem:[#allocation3 + $0x50] sm:$0xff] %vm4296_vm2, %v4253_v24  ;;  %4306 = vst.msk [vmem:[#allocation3 + $0x48] sm:$0xff] %vm4296_vm2, %v4252_v16  ;;  %2501 = vperm.xlu0 %11562, %v2368_v31   ;;  %v1875_v52 = vadd.f32 %v1822_v0, %v1443_v2  ;;  %v2686_v54 = vmul.f32 %v12597_v46, %v2462_v55  ;;  %v2371_v2 = vld [vmem:[#allocation2 + $0xc0] sm:$0xff] }
 0x1c4   :  { %v2308_v24 = vadd.f32 %v2255_v63, %v1876_v9 }
 0x1c5   :  { %v12538_v40 = vpop.permute.xlu1 %1180  ;;  %v12540_v57 = vpop.permute.xlu0 %1175 }
 0x1c6   :  { %1220 = vperm.xlu1 %11563, %v1075_v25   ;;  %v1938_v25 = vld [vmem:[#allocation2 + $0xb7] sm:$0xff] }
 0x1c7   :  { %1215 = vperm.xlu0 %11562, %v1074_v4   ;;  %v2307_v4 = vadd.f32 %v2254_v53, %v1875_v52  ;;  %v2370_v53 = vld [vmem:[#allocation2 + $0xb8] sm:$0xff] }
 0x1c8   :  { %v1076_v52 = vld [vmem:[#allocation2 + $0xba] sm:$0xff] }
 0x1c9   :  { %v2899_v33 = vpop.permute.xlu1 %2898  ;;  %v2894_v29 = vpop.permute.xlu0 %2893 }
 0x1ca   :  { %2938 = vperm.xlu1 %11563, %v2801_v42   ;;  %v4434_v62 = vld [vmem:[#allocation3 + $0x41] sm:$0xff]  ;;  %v4435_v27 = vld [vmem:[#allocation3 + $0x49] sm:$0xff]  ;;  %v3119_v16 = vmul.f32 %v12604_v5, %v2899_v33  ;;  %v3118_v42 = vmul.f32 %v12604_v5, %v2894_v29 }
 0x1cb   :  { %2933 = vperm.xlu0 %11562, %v2800_v49   ;;  %v4479_v34 = vpack.c.bf16 %v4435_v27, %v4434_v62  ;;  %v2740_v49 = vadd.f32 %v2687_v6, %v2308_v24  ;;  %v2739_v62 = vadd.f32 %v2686_v54, %v2307_v4  ;;  %v12616_v27 = vld [vmem:[%s15524_s1 + $0x7] ss:$0 sm:$0xff]  ;;  %v2803_v24 = vld [vmem:[#allocation2 + $0xcc] sm:$0xff]  ;;  %v961_v4 = vmul.f32 %v12545_v39, %v12530_v11 }
 0x1cc   :  { %v528_v11 = vmul.f32 %v12554_v45, %v12113_v12  ;;  %v3235_v12 = vld [vmem:[#allocation2 + $0xcd] sm:$0xff] }
 0x1cd   :  { %v12569_v28 = vpop.permute.xlu1 %1612  ;;  %10633 = vmatmul.mubr.msk.bf16.gmra.mrb[16].mxu0 %vm4296_vm2, %v4479_v34  ;;  %v3172_v58 = vadd.f32 %v3119_v16, %v2740_v49  ;;  %v3171_v34 = vadd.f32 %v3118_v42, %v2739_v62  ;;  %v2802_v16 = vld [vmem:[#allocation2 + $0xc4] sm:$0xff]  ;;  %v960_v49 = vmul.f32 %v12545_v39, %v12534_v43 }
 0x1ce   :  { %v12579_v7 = vpop.permute.xlu0 %1607  ;;  %1652 = vperm.xlu1 %11563, %v1507_v17   ;;  %10636 = vmatprep.mubr.msk.bf16.mxu0 %vm11696_vm1, %v15557_v48 }
 0x1cf   :  { %1647 = vperm.xlu0 %11562, %v1506_v30  }
 0x1d1   :  { %v3331_v35 = vpop.permute.xlu1 %3330 }
 0x1d2   :  { %v3326_v31 = vpop.permute.xlu0 %3325  ;;  %3370 = vperm.xlu1 %11563, %v3233_v1   ;;  %v3551_v41 = vmul.f32 %v12294_v37, %v3331_v35 }
 0x1d3   :  { %3365 = vperm.xlu0 %11562, %v3232_v60   ;;  %v3550_v33 = vmul.f32 %v12616_v27, %v3326_v31  ;;  %v1077_v31 = vld [vmem:[#allocation2 + $0xc2] sm:$0xff] }
 0x1d4   :  { %v3604_v36 = vadd.f32 %v3551_v41, %v3172_v58  ;;  %v529_v58 = vmul.f32 %v12554_v45, %v12119_v15 }
 0x1d5   :  { %v12608_v59 = vpop.permute.xlu1 %2044  ;;  %v3603_v37 = vadd.f32 %v3550_v33, %v3171_v34  ;;  %v1509_v33 = vld [vmem:[#allocation2 + $0xce] sm:$0xff]  ;;  %v1393_v34 = vmul.f32 %v12561_v44, %v12538_v40  ;;  %v1013_v40 = vadd.f32 %v960_v49, %v528_v11 }
 0x1d6   :  { %v12611_v55 = vpop.permute.xlu0 %2039  ;;  %2084 = vperm.xlu1 %11563, %v1939_v21   ;;  %v136_v21 = vld [vmem:[%s15523_s0 + $0x160] sm:$0xff]  ;;  %v1014_v43 = vadd.f32 %v961_v4, %v529_v58 }
 0x1d7   :  { %2079 = vperm.xlu0 %11562, %v1938_v25   ;;  %185 = vst.msk [vmem:[#allocation2 + $0x160] sm:$0xff] %vm34_vm0, %v136_v21 }
 0x1d9   :  { %v3763_v29 = vpop.permute.xlu1 %3762 }
 0x1da   :  { %v3983_v20 = vmul.f32 %v12309_v10, %v3763_v29  ;;  %v3758_v56 = vpop.permute.xlu0 %3757  ;;  %3802 = vperm.xlu1 %11563, %v1507_v17  }
 0x1db   :  { %v3982_v61 = vmul.f32 %v12309_v10, %v3758_v56  ;;  %3797 = vperm.xlu0 %11562, %v1506_v30  }
 0x1dc   :  { %v4036_v47 = vadd.f32 %v3983_v20, %v3604_v36  ;;  %v1508_v36 = vld [vmem:[#allocation2 + $0xc6] sm:$0xff]  ;;  %v1392_v20 = vmul.f32 %v12561_v44, %v12540_v57  ;;  %v1446_v57 = vadd.f32 %v1393_v34, %v1014_v43 }
 0x1dd   :  { %v4035_v0 = vadd.f32 %v3982_v61, %v3603_v37  ;;  %v12621_v1 = vpop.permute.xlu1 %758  ;;  %v1825_v37 = vmul.f32 %v12575_v51, %v12569_v28  ;;  %v1824_v61 = vmul.f32 %v12575_v51, %v12579_v7 }
 0x1de   :  { %v4096_v50 = vadd.f32 %v12319_v38, %v4036_v47  ;;  %v12624_v63 = vpop.permute.xlu0 %753  ;;  %798 = vperm.xlu1 %11563, %v645_v13   ;;  %v2257_v13 = vmul.f32 %v12588_v3, %v12608_v59  ;;  %v3234_v47 = vld [vmem:[#allocation2 + $0xc5] sm:$0xff]  ;;  %v1445_v28 = vadd.f32 %v1392_v20, %v1013_v40  ;;  %v12686_v40 = vld [vmem:[%s15525_s2] ss:$0 sm:$0xff] }
 0x1df   :  { %v4095_v60 = vadd.f32 %v12319_v38, %v4035_v0  ;;  %793 = vperm.xlu0 %11562, %v644_v8   ;;  %v2256_v8 = vmul.f32 %v12588_v3, %v12611_v55  ;;  %v1940_v59 = vld [vmem:[#allocation2 + $0xc7] sm:$0xff] }
 0x1e0   :  { %vm4149_vm14 = vcmp.ge.f32.partialorder %v4096_v50, 0.0  ;;  %v4202_v17 = vmul.f32 0.01, %v4096_v50  ;;  %v1877_v7 = vadd.f32 %v1824_v61, %v1445_v28  ;;  %v646_v20 = vld [vmem:[#allocation2 + $0xc9] sm:$0xff] }
 0x1e1   :  { %vm4148_vm15 = vcmp.ge.f32.partialorder %v4095_v60, 0.0  ;;  %v4201_v10 = vmul.f32 0.01, %v4095_v60  ;;  %v2477_v30 = vpop.permute.xlu1 %2476 }
 0x1e2   :  { %v4255_v35 = vsel %vm4149_vm14, %v4096_v50, %v4202_v17  ;;  %v2472_v9 = vpop.permute.xlu0 %2471  ;;  %2516 = vperm.xlu1 %11563, %v2371_v2   ;;  %v1878_v50 = vadd.f32 %v1825_v37, %v1446_v57 }
 0x1e3   :  { %4309 = vst.msk [vmem:[#allocation3 + $0x60] sm:$0xff] %vm4296_vm2, %v4255_v35  ;;  %v4254_v6 = vsel %vm4148_vm15, %v4095_v60, %v4201_v10  ;;  %2511 = vperm.xlu0 %11562, %v2370_v53   ;;  %v2689_v60 = vmul.f32 %v12597_v46, %v2477_v30  ;;  %v2688_v17 = vmul.f32 %v12597_v46, %v2472_v9  ;;  %v1941_v53 = vld [vmem:[#allocation2 + $0xcf] sm:$0xff] }
 0x1e4   :  { %4308 = vst.msk [vmem:[#allocation3 + $0x58] sm:$0xff] %vm4296_vm2, %v4254_v6  ;;  %v2310_v10 = vadd.f32 %v2257_v13, %v1878_v50  ;;  %v2309_v6 = vadd.f32 %v2256_v8, %v1877_v7  ;;  %v2372_v13 = vld [vmem:[#allocation2 + $0xc8] sm:$0xff] }
 0x1e5   :  { %v12629_v38 = vpop.permute.xlu1 %1190 }
 0x1e6   :  { %v12631_v54 = vpop.permute.xlu0 %1185  ;;  %1230 = vperm.xlu1 %11563, %v1077_v31   ;;  %v2742_v55 = vadd.f32 %v2689_v60, %v2310_v10  ;;  %v1079_v60 = vld [vmem:[#allocation2 + $0xd2] sm:$0xff] }
 0x1e7   :  { %1225 = vperm.xlu0 %11562, %v1076_v52   ;;  %v2804_v10 = vld [vmem:[#allocation2 + $0xd4] sm:$0xff] }
 0x1e9   :  { %v2909_v25 = vpop.permute.xlu1 %2908 }
 0x1ea   :  { %v2904_v42 = vpop.permute.xlu0 %2903  ;;  %2948 = vperm.xlu1 %11563, %v2803_v24   ;;  %v3121_v35 = vmul.f32 %v12604_v5, %v2909_v25  ;;  %v2741_v24 = vadd.f32 %v2688_v17, %v2309_v6 }
 0x1eb   :  { %2943 = vperm.xlu0 %11562, %v2802_v16   ;;  %v4436_v41 = vld [vmem:[#allocation3 + $0x51] sm:$0xff]  ;;  %v4437_v62 = vld [vmem:[#allocation3 + $0x59] sm:$0xff]  ;;  %v3120_v31 = vmul.f32 %v12604_v5, %v2904_v42 }
 0x1ec   :  { %v4480_v29 = vpack.c.bf16 %v4437_v62, %v4436_v41  ;;  %v3174_v16 = vadd.f32 %v3121_v35, %v2742_v55  ;;  %v12677_v42 = vld [vmem:[%s15524_s1 + $0x8] ss:$0 sm:$0xff] }
 0x1ed   :  { %v12649_v56 = vpop.permute.xlu1 %1622  ;;  %v3173_v4 = vadd.f32 %v3120_v31, %v2741_v24  ;;  %v962_v31 = vmul.f32 %v12545_v39, %v12624_v63  ;;  %v12702_v24 = vld [vmem:[#allocation2 + $0xde] sm:$0xff] }
 0x1ee   :  { %10637 = vmatmul.mubr.msk.bf16.gmra.mrb[20].mxu0 %vm4296_vm2, %v4480_v29  ;;  %v12654_v15 = vpop.permute.xlu0 %1617  ;;  %1662 = vperm.xlu1 %11563, %v1509_v33   ;;  %v647_v29 = vld [vmem:[#allocation2 + $0xd1] sm:$0xff] }
 0x1ef   :  { %1657 = vperm.xlu0 %11562, %v1508_v36   ;;  %10640 = vmatprep.mubr.msk.bf16.mxu0 %vm11696_vm1, %v15557_v48 }
 0x1f1   :  { %v3341_v0 = vpop.permute.xlu1 %3340 }
 0x1f2   :  { %v3336_v2 = vpop.permute.xlu0 %3335  ;;  %3380 = vperm.xlu1 %11563, %v3235_v12   ;;  %v3553_v21 = vmul.f32 %v12616_v27, %v3341_v0 }
 0x1f3   :  { %3375 = vperm.xlu0 %11562, %v3234_v47   ;;  %v3552_v9 = vmul.f32 %v12616_v27, %v3336_v2  ;;  %v1078_v2 = vld [vmem:[#allocation2 + $0xca] sm:$0xff] }
 0x1f4   :  { %v3606_v25 = vadd.f32 %v3553_v21, %v3174_v16  ;;  %v1395_v16 = vmul.f32 %v12561_v44, %v12629_v38 }
 0x1f5   :  { %v12668_v52 = vpop.permute.xlu1 %2054  ;;  %v3605_v58 = vadd.f32 %v3552_v9, %v3173_v4  ;;  %v531_v9 = vmul.f32 %v12554_v45, %v12125_v19 }
 0x1f6   :  { %v12671_v30 = vpop.permute.xlu0 %2049  ;;  %2094 = vperm.xlu1 %11563, %v1941_v53   ;;  %v2805_v53 = vld [vmem:[#allocation2 + $0xdc] sm:$0xff] }
 0x1f7   :  { %2089 = vperm.xlu0 %11562, %v1940_v59   ;;  %v963_v59 = vmul.f32 %v12545_v39, %v12621_v1  ;;  %v530_v1 = vmul.f32 %v12554_v45, %v12117_v14  ;;  %v3237_v14 = vld [vmem:[#allocation2 + $0xdd] sm:$0xff] }
 0x1f9   :  { %v3773_v49 = vpop.permute.xlu1 %3772  ;;  %v1015_v38 = vadd.f32 %v962_v31, %v530_v1 }
 0x1fa   :  { %v3985_v41 = vmul.f32 %v12677_v42, %v3773_v49  ;;  %v3768_v62 = vpop.permute.xlu0 %3767  ;;  %3812 = vperm.xlu1 %11563, %v1509_v33   ;;  %v1510_v49 = vld [vmem:[#allocation2 + $0xd6] sm:$0xff] }
 0x1fb   :  { %v3984_v34 = vmul.f32 %v12677_v42, %v3768_v62  ;;  %3807 = vperm.xlu0 %11562, %v1508_v36   ;;  %v2373_v36 = vld [vmem:[#allocation2 + $0xd0] sm:$0xff]  ;;  %v1827_v62 = vmul.f32 %v12575_v51, %v12649_v56 }
 0x1fc   :  { %v4038_v11 = vadd.f32 %v3985_v41, %v3606_v25  ;;  %v1394_v25 = vmul.f32 %v12561_v44, %v12631_v54  ;;  %v1016_v41 = vadd.f32 %v963_v59, %v531_v9  ;;  %v3236_v56 = vld [vmem:[#allocation2 + $0xd5] sm:$0xff] }
 0x1fd   :  { %v4037_v43 = vadd.f32 %v3984_v34, %v3605_v58  ;;  %v12681_v37 = vpop.permute.xlu1 %768  ;;  %v1826_v58 = vmul.f32 %v12575_v51, %v12654_v15  ;;  %v2259_v34 = vmul.f32 %v12588_v3, %v12668_v52  ;;  %v137_v15 = vld [vmem:[%s15523_s0 + $0x168] sm:$0xff]  ;;  %v660_v52 = vld [vmem:[#allocation2 + $0x139] sm:$0xff] }
 0x1fe   :  { %v4098_v61 = vadd.f32 %v12686_v40, %v4038_v11  ;;  %v12689_v12 = vpop.permute.xlu0 %763  ;;  %808 = vperm.xlu1 %11563, %v647_v29   ;;  %v1448_v54 = vadd.f32 %v1395_v16, %v1016_v41  ;;  %v1447_v29 = vadd.f32 %v1394_v25, %v1015_v38  ;;  %v2258_v11 = vmul.f32 %v12588_v3, %v12671_v30  ;;  %v1942_v59 = vld [vmem:[#allocation2 + $0xd7] sm:$0xff]  ;;  %v1943_v41 = vld [vmem:[#allocation2 + $0xdf] sm:$0xff] }
 0x1ff   :  { %v4097_v33 = vadd.f32 %v12686_v40, %v4037_v43  ;;  %803 = vperm.xlu0 %11562, %v646_v20   ;;  %186 = vst.msk [vmem:[#allocation2 + $0x168] sm:$0xff] %vm34_vm0, %v137_v15 }
 0x200   :  { %vm4151_vm3 = vcmp.ge.f32.partialorder %v4098_v61, 0.0  ;;  %v4204_v57 = vmul.f32 0.01, %v4098_v61  ;;  %v1880_v43 = vadd.f32 %v1827_v62, %v1448_v54 }
 0x201   :  { %vm4150_vm4 = vcmp.ge.f32.partialorder %v4097_v33, 0.0  ;;  %v4203_v47 = vmul.f32 0.01, %v4097_v33  ;;  %v2487_v28 = vpop.permute.xlu1 %2486 }
 0x202   :  { %v4257_v8 = vsel %vm4151_vm3, %v4098_v61, %v4204_v57  ;;  %v2482_v0 = vpop.permute.xlu0 %2481  ;;  %2526 = vperm.xlu1 %11563, %v2373_v36   ;;  %v2691_v61 = vmul.f32 %v12597_v46, %v2487_v28  ;;  %v1879_v36 = vadd.f32 %v1826_v58, %v1447_v29 }
 0x203   :  { %4311 = vst.msk [vmem:[#allocation3 + $0x70] sm:$0xff] %vm4296_vm2, %v4257_v8  ;;  %v4256_v50 = vsel %vm4150_vm4, %v4097_v33, %v4203_v47  ;;  %2521 = vperm.xlu0 %11562, %v2372_v13   ;;  %v2690_v57 = vmul.f32 %v12597_v46, %v2482_v0  ;;  %v2312_v13 = vadd.f32 %v2259_v34, %v1880_v43  ;;  %v659_v47 = vld [vmem:[#allocation2 + $0x131] sm:$0xff]  ;;  %v648_v34 = vld [vmem:[#allocation2 + $0xd9] sm:$0xff] }
 0x204   :  { %4310 = vst.msk [vmem:[#allocation3 + $0x68] sm:$0xff] %vm4296_vm2, %v4256_v50  ;;  %v2311_v8 = vadd.f32 %v2258_v11, %v1879_v36 }
 0x205   :  { %v12694_v7 = vpop.permute.xlu1 %1200 }
 0x206   :  { %v12696_v17 = vpop.permute.xlu0 %1195  ;;  %1240 = vperm.xlu1 %11563, %v1079_v60   ;;  %v2744_v60 = vadd.f32 %v2691_v61, %v2312_v13  ;;  %v2743_v0 = vadd.f32 %v2690_v57, %v2311_v8  ;;  %v1091_v57 = vld [vmem:[#allocation2 + $0x132] sm:$0xff]  ;;  %v1092_v8 = vld [vmem:[#allocation2 + $0x13a] sm:$0xff] }
 0x207   :  { %1235 = vperm.xlu0 %11562, %v1078_v2  }
 0x209   :  { %v2919_v35 = vpop.permute.xlu1 %2918 }
 0x20a   :  { %v2914_v6 = vpop.permute.xlu0 %2913  ;;  %2958 = vperm.xlu1 %11563, %v2805_v53   ;;  %v3123_v30 = vmul.f32 %v12604_v5, %v2919_v35 }
 0x20b   :  { %2953 = vperm.xlu0 %11562, %v2804_v10   ;;  %v4438_v55 = vld [vmem:[#allocation3 + $0x61] sm:$0xff]  ;;  %v4439_v21 = vld [vmem:[#allocation3 + $0x69] sm:$0xff]  ;;  %v3122_v28 = vmul.f32 %v12604_v5, %v2914_v6 }
 0x20c   :  { %v4481_v4 = vpack.c.bf16 %v4439_v21, %v4438_v55  ;;  %v3176_v31 = vadd.f32 %v3123_v30, %v2744_v60  ;;  %v661_v55 = vld [vmem:[#allocation2 + $0x141] sm:$0xff]  ;;  %v965_v60 = vmul.f32 %v12545_v39, %v12681_v37  ;;  %v532_v37 = vmul.f32 %v12554_v45, %v12123_v18 }
 0x20d   :  { %v12712_v63 = vpop.permute.xlu1 %1632  ;;  %v3175_v35 = vadd.f32 %v3122_v28, %v2743_v0 }
 0x20e   :  { %10641 = vmatmul.mubr.msk.bf16.gmra.mrb[24].mxu0 %vm4296_vm2, %v4481_v4  ;;  %v12717_v19 = vpop.permute.xlu0 %1627  ;;  %1672 = vperm.xlu1 %11563, %v12702_v24  }
 0x20f   :  { %1667 = vperm.xlu0 %11562, %v1510_v49   ;;  %10644 = vmatprep.mubr.msk.bf16.mxu0 %vm11696_vm1, %v15557_v48  ;;  %v1828_v18 = vmul.f32 %v12575_v51, %v12717_v19 }
 0x211   :  { %v3351_v20 = vpop.permute.xlu1 %3350 }
 0x212   :  { %v3346_v33 = vpop.permute.xlu0 %3345  ;;  %3390 = vperm.xlu1 %11563, %v3237_v14   ;;  %v3555_v2 = vmul.f32 %v12616_v27, %v3351_v20 }
 0x213   :  { %3385 = vperm.xlu0 %11562, %v3236_v56   ;;  %v3554_v10 = vmul.f32 %v12616_v27, %v3346_v33 }
 0x214   :  { %v3608_v9 = vadd.f32 %v3555_v2, %v3176_v31  ;;  %v533_v31 = vmul.f32 %v12554_v45, %v12129_v23 }
 0x215   :  { %v12736_v50 = vpop.permute.xlu1 %2064  ;;  %v3607_v4 = vadd.f32 %v3554_v10, %v3175_v35 }
 0x216   :  { %v12739_v53 = vpop.permute.xlu0 %2059  ;;  %873 = vperm.xlu1 %11563, %v660_v52   ;;  %v649_v52 = vld [vmem:[#allocation2 + $0xe1] sm:$0xff] }
 0x217   :  { %868 = vperm.xlu0 %11562, %v659_v47   ;;  %v1093_v47 = vld [vmem:[#allocation2 + $0x142] sm:$0xff] }
 0x219   :  { %v3783_v21 = vpop.permute.xlu1 %3782 }
 0x21a   :  { %v3987_v6 = vmul.f32 %v12677_v42, %v3783_v21  ;;  %v3778_v16 = vpop.permute.xlu0 %3777  ;;  %2099 = vperm.xlu1 %11563, %v1942_v59   ;;  %v2375_v59 = vld [vmem:[#allocation2 + $0xe0] sm:$0xff]  ;;  %v2374_v21 = vld [vmem:[#allocation2 + $0xd8] sm:$0xff] }
 0x21b   :  { %v3986_v1 = vmul.f32 %v12677_v42, %v3778_v16  ;;  %878 = vperm.xlu0 %11562, %v661_v55   ;;  %v1397_v55 = vmul.f32 %v12561_v44, %v12694_v7  ;;  %v1829_v16 = vmul.f32 %v12575_v51, %v12712_v63  ;;  %v138_v7 = vld [vmem:[%s15523_s0 + $0x170] sm:$0xff] }
 0x21c   :  { %v4040_v25 = vadd.f32 %v3987_v6, %v3608_v9  ;;  %v1396_v9 = vmul.f32 %v12561_v44, %v12696_v17  ;;  %v1081_v17 = vld [vmem:[#allocation2 + $0xe2] sm:$0xff]  ;;  %187 = vst.msk [vmem:[#allocation2 + $0x170] sm:$0xff] %vm34_vm0, %v138_v7 }
 0x21d   :  { %v4039_v62 = vadd.f32 %v3986_v1, %v3607_v4  ;;  %v12744_v38 = vpop.permute.xlu1 %778  ;;  %v2261_v1 = vmul.f32 %v12588_v3, %v12736_v50  ;;  %v1523_v50 = vld [vmem:[#allocation2 + $0x13e] sm:$0xff] }
 0x21e   :  { %v4100_v58 = vadd.f32 %v12686_v40, %v4040_v25  ;;  %v12747_v14 = vpop.permute.xlu0 %773  ;;  %3817 = vperm.xlu1 %11563, %v1510_v49   ;;  %v1080_v25 = vld [vmem:[#allocation2 + $0xda] sm:$0xff] }
 0x21f   :  { %v4099_v54 = vadd.f32 %v12686_v40, %v4039_v62  ;;  %2104 = vperm.xlu0 %11562, %v1943_v41   ;;  %v2260_v62 = vmul.f32 %v12588_v3, %v12739_v53 }
 0x220   :  { %vm4153_vm5 = vcmp.ge.f32.partialorder %v4100_v58, 0.0  ;;  %v4206_v56 = vmul.f32 0.01, %v4100_v58  ;;  %v12750_v29 = vpop.f32.mrb[0].mxu0 }
 0x221   :  { %15558 = vst [vmem:[#allocation31_spill] sm:$0xff] %v12750_v29  ;;  %vm4152_vm6 = vcmp.ge.f32.partialorder %v4099_v54, 0.0  ;;  %v4205_v11 = vmul.f32 0.01, %v4099_v54  ;;  %v2497_v20 = vpop.permute.xlu1 %2496  ;;  %v10618_v43 = vpop.f32.mrb[1].mxu0 }
 0x222   :  { %v4259_v61 = vsel %vm4153_vm5, %v4100_v58, %v4206_v56  ;;  %v2492_v33 = vpop.permute.xlu0 %2491  ;;  %813 = vperm.xlu1 %11563, %v648_v34   ;;  %v12752_v15 = vpop.f32.mrb[2].mxu0  ;;  %v2693_v19 = vmul.f32 %v12597_v46, %v2497_v20  ;;  %v1524_v43 = vld [vmem:[#allocation2 + $0x146] sm:$0xff] }
 0x223   :  { %15559 = vst [vmem:[#allocation32_spill] sm:$0xff] %v12752_v15  ;;  %4313 = vst.msk [vmem:[#allocation3 + $0x80] sm:$0xff] %vm4296_vm2, %v4259_v61  ;;  %v4258_v49 = vsel %vm4152_vm6, %v4099_v54, %v4205_v11  ;;  %3822 = vperm.xlu0 %11562, %v12702_v24   ;;  %v10619_v36 = vpop.f32.mrb[3].mxu0  ;;  %v964_v24 = vmul.f32 %v12545_v39, %v12689_v12  ;;  %v1018_v12 = vadd.f32 %v965_v60, %v533_v31  ;;  %v2806_v60 = vld [vmem:[#allocation2 + $0xe4] sm:$0xff] }
 0x224   :  { %4312 = vst.msk [vmem:[#allocation3 + $0x78] sm:$0xff] %vm4296_vm2, %v4258_v49  ;;  %v2692_v11 = vmul.f32 %v12597_v46, %v2492_v33 }
 0x225   :  { %v12757_v13 = vpop.permute.xlu1 %1210  ;;  %v1017_v4 = vadd.f32 %v964_v24, %v532_v37  ;;  %v1450_v63 = vadd.f32 %v1397_v55, %v1018_v12 }
 0x226   :  { %v12759_v30 = vpop.permute.xlu0 %1205  ;;  %1300 = vperm.xlu1 %11563, %v1091_v57  }
 0x227   :  { %818 = vperm.xlu0 %11562, %v649_v52   ;;  %v1449_v41 = vadd.f32 %v1396_v9, %v1017_v4  ;;  %v1882_v54 = vadd.f32 %v1829_v16, %v1450_v63  ;;  %v2807_v9 = vld [vmem:[#allocation2 + $0xec] sm:$0xff] }
 0x229   :  { %v2929_v28 = vpop.permute.xlu1 %2928  ;;  %v1881_v56 = vadd.f32 %v1828_v18, %v1449_v41  ;;  %v2314_v61 = vadd.f32 %v2261_v1, %v1882_v54  ;;  %v12816_v1 = vld [vmem:[#allocation2 + $0xee] sm:$0xff] }
 0x22a   :  { %v2924_v2 = vpop.permute.xlu0 %2923  ;;  %1310 = vperm.xlu1 %11563, %v1093_v47   ;;  %v3125_v49 = vmul.f32 %v12604_v5, %v2929_v28 }
 0x22b   :  { %1305 = vperm.xlu0 %11562, %v1092_v8   ;;  %v4440_v0 = vld [vmem:[#allocation3 + $0x71] sm:$0xff]  ;;  %v4441_v10 = vld [vmem:[#allocation3 + $0x79] sm:$0xff]  ;;  %v2313_v36 = vadd.f32 %v2260_v62, %v1881_v56  ;;  %v3124_v57 = vmul.f32 %v12604_v5, %v2924_v2  ;;  %v2746_v53 = vadd.f32 %v2693_v19, %v2314_v61 }
 0x22c   :  { %v4482_v35 = vpack.c.bf16 %v4441_v10, %v4440_v0  ;;  %v12802_v0 = vld [vmem:[#allocation2 + $0x14e] sm:$0xff] }
 0x22d   :  { %v12773_v6 = vpop.permute.xlu1 %1642  ;;  %v2745_v8 = vadd.f32 %v2692_v11, %v2313_v36  ;;  %v3178_v24 = vadd.f32 %v3125_v49, %v2746_v53  ;;  %v1957_v11 = vld [vmem:[#allocation2 + $0x14f] sm:$0xff]  ;;  %v1956_v61 = vld [vmem:[#allocation2 + $0x147] sm:$0xff] }
 0x22e   :  { %10645 = vmatmul.mubr.msk.bf16.gmra.mrb[28].mxu0 %vm4296_vm2, %v4482_v35  ;;  %v12778_v23 = vpop.permute.xlu0 %1637  ;;  %2536 = vperm.xlu1 %11563, %v2375_v59   ;;  %v3239_v36 = vld [vmem:[#allocation2 + $0xed] sm:$0xff] }
 0x22f   :  { %2531 = vperm.xlu0 %11562, %v2374_v21   ;;  %10648 = vmatprep.mubr.msk.bf16.mxu0 %vm11696_vm1, %v15557_v48  ;;  %v3177_v28 = vadd.f32 %v3124_v57, %v2745_v8  ;;  %v12807_v21 = vld [vmem:[#allocation2 + $0xe6] sm:$0xff] }
 0x230   :  { %v3238_v57 = vld [vmem:[#allocation2 + $0xe5] sm:$0xff] }
 0x231   :  { %v3361_v58 = vpop.permute.xlu1 %3360 }
 0x232   :  { %v3356_v34 = vpop.permute.xlu0 %3355  ;;  %1250 = vperm.xlu1 %11563, %v1081_v17   ;;  %v3557_v47 = vmul.f32 %v12616_v27, %v3361_v58  ;;  %v1955_v17 = vld [vmem:[#allocation2 + $0x13f] sm:$0xff] }
 0x233   :  { %1245 = vperm.xlu0 %11562, %v1080_v25   ;;  %v3556_v33 = vmul.f32 %v12616_v27, %v3356_v34 }
 0x234   :  { %v3610_v59 = vadd.f32 %v3557_v47, %v3178_v24  ;;  %v967_v47 = vmul.f32 %v12545_v39, %v12744_v38  ;;  %v534_v38 = vmul.f32 %v12554_v45, %v12127_v22  ;;  %v1945_v22 = vld [vmem:[#allocation2 + $0xef] sm:$0xff] }
 0x235   :  { %v12796_v52 = vpop.permute.xlu1 %2074  ;;  %v3609_v55 = vadd.f32 %v3556_v33, %v3177_v28  ;;  %v966_v33 = vmul.f32 %v12545_v39, %v12747_v14  ;;  %v663_v28 = vld [vmem:[#allocation2 + $0x151] sm:$0xff] }
 0x236   :  { %v12799_v20 = vpop.permute.xlu0 %2069  ;;  %1737 = vperm.xlu1 %11563, %v1524_v43  }
 0x237   :  { %1732 = vperm.xlu0 %11562, %v1523_v50  }
 0x239   :  { %v3793_v10 = vpop.permute.xlu1 %3792 }
 0x23a   :  { %v3989_v2 = vmul.f32 %v12677_v42, %v3793_v10  ;;  %v3788_v31 = vpop.permute.xlu0 %3787  ;;  %2963 = vperm.xlu1 %11563, %v2806_v60   ;;  %v535_v10 = vmul.f32 %v12554_v45, %v12138_v26 }
 0x23b   :  { %v3988_v35 = vmul.f32 %v12677_v42, %v3788_v31  ;;  %1742 = vperm.xlu0 %11562, %v12802_v0   ;;  %v662_v31 = vld [vmem:[#allocation2 + $0x149] sm:$0xff] }
 0x23c   :  { %v4042_v37 = vadd.f32 %v3989_v2, %v3610_v59  ;;  %v1399_v59 = vmul.f32 %v12561_v44, %v12757_v13  ;;  %v1020_v14 = vadd.f32 %v967_v47, %v535_v10  ;;  %v1019_v13 = vadd.f32 %v966_v33, %v534_v38 }
 0x23d   :  { %v4041_v12 = vadd.f32 %v3988_v35, %v3609_v55  ;;  %v12809_v16 = vpop.permute.xlu1 %788  ;;  %v1398_v55 = vmul.f32 %v12561_v44, %v12759_v30 }
 0x23e   :  { %v4102_v7 = vadd.f32 %v12686_v40, %v4042_v37  ;;  %v12812_v4 = vpop.permute.xlu0 %783  ;;  %1677 = vperm.xlu1 %11563, %v12807_v21   ;;  %v1831_v37 = vmul.f32 %v12575_v51, %v12773_v6  ;;  %v1452_v30 = vadd.f32 %v1399_v59, %v1020_v14 }
 0x23f   :  { %v4101_v18 = vadd.f32 %v12686_v40, %v4041_v12  ;;  %2968 = vperm.xlu0 %11562, %v2807_v9   ;;  %v1830_v9 = vmul.f32 %v12575_v51, %v12778_v23  ;;  %v2263_v12 = vmul.f32 %v12588_v3, %v12796_v52  ;;  %v1451_v6 = vadd.f32 %v1398_v55, %v1019_v13  ;;  %v2387_v52 = vld [vmem:[#allocation2 + $0x140] sm:$0xff]  ;;  %v650_v55 = vld [vmem:[#allocation2 + $0xe9] sm:$0xff] }
 0x240   :  { %vm4155_vm7 = vcmp.ge.f32.partialorder %v4102_v7, 0.0  ;;  %v4208_v63 = vmul.f32 0.01, %v4102_v7  ;;  %v12818_v41 = vpop.f32.mrb[4].mxu0 }
 0x241   :  { %vm4154_vm8 = vcmp.ge.f32.partialorder %v4101_v18, 0.0  ;;  %v4207_v25 = vmul.f32 0.01, %v4101_v18  ;;  %15560 = vst [vmem:[#allocation33_spill] sm:$0xff] %v12818_v41  ;;  %v2507_v62 = vpop.permute.xlu1 %2506  ;;  %v10622_v54 = vpop.f32.mrb[5].mxu0  ;;  %v1883_v23 = vadd.f32 %v1830_v9, %v1451_v6 }
 0x242   :  { %v4261_v58 = vsel %vm4155_vm7, %v4102_v7, %v4208_v63  ;;  %v2502_v19 = vpop.permute.xlu0 %2501  ;;  %2164 = vperm.xlu1 %11563, %v1955_v17   ;;  %v12821_v56 = vpop.f32.mrb[6].mxu0  ;;  %v1944_v7 = vld [vmem:[#allocation2 + $0xe7] sm:$0xff]  ;;  %v1884_v63 = vadd.f32 %v1831_v37, %v1452_v30 }
 0x243   :  { %4315 = vst.msk [vmem:[#allocation3 + $0x90] sm:$0xff] %vm4296_vm2, %v4261_v58  ;;  %v4260_v34 = vsel %vm4154_vm8, %v4101_v18, %v4207_v25  ;;  %15561 = vst [vmem:[#allocation34_spill] sm:$0xff] %v12821_v56  ;;  %1682 = vperm.xlu0 %11562, %v12816_v1   ;;  %v10623_v43 = vpop.f32.mrb[7].mxu0  ;;  %v2262_v18 = vmul.f32 %v12588_v3, %v12799_v20  ;;  %v2695_v25 = vmul.f32 %v12597_v46, %v2507_v62 }
 0x244   :  { %4314 = vst.msk [vmem:[#allocation3 + $0x88] sm:$0xff] %vm4296_vm2, %v4260_v34  ;;  %v2694_v54 = vmul.f32 %v12597_v46, %v2502_v19  ;;  %v2388_v34 = vld [vmem:[#allocation2 + $0x148] sm:$0xff]  ;;  %v139_v19 = vld [vmem:[%s15523_s0 + $0x178] sm:$0xff] }
 0x245   :  { %v12825_v49 = vpop.permute.xlu1 %1220  ;;  %188 = vst.msk [vmem:[#allocation2 + $0x178] sm:$0xff] %vm34_vm0, %v139_v19 }
 0x246   :  { %v12827_v50 = vpop.permute.xlu0 %1215  ;;  %2174 = vperm.xlu1 %11563, %v1957_v11   ;;  %v2316_v11 = vadd.f32 %v2263_v12, %v1884_v63  ;;  %v1094_v12 = vld [vmem:[#allocation2 + $0x14a] sm:$0xff] }
 0x247   :  { %2169 = vperm.xlu0 %11562, %v1956_v61   ;;  %v2315_v61 = vadd.f32 %v2262_v18, %v1883_v23 }
 0x248   :  { %v2748_v20 = vadd.f32 %v2695_v25, %v2316_v11  ;;  %v1095_v11 = vld [vmem:[#allocation2 + $0x152] sm:$0xff] }
 0x249   :  { %v2939_v53 = vpop.permute.xlu1 %2938  ;;  %v2747_v33 = vadd.f32 %v2694_v54, %v2315_v61  ;;  %v2819_v61 = vld [vmem:[#allocation2 + $0x14c] sm:$0xff] }
 0x24a   :  { %v2934_v8 = vpop.permute.xlu0 %2933  ;;  %3400 = vperm.xlu1 %11563, %v3239_v36   ;;  %v3127_v43 = vmul.f32 %v12604_v5, %v2939_v53 }
 0x24b   :  { %3395 = vperm.xlu0 %11562, %v3238_v57   ;;  %v4442_v60 = vld [vmem:[#allocation3 + $0x81] sm:$0xff]  ;;  %v4443_v24 = vld [vmem:[#allocation3 + $0x89] sm:$0xff]  ;;  %v3126_v36 = vmul.f32 %v12604_v5, %v2934_v8 }
 0x24c   :  { %v4483_v2 = vpack.c.bf16 %v4443_v24, %v4442_v60  ;;  %v3180_v53 = vadd.f32 %v3127_v43, %v2748_v20  ;;  %v2389_v8 = vld [vmem:[#allocation2 + $0x150] sm:$0xff] }
 0x24d   :  { %v12841_v35 = vpop.permute.xlu1 %1652  ;;  %v3179_v24 = vadd.f32 %v3126_v36, %v2747_v33  ;;  %v2377_v36 = vld [vmem:[#allocation2 + $0xf0] sm:$0xff]  ;;  %v968_v33 = vmul.f32 %v12545_v39, %v12812_v4 }
 0x24e   :  { %10649 = vmatmul.mubr.msk.bf16.gmra.mrb[32].mxu0 %vm4296_vm2, %v4483_v2  ;;  %v12846_v26 = vpop.permute.xlu0 %1647  ;;  %888 = vperm.xlu1 %11563, %v663_v28   ;;  %v1833_v4 = vmul.f32 %v12575_v51, %v12841_v35 }
 0x24f   :  { %883 = vperm.xlu0 %11562, %v662_v31   ;;  %10652 = vmatprep.mubr.msk.bf16.mxu0 %vm11696_vm1, %v15557_v48 }
 0x251   :  { %v3371_v17 = vpop.permute.xlu1 %3370 }
 0x252   :  { %v3366_v58 = vpop.permute.xlu0 %3365  ;;  %2114 = vperm.xlu1 %11563, %v1945_v22   ;;  %v3559_v47 = vmul.f32 %v12616_v27, %v3371_v17 }
 0x253   :  { %2109 = vperm.xlu0 %11562, %v1944_v7   ;;  %v3558_v60 = vmul.f32 %v12616_v27, %v3366_v58  ;;  %v651_v7 = vld [vmem:[#allocation2 + $0xf1] sm:$0xff] }
 0x254   :  { %v3612_v10 = vadd.f32 %v3559_v47, %v3180_v53  ;;  %v969_v47 = vmul.f32 %v12545_v39, %v12809_v16 }
 0x255   :  { %v12860_v57 = vpop.permute.xlu1 %2084  ;;  %v3611_v31 = vadd.f32 %v3558_v60, %v3179_v24  ;;  %v537_v24 = vmul.f32 %v12554_v45, %v12146_v32 }
 0x256   :  { %v12863_v62 = vpop.permute.xlu0 %2079  ;;  %2601 = vperm.xlu1 %11563, %v2388_v34  }
 0x257   :  { %2596 = vperm.xlu0 %11562, %v2387_v52   ;;  %v1022_v39 = vadd.f32 %v969_v47, %v537_v24 }
 0x259   :  { %v3803_v28 = vpop.permute.xlu1 %3802 }
 0x25a   :  { %v3991_v59 = vmul.f32 %v12677_v42, %v3803_v28  ;;  %v3798_v2 = vpop.permute.xlu0 %3797  ;;  %3827 = vperm.xlu1 %11563, %v12807_v21   ;;  %v1401_v28 = vmul.f32 %v12561_v44, %v12825_v49 }
 0x25b   :  { %v3990_v38 = vmul.f32 %v12677_v42, %v3798_v2  ;;  %2606 = vperm.xlu0 %11562, %v2389_v8   ;;  %v2821_v8 = vld [vmem:[#allocation2 + $0x15c] sm:$0xff]  ;;  %v15564_v2 = vld [vmem:[#allocation9_spill] sm:$0xff] }
 0x25c   :  { %v4044_v14 = vadd.f32 %v3991_v59, %v3612_v10  ;;  %v2820_v59 = vld [vmem:[#allocation2 + $0x154] sm:$0xff]  ;;  %v536_v16 = vmul.f32 %v12554_v45, %v15564_v2 }
 0x25d   :  { %v4043_v37 = vadd.f32 %v3990_v38, %v3611_v31  ;;  %v12873_v13 = vpop.permute.xlu1 %798  ;;  %v1400_v31 = vmul.f32 %v12561_v44, %v12827_v50  ;;  %v1083_v45 = vld [vmem:[#allocation2 + $0xf2] sm:$0xff]  ;;  %v1454_v44 = vadd.f32 %v1401_v28, %v1022_v39  ;;  %v2265_v50 = vmul.f32 %v12588_v3, %v12860_v57  ;;  %v12922_v57 = vld [vmem:[#allocation2 + $0x15e] sm:$0xff] }
 0x25e   :  { %v4104_v9 = vadd.f32 %v12686_v40, %v4044_v14  ;;  %v12876_v22 = vpop.permute.xlu0 %793  ;;  %823 = vperm.xlu1 %11563, %v650_v55   ;;  %v1021_v49 = vadd.f32 %v968_v33, %v536_v16  ;;  %v1832_v55 = vmul.f32 %v12575_v51, %v12846_v26  ;;  %v1082_v14 = vld [vmem:[#allocation2 + $0xea] sm:$0xff]  ;;  %v140_v51 = vld [vmem:[%s15523_s0 + $0x180] sm:$0xff] }
 0x25f   :  { %v4103_v30 = vadd.f32 %v12686_v40, %v4043_v37  ;;  %3832 = vperm.xlu0 %11562, %v12816_v1   ;;  %v2376_v1 = vld [vmem:[#allocation2 + $0xe8] sm:$0xff]  ;;  %v2264_v37 = vmul.f32 %v12588_v3, %v12863_v62  ;;  %189 = vst.msk [vmem:[#allocation2 + $0x180] sm:$0xff] %vm34_vm0, %v140_v51  ;;  %v12926_v62 = vld [vmem:[#allocation2 + $0x156] sm:$0xff] }
 0x260   :  { %vm4157_vm9 = vcmp.ge.f32.partialorder %v4104_v9, 0.0  ;;  %v4210_v21 = vmul.f32 0.01, %v4104_v9  ;;  %v12880_v18 = vpop.f32.mrb[8].mxu0  ;;  %v1453_v35 = vadd.f32 %v1400_v31, %v1021_v49  ;;  %v3251_v28 = vld [vmem:[#allocation2 + $0x14d] sm:$0xff]  ;;  %v12945_v31 = vld [vmem:[#allocation2 + $0xf6] sm:$0xff] }
 0x261   :  { %vm4156_vm10 = vcmp.ge.f32.partialorder %v4103_v30, 0.0  ;;  %v4209_v6 = vmul.f32 0.01, %v4103_v30  ;;  %15562 = vst [vmem:[#allocation35_spill] sm:$0xff] %v12880_v18  ;;  %v2517_v17 = vpop.permute.xlu1 %2516  ;;  %v10626_v25 = vpop.f32.mrb[9].mxu0  ;;  %v3253_v49 = vld [vmem:[#allocation2 + $0x15d] sm:$0xff] }
 0x262   :  { %v4263_v63 = vsel %vm4157_vm9, %v4104_v9, %v4210_v21  ;;  %v2512_v58 = vpop.permute.xlu0 %2511  ;;  %1315 = vperm.xlu1 %11563, %v1094_v12   ;;  %v12883_v54 = vpop.f32.mrb[10].mxu0  ;;  %v2697_v12 = vmul.f32 %v12597_v46, %v2517_v17  ;;  %v1885_v26 = vadd.f32 %v1832_v55, %v1453_v35 }
 0x263   :  { %4317 = vst.msk [vmem:[#allocation3 + $0xa0] sm:$0xff] %vm4296_vm2, %v4263_v63  ;;  %v4262_v23 = vsel %vm4156_vm10, %v4103_v30, %v4209_v6  ;;  %15563 = vst [vmem:[#allocation36_spill] sm:$0xff] %v12883_v54  ;;  %828 = vperm.xlu0 %11562, %v651_v7   ;;  %v10627_v34 = vpop.f32.mrb[11].mxu0  ;;  %v1886_v30 = vadd.f32 %v1833_v4, %v1454_v44  ;;  %v2696_v7 = vmul.f32 %v12597_v46, %v2512_v58  ;;  %v3243_v54 = vld [vmem:[#allocation2 + $0x10d] sm:$0xff] }
 0x264   :  { %4316 = vst.msk [vmem:[#allocation3 + $0x98] sm:$0xff] %vm4296_vm2, %v4262_v23  ;;  %v2317_v17 = vadd.f32 %v2264_v37, %v1885_v26  ;;  %v3240_v26 = vld [vmem:[#allocation2 + $0xf5] sm:$0xff] }
 0x265   :  { %v12886_v43 = vpop.permute.xlu1 %1230  ;;  %v2318_v6 = vadd.f32 %v2265_v50, %v1886_v30  ;;  %v1958_v30 = vld [vmem:[#allocation2 + $0x157] sm:$0xff] }
 0x266   :  { %v12888_v52 = vpop.permute.xlu0 %1225  ;;  %2541 = vperm.xlu1 %11563, %v2376_v1   ;;  %v2749_v46 = vadd.f32 %v2696_v7, %v2317_v17  ;;  %v1959_v7 = vld [vmem:[#allocation2 + $0x15f] sm:$0xff] }
 0x267   :  { %1320 = vperm.xlu0 %11562, %v1095_v11   ;;  %v2750_v23 = vadd.f32 %v2697_v12, %v2318_v6  ;;  %v2809_v11 = vld [vmem:[#allocation2 + $0xfc] sm:$0xff] }
 0x268   :  { %v12956_v12 = vld [vmem:[#allocation2 + $0xfe] sm:$0xff] }
 0x269   :  { %v2949_v20 = vpop.permute.xlu1 %2948 }
 0x26a   :  { %v2944_v19 = vpop.permute.xlu0 %2943  ;;  %3028 = vperm.xlu1 %11563, %v2819_v61   ;;  %v3129_v3 = vmul.f32 %v12604_v5, %v2949_v20 }
 0x26b   :  { %2546 = vperm.xlu0 %11562, %v2377_v36   ;;  %v4444_v60 = vld [vmem:[#allocation3 + $0x91] sm:$0xff]  ;;  %v4445_v53 = vld [vmem:[#allocation3 + $0x99] sm:$0xff]  ;;  %v3128_v63 = vmul.f32 %v12604_v5, %v2944_v19 }
 0x26c   :  { %v4484_v10 = vpack.c.bf16 %v4445_v53, %v4444_v60  ;;  %v3182_v61 = vadd.f32 %v3129_v3, %v2750_v23  ;;  %v2808_v36 = vld [vmem:[#allocation2 + $0xf4] sm:$0xff] }
 0x26d   :  { %v12902_v38 = vpop.permute.xlu1 %1662  ;;  %v3181_v20 = vadd.f32 %v3128_v63, %v2749_v46 }
 0x26e   :  { %10653 = vmatmul.mubr.msk.bf16.gmra.mrb[36].mxu0 %vm4296_vm2, %v4484_v10  ;;  %v12907_v32 = vpop.permute.xlu0 %1657  ;;  %3038 = vperm.xlu1 %11563, %v2821_v8   ;;  %v3252_v8 = vld [vmem:[#allocation2 + $0x155] sm:$0xff] }
 0x26f   :  { %3033 = vperm.xlu0 %11562, %v2820_v59   ;;  %10656 = vmatprep.mubr.msk.bf16.mxu0 %vm11696_vm1, %v15557_v48 }
 0x271   :  { %v3381_v9 = vpop.permute.xlu1 %3380 }
 0x272   :  { %v3376_v21 = vpop.permute.xlu0 %3375  ;;  %1260 = vperm.xlu1 %11563, %v1083_v45   ;;  %v3561_v1 = vmul.f32 %v12616_v27, %v3381_v9 }
 0x273   :  { %1255 = vperm.xlu0 %11562, %v1082_v14   ;;  %v3560_v58 = vmul.f32 %v12616_v27, %v3376_v21 }
 0x274   :  { %v3614_v5 = vadd.f32 %v3561_v1, %v3182_v61  ;;  %v3241_v1 = vld [vmem:[#allocation2 + $0xfd] sm:$0xff] }
 0x275   :  { %v12929_v25 = vpop.permute.xlu1 %2094  ;;  %v3613_v60 = vadd.f32 %v3560_v58, %v3181_v20  ;;  %v12970_v58 = vld [vmem:[%s15524_s1 + $0x1] ss:$0 sm:$0xff]  ;;  %v15567_v20 = vld [vmem:[#allocation10_spill] sm:$0xff] }
 0x276   :  { %v12932_v34 = vpop.permute.xlu0 %2089  ;;  %1752 = vperm.xlu1 %11563, %v12922_v57  }
 0x277   :  { %1747 = vperm.xlu0 %11562, %v12926_v62  }
 0x279   :  { %v3813_v47 = vpop.permute.xlu1 %3812 }
 0x27a   :  { %v3993_v19 = vmul.f32 %v12677_v42, %v3813_v47  ;;  %v3808_v33 = vpop.permute.xlu0 %3807  ;;  %2978 = vperm.xlu1 %11563, %v2809_v11   ;;  %v970_v11 = vmul.f32 %v12970_v58, %v12876_v22  ;;  %v12990_v22 = vld [vmem:[%s15524_s1 + $0x2] ss:$0 sm:$0xff] }
 0x27b   :  { %v3992_v53 = vmul.f32 %v12677_v42, %v3808_v33  ;;  %2973 = vperm.xlu0 %11562, %v2808_v36   ;;  %v12983_v36 = vld [vmem:[%s15524_s1] ss:$0 sm:$0xff]  ;;  %v12997_v33 = vld [vmem:[%s15524_s1 + $0x3] ss:$0 sm:$0xff] }
 0x27c   :  { %v4046_v24 = vadd.f32 %v3993_v19, %v3614_v5  ;;  %v538_v47 = vmul.f32 %v12983_v36, %v15567_v20  ;;  %v1947_v20 = vld [vmem:[#allocation2 + $0xff] sm:$0xff] }
 0x27d   :  { %v4045_v27 = vadd.f32 %v3992_v53, %v3613_v60  ;;  %v12939_v10 = vpop.permute.xlu1 %808  ;;  %v1834_v60 = vmul.f32 %v12997_v33, %v12907_v32  ;;  %v15568_v32 = vld [vmem:[#allocation12_spill] sm:$0xff] }
 0x27e   :  { %v4106_v59 = vadd.f32 %v12686_v40, %v4046_v24  ;;  %v12942_v2 = vpop.permute.xlu0 %803  ;;  %3465 = vperm.xlu1 %11563, %v3252_v8   ;;  %v1023_v19 = vadd.f32 %v970_v11, %v538_v47  ;;  %v971_v8 = vmul.f32 %v12970_v58, %v12873_v13  ;;  %v664_v24 = vld [vmem:[#allocation2 + $0x159] sm:$0xff] }
 0x27f   :  { %v4105_v16 = vadd.f32 %v12686_v40, %v4045_v27  ;;  %3460 = vperm.xlu0 %11562, %v3251_v28   ;;  %v13008_v28 = vld [vmem:[%s15524_s1 + $0x4] ss:$0 sm:$0xff]  ;;  %v2390_v11 = vld [vmem:[#allocation2 + $0x158] sm:$0xff] }
 0x280   :  { %vm4159_vm0 = vcmp.ge.f32.partialorder %v4106_v59, 0.0  ;;  %v4212_v39 = vmul.f32 0.01, %v4106_v59  ;;  %v12947_v4 = vpop.f32.mrb[12].mxu0  ;;  %v2266_v27 = vmul.f32 %v13008_v28, %v12932_v34 }
 0x281   :  { %15565 = vst [vmem:[#allocation9_spill] sm:$0xff] %v12947_v4  ;;  %vm4158_vm11 = vcmp.ge.f32.partialorder %v4105_v16, 0.0  ;;  %v4211_v55 = vmul.f32 0.01, %v4105_v16  ;;  %v12949_v45 = vpop.permute.xlu1 %2526  ;;  %v10630_v44 = vpop.f32.mrb[13].mxu0 }
 0x282   :  { %v4265_v50 = vsel %vm4159_vm0, %v4106_v59, %v4212_v39  ;;  %v2522_v14 = vpop.permute.xlu0 %2521  ;;  %1687 = vperm.xlu1 %11563, %v12945_v31   ;;  %v12952_v35 = vpop.f32.mrb[14].mxu0  ;;  %v234_v59 = vld [vmem:[#allocation2 + $0x160] sm:$0xff]  ;;  %v1835_v44 = vmul.f32 %v12997_v33, %v12902_v38 }
 0x283   :  { %15566 = vst [vmem:[#allocation37_spill] sm:$0xff] %v12952_v35  ;;  %4319 = vst.msk [vmem:[#allocation3 + $0xb0] sm:$0xff] %vm4296_vm2, %v4265_v50  ;;  %v4264_v37 = vsel %vm4158_vm11, %v4105_v16, %v4211_v55  ;;  %3470 = vperm.xlu0 %11562, %v3253_v49   ;;  %v10631_v9 = vpop.f32.mrb[15].mxu0  ;;  %v539_v16 = vmul.f32 %v12983_v36, %v15568_v32  ;;  %v13021_v39 = vld [vmem:[%s15524_s1 + $0x5] ss:$0 sm:$0xff]  ;;  %v1946_v50 = vld [vmem:[#allocation2 + $0xf7] sm:$0xff] }
 0x284   :  { %4318 = vst.msk [vmem:[#allocation3 + $0xa8] sm:$0xff] %vm4296_vm2, %v4264_v37  ;;  %v2698_v49 = vmul.f32 %v13021_v39, %v2522_v14  ;;  %v13031_v37 = vld [vmem:[%s15524_s1 + $0x6] ss:$0 sm:$0xff]  ;;  %v2267_v14 = vmul.f32 %v13008_v28, %v12929_v25  ;;  %v13041_v38 = vld [vmem:[%s15524_s1 + $0x7] ss:$0 sm:$0xff] }
 0x285   :  { %v12958_v21 = vpop.permute.xlu1 %1240  ;;  %v1024_v34 = vadd.f32 %v971_v8, %v539_v16 }
 0x286   :  { %v12960_v51 = vpop.permute.xlu0 %1235  ;;  %2179 = vperm.xlu1 %11563, %v1958_v30   ;;  %v665_v30 = vld [vmem:[#allocation2 + $0x161] sm:$0xff] }
 0x287   :  { %1692 = vperm.xlu0 %11562, %v12956_v12  }
 0x289   :  { %v12963_v6 = vpop.permute.xlu1 %2958 }
 0x28a   :  { %v2954_v3 = vpop.permute.xlu0 %2953  ;;  %3405 = vperm.xlu1 %11563, %v3240_v26  }
 0x28b   :  { %2184 = vperm.xlu0 %11562, %v1959_v7   ;;  %v4446_v17 = vld [vmem:[#allocation3 + $0xa1] sm:$0xff]  ;;  %v4447_v63 = vld [vmem:[#allocation3 + $0xa9] sm:$0xff]  ;;  %v3130_v9 = vmul.f32 %v13031_v37, %v2954_v3  ;;  %v2699_v3 = vmul.f32 %v13021_v39, %v12949_v45 }
 0x28c   :  { %v4485_v23 = vpack.c.bf16 %v4447_v63, %v4446_v17 }
 0x28d   :  { %v12965_v46 = vpop.permute.xlu1 %1672 }
 0x28e   :  { %10657 = vmatmul.mubr.msk.bf16.gmra.mrb[40].mxu0 %vm4296_vm2, %v4485_v23  ;;  %v12975_v61 = vpop.permute.xlu0 %1667  ;;  %3892 = vperm.xlu1 %11563, %v12802_v0   ;;  %v1402_v0 = vmul.f32 %v12990_v22, %v12888_v52 }
 0x28f   :  { %3410 = vperm.xlu0 %11562, %v3241_v1   ;;  %10660 = vmatprep.mubr.msk.bf16.mxu0 %vm11696_vm1, %v15557_v48  ;;  %v1836_v35 = vmul.f32 %v12997_v33, %v12975_v61 }
 0x290   :  { %v1455_v52 = vadd.f32 %v1402_v0, %v1023_v19  ;;  %v3131_v0 = vmul.f32 %v13031_v37, %v12963_v6 }
 0x291   :  { %v3391_v5 = vpop.permute.xlu1 %3390 }
 0x292   :  { %v3386_v53 = vpop.permute.xlu0 %3385  ;;  %3902 = vperm.xlu1 %11563, %v12922_v57   ;;  %v1403_v57 = vmul.f32 %v12990_v22, %v12886_v43 }
 0x293   :  { %3897 = vperm.xlu0 %11562, %v12926_v62   ;;  %v1887_v62 = vadd.f32 %v1834_v60, %v1455_v52  ;;  %v3562_v63 = vmul.f32 %v13041_v38, %v3386_v53  ;;  %v3563_v52 = vmul.f32 %v13041_v38, %v3391_v5  ;;  %v13065_v5 = vld [vmem:[%s15524_s1 + $0x8] ss:$0 sm:$0xff] }
 0x294   :  { %v1456_v26 = vadd.f32 %v1403_v57, %v1024_v34 }
 0x295   :  { %v13016_v13 = vpop.permute.xlu1 %873  ;;  %v2319_v43 = vadd.f32 %v2266_v27, %v1887_v62 }
 0x296   :  { %v13024_v55 = vpop.permute.xlu0 %868  ;;  %893 = vperm.xlu1 %11563, %v664_v24   ;;  %v1888_v1 = vadd.f32 %v1835_v44, %v1456_v26  ;;  %v13076_v26 = vld [vmem:[%s15525_s2] ss:$0 sm:$0xff] }
 0x297   :  { %466 = vperm.xlu0 %11562, %v234_v59   ;;  %v2751_v17 = vadd.f32 %v2698_v49, %v2319_v43 }
 0x298   :  { %v2320_v47 = vadd.f32 %v2267_v14, %v1888_v1  ;;  %v1096_v14 = vld [vmem:[#allocation2 + $0x15a] sm:$0xff] }
 0x299   :  { %v13036_v7 = vpop.permute.xlu1 %2099  ;;  %v3183_v25 = vadd.f32 %v3130_v9, %v2751_v17  ;;  %v653_v17 = vld [vmem:[#allocation2 + $0x101] sm:$0xff] }
 0x29a   :  { %v13044_v23 = vpop.permute.xlu0 %878  ;;  %2119 = vperm.xlu1 %11563, %v1946_v50   ;;  %v2752_v24 = vadd.f32 %v2699_v3, %v2320_v47  ;;  %v652_v50 = vld [vmem:[#allocation2 + $0xf9] sm:$0xff] }
 0x29b   :  { %898 = vperm.xlu0 %11562, %v665_v30   ;;  %v3615_v60 = vadd.f32 %v3562_v63, %v3183_v25  ;;  %v2378_v25 = vld [vmem:[#allocation2 + $0xf8] sm:$0xff] }
 0x29c   :  { %v3184_v32 = vadd.f32 %v3131_v0, %v2752_v24 }
 0x29d   :  { %v3818_v19 = vpop.permute.xlu1 %3817 }
 0x29e   :  { %v3994_v8 = vmul.f32 %v12677_v42, %v3818_v19  ;;  %v13051_v53 = vpop.permute.xlu0 %2104  ;;  %2611 = vperm.xlu1 %11563, %v2390_v11   ;;  %v3616_v49 = vadd.f32 %v3563_v52, %v3184_v32  ;;  %v2379_v19 = vld [vmem:[#allocation2 + $0x100] sm:$0xff] }
 0x29f   :  { %2124 = vperm.xlu0 %11562, %v1947_v20   ;;  %v1097_v20 = vld [vmem:[#allocation2 + $0x162] sm:$0xff] }
 0x2a0   :  { %v4047_v45 = vadd.f32 %v3994_v8, %v3615_v60  ;;  %v13054_v27 = vpop.f32.mrb[16].mxu0 }
 0x2a1   :  { %15569 = vst [vmem:[#allocation10_spill] sm:$0xff] %v13054_v27  ;;  %v13056_v16 = vpop.permute.xlu1 %813  ;;  %v10634_v57 = vpop.f32.mrb[17].mxu0 }
 0x2a2   :  { %v4107_v6 = vadd.f32 %v12686_v40, %v4047_v45  ;;  %v3823_v62 = vpop.permute.xlu0 %3822  ;;  %3837 = vperm.xlu1 %11563, %v12945_v31   ;;  %v13060_v42 = vpop.f32.mrb[18].mxu0  ;;  %v1084_v45 = vld [vmem:[#allocation2 + $0xfa] sm:$0xff]  ;;  %v2823_v57 = vld [vmem:[#allocation2 + $0x16c] sm:$0xff] }
 0x2a3   :  { %15570 = vst [vmem:[#allocation12_spill] sm:$0xff] %v13060_v42  ;;  %v3995_v34 = vmul.f32 %v13065_v5, %v3823_v62  ;;  %2616 = vperm.xlu0 %11562, %v234_v59   ;;  %v10635_v44 = vpop.f32.mrb[19].mxu0  ;;  %v1961_v42 = vld [vmem:[#allocation2 + $0x16f] sm:$0xff] }
 0x2a4   :  { %vm4160_vm12 = vcmp.ge.f32.partialorder %v4107_v6, 0.0  ;;  %v4213_v43 = vmul.f32 0.01, %v4107_v6 }
 0x2a5   :  { %v4048_v9 = vadd.f32 %v3995_v34, %v3616_v49  ;;  %v13068_v40 = vpop.permute.xlu1 %1300  ;;  %v1528_v49 = vld [vmem:[#allocation2 + $0x166] sm:$0xff] }
 0x2a6   :  { %v4266_v30 = vsel %vm4160_vm12, %v4107_v6, %v4213_v43  ;;  %v13070_v31 = vpop.permute.xlu0 %818  ;;  %833 = vperm.xlu1 %11563, %v652_v50   ;;  %v1085_v34 = vld [vmem:[#allocation2 + $0x102] sm:$0xff] }
 0x2a7   :  { %4320 = vst.msk [vmem:[#allocation3 + $0xb8] sm:$0xff] %vm4296_vm2, %v4266_v30  ;;  %v4108_v59 = vadd.f32 %v13076_v26, %v4048_v9  ;;  %3842 = vperm.xlu0 %11562, %v12956_v12   ;;  %v2822_v12 = vld [vmem:[#allocation2 + $0x164] sm:$0xff]  ;;  %v13102_v9 = vld [vmem:[#allocation2 + $0x16e] sm:$0xff] }
 0x2a8   :  { %v2810_v43 = vld [vmem:[#allocation2 + $0x104] sm:$0xff] }
 0x2a9   :  { %vm4161_vm13 = vcmp.ge.f32.partialorder %v4108_v59, 0.0  ;;  %v4214_v63 = vmul.f32 0.01, %v4108_v59  ;;  %v13080_v1 = vpop.permute.xlu1 %1310 }
 0x2aa   :  { %v13082_v3 = vpop.permute.xlu0 %1305  ;;  %1325 = vperm.xlu1 %11563, %v1096_v14   ;;  %v3254_v14 = vld [vmem:[#allocation2 + $0x165] sm:$0xff] }
 0x2ab   :  { %v4267_v11 = vsel %vm4161_vm13, %v4108_v59, %v4214_v63  ;;  %838 = vperm.xlu0 %11562, %v653_v17   ;;  %v2811_v17 = vld [vmem:[#allocation2 + $0x10c] sm:$0xff] }
 0x2ac   :  { %4321 = vst.msk [vmem:[#allocation3 + $0xc0] sm:$0xff] %vm4296_vm2, %v4267_v11 }
 0x2ad   :  { %v13085_v47 = vpop.permute.xlu1 %2536 }
 0x2ae   :  { %v13087_v0 = vpop.permute.xlu0 %2531  ;;  %2551 = vperm.xlu1 %11563, %v2378_v25   ;;  %v4448_v24 = vld [vmem:[#allocation3 + $0xb1] sm:$0xff] }
 0x2af   :  { %1330 = vperm.xlu0 %11562, %v1097_v20  }
 0x2b1   :  { %v13089_v60 = vpop.permute.xlu1 %1250 }
 0x2b2   :  { %v13091_v8 = vpop.permute.xlu0 %1245  ;;  %3043 = vperm.xlu1 %11563, %v2822_v12  }
 0x2b3   :  { %2556 = vperm.xlu0 %11562, %v2379_v19   ;;  %v4449_v52 = vld [vmem:[#allocation3 + $0xb9] sm:$0xff] }
 0x2b4   :  { %v4486_v32 = vpack.c.bf16 %v4449_v52, %v4448_v24  ;;  %v13117_v19 = vld [vmem:[#allocation2 + $0x106] sm:$0xff] }
 0x2b5   :  { %v13093_v6 = vpop.permute.xlu1 %1737  ;;  %v3255_v52 = vld [vmem:[#allocation2 + $0x16d] sm:$0xff] }
 0x2b6   :  { %10661 = vmatmul.mubr.msk.bf16.gmra.mrb[44].mxu0 %vm4296_vm2, %v4486_v32  ;;  %v13096_v62 = vpop.permute.xlu0 %1732  ;;  %1265 = vperm.xlu1 %11563, %v1084_v45  }
 0x2b7   :  { %3048 = vperm.xlu0 %11562, %v2823_v57   ;;  %10664 = vmatprep.mubr.msk.bf16.mxu0 %vm11696_vm1, %v15557_v48  ;;  %v1960_v57 = vld [vmem:[#allocation2 + $0x167] sm:$0xff] }
 0x2b9   :  { %v2964_v44 = vpop.permute.xlu1 %2963 }
 0x2ba   :  { %v13100_v50 = vpop.permute.xlu0 %1742  ;;  %1757 = vperm.xlu1 %11563, %v1528_v49  }
 0x2bb   :  { %1270 = vperm.xlu0 %11562, %v1085_v34   ;;  %v13124_v34 = vld [vmem:[#allocation2 + $0x10e] sm:$0xff] }
 0x2bd   :  { %v13104_v30 = vpop.permute.xlu1 %1677 }
 0x2be   :  { %v13106_v59 = vpop.permute.xlu0 %2968  ;;  %2983 = vperm.xlu1 %11563, %v2810_v43  }
 0x2bf   :  { %1762 = vperm.xlu0 %11562, %v13102_v9  }
 0x2c1   :  { %v13109_v63 = vpop.f32.mrb[20].mxu0  ;;  %v13111_v11 = vpop.permute.xlu1 %2164 }
 0x2c2   :  { %15571 = vst [vmem:[#allocation38_spill] sm:$0xff] %v13109_v63  ;;  %v10638_v25 = vpop.f32.mrb[21].mxu0  ;;  %v13113_v20 = vpop.permute.xlu0 %1682  ;;  %3475 = vperm.xlu1 %11563, %v3254_v14   ;;  %v972_v14 = vmul.f32 %v12970_v58, %v12942_v2  ;;  %v1404_v63 = vmul.f32 %v12990_v22, %v12960_v51  ;;  %v973_v2 = vmul.f32 %v12970_v58, %v12939_v10  ;;  %v15574_v51 = vld [vmem:[#allocation14_spill] sm:$0xff] }
 0x2c3   :  { %v13115_v12 = vpop.f32.mrb[22].mxu0  ;;  %2988 = vperm.xlu0 %11562, %v2811_v17   ;;  %v3242_v17 = vld [vmem:[#allocation2 + $0x105] sm:$0xff]  ;;  %v541_v18 = vmul.f32 %v12983_v36, %v15574_v51 }
 0x2c4   :  { %15572 = vst [vmem:[#allocation39_spill] sm:$0xff] %v13115_v12  ;;  %v10639_v24 = vpop.f32.mrb[23].mxu0 }
 0x2c5   :  { %v13119_v45 = vpop.permute.xlu1 %2174  ;;  %v15573_v24 = vld [vmem:[#allocation11_spill] sm:$0xff]  ;;  %v1026_v10 = vadd.f32 %v973_v2, %v541_v18 }
 0x2c6   :  { %v13121_v32 = vpop.permute.xlu0 %2169  ;;  %1697 = vperm.xlu1 %11563, %v13117_v19   ;;  %v540_v12 = vmul.f32 %v12983_v36, %v15573_v24  ;;  %v2268_v24 = vmul.f32 %v13008_v28, %v13036_v7  ;;  %v1837_v7 = vmul.f32 %v12997_v33, %v12965_v46  ;;  %v666_v46 = vld [vmem:[#allocation2 + $0x169] sm:$0xff] }
 0x2c7   :  { %3480 = vperm.xlu0 %11562, %v3255_v52  }
 0x2c8   :  { %v1025_v27 = vadd.f32 %v972_v14, %v540_v12  ;;  %v1405_v12 = vmul.f32 %v12990_v22, %v12958_v21  ;;  %v2269_v21 = vmul.f32 %v13008_v28, %v13051_v53  ;;  %v3133_v53 = vmul.f32 %v13031_v37, %v13106_v59 }
 0x2c9   :  { %v3401_v43 = vpop.permute.xlu1 %3400 }
 0x2ca   :  { %v3396_v25 = vpop.permute.xlu0 %3395  ;;  %2189 = vperm.xlu1 %11563, %v1960_v57   ;;  %v1457_v57 = vadd.f32 %v1404_v63, %v1025_v27  ;;  %v235_v27 = vld [vmem:[#allocation2 + $0x168] sm:$0xff]  ;;  %v3132_v63 = vmul.f32 %v13031_v37, %v2964_v44  ;;  %v1458_v51 = vadd.f32 %v1405_v12, %v1026_v10  ;;  %v236_v44 = vld [vmem:[#allocation2 + $0x170] sm:$0xff]  ;;  %v3565_v10 = vmul.f32 %v13041_v38, %v3401_v43 }
 0x2cb   :  { %1702 = vperm.xlu0 %11562, %v13124_v34  }
 0x2cc   :  { %v1889_v61 = vadd.f32 %v1836_v35, %v1457_v57  ;;  %v1890_v18 = vadd.f32 %v1837_v7, %v1458_v51  ;;  %v667_v7 = vld [vmem:[#allocation2 + $0x171] sm:$0xff] }
 0x2cd   :  { %v13133_v52 = vpop.permute.xlu1 %888 }
 0x2ce   :  { %v13137_v4 = vpop.permute.xlu0 %883  ;;  %3415 = vperm.xlu1 %11563, %v3242_v17   ;;  %v2700_v17 = vmul.f32 %v13021_v39, %v13087_v0  ;;  %v3564_v0 = vmul.f32 %v13041_v38, %v3396_v25  ;;  %v2322_v2 = vadd.f32 %v2269_v21, %v1890_v18  ;;  %v1949_v18 = vld [vmem:[#allocation2 + $0x10f] sm:$0xff] }
 0x2cf   :  { %2194 = vperm.xlu0 %11562, %v1961_v42   ;;  %v2321_v42 = vadd.f32 %v2268_v24, %v1889_v61 }
 0x2d1   :  { %v13147_v14 = vpop.permute.xlu1 %2114  ;;  %v2753_v57 = vadd.f32 %v2700_v17, %v2321_v42 }
 0x2d2   :  { %v13151_v56 = vpop.permute.xlu0 %2109  ;;  %3907 = vperm.xlu1 %11563, %v1528_v49  }
 0x2d3   :  { %3420 = vperm.xlu0 %11562, %v3243_v54   ;;  %v2701_v54 = vmul.f32 %v13021_v39, %v13085_v47  ;;  %v3185_v49 = vadd.f32 %v3132_v63, %v2753_v57  ;;  %v1948_v47 = vld [vmem:[#allocation2 + $0x107] sm:$0xff] }
 0x2d5   :  { %v13158_v35 = vpop.permute.xlu1 %2601  ;;  %v3617_v12 = vadd.f32 %v3564_v0, %v3185_v49  ;;  %v2754_v17 = vadd.f32 %v2701_v54, %v2322_v2 }
 0x2d6   :  { %v13161_v41 = vpop.permute.xlu0 %2596  ;;  %471 = vperm.xlu1 %11563, %v235_v27  }
 0x2d7   :  { %3912 = vperm.xlu0 %11562, %v13102_v9   ;;  %v3186_v42 = vadd.f32 %v3133_v53, %v2754_v17 }
 0x2d9   :  { %v3828_v24 = vpop.permute.xlu1 %3827  ;;  %v3618_v21 = vadd.f32 %v3565_v10, %v3186_v42 }
 0x2da   :  { %v3996_v25 = vmul.f32 %v13065_v5, %v3828_v24  ;;  %v13169_v61 = vpop.permute.xlu0 %2606  ;;  %903 = vperm.xlu1 %11563, %v666_v46  }
 0x2db   :  { %476 = vperm.xlu0 %11562, %v236_v44  }
 0x2dc   :  { %v4049_v9 = vadd.f32 %v3996_v25, %v3617_v12 }
 0x2dd   :  { %v13172_v63 = vpop.permute.xlu1 %823 }
 0x2de   :  { %15575 = vst [vmem:[#allocation11_spill] sm:$0xff] %v13172_v63  ;;  %v4109_v51 = vadd.f32 %v13076_v26, %v4049_v9  ;;  %v3833_v59 = vpop.permute.xlu0 %3832  ;;  %2129 = vperm.xlu1 %11563, %v1948_v47  }
 0x2df   :  { %v3997_v57 = vmul.f32 %v13065_v5, %v3833_v59  ;;  %908 = vperm.xlu0 %11562, %v667_v7   ;;  %v654_v7 = vld [vmem:[#allocation2 + $0x109] sm:$0xff]  ;;  %v655_v59 = vld [vmem:[#allocation2 + $0x111] sm:$0xff] }
 0x2e0   :  { %vm4162_vm14 = vcmp.ge.f32.partialorder %v4109_v51, 0.0  ;;  %v4215_v0 = vmul.f32 0.01, %v4109_v51 }
 0x2e1   :  { %v4050_v54 = vadd.f32 %v3997_v57, %v3618_v21  ;;  %v13176_v43 = vpop.f32.mrb[24].mxu0  ;;  %v13178_v46 = vpop.permute.xlu1 %1315 }
 0x2e2   :  { %15576 = vst [vmem:[#allocation14_spill] sm:$0xff] %v13176_v43  ;;  %v4268_v49 = vsel %vm4162_vm14, %v4109_v51, %v4215_v0  ;;  %v10642_v2 = vpop.f32.mrb[25].mxu0  ;;  %v13180_v53 = vpop.permute.xlu0 %828  ;;  %2621 = vperm.xlu1 %11563, %v235_v27   ;;  %v1098_v51 = vld [vmem:[#allocation2 + $0x16a] sm:$0xff] }
 0x2e3   :  { %15577 = vst [vmem:[#allocation40_spill] sm:$0xff] %v13180_v53  ;;  %4322 = vst.msk [vmem:[#allocation3 + $0xc8] sm:$0xff] %vm4296_vm2, %v4268_v49  ;;  %v4110_v24 = vadd.f32 %v13076_v26, %v4050_v54  ;;  %v13184_v12 = vpop.f32.mrb[26].mxu0  ;;  %2134 = vperm.xlu0 %11562, %v1949_v18   ;;  %v2380_v0 = vld [vmem:[#allocation2 + $0x108] sm:$0xff]  ;;  %v1099_v54 = vld [vmem:[#allocation2 + $0x172] sm:$0xff] }
 0x2e4   :  { %15578 = vst [vmem:[#allocation41_spill] sm:$0xff] %v13184_v12  ;;  %v10643_v25 = vpop.f32.mrb[27].mxu0 }
 0x2e5   :  { %vm4163_vm15 = vcmp.ge.f32.partialorder %v4110_v24, 0.0  ;;  %v4216_v17 = vmul.f32 0.01, %v4110_v24  ;;  %v13186_v10 = vpop.permute.xlu1 %2541 }
 0x2e6   :  { %v13188_v47 = vpop.permute.xlu0 %1320  ;;  %3847 = vperm.xlu1 %11563, %v13117_v19  }
 0x2e7   :  { %15579 = vst [vmem:[#allocation42_spill] sm:$0xff] %v13188_v47  ;;  %v4269_v9 = vsel %vm4163_vm15, %v4110_v24, %v4216_v17  ;;  %2626 = vperm.xlu0 %11562, %v236_v44   ;;  %v2381_v24 = vld [vmem:[#allocation2 + $0x110] sm:$0xff] }
 0x2e8   :  { %4323 = vst.msk [vmem:[#allocation3 + $0xd0] sm:$0xff] %vm4296_vm2, %v4269_v9  ;;  %v1086_v9 = vld [vmem:[#allocation2 + $0x10a] sm:$0xff] }
 0x2e9   :  { %v13192_v27 = vpop.permute.xlu1 %3028 }
 0x2ea   :  { %v13194_v42 = vpop.permute.xlu0 %2546  ;;  %843 = vperm.xlu1 %11563, %v654_v7   ;;  %v4450_v19 = vld [vmem:[#allocation3 + $0xc1] sm:$0xff]  ;;  %v2825_v7 = vld [vmem:[#allocation2 + $0x17c] sm:$0xff] }
 0x2eb   :  { %3852 = vperm.xlu0 %11562, %v13124_v34   ;;  %v2824_v34 = vld [vmem:[#allocation2 + $0x174] sm:$0xff] }
 0x2ed   :  { %v13197_v21 = vpop.permute.xlu1 %3038 }
 0x2ee   :  { %v13199_v57 = vpop.permute.xlu0 %3033  ;;  %1335 = vperm.xlu1 %11563, %v1098_v51  }
 0x2ef   :  { %848 = vperm.xlu0 %11562, %v655_v59   ;;  %v4451_v44 = vld [vmem:[#allocation3 + $0xc9] sm:$0xff] }
 0x2f0   :  { %v4487_v18 = vpack.c.bf16 %v4451_v44, %v4450_v19  ;;  %v13216_v19 = vld [vmem:[#allocation2 + $0x176] sm:$0xff] }
 0x2f1   :  { %v13201_v49 = vpop.permute.xlu1 %1260  ;;  %v1087_v44 = vld [vmem:[#allocation2 + $0x112] sm:$0xff] }
 0x2f2   :  { %15580 = vst [vmem:[#allocation43_spill] sm:$0xff] %v13201_v49  ;;  %10665 = vmatmul.mubr.msk.bf16.gmra.mrb[48].mxu0 %vm4296_vm2, %v4487_v18  ;;  %v13204_v2 = vpop.permute.xlu0 %1255  ;;  %2561 = vperm.xlu1 %11563, %v2380_v0   ;;  %v985_v18 = vmul.f32 %v12970_v58, %v13024_v55  ;;  %v987_v55 = vmul.f32 %v12970_v58, %v13044_v23 }
 0x2f3   :  { %15581 = vst [vmem:[#allocation44_spill] sm:$0xff] %v13204_v2  ;;  %1340 = vperm.xlu0 %11562, %v1099_v54   ;;  %10668 = vmatprep.mubr.msk.bf16.mxu0 %vm11696_vm1, %v15557_v48  ;;  %v15587_v2 = vld [vmem:[#allocation28_spill] sm:$0xff]  ;;  %v1419_v23 = vmul.f32 %v12990_v22, %v13080_v1  ;;  %v2713_v1 = vmul.f32 %v13021_v39, %v13161_v41 }
 0x2f5   :  { %v13208_v25 = vpop.permute.xlu1 %1752 }
 0x2f6   :  { %15582 = vst [vmem:[#allocation45_spill] sm:$0xff] %v13208_v25  ;;  %v13210_v17 = vpop.permute.xlu0 %1747  ;;  %3053 = vperm.xlu1 %11563, %v2824_v34   ;;  %v2812_v34 = vld [vmem:[#allocation2 + $0x114] sm:$0xff] }
 0x2f7   :  { %2566 = vperm.xlu0 %11562, %v2381_v24   ;;  %v15583_v24 = vld [vmem:[#allocation26_spill] sm:$0xff] }
 0x2f8   :  { %v553_v12 = vmul.f32 %v12983_v36, %v15583_v24  ;;  %v986_v24 = vmul.f32 %v12970_v58, %v13016_v13 }
 0x2f9   :  { %v13212_v51 = vpop.permute.xlu1 %2978 }
 0x2fa   :  { %v13214_v59 = vpop.permute.xlu0 %2973  ;;  %1275 = vperm.xlu1 %11563, %v1086_v9   ;;  %v1417_v9 = vmul.f32 %v12990_v22, %v13068_v40  ;;  %v1038_v29 = vadd.f32 %v985_v18, %v553_v12  ;;  %v555_v12 = vmul.f32 %v12983_v36, %v15587_v2 }
 0x2fb   :  { %3058 = vperm.xlu0 %11562, %v2825_v7   ;;  %v13227_v7 = vld [vmem:[#allocation2 + $0x17e] sm:$0xff] }
 0x2fc   :  { %v1470_v18 = vadd.f32 %v1417_v9, %v1038_v29  ;;  %v1040_v25 = vadd.f32 %v987_v55, %v555_v12  ;;  %v1851_v29 = vmul.f32 %v12997_v33, %v13100_v50  ;;  %v13262_v9 = vld [vmem:[#allocation2 + $0x116] sm:$0xff]  ;;  %v2283_v55 = vmul.f32 %v13008_v28, %v13119_v45 }
 0x2fd   :  { %v13218_v0 = vpop.permute.xlu1 %3465  ;;  %v3145_v50 = vmul.f32 %v13031_v37, %v13192_v27  ;;  %v2714_v27 = vmul.f32 %v13021_v39, %v13158_v35 }
 0x2fe   :  { %v3461_v54 = vpop.permute.xlu0 %3460  ;;  %1767 = vperm.xlu1 %11563, %v13216_v19  }
 0x2ff   :  { %1280 = vperm.xlu0 %11562, %v1087_v44   ;;  %v1849_v44 = vmul.f32 %v12997_v33, %v13096_v62  ;;  %v2281_v62 = vmul.f32 %v13008_v28, %v13111_v11 }
 0x301   :  { %v13229_v43 = vpop.f32.mrb[28].mxu0  ;;  %v13231_v15 = vpop.permute.xlu1 %1687  ;;  %v1902_v47 = vadd.f32 %v1849_v44, %v1470_v18  ;;  %v3257_v44 = vld [vmem:[#allocation2 + $0x17d] sm:$0xff]  ;;  %v2715_v18 = vmul.f32 %v13021_v39, %v13169_v61 }
 0x302   :  { %15584 = vst [vmem:[#allocation26_spill] sm:$0xff] %v13229_v43  ;;  %15585 = vst [vmem:[#allocation46_spill] sm:$0xff] %v13231_v15  ;;  %v10646_v49 = vpop.f32.mrb[29].mxu0  ;;  %v3471_v53 = vpop.permute.xlu0 %3470  ;;  %2993 = vperm.xlu1 %11563, %v2812_v34   ;;  %v3256_v43 = vld [vmem:[#allocation2 + $0x175] sm:$0xff]  ;;  %v15588_v15 = vld [vmem:[#allocation25_spill] sm:$0xff] }
 0x303   :  { %v13239_v40 = vpop.f32.mrb[30].mxu0  ;;  %1772 = vperm.xlu0 %11562, %v13227_v7   ;;  %v2813_v34 = vld [vmem:[#allocation2 + $0x11c] sm:$0xff]  ;;  %v554_v13 = vmul.f32 %v12983_v36, %v15588_v15  ;;  %v1850_v15 = vmul.f32 %v12997_v33, %v13093_v6 }
 0x304   :  { %15586 = vst [vmem:[#allocation47_spill] sm:$0xff] %v13239_v40  ;;  %v10647_v49 = vpop.f32.mrb[31].mxu0  ;;  %v1418_v40 = vmul.f32 %v12990_v22, %v13082_v3  ;;  %v1472_v3 = vadd.f32 %v1419_v23, %v1040_v25 }
 0x305   :  { %v13252_v63 = vpop.permute.xlu1 %2179  ;;  %v1039_v11 = vadd.f32 %v986_v24, %v554_v13  ;;  %v2334_v49 = vadd.f32 %v2281_v62, %v1902_v47  ;;  %v3577_v47 = vmul.f32 %v13041_v38, %v3461_v54  ;;  %v3147_v62 = vmul.f32 %v13031_v37, %v13197_v21 }
 0x306   :  { %v13258_v2 = vpop.permute.xlu0 %1692  ;;  %3485 = vperm.xlu1 %11563, %v3256_v43   ;;  %v2282_v43 = vmul.f32 %v13008_v28, %v13121_v32  ;;  %v1904_v12 = vadd.f32 %v1851_v29, %v1472_v3  ;;  %v3146_v54 = vmul.f32 %v13031_v37, %v13199_v57  ;;  %v3578_v21 = vmul.f32 %v13041_v38, %v13218_v0  ;;  %v1963_v57 = vld [vmem:[#allocation2 + $0x17f] sm:$0xff] }
 0x307   :  { %2998 = vperm.xlu0 %11562, %v2813_v34   ;;  %v1471_v41 = vadd.f32 %v1418_v40, %v1039_v11  ;;  %v2766_v6 = vadd.f32 %v2713_v1, %v2334_v49  ;;  %v1962_v40 = vld [vmem:[#allocation2 + $0x177] sm:$0xff]  ;;  %v3579_v11 = vmul.f32 %v13041_v38, %v3471_v53  ;;  %v974_v53 = vmul.f32 %v12970_v58, %v13056_v16 }
 0x308   :  { %v2336_v32 = vadd.f32 %v2283_v55, %v1904_v12  ;;  %v13282_v34 = vld [vmem:[#allocation2 + $0x11e] sm:$0xff]  ;;  %v3244_v49 = vld [vmem:[#allocation2 + $0x115] sm:$0xff] }
 0x309   :  { %v13270_v24 = vpop.permute.xlu1 %3405  ;;  %v1903_v45 = vadd.f32 %v1850_v15, %v1471_v41  ;;  %v3198_v23 = vadd.f32 %v3145_v50, %v2766_v6 }
 0x30a   :  { %v13275_v25 = vpop.permute.xlu0 %2184  ;;  %1707 = vperm.xlu1 %11563, %v13262_v9   ;;  %v2768_v29 = vadd.f32 %v2715_v18, %v2336_v32 }
 0x30b   :  { %3490 = vperm.xlu0 %11562, %v3257_v44   ;;  %v2335_v61 = vadd.f32 %v2282_v43, %v1903_v45  ;;  %v3630_v1 = vadd.f32 %v3577_v47, %v3198_v23  ;;  %v15589_v47 = vld [vmem:[#allocation13_spill] sm:$0xff]  ;;  %v3245_v23 = vld [vmem:[#allocation2 + $0x11d] sm:$0xff] }
 0x30c   :  { %v3200_v55 = vadd.f32 %v3147_v62, %v2768_v29  ;;  %v542_v0 = vmul.f32 %v12983_v36, %v15589_v47  ;;  %v3134_v47 = vmul.f32 %v13031_v37, %v13214_v59  ;;  %v2703_v59 = vmul.f32 %v13021_v39, %v13194_v42 }
 0x30d   :  { %v3893_v13 = vpop.permute.xlu1 %3892  ;;  %v2767_v3 = vadd.f32 %v2714_v27, %v2335_v61 }
 0x30e   :  { %v4009_v35 = vmul.f32 %v13065_v5, %v3893_v13  ;;  %v13288_v15 = vpop.permute.xlu0 %3410  ;;  %2199 = vperm.xlu1 %11563, %v1962_v40   ;;  %v3632_v43 = vadd.f32 %v3579_v11, %v3200_v55  ;;  %v1406_v40 = vmul.f32 %v12990_v22, %v13091_v8  ;;  %v1838_v13 = vmul.f32 %v12997_v33, %v13104_v30  ;;  %v15590_v55 = vld [vmem:[#allocation16_spill] sm:$0xff] }
 0x30f   :  { %1712 = vperm.xlu0 %11562, %v13282_v34   ;;  %v3199_v44 = vadd.f32 %v3146_v54, %v2767_v3  ;;  %v1027_v54 = vadd.f32 %v974_v53, %v542_v0  ;;  %v975_v8 = vmul.f32 %v12970_v58, %v13070_v31  ;;  %v237_v3 = vld [vmem:[#allocation2 + $0x178] sm:$0xff]  ;;  %v2270_v30 = vmul.f32 %v13008_v28, %v13151_v56 }
 0x310   :  { %v4062_v50 = vadd.f32 %v4009_v35, %v3630_v1  ;;  %v3567_v42 = vmul.f32 %v13041_v38, %v13288_v15 }
 0x311   :  { %v3903_v41 = vpop.permute.xlu1 %3902  ;;  %v3631_v45 = vadd.f32 %v3578_v21, %v3199_v44  ;;  %v1459_v21 = vadd.f32 %v1406_v40, %v1027_v54  ;;  %v3566_v40 = vmul.f32 %v13041_v38, %v13270_v24 }
 0x312   :  { %v4122_v12 = vadd.f32 %v13076_v26, %v4062_v50  ;;  %v4011_v6 = vmul.f32 %v13065_v5, %v3903_v41  ;;  %v3898_v18 = vpop.permute.xlu0 %3897  ;;  %3425 = vperm.xlu1 %11563, %v3244_v49   ;;  %v543_v50 = vmul.f32 %v12983_v36, %v15590_v55  ;;  %v2702_v41 = vmul.f32 %v13021_v39, %v13186_v10  ;;  %v238_v10 = vld [vmem:[#allocation2 + $0x180] sm:$0xff] }
 0x313   :  { %v4010_v27 = vmul.f32 %v13065_v5, %v3898_v18  ;;  %2204 = vperm.xlu0 %11562, %v1963_v57   ;;  %v1891_v44 = vadd.f32 %v1838_v13, %v1459_v21 }
 0x314   :  { %vm4175_vm3 = vcmp.ge.f32.partialorder %v4122_v12, 0.0  ;;  %v4228_v32 = vmul.f32 0.01, %v4122_v12  ;;  %v4064_v16 = vadd.f32 %v4011_v6, %v3632_v43  ;;  %v1028_v56 = vadd.f32 %v975_v8, %v543_v50 }
 0x315   :  { %v4063_v62 = vadd.f32 %v4010_v27, %v3631_v45  ;;  %v13302_v61 = vpop.permute.xlu1 %893  ;;  %v2323_v18 = vadd.f32 %v2270_v30, %v1891_v44  ;;  %v2271_v45 = vmul.f32 %v13008_v28, %v13147_v14  ;;  %v3135_v14 = vmul.f32 %v13031_v37, %v13212_v51 }
 0x316   :  { %v4281_v29 = vsel %vm4175_vm3, %v4122_v12, %v4228_v32  ;;  %v4124_v1 = vadd.f32 %v13076_v26, %v4064_v16  ;;  %v13307_v11 = vpop.permute.xlu0 %466  ;;  %3917 = vperm.xlu1 %11563, %v13216_v19   ;;  %v1407_v19 = vmul.f32 %v12990_v22, %v13089_v60  ;;  %v1839_v12 = vmul.f32 %v12997_v33, %v13113_v20  ;;  %v668_v60 = vld [vmem:[#allocation2 + $0x179] sm:$0xff] }
 0x317   :  { %4335 = vst.msk [vmem:[#allocation3 + $0x130] sm:$0xff] %vm4296_vm2, %v4281_v29  ;;  %v4123_v35 = vadd.f32 %v13076_v26, %v4063_v62  ;;  %3430 = vperm.xlu0 %11562, %v3245_v23   ;;  %v2755_v20 = vadd.f32 %v2702_v41, %v2323_v18  ;;  %v1950_v16 = vld [vmem:[#allocation2 + $0x117] sm:$0xff]  ;;  %v669_v62 = vld [vmem:[#allocation2 + $0x181] sm:$0xff] }
 0x318   :  { %vm4177_vm4 = vcmp.ge.f32.partialorder %v4124_v1, 0.0  ;;  %v4230_v49 = vmul.f32 0.01, %v4124_v1  ;;  %v1460_v0 = vadd.f32 %v1407_v19, %v1028_v56 }
 0x319   :  { %vm4176_vm5 = vcmp.ge.f32.partialorder %v4123_v35, 0.0  ;;  %v4229_v31 = vmul.f32 0.01, %v4123_v35  ;;  %v13320_v57 = vpop.permute.xlu1 %2119  ;;  %v3187_v23 = vadd.f32 %v3134_v47, %v2755_v20 }
 0x31a   :  { %v4283_v53 = vsel %vm4177_vm4, %v4124_v1, %v4230_v49  ;;  %v13324_v43 = vpop.permute.xlu0 %898  ;;  %481 = vperm.xlu1 %11563, %v237_v3  }
 0x31b   :  { %4337 = vst.msk [vmem:[#allocation3 + $0x140] sm:$0xff] %vm4296_vm2, %v4283_v53  ;;  %v4282_v6 = vsel %vm4176_vm5, %v4123_v35, %v4229_v31  ;;  %3922 = vperm.xlu0 %11562, %v13227_v7   ;;  %v1892_v7 = vadd.f32 %v1839_v12, %v1460_v0  ;;  %v3619_v1 = vadd.f32 %v3566_v40, %v3187_v23  ;;  %v1951_v31 = vld [vmem:[#allocation2 + $0x11f] sm:$0xff] }
 0x31c   :  { %4336 = vst.msk [vmem:[#allocation3 + $0x138] sm:$0xff] %vm4296_vm2, %v4282_v6 }
 0x31d   :  { %v13335_v27 = vpop.permute.xlu1 %2611  ;;  %v2324_v54 = vadd.f32 %v2271_v45, %v1892_v7  ;;  %v656_v45 = vld [vmem:[#allocation2 + $0x119] sm:$0xff] }
 0x31e   :  { %v13339_v32 = vpop.permute.xlu0 %2124  ;;  %913 = vperm.xlu1 %11563, %v668_v60  }
 0x31f   :  { %486 = vperm.xlu0 %11562, %v238_v10   ;;  %v2756_v21 = vadd.f32 %v2703_v59, %v2324_v54  ;;  %v11565_v54 = vld [vmem:[%s15526_s3 + $0x10] sm:$0xff]  }
 0x320   :  { %10819 = vmatpush3.bf16.msra.mxu0 %v11565_v54  ;;  %v13415_v54 = vld [vmem:[%s15524_s1 + $0x1] ss:$0 sm:$0xff] }
 0x321   :  { %v13345_v13 = vpop.f32.mrb[32].mxu0  ;;  %v3838_v29 = vpop.permute.xlu1 %3837  ;;  %v3188_v44 = vadd.f32 %v3135_v14, %v2756_v21  ;;  %v1101_v14 = vld [vmem:[#allocation2 + $0x182] sm:$0xff]  ;;  %11022 = vmatprep.subr.bf16.mxu0 %v15557_v48 }
 0x322   :  { %15591 = vst [vmem:[#allocation28_spill] sm:$0xff] %v13345_v13  ;;  %v3998_v24 = vmul.f32 %v13065_v5, %v3838_v29  ;;  %v10650_v8 = vpop.f32.mrb[33].mxu0  ;;  %v13348_v35 = vpop.permute.xlu0 %2616  ;;  %2139 = vperm.xlu1 %11563, %v1950_v16   ;;  %v1100_v16 = vld [vmem:[#allocation2 + $0x17a] sm:$0xff] }
 0x323   :  { %v4685_v30 = vpop.f32.mrb[34].mxu0  ;;  %918 = vperm.xlu0 %11562, %v669_v62   ;;  %v4464_v49 = vld [vmem:[#allocation3 + $0x131] sm:$0xff]  ;;  %v4465_v55 = vld [vmem:[#allocation3 + $0x139] sm:$0xff]  ;;  %v3620_v12 = vadd.f32 %v3567_v42, %v3188_v44 }
 0x324   :  { %v4051_v50 = vadd.f32 %v3998_v24, %v3619_v1  ;;  %v10651_v51 = vpop.f32.mrb[35].mxu0  ;;  %v4494_v19 = vpack.c.bf16 %v4465_v55, %v4464_v49  ;;  %v2826_v8 = vld [vmem:[#allocation2 + $0x184] sm:$0xff]  ;;  %v1088_v55 = vld [vmem:[#allocation2 + $0x11a] sm:$0xff] }
 0x325   :  { %v13352_v41 = vpop.permute.xlu1 %833  ;;  %v2383_v42 = vld [vmem:[#allocation2 + $0x120] sm:$0xff] }
 0x326   :  { %v4111_v53 = vadd.f32 %v13076_v26, %v4051_v50  ;;  %10693 = vmatmul.mubr.msk.bf16.vlgmr.msra.gmra.mrb[0].mxu1 %vm4296_vm2, %v4494_v19  ;;  %v3843_v56 = vpop.permute.xlu0 %3842  ;;  %2631 = vperm.xlu1 %11563, %v237_v3   ;;  %v2827_v50 = vld [vmem:[#allocation2 + $0x18c] sm:$0xff]  ;;  %v1089_v44 = vld [vmem:[#allocation2 + $0x122] sm:$0xff] }
 0x327   :  { %v3999_v15 = vmul.f32 %v13065_v5, %v3843_v56  ;;  %2144 = vperm.xlu0 %11562, %v1951_v31   ;;  %10696 = vmatprep.mubr.msk.bf16.mxu1 %vm11696_vm1, %v15557_v48  ;;  %v13395_v31 = vld [vmem:[#allocation2 + $0x186] sm:$0xff] }
 0x328   :  { %vm4164_vm6 = vcmp.ge.f32.partialorder %v4111_v53, 0.0  ;;  %v4217_v6 = vmul.f32 0.01, %v4111_v53 }
 0x329   :  { %v4052_v60 = vadd.f32 %v3999_v15, %v3620_v12  ;;  %v13359_v18 = vpop.permute.xlu1 %1325  ;;  %v988_v12 = vmul.f32 %v12970_v58, %v13137_v4  ;;  %v1852_v58 = vmul.f32 %v12997_v33, %v13210_v17  ;;  %v13425_v33 = vld [vmem:[%s15524_s1] ss:$0 sm:$0xff]  ;;  %v15593_v17 = vld [vmem:[#allocation30_spill] sm:$0xff] }
 0x32a   :  { %v4270_v47 = vsel %vm4164_vm6, %v4111_v53, %v4217_v6  ;;  %v13361_v0 = vpop.permute.xlu0 %838  ;;  %3857 = vperm.xlu1 %11563, %v13262_v9   ;;  %v657_v9 = vld [vmem:[#allocation2 + $0x121] sm:$0xff] }
 0x32b   :  { %4324 = vst.msk [vmem:[#allocation3 + $0xd8] sm:$0xff] %vm4296_vm2, %v4270_v47  ;;  %v4112_v3 = vadd.f32 %v13076_v26, %v4052_v60  ;;  %2636 = vperm.xlu0 %11562, %v238_v10   ;;  %v2382_v10 = vld [vmem:[#allocation2 + $0x118] sm:$0xff]  ;;  %v2814_v47 = vld [vmem:[#allocation2 + $0x124] sm:$0xff] }
 0x32d   :  { %vm4165_vm7 = vcmp.ge.f32.partialorder %v4112_v3, 0.0  ;;  %v4218_v20 = vmul.f32 0.01, %v4112_v3  ;;  %v13366_v40 = vpop.permute.xlu1 %2551 }
 0x32e   :  { %v13368_v7 = vpop.permute.xlu0 %1330  ;;  %853 = vperm.xlu1 %11563, %v656_v45  }
 0x32f   :  { %v4271_v59 = vsel %vm4165_vm7, %v4112_v3, %v4218_v20  ;;  %3862 = vperm.xlu0 %11562, %v13282_v34   ;;  %v15592_v3 = vld [vmem:[#allocation27_spill] sm:$0xff]  ;;  %v1420_v20 = vmul.f32 %v12990_v22, %v13178_v46  ;;  %v3258_v22 = vld [vmem:[#allocation2 + $0x185] sm:$0xff] }
 0x330   :  { %4325 = vst.msk [vmem:[#allocation3 + $0xe0] sm:$0xff] %vm4296_vm2, %v4271_v59  ;;  %v556_v45 = vmul.f32 %v12983_v36, %v15592_v3  ;;  %v989_v36 = vmul.f32 %v13415_v54, %v13133_v52  ;;  %v13432_v52 = vld [vmem:[%s15524_s1 + $0x2] ss:$0 sm:$0xff]  ;;  %v13456_v3 = vld [vmem:[%s15524_s1 + $0x4] ss:$0 sm:$0xff] }
 0x331   :  { %v13372_v23 = vpop.permute.xlu1 %3043 }
 0x332   :  { %v13374_v62 = vpop.permute.xlu0 %2556  ;;  %1345 = vperm.xlu1 %11563, %v1100_v16   ;;  %v4452_v1 = vld [vmem:[#allocation3 + $0xd1] sm:$0xff]  ;;  %v13406_v16 = vld [vmem:[#allocation2 + $0x18e] sm:$0xff]  ;;  %v1041_v4 = vadd.f32 %v988_v12, %v556_v45  ;;  %v2285_v45 = vmul.f32 %v13456_v3, %v13275_v25 }
 0x333   :  { %858 = vperm.xlu0 %11562, %v657_v9   ;;  %v1964_v25 = vld [vmem:[#allocation2 + $0x187] sm:$0xff] }
 0x334   :  { %v1473_v46 = vadd.f32 %v1420_v20, %v1041_v4 }
 0x335   :  { %v13379_v29 = vpop.permute.xlu1 %1265 }
 0x336   :  { %v13381_v34 = vpop.permute.xlu0 %3048  ;;  %2571 = vperm.xlu1 %11563, %v2382_v10  }
 0x337   :  { %1350 = vperm.xlu0 %11562, %v1101_v14   ;;  %v4453_v24 = vld [vmem:[#allocation3 + $0xd9] sm:$0xff]  ;;  %v2284_v14 = vmul.f32 %v13008_v28, %v13252_v63  ;;  %v1905_v28 = vadd.f32 %v1852_v58, %v1473_v46  ;;  %v2716_v63 = vmul.f32 %v13021_v39, %v13335_v27  ;;  %v3259_v39 = vld [vmem:[#allocation2 + $0x18d] sm:$0xff] }
 0x338   :  { %v4488_v21 = vpack.c.bf16 %v4453_v24, %v4452_v1  ;;  %v2815_v1 = vld [vmem:[#allocation2 + $0x12c] sm:$0xff]  ;;  %v557_v24 = vmul.f32 %v13425_v33, %v15593_v17 }
 0x339   :  { %v13384_v30 = vpop.permute.xlu1 %1757  ;;  %v13473_v46 = vld [vmem:[#allocation2 + $0x12e] sm:$0xff] }
 0x33a   :  { %10669 = vmatmul.mubr.msk.bf16.gmra.mrb[52].mxu0 %vm4296_vm2, %v4488_v21  ;;  %v13387_v49 = vpop.permute.xlu0 %1270  ;;  %3063 = vperm.xlu1 %11563, %v2826_v8   ;;  %v15594_v8 = vld [vmem:[#allocation42_spill] sm:$0xff] }
 0x33b   :  { %2576 = vperm.xlu0 %11562, %v2383_v42   ;;  %10672 = vmatprep.mubr.msk.bf16.mxu0 %vm11696_vm1, %v15557_v48  ;;  %v1421_v21 = vmul.f32 %v13432_v52, %v15594_v8 }
 0x33d   :  { %v13391_v51 = vpop.permute.xlu1 %2983 }
 0x33e   :  { %v13393_v19 = vpop.permute.xlu0 %1762  ;;  %1285 = vperm.xlu1 %11563, %v1088_v55  }
 0x33f   :  { %3068 = vperm.xlu0 %11562, %v2827_v50   ;;  %v1042_v50 = vadd.f32 %v989_v36, %v557_v24 }
 0x341   :  { %v4690_v53 = vpop.f32.mrb[36].mxu0  ;;  %v3476_v56 = vpop.permute.xlu1 %3475  ;;  %v1474_v27 = vadd.f32 %v1421_v21, %v1042_v50  ;;  %v13488_v21 = vld [vmem:[%s15524_s1 + $0x7] ss:$0 sm:$0xff] }
 0x342   :  { %v10654_v15 = vpop.f32.mrb[37].mxu0  ;;  %v13399_v6 = vpop.permute.xlu0 %2988  ;;  %1777 = vperm.xlu1 %11563, %v13395_v31   ;;  %v15595_v53 = vld [vmem:[#allocation45_spill] sm:$0xff]  ;;  %v3580_v4 = vmul.f32 %v13041_v38, %v3476_v56  ;;  %v13478_v38 = vld [vmem:[%s15524_s1 + $0x6] ss:$0 sm:$0xff] }
 0x343   :  { %v4693_v60 = vpop.f32.mrb[38].mxu0  ;;  %1290 = vperm.xlu0 %11562, %v1089_v44   ;;  %v13445_v44 = vld [vmem:[%s15524_s1 + $0x3] ss:$0 sm:$0xff]  ;;  %v13449_v15 = vld [vmem:[#allocation2 + $0x126] sm:$0xff]  ;;  %v3149_v56 = vmul.f32 %v13478_v38, %v13381_v34  ;;  %v1965_v34 = vld [vmem:[#allocation2 + $0x18f] sm:$0xff] }
 0x344   :  { %v10655_v59 = vpop.f32.mrb[39].mxu0  ;;  %v1853_v12 = vmul.f32 %v13445_v44, %v15595_v53  ;;  %v2337_v60 = vadd.f32 %v2284_v14, %v1905_v28 }
 0x345   :  { %v13408_v9 = vpop.permute.xlu1 %1697 }
 0x346   :  { %v3481_v10 = vpop.permute.xlu0 %3480  ;;  %3003 = vperm.xlu1 %11563, %v2814_v47   ;;  %v3148_v47 = vmul.f32 %v13031_v37, %v13372_v23  ;;  %v2769_v59 = vadd.f32 %v2716_v63, %v2337_v60  ;;  %v1906_v37 = vadd.f32 %v1853_v12, %v1474_v27  ;;  %v13469_v23 = vld [vmem:[%s15524_s1 + $0x5] ss:$0 sm:$0xff]  ;;  %v15596_v60 = vld [vmem:[#allocation11_spill] sm:$0xff] }
 0x347   :  { %1782 = vperm.xlu0 %11562, %v13406_v16   ;;  %v2717_v36 = vmul.f32 %v13469_v23, %v13348_v35  ;;  %v3581_v28 = vmul.f32 %v13488_v21, %v3481_v10  ;;  %v3246_v63 = vld [vmem:[#allocation2 + $0x125] sm:$0xff]  ;;  %v15597_v10 = vld [vmem:[#allocation15_spill] sm:$0xff] }
 0x348   :  { %v2338_v14 = vadd.f32 %v2285_v45, %v1906_v37  ;;  %v15598_v37 = vld [vmem:[#allocation44_spill] sm:$0xff] }
 0x349   :  { %v13436_v42 = vpop.permute.xlu1 %2189 }
 0x34a   :  { %v13440_v55 = vpop.permute.xlu0 %1702  ;;  %3495 = vperm.xlu1 %11563, %v3258_v22   ;;  %v3201_v22 = vadd.f32 %v3148_v47, %v2769_v59  ;;  %v2770_v35 = vadd.f32 %v2717_v36, %v2338_v14  ;;  %v976_v47 = vmul.f32 %v13415_v54, %v15596_v60  ;;  %v1408_v36 = vmul.f32 %v13432_v52, %v15598_v37 }
 0x34b   :  { %3008 = vperm.xlu0 %11562, %v2815_v1   ;;  %v2272_v60 = vmul.f32 %v13456_v3, %v13320_v57  ;;  %v1841_v57 = vmul.f32 %v13445_v44, %v13258_v2 }
 0x34c   :  { %v3633_v17 = vadd.f32 %v3580_v4, %v3201_v22  ;;  %v3202_v53 = vadd.f32 %v3149_v56, %v2770_v35  ;;  %v544_v4 = vmul.f32 %v13425_v33, %v15597_v10  ;;  %v3247_v22 = vld [vmem:[#allocation2 + $0x12d] sm:$0xff] }
 0x34d   :  { %v13460_v20 = vpop.permute.xlu1 %3415 }
 0x34e   :  { %v13463_v58 = vpop.permute.xlu0 %2194  ;;  %1717 = vperm.xlu1 %11563, %v13449_v15   ;;  %v3634_v45 = vadd.f32 %v3581_v28, %v3202_v53  ;;  %v3568_v2 = vmul.f32 %v13488_v21, %v13460_v20  ;;  %v13546_v20 = vld [vmem:[%s15524_s1 + $0x8] ss:$0 sm:$0xff] }
 0x34f   :  { %3500 = vperm.xlu0 %11562, %v3259_v39  }
 0x351   :  { %v3908_v1 = vpop.permute.xlu1 %3907 }
 0x352   :  { %v4012_v24 = vmul.f32 %v13065_v5, %v3908_v1  ;;  %v13483_v8 = vpop.permute.xlu0 %3420  ;;  %2209 = vperm.xlu1 %11563, %v1964_v25   ;;  %v1029_v1 = vadd.f32 %v976_v47, %v544_v4  ;;  %v15601_v47 = vld [vmem:[#allocation18_spill] sm:$0xff] }
 0x353   :  { %1722 = vperm.xlu0 %11562, %v13473_v46  }
 0x354   :  { %v4065_v50 = vadd.f32 %v4012_v24, %v3633_v17  ;;  %v15599_v17 = vld [vmem:[#allocation46_spill] sm:$0xff]  ;;  %v1461_v53 = vadd.f32 %v1408_v36, %v1029_v1 }
 0x355   :  { %v13492_v12 = vpop.permute.xlu1 %471  ;;  %v1840_v24 = vmul.f32 %v13445_v44, %v15599_v17  ;;  %v670_v1 = vld [vmem:[#allocation2 + $0x189] sm:$0xff] }
 0x356   :  { %v4125_v39 = vadd.f32 %v13076_v26, %v4065_v50  ;;  %v3913_v27 = vpop.permute.xlu0 %3912  ;;  %3435 = vperm.xlu1 %11563, %v3246_v63  }
 0x357   :  { %v4013_v59 = vmul.f32 %v13065_v5, %v3913_v27  ;;  %2214 = vperm.xlu0 %11562, %v1965_v34   ;;  %v15600_v5 = vld [vmem:[#allocation40_spill] sm:$0xff]  ;;  %v239_v34 = vld [vmem:[#allocation2 + $0x188] sm:$0xff]  ;;  %v15602_v27 = vld [vmem:[#allocation43_spill] sm:$0xff]  ;;  %v1893_v10 = vadd.f32 %v1840_v24, %v1461_v53 }
 0x358   :  { %vm4178_vm8 = vcmp.ge.f32.partialorder %v4125_v39, 0.0  ;;  %v4231_v25 = vmul.f32 0.01, %v4125_v39  ;;  %v977_v63 = vmul.f32 %v13415_v54, %v15600_v5 }
 0x359   :  { %v4066_v14 = vadd.f32 %v4013_v59, %v3634_v45  ;;  %v13502_v56 = vpop.permute.xlu1 %903  ;;  %v1409_v45 = vmul.f32 %v13432_v52, %v15602_v27  ;;  %v3137_v27 = vmul.f32 %v13478_v38, %v13399_v6 }
 0x35a   :  { %v4284_v35 = vsel %vm4178_vm8, %v4125_v39, %v4231_v25  ;;  %v13506_v28 = vpop.permute.xlu0 %476  ;;  %3927 = vperm.xlu1 %11563, %v13395_v31   ;;  %v545_v39 = vmul.f32 %v13425_v33, %v15601_v47  ;;  %v1952_v25 = vld [vmem:[#allocation2 + $0x127] sm:$0xff] }
 0x35b   :  { %4338 = vst.msk [vmem:[#allocation3 + $0x148] sm:$0xff] %vm4296_vm2, %v4284_v35  ;;  %v4126_v50 = vadd.f32 %v13076_v26, %v4066_v14  ;;  %3440 = vperm.xlu0 %11562, %v3247_v22   ;;  %v2704_v26 = vmul.f32 %v13469_v23, %v13366_v40  ;;  %v2325_v22 = vadd.f32 %v2272_v60, %v1893_v10 }
 0x35c   :  { %v1030_v37 = vadd.f32 %v977_v63, %v545_v39  ;;  %v3136_v14 = vmul.f32 %v13478_v38, %v13391_v51  ;;  %v2273_v40 = vmul.f32 %v13456_v3, %v13339_v32  ;;  %v2705_v51 = vmul.f32 %v13469_v23, %v13374_v62  ;;  %v1953_v32 = vld [vmem:[#allocation2 + $0x12f] sm:$0xff] }
 0x35d   :  { %vm4179_vm9 = vcmp.ge.f32.partialorder %v4126_v50, 0.0  ;;  %v4232_v31 = vmul.f32 0.01, %v4126_v50  ;;  %v13519_v59 = vpop.permute.xlu1 %2129  ;;  %v2757_v5 = vadd.f32 %v2704_v26, %v2325_v22  ;;  %v13553_v22 = vld [vmem:[#allocation2 + $0x190] sm:$0xff] }
 0x35e   :  { %v13523_v4 = vpop.permute.xlu0 %908  ;;  %491 = vperm.xlu1 %11563, %v239_v34   ;;  %v1462_v17 = vadd.f32 %v1409_v45, %v1030_v37  ;;  %v3569_v37 = vmul.f32 %v13488_v21, %v13483_v8 }
 0x35f   :  { %v4285_v36 = vsel %vm4179_vm9, %v4126_v50, %v4232_v31  ;;  %3932 = vperm.xlu0 %11562, %v13406_v16   ;;  %v3189_v60 = vadd.f32 %v3136_v14, %v2757_v5  ;;  %v658_v5 = vld [vmem:[#allocation2 + $0x129] sm:$0xff] }
 0x360   :  { %4339 = vst.msk [vmem:[#allocation3 + $0x150] sm:$0xff] %vm4296_vm2, %v4285_v36  ;;  %v1894_v50 = vadd.f32 %v1841_v57, %v1462_v17  ;;  %v13560_v17 = vld [vmem:[%s15525_s2] ss:$0 sm:$0xff] }
 0x361   :  { %v4698_v24 = vpop.f32.mrb[40].mxu0  ;;  %v13533_v35 = vpop.permute.xlu1 %2621  ;;  %v3621_v31 = vadd.f32 %v3568_v2, %v3189_v60  ;;  %v2384_v60 = vld [vmem:[#allocation2 + $0x128] sm:$0xff] }
 0x362   :  { %v10658_v16 = vpop.f32.mrb[41].mxu0  ;;  %v13537_v63 = vpop.permute.xlu0 %2134  ;;  %2149 = vperm.xlu1 %11563, %v1952_v25   ;;  %v2326_v39 = vadd.f32 %v2273_v40, %v1894_v50  ;;  %v4466_v57 = vld [vmem:[#allocation3 + $0x141] sm:$0xff] }
 0x363   :  { %v4701_v53 = vpop.f32.mrb[42].mxu0  ;;  %923 = vperm.xlu0 %11562, %v670_v1  }
 0x364   :  { %v10659_v47 = vpop.f32.mrb[43].mxu0  ;;  %v2758_v62 = vadd.f32 %v2705_v51, %v2326_v39 }
 0x365   :  { %v3848_v45 = vpop.permute.xlu1 %3847  ;;  %v1102_v47 = vld [vmem:[#allocation2 + $0x18a] sm:$0xff] }
 0x366   :  { %v4000_v10 = vmul.f32 %v13546_v20, %v3848_v45  ;;  %v13549_v26 = vpop.permute.xlu0 %2626  ;;  %2641 = vperm.xlu1 %11563, %v239_v34   ;;  %v3190_v14 = vadd.f32 %v3137_v27, %v2758_v62 }
 0x367   :  { %2154 = vperm.xlu0 %11562, %v1953_v32   ;;  %v4467_v36 = vld [vmem:[#allocation3 + $0x149] sm:$0xff] }
 0x368   :  { %v4053_v6 = vadd.f32 %v4000_v10, %v3621_v31  ;;  %v4495_v25 = vpack.c.bf16 %v4467_v36, %v4466_v57  ;;  %v3622_v40 = vadd.f32 %v3569_v37, %v3190_v14  ;;  %v2828_v31 = vld [vmem:[#allocation2 + $0x194] sm:$0xff]  ;;  %v2829_v57 = vld [vmem:[#allocation2 + $0x19c] sm:$0xff] }
 0x369   :  { %v13555_v1 = vpop.permute.xlu1 %843  ;;  %v2385_v10 = vld [vmem:[#allocation2 + $0x130] sm:$0xff] }
 0x36a   :  { %v4113_v34 = vadd.f32 %v13560_v17, %v4053_v6  ;;  %10697 = vmatmul.mubr.msk.bf16.gmra.mrb[4].mxu1 %vm4296_vm2, %v4495_v25  ;;  %v3853_v8 = vpop.permute.xlu0 %3852  ;;  %3867 = vperm.xlu1 %11563, %v13449_v15  }
 0x36b   :  { %v4001_v24 = vmul.f32 %v13546_v20, %v3853_v8  ;;  %2646 = vperm.xlu0 %11562, %v13553_v22   ;;  %10700 = vmatprep.mubr.msk.bf16.mxu1 %vm11696_vm1, %v15557_v48 }
 0x36c   :  { %vm4166_vm10 = vcmp.ge.f32.partialorder %v4113_v34, 0.0  ;;  %v4219_v2 = vmul.f32 0.01, %v4113_v34 }
 0x36d   :  { %v4054_v16 = vadd.f32 %v4001_v24, %v3622_v40  ;;  %v13569_v50 = vpop.permute.xlu1 %1335  ;;  %v1534_v40 = vld [vmem:[#allocation2 + $0x196] sm:$0xff] }
 0x36e   :  { %v4272_v51 = vsel %vm4166_vm10, %v4113_v34, %v4219_v2  ;;  %v13571_v53 = vpop.permute.xlu0 %848  ;;  %863 = vperm.xlu1 %11563, %v658_v5   ;;  %v2816_v34 = vld [vmem:[#allocation2 + $0x134] sm:$0xff] }
 0x36f   :  { %15603 = vst [vmem:[#allocation25_spill] sm:$0xff] %v13571_v53  ;;  %4326 = vst.msk [vmem:[#allocation3 + $0xe8] sm:$0xff] %vm4296_vm2, %v4272_v51  ;;  %v4114_v15 = vadd.f32 %v13560_v17, %v4054_v16  ;;  %3872 = vperm.xlu0 %11562, %v13473_v46   ;;  %v1090_v46 = vld [vmem:[#allocation2 + $0x12a] sm:$0xff]  ;;  %v3260_v2 = vld [vmem:[#allocation2 + $0x195] sm:$0xff] }
 0x370   :  { %v2817_v16 = vld [vmem:[#allocation2 + $0x13c] sm:$0xff] }
 0x371   :  { %vm4167_vm0 = vcmp.ge.f32.partialorder %v4114_v15, 0.0  ;;  %v4220_v32 = vmul.f32 0.01, %v4114_v15  ;;  %v13576_v39 = vpop.permute.xlu1 %2561 }
 0x372   :  { %v13578_v27 = vpop.permute.xlu0 %1340  ;;  %2581 = vperm.xlu1 %11563, %v2384_v60   ;;  %v1522_v60 = vld [vmem:[#allocation2 + $0x136] sm:$0xff] }
 0x373   :  { %v4273_v45 = vsel %vm4167_vm0, %v4114_v15, %v4220_v32  ;;  %1355 = vperm.xlu0 %11562, %v1102_v47   ;;  %v3261_v47 = vld [vmem:[#allocation2 + $0x19d] sm:$0xff] }
 0x374   :  { %4327 = vst.msk [vmem:[#allocation3 + $0xf0] sm:$0xff] %vm4296_vm2, %v4273_v45  ;;  %v990_v45 = vmul.f32 %v13415_v54, %v13302_v61 }
 0x375   :  { %v13581_v62 = vpop.permute.xlu1 %3053 }
 0x376   :  { %v13583_v37 = vpop.permute.xlu0 %2566  ;;  %3073 = vperm.xlu1 %11563, %v2828_v31   ;;  %v4454_v25 = vld [vmem:[#allocation3 + $0xe1] sm:$0xff] }
 0x377   :  { %2586 = vperm.xlu0 %11562, %v2385_v10   ;;  %v3248_v10 = vld [vmem:[#allocation2 + $0x135] sm:$0xff] }
 0x379   :  { %v13585_v36 = vpop.permute.xlu1 %1275 }
 0x37a   :  { %v13587_v6 = vpop.permute.xlu0 %3058  ;;  %1295 = vperm.xlu1 %11563, %v1090_v46   ;;  %v15605_v46 = vld [vmem:[#allocation29_spill] sm:$0xff] }
 0x37b   :  { %3078 = vperm.xlu0 %11562, %v2829_v57   ;;  %v4455_v14 = vld [vmem:[#allocation3 + $0xe9] sm:$0xff]  ;;  %v558_v57 = vmul.f32 %v13425_v33, %v15605_v46 }
 0x37c   :  { %v4489_v8 = vpack.c.bf16 %v4455_v14, %v4454_v25  ;;  %v1422_v25 = vmul.f32 %v13432_v52, %v13359_v18  ;;  %v1966_v14 = vld [vmem:[#allocation2 + $0x197] sm:$0xff]  ;;  %v2286_v18 = vmul.f32 %v13456_v3, %v13436_v42  ;;  %v1855_v42 = vmul.f32 %v13445_v44, %v13393_v19 }
 0x37d   :  { %v13589_v24 = vpop.permute.xlu1 %1767 }
 0x37e   :  { %10673 = vmatmul.mubr.msk.bf16.gmra.mrb[56].mxu0 %vm4296_vm2, %v4489_v8  ;;  %v13592_v5 = vpop.permute.xlu0 %1280  ;;  %3013 = vperm.xlu1 %11563, %v2816_v34  }
 0x37f   :  { %15604 = vst [vmem:[#allocation13_spill] sm:$0xff] %v13592_v5  ;;  %1787 = vperm.xlu0 %11562, %v1534_v40   ;;  %10676 = vmatprep.mubr.msk.bf16.mxu0 %vm11696_vm1, %v15557_v48 }
 0x381   :  { %v13596_v51 = vpop.permute.xlu1 %2993 }
 0x382   :  { %v13598_v15 = vpop.permute.xlu0 %1772  ;;  %3505 = vperm.xlu1 %11563, %v3260_v2   ;;  %v1043_v2 = vadd.f32 %v990_v45, %v558_v57  ;;  %v559_v45 = vmul.f32 %v13425_v33, %v13307_v11  ;;  %v3150_v11 = vmul.f32 %v13478_v38, %v13581_v62 }
 0x383   :  { %3018 = vperm.xlu0 %11562, %v2817_v16   ;;  %v1854_v16 = vmul.f32 %v13445_v44, %v13384_v30  ;;  %v1423_v30 = vmul.f32 %v13432_v52, %v13368_v7  ;;  %v13630_v7 = vld [vmem:[#allocation2 + $0x19e] sm:$0xff] }
 0x384   :  { %v1475_v46 = vadd.f32 %v1422_v25, %v1043_v2 }
 0x385   :  { %v3486_v32 = vpop.permute.xlu1 %3485 }
 0x386   :  { %v13602_v31 = vpop.permute.xlu0 %2998  ;;  %1727 = vperm.xlu1 %11563, %v1522_v60  }
 0x387   :  { %3510 = vperm.xlu0 %11562, %v3261_v47   ;;  %v991_v47 = vmul.f32 %v13415_v54, %v13324_v43  ;;  %v2718_v43 = vmul.f32 %v13469_v23, %v13533_v35 }
 0x389   :  { %v4706_v34 = vpop.f32.mrb[44].mxu0  ;;  %v13608_v8 = vpop.permute.xlu1 %1707  ;;  %v1044_v25 = vadd.f32 %v991_v47, %v559_v45 }
 0x38a   :  { %v10662_v61 = vpop.f32.mrb[45].mxu0  ;;  %v3491_v13 = vpop.permute.xlu0 %3490  ;;  %3445 = vperm.xlu1 %11563, %v3248_v10   ;;  %v3249_v34 = vld [vmem:[#allocation2 + $0x13d] sm:$0xff]  ;;  %v1907_v10 = vadd.f32 %v1854_v16, %v1475_v46  ;;  %v2287_v16 = vmul.f32 %v13456_v3, %v13463_v58  ;;  %v2719_v46 = vmul.f32 %v13469_v23, %v13549_v26  ;;  %v3151_v58 = vmul.f32 %v13478_v38, %v13587_v6 }
 0x38b   :  { %v4709_v5 = vpop.f32.mrb[46].mxu0  ;;  %2219 = vperm.xlu0 %11562, %v1966_v14   ;;  %v1476_v2 = vadd.f32 %v1423_v30, %v1044_v25  ;;  %v3583_v25 = vmul.f32 %v13488_v21, %v3491_v13  ;;  %v2386_v26 = vld [vmem:[#allocation2 + $0x138] sm:$0xff]  ;;  %v978_v6 = vmul.f32 %v13415_v54, %v13352_v41  ;;  %v2818_v13 = vld [vmem:[#allocation2 + $0x144] sm:$0xff] }
 0x38c   :  { %v10663_v53 = vpop.f32.mrb[47].mxu0  ;;  %v2339_v14 = vadd.f32 %v2286_v18, %v1907_v10  ;;  %v13642_v18 = vld [vmem:[#allocation2 + $0x198] sm:$0xff]  ;;  %v11566_v41 = vld [vmem:[%s15526_s3] sm:$0xff]  }
 0x38d   :  { %v13620_v57 = vpop.permute.xlu1 %2199  ;;  %v1954_v53 = vld [vmem:[#allocation2 + $0x137] sm:$0xff]  ;;  %v1908_v19 = vadd.f32 %v1855_v42, %v1476_v2  ;;  %10717 = vmatpush3.bf16.msra.mxu1 %v11566_v41  ;;  %v13692_v41 = vld [vmem:[#allocation2 + $0x1a6] sm:$0xff] }
 0x38e   :  { %v13624_v5 = vpop.permute.xlu0 %1712  ;;  %3937 = vperm.xlu1 %11563, %v1534_v40   ;;  %v2771_v61 = vadd.f32 %v2718_v43, %v2339_v14  ;;  %v3582_v40 = vmul.f32 %v13488_v21, %v3486_v32  ;;  %10920 = vmatprep.subr.bf16.mxu1 %v15557_v48 }
 0x38f   :  { %3450 = vperm.xlu0 %11562, %v3249_v34   ;;  %v2340_v34 = vadd.f32 %v2287_v16, %v1908_v19 }
 0x390   :  { %v3203_v62 = vadd.f32 %v3150_v11, %v2771_v61 }
 0x391   :  { %v13634_v35 = vpop.permute.xlu1 %3425  ;;  %v2772_v43 = vadd.f32 %v2719_v46, %v2340_v34  ;;  %v1410_v46 = vmul.f32 %v13432_v52, %v13379_v29  ;;  %v2830_v34 = vld [vmem:[#allocation2 + $0x1a4] sm:$0xff]  ;;  %v979_v29 = vmul.f32 %v13415_v54, %v13361_v0 }
 0x392   :  { %v13637_v47 = vpop.permute.xlu0 %2204  ;;  %2159 = vperm.xlu1 %11563, %v1954_v53   ;;  %v3635_v30 = vadd.f32 %v3582_v40, %v3203_v62  ;;  %v3681_v53 = vld [vmem:[#allocation2 + $0x13e] sm:$0xff]  ;;  %v15606_v40 = vld [vmem:[#allocation17_spill] sm:$0xff] }
 0x393   :  { %3942 = vperm.xlu0 %11562, %v13630_v7   ;;  %v3204_v14 = vadd.f32 %v3151_v58, %v2772_v43  ;;  %v546_v19 = vmul.f32 %v13425_v33, %v15606_v40 }
 0x395   :  { %v3918_v45 = vpop.permute.xlu1 %3917  ;;  %v3636_v61 = vadd.f32 %v3583_v25, %v3204_v14  ;;  %v3262_v14 = vld [vmem:[#allocation2 + $0x1a5] sm:$0xff] }
 0x396   :  { %v4014_v32 = vmul.f32 %v13546_v20, %v3918_v45  ;;  %v13647_v10 = vpop.permute.xlu0 %3430  ;;  %3877 = vperm.xlu1 %11563, %v1522_v60  }
 0x397   :  { %2651 = vperm.xlu0 %11562, %v13642_v18  }
 0x398   :  { %v4067_v42 = vadd.f32 %v4014_v32, %v3635_v30  ;;  %v1031_v30 = vadd.f32 %v978_v6, %v546_v19  ;;  %v1842_v32 = vmul.f32 %v13445_v44, %v13408_v9  ;;  %v2274_v9 = vmul.f32 %v13456_v3, %v13519_v59  ;;  %v15607_v6 = vld [vmem:[#allocation20_spill] sm:$0xff] }
 0x399   :  { %v13651_v11 = vpop.permute.xlu1 %481  ;;  %v1843_v59 = vmul.f32 %v13445_v44, %v13440_v55  ;;  %v3570_v55 = vmul.f32 %v13488_v21, %v13634_v35 }
 0x39a   :  { %v4127_v2 = vadd.f32 %v13560_v17, %v4067_v42  ;;  %v3923_v16 = vpop.permute.xlu0 %3922  ;;  %2591 = vperm.xlu1 %11563, %v2386_v26   ;;  %v3250_v42 = vld [vmem:[#allocation2 + $0x145] sm:$0xff] }
 0x39b   :  { %v4015_v60 = vmul.f32 %v13546_v20, %v3923_v16  ;;  %3882 = vperm.xlu0 %11562, %v3681_v53   ;;  %v1463_v53 = vadd.f32 %v1410_v46, %v1031_v30  ;;  %v1411_v16 = vmul.f32 %v13432_v52, %v13387_v49  ;;  %v3138_v49 = vmul.f32 %v13478_v38, %v13596_v51 }
 0x39c   :  { %vm4180_vm11 = vcmp.ge.f32.partialorder %v4127_v2, 0.0  ;;  %v4233_v62 = vmul.f32 0.01, %v4127_v2  ;;  %v2707_v51 = vmul.f32 %v13469_v23, %v13583_v37 }
 0x39d   :  { %v4068_v58 = vadd.f32 %v4015_v60, %v3636_v61  ;;  %v13664_v45 = vpop.permute.xlu1 %913  ;;  %v1895_v60 = vadd.f32 %v1842_v32, %v1463_v53 }
 0x39e   :  { %v4286_v43 = vsel %vm4180_vm11, %v4127_v2, %v4233_v62  ;;  %v13668_v25 = vpop.permute.xlu0 %486  ;;  %3023 = vperm.xlu1 %11563, %v2818_v13   ;;  %v547_v2 = vmul.f32 %v13425_v33, %v15607_v6  ;;  %v2706_v13 = vmul.f32 %v13469_v23, %v13576_v39  ;;  %v3682_v62 = vld [vmem:[#allocation2 + $0x146] sm:$0xff]  ;;  %v2275_v39 = vmul.f32 %v13456_v3, %v13537_v63 }
 0x39f   :  { %4340 = vst.msk [vmem:[#allocation3 + $0x158] sm:$0xff] %vm4296_vm2, %v4286_v43  ;;  %v4128_v26 = vadd.f32 %v13560_v17, %v4068_v58  ;;  %3083 = vperm.xlu0 %11562, %v2830_v34   ;;  %v2327_v34 = vadd.f32 %v2274_v9, %v1895_v60  ;;  %v3139_v63 = vmul.f32 %v13478_v38, %v13602_v31 }
 0x3a0   :  { %v1032_v19 = vadd.f32 %v979_v29, %v547_v2 }
 0x3a1   :  { %vm4181_vm12 = vcmp.ge.f32.partialorder %v4128_v26, 0.0  ;;  %v4234_v0 = vmul.f32 0.01, %v4128_v26  ;;  %v13681_v61 = vpop.permute.xlu1 %2139  ;;  %v2759_v32 = vadd.f32 %v2706_v13, %v2327_v34 }
 0x3a2   :  { %v13685_v40 = vpop.permute.xlu0 %918  ;;  %3455 = vperm.xlu1 %11563, %v3250_v42   ;;  %v1464_v58 = vadd.f32 %v1411_v16, %v1032_v19  ;;  %v3571_v16 = vmul.f32 %v13488_v21, %v13647_v10  ;;  %v1103_v19 = vld [vmem:[#allocation2 + $0x192] sm:$0xff] }
 0x3a3   :  { %v4287_v46 = vsel %vm4181_vm12, %v4128_v26, %v4234_v0  ;;  %3515 = vperm.xlu0 %11562, %v3262_v14   ;;  %v671_v26 = vld [vmem:[#allocation2 + $0x191] sm:$0xff]  ;;  %v3191_v42 = vadd.f32 %v3138_v49, %v2759_v32 }
 0x3a4   :  { %4341 = vst.msk [vmem:[#allocation3 + $0x160] sm:$0xff] %vm4296_vm2, %v4287_v46  ;;  %v1896_v29 = vadd.f32 %v1843_v59, %v1464_v58  ;;  %v1967_v58 = vld [vmem:[#allocation2 + $0x19f] sm:$0xff] }
 0x3a5   :  { %v13696_v30 = vpop.permute.xlu1 %2631  ;;  %v3623_v14 = vadd.f32 %v3570_v55, %v3191_v42 }
 0x3a6   :  { %v13700_v43 = vpop.permute.xlu0 %2144  ;;  %3887 = vperm.xlu1 %11563, %v3682_v62   ;;  %v2328_v53 = vadd.f32 %v2275_v39, %v1896_v29  ;;  %v4468_v37 = vld [vmem:[#allocation3 + $0x151] sm:$0xff] }
 0x3a7   :  { %3947 = vperm.xlu0 %11562, %v13692_v41  }
 0x3a8   :  { %v2760_v2 = vadd.f32 %v2707_v51, %v2328_v53  ;;  %v3263_v51 = vld [vmem:[#allocation2 + $0x1ad] sm:$0xff] }
 0x3a9   :  { %v3858_v9 = vpop.permute.xlu1 %3857 }
 0x3aa   :  { %v4002_v6 = vmul.f32 %v13546_v20, %v3858_v9  ;;  %v13708_v35 = vpop.permute.xlu0 %2636  ;;  %928 = vperm.xlu1 %11563, %v671_v26   ;;  %v3192_v59 = vadd.f32 %v3139_v63, %v2760_v2  ;;  %v2831_v26 = vld [vmem:[#allocation2 + $0x1ac] sm:$0xff] }
 0x3ab   :  { %496 = vperm.xlu0 %11562, %v13553_v22   ;;  %v4469_v0 = vld [vmem:[#allocation3 + $0x159] sm:$0xff] }
 0x3ac   :  { %v4055_v60 = vadd.f32 %v4002_v6, %v3623_v14  ;;  %v4496_v13 = vpack.c.bf16 %v4469_v0, %v4468_v37  ;;  %v3624_v34 = vadd.f32 %v3571_v16, %v3192_v59  ;;  %v2399_v22 = vld [vmem:[#allocation2 + $0x1a0] sm:$0xff]  ;;  %v3695_v14 = vld [vmem:[#allocation2 + $0x1ae] sm:$0xff] }
 0x3ad   :  { %v13713_v31 = vpop.permute.xlu1 %853  ;;  %v1104_v16 = vld [vmem:[#allocation2 + $0x19a] sm:$0xff]  ;;  %v1968_v59 = vld [vmem:[#allocation2 + $0x1a7] sm:$0xff] }
 0x3ae   :  { %v4115_v46 = vadd.f32 %v13560_v17, %v4055_v60  ;;  %10701 = vmatmul.mubr.msk.bf16.gmra.mrb[8].mxu1 %vm4296_vm2, %v4496_v13  ;;  %v3863_v62 = vpop.permute.xlu0 %3862  ;;  %1792 = vperm.xlu1 %11563, %v13630_v7   ;;  %v672_v37 = vld [vmem:[#allocation2 + $0x199] sm:$0xff] }
 0x3af   :  { %v4003_v10 = vmul.f32 %v13546_v20, %v3863_v62  ;;  %1360 = vperm.xlu0 %11562, %v1103_v19   ;;  %10704 = vmatprep.mubr.msk.bf16.mxu1 %vm11696_vm1, %v15557_v48 }
 0x3b0   :  { %vm4168_vm13 = vcmp.ge.f32.partialorder %v4115_v46, 0.0  ;;  %v4221_v49 = vmul.f32 0.01, %v4115_v46 }
 0x3b1   :  { %v4056_v39 = vadd.f32 %v4003_v10, %v3624_v34  ;;  %v13721_v32 = vpop.permute.xlu1 %1345 }
 0x3b2   :  { %v4274_v55 = vsel %vm4168_vm13, %v4115_v46, %v4221_v49  ;;  %v13723_v29 = vpop.permute.xlu0 %858  ;;  %2656 = vperm.xlu1 %11563, %v2399_v22  }
 0x3b3   :  { %4328 = vst.msk [vmem:[#allocation3 + $0xf8] sm:$0xff] %vm4296_vm2, %v4274_v55  ;;  %v4116_v7 = vadd.f32 %v13560_v17, %v4056_v39  ;;  %2224 = vperm.xlu0 %11562, %v1967_v58  }
 0x3b5   :  { %vm4169_vm14 = vcmp.ge.f32.partialorder %v4116_v7, 0.0  ;;  %v4222_v42 = vmul.f32 0.01, %v4116_v7  ;;  %v13727_v53 = vpop.permute.xlu1 %2571 }
 0x3b6   :  { %v13729_v63 = vpop.permute.xlu0 %1350  ;;  %3520 = vperm.xlu1 %11563, %v3263_v51  }
 0x3b7   :  { %v4275_v9 = vsel %vm4169_vm14, %v4116_v7, %v4222_v42  ;;  %3088 = vperm.xlu0 %11562, %v2831_v26   ;;  %v1105_v7 = vld [vmem:[#allocation2 + $0x1a2] sm:$0xff]  ;;  %vm8405_vm14 = vcmask 261120  }
 0x3b8   :  { %4329 = vst.msk [vmem:[#allocation3 + $0x100] sm:$0xff] %vm4296_vm2, %v4275_v9  ;;  %v2400_v26 = vld [vmem:[#allocation2 + $0x1a8] sm:$0xff] }
 0x3b9   :  { %v3064_v6 = vpop.permute.xlu1 %3063 }
 0x3ba   :  { %v13732_v2 = vpop.permute.xlu0 %2576  ;;  %501 = vperm.xlu1 %11563, %v13642_v18   ;;  %v4456_v13 = vld [vmem:[#allocation3 + $0xf1] sm:$0xff]  ;;  %v673_v18 = vld [vmem:[#allocation2 + $0x1a1] sm:$0xff] }
 0x3bb   :  { %3952 = vperm.xlu0 %11562, %v3695_v14  }
 0x3bd   :  { %v13735_v0 = vpop.permute.xlu1 %1285 }
 0x3be   :  { %v13737_v60 = vpop.permute.xlu0 %3068  ;;  %1365 = vperm.xlu1 %11563, %v1104_v16   ;;  %v560_v16 = vmul.f32 %v13425_v33, %v13492_v12  ;;  %v2288_v12 = vmul.f32 %v13456_v3, %v13620_v57  ;;  %v1857_v57 = vmul.f32 %v13445_v44, %v13598_v15  ;;  %v2721_v15 = vmul.f32 %v13469_v23, %v13708_v35 }
 0x3bf   :  { %933 = vperm.xlu0 %11562, %v672_v37   ;;  %v4457_v19 = vld [vmem:[#allocation3 + $0xf9] sm:$0xff]  ;;  %v1424_v37 = vmul.f32 %v13432_v52, %v13569_v50  ;;  %v561_v50 = vmul.f32 %v13425_v33, %v13506_v28  ;;  %v3152_v28 = vmul.f32 %v13478_v38, %v3064_v6 }
 0x3c0   :  { %v4490_v46 = vpack.c.bf16 %v4457_v19, %v4456_v13  ;;  %v2832_v13 = vld [vmem:[#allocation2 + $0x1b4] sm:$0xff]  ;;  %v2833_v6 = vld [vmem:[#allocation2 + $0x1bc] sm:$0xff] }
 0x3c1   :  { %v13739_v62 = vpop.permute.xlu1 %1777 }
 0x3c2   :  { %10677 = vmatmul.mubr.msk.bf16.gmra.mrb[60].mxu0 %vm4296_vm2, %v4490_v46  ;;  %v13742_v34 = vpop.permute.xlu0 %1290  ;;  %2229 = vperm.xlu1 %11563, %v1968_v59   ;;  %v1856_v59 = vmul.f32 %v13445_v44, %v13589_v24 }
 0x3c3   :  { %1797 = vperm.xlu0 %11562, %v13692_v41   ;;  %10680 = vmatprep.mubr.msk.bf16.mxu0 %vm11696_vm1, %v15557_v48  ;;  %v992_v41 = vmul.f32 %v13415_v54, %v13502_v56  ;;  %v993_v56 = vmul.f32 %v13415_v54, %v13523_v4 }
 0x3c5   :  { %v13747_v10 = vpop.f32.mrb[48].mxu0  ;;  %v13749_v49 = vpop.permute.xlu1 %3003 }
 0x3c6   :  { %v10666_v58 = vpop.f32.mrb[49].mxu0  ;;  %v13751_v39 = vpop.permute.xlu0 %1782  ;;  %938 = vperm.xlu1 %11563, %v673_v18   ;;  %v1969_v18 = vld [vmem:[#allocation2 + $0x1af] sm:$0xff] }
 0x3c7   :  { %v13753_v55 = vpop.f32.mrb[50].mxu0  ;;  %506 = vperm.xlu0 %11562, %v2399_v22   ;;  %v1045_v22 = vadd.f32 %v992_v41, %v560_v16  ;;  %v1046_v41 = vadd.f32 %v993_v56, %v561_v50  ;;  %v2401_v16 = vld [vmem:[#allocation2 + $0x1b0] sm:$0xff]  ;;  %v3153_v50 = vmul.f32 %v13478_v38, %v13737_v60 }
 0x3c8   :  { %15608 = vst [vmem:[#allocation16_spill] sm:$0xff] %v13753_v55  ;;  %v10667_v51 = vpop.f32.mrb[51].mxu0 }
 0x3c9   :  { %v3496_v42 = vpop.permute.xlu1 %3495  ;;  %v1477_v58 = vadd.f32 %v1424_v37, %v1045_v22  ;;  %v1425_v51 = vmul.f32 %v13432_v52, %v13578_v27  ;;  %v2289_v22 = vmul.f32 %v13456_v3, %v13637_v47 }
 0x3ca   :  { %v13757_v9 = vpop.permute.xlu0 %3008  ;;  %1370 = vperm.xlu1 %11563, %v1105_v7   ;;  %v3264_v7 = vld [vmem:[#allocation2 + $0x1b5] sm:$0xff] }
 0x3cb   :  { %2661 = vperm.xlu0 %11562, %v2400_v26   ;;  %v1909_v24 = vadd.f32 %v1856_v59, %v1477_v58  ;;  %v1478_v27 = vadd.f32 %v1425_v51, %v1046_v41  ;;  %v980_v51 = vmul.f32 %v13415_v54, %v13555_v1 }
 0x3cd   :  { %v13763_v19 = vpop.permute.xlu1 %1717  ;;  %v2341_v37 = vadd.f32 %v2288_v12, %v1909_v24  ;;  %v1910_v56 = vadd.f32 %v1857_v57, %v1478_v27  ;;  %v15609_v57 = vld [vmem:[#allocation19_spill] sm:$0xff] }
 0x3ce   :  { %v3501_v46 = vpop.permute.xlu0 %3500  ;;  %1802 = vperm.xlu1 %11563, %v3695_v14   ;;  %v2720_v14 = vmul.f32 %v13469_v23, %v13696_v30  ;;  %v3584_v30 = vmul.f32 %v13488_v21, %v3496_v42 }
 0x3cf   :  { %3093 = vperm.xlu0 %11562, %v2832_v13   ;;  %v3696_v13 = vld [vmem:[#allocation2 + $0x1b6] sm:$0xff]  ;;  %v3585_v35 = vmul.f32 %v13488_v21, %v3501_v46  ;;  %v15610_v46 = vld [vmem:[#allocation25_spill] sm:$0xff] }
 0x3d0   :  { %v2773_v58 = vadd.f32 %v2720_v14, %v2341_v37  ;;  %v1412_v37 = vmul.f32 %v13432_v52, %v13585_v36 }
 0x3d1   :  { %v13775_v26 = vpop.permute.xlu1 %2209 }
 0x3d2   :  { %v13779_v4 = vpop.permute.xlu0 %1722  ;;  %2234 = vperm.xlu1 %11563, %v1969_v18   ;;  %v3265_v18 = vld [vmem:[#allocation2 + $0x1bd] sm:$0xff]  ;;  %v3205_v12 = vadd.f32 %v3152_v28, %v2773_v58 }
 0x3d3   :  { %3525 = vperm.xlu0 %11562, %v3264_v7   ;;  %v2342_v7 = vadd.f32 %v2289_v22, %v1910_v56  ;;  %v3697_v28 = vld [vmem:[#allocation2 + $0x1be] sm:$0xff]  ;;  %v1844_v22 = vmul.f32 %v13445_v44, %v13608_v8  ;;  %v981_v56 = vmul.f32 %v13415_v54, %v15610_v46  ;;  %v15612_v8 = vld [vmem:[#allocation13_spill] sm:$0xff] }
 0x3d4   :  { %v3637_v42 = vadd.f32 %v3584_v30, %v3205_v12  ;;  %v2276_v12 = vmul.f32 %v13456_v3, %v13681_v61  ;;  %v1845_v61 = vmul.f32 %v13445_v44, %v13624_v5 }
 0x3d5   :  { %v3436_v59 = vpop.permute.xlu1 %3435  ;;  %v2774_v41 = vadd.f32 %v2721_v15, %v2342_v7  ;;  %v15611_v7 = vld [vmem:[#allocation22_spill] sm:$0xff] }
 0x3d6   :  { %v13787_v55 = vpop.permute.xlu0 %2214  ;;  %2666 = vperm.xlu1 %11563, %v2401_v16   ;;  %v548_v16 = vmul.f32 %v13425_v33, %v15609_v57 }
 0x3d7   :  { %3957 = vperm.xlu0 %11562, %v3696_v13   ;;  %v3206_v13 = vadd.f32 %v3153_v50, %v2774_v41  ;;  %v549_v50 = vmul.f32 %v13425_v33, %v15611_v7 }
 0x3d8   :  { %v1033_v1 = vadd.f32 %v980_v51, %v548_v16 }
 0x3d9   :  { %v3928_v47 = vpop.permute.xlu1 %3927  ;;  %v3638_v15 = vadd.f32 %v3585_v35, %v3206_v13  ;;  %v1034_v57 = vadd.f32 %v981_v56, %v549_v50 }
 0x3da   :  { %v4016_v24 = vmul.f32 %v13546_v20, %v3928_v47  ;;  %v3441_v14 = vpop.permute.xlu0 %3440  ;;  %3530 = vperm.xlu1 %11563, %v3265_v18   ;;  %v1465_v36 = vadd.f32 %v1412_v37, %v1033_v1  ;;  %v1413_v47 = vmul.f32 %v13432_v52, %v15612_v8  ;;  %v3140_v52 = vmul.f32 %v13478_v38, %v13749_v49 }
 0x3db   :  { %3098 = vperm.xlu0 %11562, %v2833_v6   ;;  %v3572_v1 = vmul.f32 %v13488_v21, %v3436_v59 }
 0x3dc   :  { %v4069_v60 = vadd.f32 %v4016_v24, %v3637_v42  ;;  %v1897_v54 = vadd.f32 %v1844_v22, %v1465_v36  ;;  %v2708_v24 = vmul.f32 %v13469_v23, %v13727_v53  ;;  %v1466_v37 = vadd.f32 %v1413_v47, %v1034_v57 }
 0x3dd   :  { %v13801_v27 = vpop.permute.xlu1 %491  ;;  %v2709_v22 = vmul.f32 %v13469_v23, %v13732_v2 }
 0x3de   :  { %v4129_v58 = vadd.f32 %v13560_v17, %v4069_v60  ;;  %v3933_v30 = vpop.permute.xlu0 %3932  ;;  %v2329_v16 = vadd.f32 %v2276_v12, %v1897_v54  ;;  %v2277_v60 = vmul.f32 %v13456_v3, %v13700_v43  ;;  %v1898_v5 = vadd.f32 %v1845_v61, %v1466_v37 }
 0x3df   :  { %v4017_v18 = vmul.f32 %v13546_v20, %v3933_v30  ;;  %3962 = vperm.xlu0 %11562, %v3697_v28   ;;  %v3141_v3 = vmul.f32 %v13478_v38, %v13757_v9 }
 0x3e0   :  { %vm4182_vm15 = vcmp.ge.f32.partialorder %v4129_v58, 0.0  ;;  %v4235_v6 = vmul.f32 0.01, %v4129_v58  ;;  %v2761_v13 = vadd.f32 %v2708_v24, %v2329_v16  ;;  %v2330_v49 = vadd.f32 %v2277_v60, %v1898_v5  ;;  %v13870_v5 = vld [vmem:[%s15524_s1 + $0x1] ss:$0 sm:$0xff] }
 0x3e1   :  { %v4070_v51 = vadd.f32 %v4017_v18, %v3638_v15  ;;  %v13815_v42 = vpop.permute.xlu1 %2149  ;;  %v3573_v18 = vmul.f32 %v13488_v21, %v3441_v14 }
 0x3e2   :  { %v4288_v41 = vsel %vm4182_vm15, %v4129_v58, %v4235_v6  ;;  %v13819_v35 = vpop.permute.xlu0 %923  ;;  %v3193_v30 = vadd.f32 %v3140_v52, %v2761_v13  ;;  %v2762_v59 = vadd.f32 %v2709_v22, %v2330_v49  ;;  %v994_v22 = vmul.f32 %v13870_v5, %v13664_v45 }
 0x3e3   :  { %4342 = vst.msk [vmem:[#allocation3 + $0x168] sm:$0xff] %vm4296_vm2, %v4288_v41  ;;  %v4130_v33 = vadd.f32 %v13560_v17, %v4070_v51 }
 0x3e4   :  { %v3625_v46 = vadd.f32 %v3572_v1, %v3193_v30  ;;  %v3194_v12 = vadd.f32 %v3141_v3, %v2762_v59  ;;  %v13879_v3 = vld [vmem:[%s15524_s1] ss:$0 sm:$0xff] }
 0x3e5   :  { %vm4183_vm3 = vcmp.ge.f32.partialorder %v4130_v33, 0.0  ;;  %v4236_v53 = vmul.f32 0.01, %v4130_v33  ;;  %v13829_v28 = vpop.permute.xlu1 %2641 }
 0x3e6   :  { %v13832_v44 = vpop.permute.xlu0 %2154  ;;  %v3626_v7 = vadd.f32 %v3573_v18, %v3194_v12 }
 0x3e7   :  { %v4289_v58 = vsel %vm4183_vm3, %v4130_v33, %v4236_v53 }
 0x3e8   :  { %4343 = vst.msk [vmem:[#allocation3 + $0x170] sm:$0xff] %vm4296_vm2, %v4289_v58 }
 0x3e9   :  { %v3868_v43 = vpop.permute.xlu1 %3867 }
 0x3ea   :  { %v4004_v56 = vmul.f32 %v13546_v20, %v3868_v43  ;;  %v13840_v15 = vpop.permute.xlu0 %2646  ;;  %v4470_v38 = vld [vmem:[#allocation3 + $0x161] sm:$0xff]  ;;  %v562_v43 = vmul.f32 %v13879_v3, %v13651_v11 }
 0x3ec   :  { %v4057_v36 = vadd.f32 %v4004_v56, %v3625_v46  ;;  %v13886_v46 = vld [vmem:[%s15524_s1 + $0x2] ss:$0 sm:$0xff]  ;;  %v1047_v18 = vadd.f32 %v994_v22, %v562_v43 }
 0x3ed   :  { %v13843_v23 = vpop.permute.xlu1 %863  ;;  %v1426_v45 = vmul.f32 %v13886_v46, %v13721_v32 }
 0x3ee   :  { %v4117_v2 = vadd.f32 %v13560_v17, %v4057_v36  ;;  %v3873_v6 = vpop.permute.xlu0 %3872  ;;  %v13893_v36 = vld [vmem:[%s15524_s1 + $0x3] ss:$0 sm:$0xff] }
 0x3ef   :  { %v4005_v50 = vmul.f32 %v13546_v20, %v3873_v6  ;;  %v4471_v9 = vld [vmem:[#allocation3 + $0x169] sm:$0xff]  ;;  %v1858_v12 = vmul.f32 %v13893_v36, %v13739_v62  ;;  %v1479_v32 = vadd.f32 %v1426_v45, %v1047_v18  ;;  %v13907_v6 = vld [vmem:[%s15524_s1 + $0x4] ss:$0 sm:$0xff]  ;;  %v563_v62 = vmul.f32 %v13879_v3, %v13668_v25 }
 0x3f0   :  { %vm4170_vm4 = vcmp.ge.f32.partialorder %v4117_v2, 0.0  ;;  %v4223_v8 = vmul.f32 0.01, %v4117_v2  ;;  %v4497_v47 = vpack.c.bf16 %v4471_v9, %v4470_v38  ;;  %v1859_v25 = vmul.f32 %v13893_v36, %v13751_v39 }
 0x3f1   :  { %v4058_v51 = vadd.f32 %v4005_v50, %v3626_v7  ;;  %v13847_v54 = vpop.permute.xlu1 %2581  ;;  %v2290_v7 = vmul.f32 %v13907_v6, %v13775_v26  ;;  %v1427_v50 = vmul.f32 %v13886_v46, %v13729_v63  ;;  %v1911_v9 = vadd.f32 %v1858_v12, %v1479_v32  ;;  %v15613_v63 = vld [vmem:[#allocation21_spill] sm:$0xff]  ;;  %v15614_v12 = vld [vmem:[#allocation24_spill] sm:$0xff] }
 0x3f2   :  { %v4276_v24 = vsel %vm4170_vm4, %v4117_v2, %v4223_v8  ;;  %10705 = vmatmul.mubr.msk.bf16.gmra.mrb[12].mxu1 %vm4296_vm2, %v4497_v47  ;;  %v13850_v21 = vpop.permute.xlu0 %1355  ;;  %v995_v2 = vmul.f32 %v13870_v5, %v13685_v40  ;;  %v982_v40 = vmul.f32 %v13870_v5, %v13713_v31  ;;  %v13922_v8 = vld [vmem:[%s15524_s1 + $0x5] ss:$0 sm:$0xff]  ;;  %v1414_v31 = vmul.f32 %v13886_v46, %v13735_v0  ;;  %v13945_v0 = vld [vmem:[%s15524_s1 + $0x7] ss:$0 sm:$0xff] }
 0x3f3   :  { %4330 = vst.msk [vmem:[#allocation3 + $0x108] sm:$0xff] %vm4296_vm2, %v4276_v24  ;;  %v4118_v14 = vadd.f32 %v13560_v17, %v4058_v51  ;;  %10708 = vmatprep.mubr.msk.bf16.mxu1 %vm11696_vm1, %v15557_v48  ;;  %v2722_v26 = vmul.f32 %v13922_v8, %v13829_v28  ;;  %v550_v24 = vmul.f32 %v13879_v3, %v15613_v63 }
 0x3f4   :  { %v1048_v51 = vadd.f32 %v995_v2, %v563_v62  ;;  %v1846_v22 = vmul.f32 %v13893_v36, %v13763_v19  ;;  %v2278_v19 = vmul.f32 %v13907_v6, %v13815_v42  ;;  %v551_v2 = vmul.f32 %v13879_v3, %v15614_v12 }
 0x3f5   :  { %vm4171_vm5 = vcmp.ge.f32.partialorder %v4118_v14, 0.0  ;;  %v4224_v41 = vmul.f32 0.01, %v4118_v14  ;;  %v3074_v57 = vpop.permute.xlu1 %3073  ;;  %v1035_v39 = vadd.f32 %v982_v40, %v550_v24 }
 0x3f6   :  { %v13856_v61 = vpop.permute.xlu0 %2586  ;;  %v1480_v28 = vadd.f32 %v1427_v50, %v1048_v51 }
 0x3f7   :  { %v4277_v33 = vsel %vm4171_vm5, %v4118_v14, %v4224_v41  ;;  %v2343_v14 = vadd.f32 %v2290_v7, %v1911_v9  ;;  %v13935_v41 = vld [vmem:[%s15524_s1 + $0x6] ss:$0 sm:$0xff]  ;;  %vm8462_vm5 = vcmask 253952  }
 0x3f8   :  { %4331 = vst.msk [vmem:[#allocation3 + $0x110] sm:$0xff] %vm4296_vm2, %v4277_v33  ;;  %v3154_v33 = vmul.f32 %v13935_v41, %v3074_v57  ;;  %v983_v57 = vmul.f32 %v13870_v5, %v13723_v29  ;;  %v1912_v45 = vadd.f32 %v1859_v25, %v1480_v28  ;;  %v1847_v25 = vmul.f32 %v13893_v36, %v13779_v4 }
 0x3f9   :  { %v13859_v16 = vpop.f32.mrb[0].mxu1  ;;  %v13861_v52 = vpop.permute.xlu1 %1295  ;;  %v2279_v28 = vmul.f32 %v13907_v6, %v13832_v44  ;;  %v996_v44 = vmul.f32 %v13870_v5, %v13819_v35 }
 0x3fa   :  { %v10694_v37 = vpop.f32.mrb[1].mxu1  ;;  %v3079_v60 = vpop.permute.xlu0 %3078  ;;  %v4458_v30 = vld [vmem:[#allocation3 + $0x101] sm:$0xff]  ;;  %v1036_v51 = vadd.f32 %v983_v57, %v551_v2  ;;  %v2711_v57 = vmul.f32 %v13922_v8, %v13856_v61  ;;  %v984_v2 = vmul.f32 %v13870_v5, %v13843_v23  ;;  %v1416_v23 = vmul.f32 %v13886_v46, %v13861_v52 }
 0x3fb   :  { %v13863_v53 = vpop.f32.mrb[2].mxu1  ;;  %v2291_v37 = vmul.f32 %v13907_v6, %v13787_v55  ;;  %v2723_v55 = vmul.f32 %v13922_v8, %v13840_v15  ;;  %v3155_v7 = vmul.f32 %v13935_v41, %v3079_v60  ;;  %v2710_v15 = vmul.f32 %v13922_v8, %v13847_v54 }
 0x3fc   :  { %v10695_v13 = vpop.f32.mrb[3].mxu1 }
 0x3fd   :  { %v13865_v1 = vpop.permute.xlu1 %3013  ;;  %v2344_v32 = vadd.f32 %v2291_v37, %v1912_v45 }
 0x3fe   :  { %v13874_v58 = vpop.permute.xlu0 %1787 }
 0x3ff   :  { %v4459_v49 = vld [vmem:[#allocation3 + $0x109] sm:$0xff] }
 0x400   :  { %v4491_v56 = vpack.c.bf16 %v4459_v49, %v4458_v30  ;;  %v2775_v30 = vadd.f32 %v2722_v26, %v2343_v14 }
 0x401   :  { %v3506_v59 = vpop.permute.xlu1 %3505 }
 0x402   :  { %10681 = vmatmul.mubr.msk.bf16.gmra.mrb[64].mxu0 %vm4296_vm2, %v4491_v56  ;;  %v13898_v11 = vpop.permute.xlu0 %3018  ;;  %v3586_v49 = vmul.f32 %v13945_v0, %v3506_v59  ;;  %v1467_v56 = vadd.f32 %v1414_v31, %v1035_v39  ;;  %v3207_v18 = vadd.f32 %v3154_v33, %v2775_v30  ;;  %v1415_v59 = vmul.f32 %v13886_v46, %v13742_v34 }
 0x403   :  { %10684 = vmatprep.mubr.msk.bf16.mxu0 %vm11696_vm1, %v15557_v48  ;;  %v2776_v34 = vadd.f32 %v2723_v55, %v2344_v32  ;;  %v3142_v31 = vmul.f32 %v13935_v41, %v13865_v1 }
 0x404   :  { %v1899_v50 = vadd.f32 %v1846_v22, %v1467_v56  ;;  %v3639_v40 = vadd.f32 %v3586_v49, %v3207_v18  ;;  %v1468_v33 = vadd.f32 %v1415_v59, %v1036_v51 }
 0x405   :  { %v13915_v38 = vpop.permute.xlu1 %1727  ;;  %v3208_v37 = vadd.f32 %v3155_v7, %v2776_v34 }
 0x406   :  { %v3511_v47 = vpop.permute.xlu0 %3510  ;;  %v2331_v24 = vadd.f32 %v2278_v19, %v1899_v50  ;;  %v1900_v49 = vadd.f32 %v1847_v25, %v1468_v33 }
 0x407   :  { %v3587_v63 = vmul.f32 %v13945_v0, %v3511_v47 }
 0x408   :  { %v2763_v22 = vadd.f32 %v2710_v15, %v2331_v24  ;;  %v2332_v19 = vadd.f32 %v2279_v28, %v1900_v49  ;;  %v15615_v15 = vld [vmem:[#allocation23_spill] sm:$0xff] }
 0x409   :  { %v3446_v13 = vpop.permute.xlu1 %3445  ;;  %v3640_v45 = vadd.f32 %v3587_v63, %v3208_v37 }
 0x40a   :  { %v13948_v43 = vpop.permute.xlu0 %2219  ;;  %v3574_v4 = vmul.f32 %v13945_v0, %v3446_v13  ;;  %v3195_v55 = vadd.f32 %v3142_v31, %v2763_v22  ;;  %v3143_v13 = vmul.f32 %v13935_v41, %v13898_v11  ;;  %v552_v11 = vmul.f32 %v13879_v3, %v15615_v15 }
 0x40c   :  { %v3627_v59 = vadd.f32 %v3574_v4, %v3195_v55  ;;  %v1037_v34 = vadd.f32 %v984_v2, %v552_v11 }
 0x40d   :  { %v13961_v62 = vpop.f32.mrb[52].mxu0  ;;  %v3938_v29 = vpop.permute.xlu1 %3937 }
 0x40e   :  { %v4018_v42 = vmul.f32 %v13546_v20, %v3938_v29  ;;  %v10670_v9 = vpop.f32.mrb[53].mxu0  ;;  %v3451_v26 = vpop.permute.xlu0 %3450  ;;  %v2764_v29 = vadd.f32 %v2711_v57, %v2332_v19 }
 0x40f   :  { %v13969_v60 = vpop.f32.mrb[54].mxu0  ;;  %v3575_v50 = vmul.f32 %v13945_v0, %v3451_v26 }
 0x410   :  { %v4071_v14 = vadd.f32 %v4018_v42, %v3639_v40  ;;  %v10671_v54 = vpop.f32.mrb[55].mxu0  ;;  %v564_v40 = vmul.f32 %v13879_v3, %v13801_v27  ;;  %v3196_v9 = vadd.f32 %v3143_v13, %v2764_v29  ;;  %v14003_v27 = vld [vmem:[%s15525_s2] ss:$0 sm:$0xff]  ;;  %s11698_s2 = smov 32  }
 0x411   :  { %v2160_v39 = vpop.permute.xlu1 %2159  ;;  %v1469_v54 = vadd.f32 %v1416_v23, %v1037_v34 }
 0x412   :  { %v4131_v30 = vadd.f32 %v13560_v17, %v4071_v14  ;;  %v3943_v47 = vpop.permute.xlu0 %3942  ;;  %v1049_v26 = vadd.f32 %v996_v44, %v564_v40  ;;  %v3628_v24 = vadd.f32 %v3575_v50, %v3196_v9  ;;  %v14011_v14 = vld [vmem:[%s15524_s1 + $0x8] ss:$0 sm:$0xff]  ;;  %v2280_v33 = vmul.f32 %v13907_v6, %v2160_v39  ;;  %s9971_s1 = sshll.u32 %s11701_s20, 4  ;;  %s9972_s1 = int_to_ptr.vmem [resolvable:$true] %s9971_s1 }
 0x413   :  { %v4019_v1 = vmul.f32 %v13546_v20, %v3943_v47  ;;  %s11670_s0 = scalar_lea.vmem %s9972_s1, 32  ;;  %p11675_p1 = scmp.lt.s32.totalorder %s9972_s1, %s9972_s1 }
 0x414   :  { %vm4184_vm6 = vcmp.ge.f32.partialorder %v4131_v30, 0.0  ;;  %v4237_v56 = vmul.f32 0.01, %v4131_v30  ;;  %p11671_p0 = scmp.ne.s32.totalorder %s9972_s1, %s11670_s0  ;;  %p11676_p2 = scmp.lt.s32.totalorder %s11670_s0, %s11670_s0 }
 0x415   :  { %v4072_v18 = vadd.f32 %v4019_v1, %v3640_v45  ;;  %v3878_v12 = vpop.permute.xlu1 %3877 }
 0x416   :  { %v4290_v61 = vsel %vm4184_vm6, %v4131_v30, %v4237_v56  ;;  %v4006_v32 = vmul.f32 %v13546_v20, %v3878_v12  ;;  %v2652_v7 = vpop.permute.xlu0 %2651  ;;  %v1428_v20 = vmul.f32 %v13886_v46, %v13850_v21  ;;  %v1860_v21 = vmul.f32 %v13893_v36, %v13874_v58  ;;  %p11677_p3 = por %p11676_p2, %p11675_p1 }
 0x417   :  { %4344 = vst.msk [vmem:[#allocation3 + $0x178] sm:$0xff] %vm4296_vm2, %v4290_v61  ;;  %v4132_v35 = vadd.f32 %v13560_v17, %v4072_v18  ;;  %v1848_v17 = vmul.f32 %v13893_v36, %v13915_v38  ;;  %v2292_v58 = vmul.f32 %v13907_v6, %v13948_v43  ;;  %v2724_v39 = vmul.f32 %v13922_v8, %v2652_v7 }
 0x418   :  { %v4059_v42 = vadd.f32 %v4006_v32, %v3627_v59  ;;  %v1481_v37 = vadd.f32 %v1428_v20, %v1049_v26  ;;  %p11678_p4 = pnand %p11677_p3, %p11671_p0 }
 0x419   :  { %vm4185_vm7 = vcmp.ge.f32.partialorder %v4132_v35, 0.0  ;;  %v4238_v51 = vmul.f32 0.01, %v4132_v35  ;;  %v2592_v25 = vpop.permute.xlu1 %2591  ;;  %v1901_v30 = vadd.f32 %v1848_v17, %v1469_v54 }
 0x41a   :  { %v4119_v52 = vadd.f32 %v14003_v27, %v4059_v42  ;;  %v3883_v63 = vpop.permute.xlu0 %3882  ;;  %v2712_v49 = vmul.f32 %v13922_v8, %v2592_v25  ;;  %v1913_v45 = vadd.f32 %v1860_v21, %v1481_v37 }
 0x41b   :  { %v4291_v31 = vsel %vm4185_vm7, %v4132_v35, %v4238_v51  ;;  %v4007_v38 = vmul.f32 %v14011_v14, %v3883_v63  ;;  %v2333_v55 = vadd.f32 %v2280_v33, %v1901_v30 }
 0x41c   :  { %4345 = vst.msk [vmem:[#allocation3 + $0x180] sm:$0xff] %vm4296_vm2, %v4291_v31  ;;  %vm4172_vm8 = vcmp.ge.f32.partialorder %v4119_v52, 0.0  ;;  %v4225_v28 = vmul.f32 0.01, %v4119_v52  ;;  %v2345_v44 = vadd.f32 %v2292_v58, %v1913_v45 }
 0x41d   :  { %v4060_v22 = vadd.f32 %v4007_v38, %v3628_v24  ;;  %v3024_v4 = vpop.permute.xlu1 %3023  ;;  %v2765_v18 = vadd.f32 %v2712_v49, %v2333_v55 }
 0x41e   :  { %v4278_v47 = vsel %vm4172_vm8, %v4119_v52, %v4225_v28  ;;  %v3084_v57 = vpop.permute.xlu0 %3083  ;;  %v3144_v56 = vmul.f32 %v13935_v41, %v3024_v4  ;;  %v2777_v59 = vadd.f32 %v2724_v39, %v2345_v44  ;;  %v4472_v7 = vld [vmem:[#allocation3 + $0x171] sm:$0xff] }
 0x41f   :  { %4332 = vst.msk [vmem:[#allocation3 + $0x118] sm:$0xff] %vm4296_vm2, %v4278_v47  ;;  %v4120_v1 = vadd.f32 %v14003_v27, %v4060_v22  ;;  %v3156_v19 = vmul.f32 %v13935_v41, %v3084_v57 }
 0x420   :  { %v3197_v50 = vadd.f32 %v3144_v56, %v2765_v18 }
 0x421   :  { %vm4173_vm9 = vcmp.ge.f32.partialorder %v4120_v1, 0.0  ;;  %v4226_v43 = vmul.f32 0.01, %v4120_v1  ;;  %v3456_v13 = vpop.permute.xlu1 %3455  ;;  %v3209_v15 = vadd.f32 %v3156_v19, %v2777_v59 }
 0x422   :  { %v3576_v12 = vmul.f32 %v13945_v0, %v3456_v13  ;;  %v3516_v2 = vpop.permute.xlu0 %3515 }
 0x423   :  { %v4279_v61 = vsel %vm4173_vm9, %v4120_v1, %v4226_v43  ;;  %v3588_v32 = vmul.f32 %v13945_v0, %v3516_v2  ;;  %v4473_v29 = vld [vmem:[#allocation3 + $0x179] sm:$0xff] }
 0x424   :  { %4333 = vst.msk [vmem:[#allocation3 + $0x120] sm:$0xff] %vm4296_vm2, %v4279_v61  ;;  %v4498_v35 = vpack.c.bf16 %v4473_v29, %v4472_v7  ;;  %v3629_v40 = vadd.f32 %v3576_v12, %v3197_v50 }
 0x425   :  { %v3888_v11 = vpop.permute.xlu1 %3887  ;;  %v3641_v20 = vadd.f32 %v3588_v32, %v3209_v15 }
 0x426   :  { %v4008_v23 = vmul.f32 %v14011_v14, %v3888_v11  ;;  %10709 = vmatmul.mubr.msk.bf16.gmra.mrb[16].mxu1 %vm4296_vm2, %v4498_v35  ;;  %v3948_v42 = vpop.permute.xlu0 %3947  ;;  %v4460_v24 = vld [vmem:[#allocation3 + $0x111] sm:$0xff]  ;;  %v5129_v11 = vld [vmem:[#allocation3 + $0x2] sm:$0xff] }
 0x427   :  { %v4020_v9 = vmul.f32 %v14011_v14, %v3948_v42  ;;  %10712 = vmatprep.mubr.msk.bf16.mxu1 %vm11696_vm1, %v15557_v48 }
 0x428   :  { %v4061_v51 = vadd.f32 %v4008_v23, %v3629_v40  ;;  %v5130_v40 = vld [vmem:[#allocation3 + $0xa] sm:$0xff] }
 0x429   :  { %v4073_v25 = vadd.f32 %v4020_v9, %v3641_v20  ;;  %v929_v26 = vpop.permute.xlu1 %928  ;;  %v4351_v9 = vld [vmem:[#allocation3 + $0x8] sm:$0xff] }
 0x42a   :  { %v4121_v34 = vadd.f32 %v14003_v27, %v4061_v51  ;;  %v497_v17 = vpop.permute.xlu0 %496  ;;  %v997_v63 = vmul.f32 %v13870_v5, %v929_v26  ;;  %v11568_v26 = vld [vmem:[%s15526_s3 + $0x20] sm:$0xff]  }
 0x42b   :  { %v4133_v52 = vadd.f32 %v14003_v27, %v4073_v25  ;;  %v565_v21 = vmul.f32 %v13879_v3, %v497_v17  ;;  %v4461_v31 = vld [vmem:[#allocation3 + $0x119] sm:$0xff] }
 0x42c   :  { %vm4174_vm10 = vcmp.ge.f32.partialorder %v4121_v34, 0.0  ;;  %v4227_v38 = vmul.f32 0.01, %v4121_v34  ;;  %v4492_v54 = vpack.c.bf16 %v4461_v31, %v4460_v24 }
 0x42d   :  { %vm4186_vm0 = vcmp.ge.f32.partialorder %v4133_v52, 0.0  ;;  %v4239_v33 = vmul.f32 0.01, %v4133_v52  ;;  %v1793_v28 = vpop.permute.xlu1 %1792  ;;  %v1050_v4 = vadd.f32 %v997_v63, %v565_v21  ;;  %v5178_v63 = vpack.c.bf16 %v5130_v40, %v5129_v11  ;;  %v11567_v21 = vld [vmem:[%s15526_s3 + $0x18] sm:$0xff]  }
 0x42e   :  { %v4280_v37 = vsel %vm4174_vm10, %v4121_v34, %v4227_v38  ;;  %10685 = vmatmul.mubr.msk.bf16.gmra.mrb[68].mxu0 %vm4296_vm2, %v4492_v54  ;;  %v1361_v58 = vpop.permute.xlu0 %1360  ;;  %v1861_v47 = vmul.f32 %v13893_v36, %v1793_v28 }
 0x42f   :  { %4334 = vst.msk [vmem:[#allocation3 + $0x128] sm:$0xff] %vm4296_vm2, %v4280_v37  ;;  %v4292_v22 = vsel %vm4186_vm0, %v4133_v52, %v4239_v33  ;;  %v1429_v30 = vmul.f32 %v13886_v46, %v1361_v58  ;;  %10688 = vmatprep.mubr.msk.bf16.mxu0 %vm11696_vm1, %v15557_v48  ;;  %v4350_v52 = vld [vmem:[#allocation3] sm:$0xff] }
 0x430   :  { %4346 = vst.msk [vmem:[#allocation3 + $0x188] sm:$0xff] %vm4296_vm2, %v4292_v22  ;;  %v4399_v31 = vpack.c.bf16 %v4351_v9, %v4350_v52  ;;  %v5131_v22 = vld [vmem:[#allocation3 + $0x12] sm:$0xff] }
 0x431   :  { %v1482_v49 = vadd.f32 %v1429_v30, %v1050_v4  ;;  %v2657_v57 = vpop.permute.xlu1 %2656  ;;  %v5132_v4 = vld [vmem:[#allocation3 + $0x1a] sm:$0xff] }
 0x432   :  { %v2225_v45 = vpop.permute.xlu0 %2224  ;;  %v2725_v55 = vmul.f32 %v13922_v8, %v2657_v57 }
 0x433   :  { %v1914_v39 = vadd.f32 %v1861_v47, %v1482_v49  ;;  %v2293_v1 = vmul.f32 %v13907_v6, %v2225_v45  ;;  %v4353_v49 = vld [vmem:[#allocation3 + $0x18] sm:$0xff] }
 0x435   :  { %v2346_v56 = vadd.f32 %v2293_v1, %v1914_v39  ;;  %v3521_v44 = vpop.permute.xlu1 %3520  ;;  %v4352_v39 = vld [vmem:[#allocation3 + $0x10] sm:$0xff]  ;;  %v5179_v1 = vpack.c.bf16 %v5132_v4, %v5131_v22 }
 0x436   :  { %v3089_v43 = vpop.permute.xlu0 %3088  ;;  %v4462_v19 = vld [vmem:[#allocation3 + $0x121] sm:$0xff]  ;;  %v4463_v13 = vld [vmem:[#allocation3 + $0x129] sm:$0xff]  ;;  %v3589_v32 = vmul.f32 %v13945_v0, %v3521_v44 }
 0x437   :  { %v2778_v18 = vadd.f32 %v2725_v55, %v2346_v56  ;;  %v3157_v12 = vmul.f32 %v13935_v41, %v3089_v43  ;;  %v4493_v2 = vpack.c.bf16 %v4463_v13, %v4462_v19  ;;  %v4474_v59 = vld [vmem:[#allocation3 + $0x181] sm:$0xff]  ;;  %v4400_v55 = vpack.c.bf16 %v4353_v49, %v4352_v39 }
 0x438   :  { %v4499_v61 = vpack.c.bf16 %v4474_v59, %v4474_v59  ;;  %v5133_v13 = vld [vmem:[#allocation3 + $0x22] sm:$0xff] }
 0x439   :  { %v3210_v7 = vadd.f32 %v3157_v12, %v2778_v18  ;;  %v502_v29 = vpop.permute.xlu1 %501  ;;  %10689 = vmatmul.mubr.msk.bf16.gmra.mrb[72].mxu0 %vm4296_vm2, %v4493_v2  ;;  %v5134_v18 = vld [vmem:[#allocation3 + $0x2a] sm:$0xff] }
 0x43a   :  { %10713 = vmatmul.mubr.msk.bf16.gmra.mrb[20].mxu1 %vm4296_vm2, %v4499_v61  ;;  %v3953_v50 = vpop.permute.xlu0 %3952  ;;  %10820 = vmatprep.mubr.msk.bf16.mxu0 %vm11696_vm1, %v15557_v48  ;;  %v566_v37 = vmul.f32 %v13879_v3, %v502_v29  ;;  %v4355_v59 = vld [vmem:[#allocation3 + $0x28] sm:$0xff] }
 0x43b   :  { %v3642_v35 = vadd.f32 %v3589_v32, %v3210_v7  ;;  %v4021_v15 = vmul.f32 %v14011_v14, %v3953_v50  ;;  %10718 = vmatprep.mubr.msk.bf16.mxu1 %vm11696_vm1, %v15557_v48  ;;  %v5180_v32 = vpack.c.bf16 %v5134_v18, %v5133_v13  ;;  %v4359_v18 = vld [vmem:[#allocation3 + $0x48] sm:$0xff] }
 0x43d   :  { %v4074_v23 = vadd.f32 %v4021_v15, %v3642_v35  ;;  %v14054_v42 = vpop.f32.mrb[4].mxu1  ;;  %v1366_v20 = vpop.permute.xlu1 %1365  ;;  %v4354_v15 = vld [vmem:[#allocation3 + $0x20] sm:$0xff] }
 0x43e   :  { %v10698_v51 = vpop.f32.mrb[5].mxu1  ;;  %v934_v25 = vpop.permute.xlu0 %933  ;;  %v1430_v45 = vmul.f32 %v13886_v46, %v1366_v20  ;;  %v4401_v11 = vpack.c.bf16 %v4355_v59, %v4354_v15  ;;  %v4361_v15 = vld [vmem:[#allocation3 + $0x58] sm:$0xff] }
 0x43f   :  { %v4134_v34 = vadd.f32 %v14003_v27, %v4074_v23  ;;  %v14060_v17 = vpop.f32.mrb[6].mxu1  ;;  %v998_v54 = vmul.f32 %v13870_v5, %v934_v25 }
 0x440   :  { %v10699_v24 = vpop.f32.mrb[7].mxu1 }
 0x441   :  { %vm4187_vm11 = vcmp.ge.f32.partialorder %v4134_v34, 0.0  ;;  %v4240_v38 = vmul.f32 0.01, %v4134_v34  ;;  %v2230_v33 = vpop.permute.xlu1 %2229  ;;  %10821 = vmatmul.mubr.msk.bf16.vlgmr.msra.gmra.mrb[76].mxu0 %vm4296_vm2, %v5178_v63  ;;  %v1051_v30 = vadd.f32 %v998_v54, %v566_v37  ;;  %v5135_v63 = vld [vmem:[#allocation3 + $0x32] sm:$0xff] }
 0x442   :  { %10719 = vmatmul.mubr.msk.bf16.vlgmr.msra.gmra.mrb[24].mxu1 %vm4296_vm2, %v4399_v31  ;;  %v1798_v28 = vpop.permute.xlu0 %1797  ;;  %11023 = vmatpush3.bf16.msra.mxu0 %v11568_v26  ;;  %v2294_v7 = vmul.f32 %v13907_v6, %v2230_v33 }
 0x443   :  { %v4293_v58 = vsel %vm4187_vm11, %v4134_v34, %v4240_v38  ;;  %10921 = vmatpush3.bf16.msra.mxu1 %v11567_v21  ;;  %10722 = vmatprep.mubr.msk.bf16.mxu1 %vm11696_vm1, %v15557_v48  ;;  %v1483_v56 = vadd.f32 %v1430_v45, %v1051_v30  ;;  %v1862_v44 = vmul.f32 %v13893_v36, %v1798_v28  ;;  %v5136_v21 = vld [vmem:[#allocation3 + $0x3a] sm:$0xff] }
 0x444   :  { %4347 = vst.msk [vmem:[#allocation3 + $0x190] sm:$0xff] %vm4296_vm2, %v4293_v58  ;;  %10824 = vmatprep.mubr.msk.bf16.mxu0 %vm11696_vm1, %v15557_v48  ;;  %11124 = vmatprep.subr.bf16.mxu1 %v15557_v48  ;;  %v4357_v28 = vld [vmem:[#allocation3 + $0x38] sm:$0xff]  ;;  %v5181_v58 = vpack.c.bf16 %v5136_v21, %v5135_v63  ;;  %v4364_v21 = vld [vmem:[#allocation3 + $0x70] sm:$0xff] }
 0x445   :  { %v939_v47 = vpop.permute.xlu1 %938  ;;  %11226 = vmatprep.subr.bf16.mxu0 %v15557_v48  ;;  %v1915_v12 = vadd.f32 %v1862_v44, %v1483_v56  ;;  %v5137_v56 = vld [vmem:[#allocation3 + $0x42] sm:$0xff]  ;;  %v5138_v44 = vld [vmem:[#allocation3 + $0x4a] sm:$0xff]  ;;  %v4365_v63 = vld [vmem:[#allocation3 + $0x78] sm:$0xff] }
 0x446   :  { %v507_v57 = vpop.permute.xlu0 %506  ;;  %v999_v29 = vmul.f32 %v13870_v5, %v939_v47  ;;  %v4356_v47 = vld [vmem:[#allocation3 + $0x30] sm:$0xff] }
 0x447   :  { %v567_v50 = vmul.f32 %v13879_v3, %v507_v57  ;;  %v2347_v23 = vadd.f32 %v2294_v7, %v1915_v12  ;;  %v4402_v49 = vpack.c.bf16 %v4357_v28, %v4356_v47  ;;  %v5182_v7 = vpack.c.bf16 %v5138_v44, %v5137_v56  ;;  %v4366_v28 = vld [vmem:[#allocation3 + $0x80] sm:$0xff]  ;;  %v5147_v47 = vld [vmem:[#allocation3 + $0x92] sm:$0xff] }
 0x448   :  { %v4370_v56 = vld [vmem:[#allocation3 + $0xa0] sm:$0xff] }
 0x449   :  { %v1371_v43 = vpop.permute.xlu1 %1370  ;;  %10825 = vmatmul.mubr.msk.bf16.gmra.mrb[80].mxu0 %vm4296_vm2, %v5179_v1  ;;  %v1052_v3 = vadd.f32 %v999_v29, %v567_v50  ;;  %v5139_v50 = vld [vmem:[#allocation3 + $0x52] sm:$0xff] }
 0x44a   :  { %10723 = vmatmul.mubr.msk.bf16.gmra.mrb[28].mxu1 %vm4296_vm2, %v4400_v55  ;;  %v2662_v19 = vpop.permute.xlu0 %2661  ;;  %10828 = vmatprep.mubr.msk.bf16.mxu0 %vm11696_vm1, %v15557_v48  ;;  %v1431_v40 = vmul.f32 %v13886_v46, %v1371_v43 }
 0x44b   :  { %10726 = vmatprep.mubr.msk.bf16.mxu1 %vm11696_vm1, %v15557_v48  ;;  %v2726_v35 = vmul.f32 %v13922_v8, %v2662_v19 }
 0x44c   :  { %v1484_v31 = vadd.f32 %v1431_v40, %v1052_v3  ;;  %v4360_v40 = vld [vmem:[#allocation3 + $0x50] sm:$0xff] }
 0x44d   :  { %v1803_v2 = vpop.permute.xlu1 %1802  ;;  %v2779_v26 = vadd.f32 %v2726_v35, %v2347_v23 }
 0x44e   :  { %v3094_v61 = vpop.permute.xlu0 %3093  ;;  %v1863_v34 = vmul.f32 %v13893_v36, %v1803_v2 }
 0x44f   :  { %v3158_v20 = vmul.f32 %v13935_v41, %v3094_v61 }
 0x450   :  { %v1916_v22 = vadd.f32 %v1863_v34, %v1484_v31  ;;  %v5143_v34 = vld [vmem:[#allocation3 + $0x72] sm:$0xff]  ;;  %v4406_v31 = vpack.c.bf16 %v4365_v63, %v4364_v21  ;;  %v5160_v63 = vld [vmem:[#allocation3 + $0xfa] sm:$0xff] }
 0x451   :  { %v14090_v9 = vpop.f32.mrb[56].mxu0  ;;  %v2235_v51 = vpop.permute.xlu1 %2234  ;;  %10829 = vmatmul.mubr.msk.bf16.gmra.mrb[84].mxu0 %vm4296_vm2, %v5180_v32  ;;  %v3211_v38 = vadd.f32 %v3158_v20, %v2779_v26  ;;  %v4358_v32 = vld [vmem:[#allocation3 + $0x40] sm:$0xff]  ;;  %v4404_v20 = vpack.c.bf16 %v4361_v15, %v4360_v40  ;;  %v4377_v40 = vld [vmem:[#allocation3 + $0xd8] sm:$0xff] }
 0x452   :  { %v10674_v25 = vpop.f32.mrb[57].mxu0  ;;  %10727 = vmatmul.mubr.msk.bf16.gmra.mrb[32].mxu1 %vm4296_vm2, %v4401_v11  ;;  %v3526_v5 = vpop.permute.xlu0 %3525  ;;  %10832 = vmatprep.mubr.msk.bf16.mxu0 %vm11696_vm1, %v15557_v48  ;;  %v2295_v54 = vmul.f32 %v13907_v6, %v2235_v51  ;;  %v5142_v51 = vld [vmem:[#allocation3 + $0x6a] sm:$0xff]  ;;  %v4381_v21 = vld [vmem:[#allocation3 + $0xf8] sm:$0xff] }
 0x453   :  { %v3590_v46 = vmul.f32 %v13945_v0, %v3526_v5  ;;  %v14098_v52 = vpop.f32.mrb[58].mxu0  ;;  %10730 = vmatprep.mubr.msk.bf16.mxu1 %vm11696_vm1, %v15557_v48  ;;  %v4363_v25 = vld [vmem:[#allocation3 + $0x68] sm:$0xff]  ;;  %v4362_v5 = vld [vmem:[#allocation3 + $0x60] sm:$0xff] }
 0x454   :  { %v10675_v24 = vpop.f32.mrb[59].mxu0  ;;  %v2348_v57 = vadd.f32 %v2295_v54, %v1916_v22  ;;  %v4405_v26 = vpack.c.bf16 %v4363_v25, %v4362_v5  ;;  %v5146_v54 = vld [vmem:[#allocation3 + $0x8a] sm:$0xff] }
 0x455   :  { %v2667_v33 = vpop.permute.xlu1 %2666  ;;  %v3643_v36 = vadd.f32 %v3590_v46, %v3211_v38  ;;  %v5144_v46 = vld [vmem:[#allocation3 + $0x7a] sm:$0xff]  ;;  %v5145_v38 = vld [vmem:[#allocation3 + $0x82] sm:$0xff]  ;;  %v5158_v25 = vld [vmem:[#allocation3 + $0xea] sm:$0xff] }
 0x456   :  { %v3958_v37 = vpop.permute.xlu0 %3957  ;;  %v2727_v4 = vmul.f32 %v13922_v8, %v2667_v33  ;;  %v5185_v24 = vpack.c.bf16 %v5144_v46, %v5143_v34  ;;  %v4367_v33 = vld [vmem:[#allocation3 + $0x88] sm:$0xff] }
 0x457   :  { %v4022_v30 = vmul.f32 %v14011_v14, %v3958_v37  ;;  %v5186_v37 = vpack.c.bf16 %v5146_v54, %v5145_v38  ;;  %v4379_v5 = vld [vmem:[#allocation3 + $0xe8] sm:$0xff] }
 0x458   :  { %v2780_v1 = vadd.f32 %v2727_v4, %v2348_v57  ;;  %v4369_v57 = vld [vmem:[#allocation3 + $0x98] sm:$0xff] }
 0x459   :  { %v4075_v45 = vadd.f32 %v4022_v30, %v3643_v36  ;;  %10833 = vmatmul.mubr.msk.bf16.gmra.mrb[88].mxu0 %vm4296_vm2, %v5181_v58  ;;  %v3531_v39 = vpop.permute.xlu1 %3530  ;;  %v4407_v58 = vpack.c.bf16 %v4367_v33, %v4366_v28  ;;  %v5162_v33 = vld [vmem:[#allocation3 + $0x10a] sm:$0xff] }
 0x45a   :  { %10731 = vmatmul.mubr.msk.bf16.gmra.mrb[36].mxu1 %vm4296_vm2, %v4402_v49  ;;  %v3099_v6 = vpop.permute.xlu0 %3098  ;;  %10836 = vmatprep.mubr.msk.bf16.mxu0 %vm11696_vm1, %v15557_v48  ;;  %v3591_v19 = vmul.f32 %v13945_v0, %v3531_v39  ;;  %v5148_v49 = vld [vmem:[#allocation3 + $0x9a] sm:$0xff]  ;;  %v4383_v28 = vld [vmem:[#allocation3 + $0x108] sm:$0xff] }
 0x45b   :  { %v4135_v55 = vadd.f32 %v14003_v27, %v4075_v45  ;;  %v3159_v8 = vmul.f32 %v13935_v41, %v3099_v6  ;;  %10734 = vmatprep.mubr.msk.bf16.mxu1 %vm11696_vm1, %v15557_v48  ;;  %v4403_v41 = vpack.c.bf16 %v4359_v18, %v4358_v32  ;;  %v4368_v45 = vld [vmem:[#allocation3 + $0x90] sm:$0xff]  ;;  %v5187_v39 = vpack.c.bf16 %v5148_v49, %v5147_v47  ;;  %v4373_v18 = vld [vmem:[#allocation3 + $0xb8] sm:$0xff] }
 0x45c   :  { %v4408_v6 = vpack.c.bf16 %v4369_v57, %v4368_v45  ;;  %v4385_v47 = vld [vmem:[#allocation3 + $0x118] sm:$0xff] }
 0x45d   :  { %vm4188_vm12 = vcmp.ge.f32.partialorder %v4135_v55, 0.0  ;;  %v4241_v43 = vmul.f32 0.01, %v4135_v55  ;;  %v3212_v13 = vadd.f32 %v3159_v8, %v2780_v1  ;;  %v5149_v1 = vld [vmem:[#allocation3 + $0xa2] sm:$0xff]  ;;  %v5163_v57 = vld [vmem:[#allocation3 + $0x112] sm:$0xff] }
 0x45e   :  { %v3963_v12 = vpop.permute.xlu0 %3962  ;;  %v4371_v8 = vld [vmem:[#allocation3 + $0xa8] sm:$0xff] }
 0x45f   :  { %v4294_v2 = vsel %vm4188_vm12, %v4135_v55, %v4241_v43  ;;  %v3644_v59 = vadd.f32 %v3591_v19, %v3212_v13  ;;  %v4023_v61 = vmul.f32 %v14011_v14, %v3963_v12  ;;  %v5140_v14 = vld [vmem:[#allocation3 + $0x5a] sm:$0xff]  ;;  %v5150_v55 = vld [vmem:[#allocation3 + $0xaa] sm:$0xff]  ;;  %v4409_v43 = vpack.c.bf16 %v4371_v8, %v4370_v56  ;;  %v5165_v8 = vld [vmem:[#allocation3 + $0x122] sm:$0xff] }
 0x460   :  { %4348 = vst.msk [vmem:[#allocation3 + $0x198] sm:$0xff] %vm4296_vm2, %v4294_v2  ;;  %v5183_v23 = vpack.c.bf16 %v5140_v14, %v5139_v50  ;;  %v5188_v44 = vpack.c.bf16 %v5150_v55, %v5149_v1  ;;  %v5152_v19 = vld [vmem:[#allocation3 + $0xba] sm:$0xff]  ;;  %v5151_v2 = vld [vmem:[#allocation3 + $0xb2] sm:$0xff]  ;;  %v5153_v50 = vld [vmem:[#allocation3 + $0xc2] sm:$0xff] }
 0x461   :  { %v4076_v29 = vadd.f32 %v4023_v61, %v3644_v59  ;;  %10837 = vmatmul.mubr.msk.bf16.gmra.mrb[92].mxu0 %vm4296_vm2, %v5182_v7  ;;  %v4372_v61 = vld [vmem:[#allocation3 + $0xb0] sm:$0xff]  ;;  %v5189_v32 = vpack.c.bf16 %v5152_v19, %v5151_v2  ;;  %v4374_v14 = vld [vmem:[#allocation3 + $0xc0] sm:$0xff] }
 0x462   :  { %10735 = vmatmul.mubr.msk.bf16.gmra.mrb[40].mxu1 %vm4296_vm2, %v4403_v41  ;;  %10840 = vmatprep.mubr.msk.bf16.mxu0 %vm11696_vm1, %v15557_v48  ;;  %v4410_v41 = vpack.c.bf16 %v4373_v18, %v4372_v61  ;;  %v5166_v56 = vld [vmem:[#allocation3 + $0x12a] sm:$0xff]  ;;  %v5168_v2 = vld [vmem:[#allocation3 + $0x13a] sm:$0xff] }
 0x463   :  { %v4136_v0 = vadd.f32 %v14003_v27, %v4076_v29  ;;  %10738 = vmatprep.mubr.msk.bf16.mxu1 %vm11696_vm1, %v15557_v48  ;;  %v5141_v27 = vld [vmem:[#allocation3 + $0x62] sm:$0xff]  ;;  %v5154_v29 = vld [vmem:[#allocation3 + $0xca] sm:$0xff]  ;;  %v5196_v19 = vpack.c.bf16 %v5166_v56, %v5165_v8  ;;  %v6008_v8 = vld [vmem:[#allocation3 + $0x17] sm:$0xff] }
 0x464   :  { %v5184_v3 = vpack.c.bf16 %v5142_v51, %v5141_v27  ;;  %v5569_v56 = vld [vmem:[#allocation3 + $0x16] sm:$0xff] }
 0x465   :  { %vm4189_vm13 = vcmp.ge.f32.partialorder %v4136_v0, 0.0  ;;  %v4242_v35 = vmul.f32 0.01, %v4136_v0 }
 0x467   :  { %v4295_v11 = vsel %vm4189_vm13, %v4136_v0, %v4242_v35  ;;  %v4375_v0 = vld [vmem:[#allocation3 + $0xc8] sm:$0xff]  ;;  %v5190_v35 = vpack.c.bf16 %v5154_v29, %v5153_v50  ;;  %v4388_v29 = vld [vmem:[#allocation3 + $0x130] sm:$0xff] }
 0x468   :  { %4349 = vst.msk [vmem:[#allocation3 + $0x1a0] sm:$0xff] %vm4296_vm2, %v4295_v11  ;;  %v4411_v15 = vpack.c.bf16 %v4375_v0, %v4374_v14  ;;  %v5156_v11 = vld [vmem:[#allocation3 + $0xda] sm:$0xff] }
 0x469   :  { %10841 = vmatmul.mubr.msk.bf16.gmra.mrb[96].mxu0 %vm4296_vm2, %v5183_v23  ;;  %v5155_v23 = vld [vmem:[#allocation3 + $0xd2] sm:$0xff] }
 0x46a   :  { %10739 = vmatmul.mubr.msk.bf16.gmra.mrb[44].mxu1 %vm4296_vm2, %v4404_v20  ;;  %10844 = vmatprep.mubr.msk.bf16.mxu0 %vm11696_vm1, %v15557_v48  ;;  %v4376_v20 = vld [vmem:[#allocation3 + $0xd0] sm:$0xff]  ;;  %v5191_v27 = vpack.c.bf16 %v5156_v11, %v5155_v23  ;;  %v5169_v11 = vld [vmem:[#allocation3 + $0x142] sm:$0xff] }
 0x46b   :  { %10742 = vmatprep.mubr.msk.bf16.mxu1 %vm11696_vm1, %v15557_v48  ;;  %v4412_v51 = vpack.c.bf16 %v4377_v40, %v4376_v20  ;;  %v4390_v40 = vld [vmem:[#allocation3 + $0x140] sm:$0xff] }
 0x471   :  { %10845 = vmatmul.mubr.msk.bf16.gmra.mrb[100].mxu0 %vm4296_vm2, %v5184_v3  ;;  %v5157_v3 = vld [vmem:[#allocation3 + $0xe2] sm:$0xff] }
 0x472   :  { %10743 = vmatmul.mubr.msk.bf16.gmra.mrb[48].mxu1 %vm4296_vm2, %v4405_v26  ;;  %10848 = vmatprep.mubr.msk.bf16.mxu0 %vm11696_vm1, %v15557_v48  ;;  %v4378_v26 = vld [vmem:[#allocation3 + $0xe0] sm:$0xff]  ;;  %v5192_v34 = vpack.c.bf16 %v5158_v25, %v5157_v3  ;;  %v5171_v25 = vld [vmem:[#allocation3 + $0x152] sm:$0xff] }
 0x473   :  { %10746 = vmatprep.mubr.msk.bf16.mxu1 %vm11696_vm1, %v15557_v48  ;;  %v4413_v46 = vpack.c.bf16 %v4379_v5, %v4378_v26  ;;  %v4392_v5 = vld [vmem:[#allocation3 + $0x150] sm:$0xff] }
 0x479   :  { %10849 = vmatmul.mubr.msk.bf16.gmra.mrb[104].mxu0 %vm4296_vm2, %v5185_v24  ;;  %v5159_v24 = vld [vmem:[#allocation3 + $0xf2] sm:$0xff] }
 0x47a   :  { %10747 = vmatmul.mubr.msk.bf16.gmra.mrb[52].mxu1 %vm4296_vm2, %v4406_v31  ;;  %10852 = vmatprep.mubr.msk.bf16.mxu0 %vm11696_vm1, %v15557_v48  ;;  %v4380_v31 = vld [vmem:[#allocation3 + $0xf0] sm:$0xff]  ;;  %v5193_v38 = vpack.c.bf16 %v5160_v63, %v5159_v24  ;;  %v5173_v63 = vld [vmem:[#allocation3 + $0x162] sm:$0xff] }
 0x47b   :  { %10750 = vmatprep.mubr.msk.bf16.mxu1 %vm11696_vm1, %v15557_v48  ;;  %v4414_v54 = vpack.c.bf16 %v4381_v21, %v4380_v31  ;;  %v4394_v21 = vld [vmem:[#allocation3 + $0x160] sm:$0xff] }
 0x481   :  { %v4786_v22 = vpop.f32.mrb[8].mxu1  ;;  %10853 = vmatmul.mubr.msk.bf16.gmra.mrb[108].mxu0 %vm4296_vm2, %v5186_v37  ;;  %v5161_v37 = vld [vmem:[#allocation3 + $0x102] sm:$0xff] }
 0x482   :  { %v10702_v36 = vpop.f32.mrb[9].mxu1  ;;  %10751 = vmatmul.mubr.msk.bf16.gmra.mrb[56].mxu1 %vm4296_vm2, %v4407_v58  ;;  %10856 = vmatprep.mubr.msk.bf16.mxu0 %vm11696_vm1, %v15557_v48  ;;  %v4382_v58 = vld [vmem:[#allocation3 + $0x100] sm:$0xff]  ;;  %v5194_v22 = vpack.c.bf16 %v5162_v33, %v5161_v37  ;;  %v5175_v33 = vld [vmem:[#allocation3 + $0x172] sm:$0xff] }
 0x483   :  { %v4789_v4 = vpop.f32.mrb[10].mxu1  ;;  %10754 = vmatprep.mubr.msk.bf16.mxu1 %vm11696_vm1, %v15557_v48  ;;  %v4415_v36 = vpack.c.bf16 %v4383_v28, %v4382_v58  ;;  %v4396_v28 = vld [vmem:[#allocation3 + $0x170] sm:$0xff] }
 0x484   :  { %v10703_v30 = vpop.f32.mrb[11].mxu1  ;;  %v5164_v4 = vld [vmem:[#allocation3 + $0x11a] sm:$0xff] }
 0x489   :  { %10857 = vmatmul.mubr.msk.bf16.gmra.mrb[112].mxu0 %vm4296_vm2, %v5187_v39  ;;  %v4384_v39 = vld [vmem:[#allocation3 + $0x110] sm:$0xff] }
 0x48a   :  { %10755 = vmatmul.mubr.msk.bf16.gmra.mrb[60].mxu1 %vm4296_vm2, %v4408_v6  ;;  %10860 = vmatprep.mubr.msk.bf16.mxu0 %vm11696_vm1, %v15557_v48  ;;  %v5195_v6 = vpack.c.bf16 %v5164_v4, %v5163_v57  ;;  %v4416_v55 = vpack.c.bf16 %v4385_v47, %v4384_v39  ;;  %v5177_v47 = vld [vmem:[#allocation3 + $0x182] sm:$0xff] }
 0x48b   :  { %10758 = vmatprep.mubr.msk.bf16.mxu1 %vm11696_vm1, %v15557_v48  ;;  %v5202_v57 = vpack.c.bf16 %v5177_v47, %v5177_v47 }
 0x491   :  { %10861 = vmatmul.mubr.msk.bf16.gmra.mrb[116].mxu0 %vm4296_vm2, %v5188_v44  ;;  %v4387_v44 = vld [vmem:[#allocation3 + $0x128] sm:$0xff] }
 0x492   :  { %10759 = vmatmul.mubr.msk.bf16.gmra.mrb[64].mxu1 %vm4296_vm2, %v4409_v43  ;;  %10864 = vmatprep.mubr.msk.bf16.mxu0 %vm11696_vm1, %v15557_v48  ;;  %v4386_v43 = vld [vmem:[#allocation3 + $0x120] sm:$0xff] }
 0x493   :  { %10762 = vmatprep.mubr.msk.bf16.mxu1 %vm11696_vm1, %v15557_v48  ;;  %v4417_v18 = vpack.c.bf16 %v4387_v44, %v4386_v43  ;;  %v6007_v44 = vld [vmem:[#allocation3 + $0xf] sm:$0xff] }
 0x494   :  { %v11570_v43 = vld [vmem:[%s15526_s3 + $0x30] sm:$0xff]  }
 0x495   :  { %v14160_v13 = vpop.f32.mrb[60].mxu0 }
 0x496   :  { %v10678_v12 = vpop.f32.mrb[61].mxu0 }
 0x497   :  { %v14162_v59 = vpop.f32.mrb[62].mxu0  ;;  %v5167_v12 = vld [vmem:[#allocation3 + $0x132] sm:$0xff] }
 0x498   :  { %v10679_v7 = vpop.f32.mrb[63].mxu0  ;;  %v5197_v0 = vpack.c.bf16 %v5168_v2, %v5167_v12  ;;  %v11569_v12 = vld [vmem:[%s15526_s3 + $0x28] sm:$0xff]  }
 0x499   :  { %10865 = vmatmul.mubr.msk.bf16.gmra.mrb[120].mxu0 %vm4296_vm2, %v5189_v32  ;;  %v4389_v32 = vld [vmem:[#allocation3 + $0x138] sm:$0xff] }
 0x49a   :  { %10763 = vmatmul.mubr.msk.bf16.gmra.mrb[68].mxu1 %vm4296_vm2, %v4410_v41  ;;  %10868 = vmatprep.mubr.msk.bf16.mxu0 %vm11696_vm1, %v15557_v48  ;;  %v4418_v14 = vpack.c.bf16 %v4389_v32, %v4388_v29 }
 0x49b   :  { %10766 = vmatprep.mubr.msk.bf16.mxu1 %vm11696_vm1, %v15557_v48 }
 0x4a1   :  { %10869 = vmatmul.mubr.msk.bf16.gmra.mrb[124].mxu0 %vm4296_vm2, %v5190_v35  ;;  %v5170_v35 = vld [vmem:[#allocation3 + $0x14a] sm:$0xff] }
 0x4a2   :  { %10767 = vmatmul.mubr.msk.bf16.gmra.mrb[72].mxu1 %vm4296_vm2, %v4411_v15  ;;  %10872 = vmatprep.mubr.msk.bf16.mxu0 %vm11696_vm1, %v15557_v48  ;;  %v4391_v15 = vld [vmem:[#allocation3 + $0x148] sm:$0xff]  ;;  %v5198_v23 = vpack.c.bf16 %v5170_v35, %v5169_v11 }
 0x4a3   :  { %10770 = vmatprep.mubr.msk.bf16.mxu1 %vm11696_vm1, %v15557_v48  ;;  %v4419_v20 = vpack.c.bf16 %v4391_v15, %v4390_v40  ;;  %v6009_v15 = vld [vmem:[#allocation3 + $0x1f] sm:$0xff] }
 0x4a9   :  { %10873 = vmatmul.mubr.msk.bf16.gmra.mrb[128].mxu0 %vm4296_vm2, %v5191_v27  ;;  %v5172_v27 = vld [vmem:[#allocation3 + $0x15a] sm:$0xff] }
 0x4aa   :  { %10771 = vmatmul.mubr.msk.bf16.gmra.mrb[76].mxu1 %vm4296_vm2, %v4412_v51  ;;  %10876 = vmatprep.mubr.msk.bf16.mxu0 %vm11696_vm1, %v15557_v48  ;;  %v4393_v51 = vld [vmem:[#allocation3 + $0x158] sm:$0xff]  ;;  %v5199_v3 = vpack.c.bf16 %v5172_v27, %v5171_v25 }
 0x4ab   :  { %10774 = vmatprep.mubr.msk.bf16.mxu1 %vm11696_vm1, %v15557_v48  ;;  %v4420_v26 = vpack.c.bf16 %v4393_v51, %v4392_v5  ;;  %v6012_v5 = vld [vmem:[#allocation3 + $0x37] sm:$0xff] }
 0x4b1   :  { %10877 = vmatmul.mubr.msk.bf16.gmra.mrb[132].mxu0 %vm4296_vm2, %v5192_v34  ;;  %v5174_v34 = vld [vmem:[#allocation3 + $0x16a] sm:$0xff] }
 0x4b2   :  { %10775 = vmatmul.mubr.msk.bf16.gmra.mrb[80].mxu1 %vm4296_vm2, %v4413_v46  ;;  %10880 = vmatprep.mubr.msk.bf16.mxu0 %vm11696_vm1, %v15557_v48  ;;  %v4395_v46 = vld [vmem:[#allocation3 + $0x168] sm:$0xff]  ;;  %v5200_v24 = vpack.c.bf16 %v5174_v34, %v5173_v63  ;;  %v5573_v34 = vld [vmem:[#allocation3 + $0x36] sm:$0xff] }
 0x4b3   :  { %10778 = vmatprep.mubr.msk.bf16.mxu1 %vm11696_vm1, %v15557_v48  ;;  %v4421_v31 = vpack.c.bf16 %v4395_v46, %v4394_v21  ;;  %v15616_v46 = vld [vmem:[#allocation31_spill] sm:$0xff] }
 0x4b9   :  { %10881 = vmatmul.mubr.msk.bf16.gmra.mrb[136].mxu0 %vm4296_vm2, %v5193_v38  ;;  %v5176_v38 = vld [vmem:[#allocation3 + $0x17a] sm:$0xff] }
 0x4ba   :  { %10779 = vmatmul.mubr.msk.bf16.gmra.mrb[84].mxu1 %vm4296_vm2, %v4414_v54  ;;  %10884 = vmatprep.mubr.msk.bf16.mxu0 %vm11696_vm1, %v15557_v48  ;;  %v4397_v54 = vld [vmem:[#allocation3 + $0x178] sm:$0xff]  ;;  %v5201_v37 = vpack.c.bf16 %v5176_v38, %v5175_v33  ;;  %v5572_v33 = vld [vmem:[#allocation3 + $0x2e] sm:$0xff] }
 0x4bb   :  { %10782 = vmatprep.mubr.msk.bf16.mxu1 %vm11696_vm1, %v15557_v48  ;;  %v4422_v58 = vpack.c.bf16 %v4397_v54, %v4396_v28 }
 0x4c1   :  { %10885 = vmatmul.mubr.msk.bf16.gmra.mrb[140].mxu0 %vm4296_vm2, %v5194_v22 }
 0x4c2   :  { %10783 = vmatmul.mubr.msk.bf16.gmra.mrb[88].mxu1 %vm4296_vm2, %v4415_v36  ;;  %10888 = vmatprep.mubr.msk.bf16.mxu0 %vm11696_vm1, %v15557_v48 }
 0x4c3   :  { %10786 = vmatprep.mubr.msk.bf16.mxu1 %vm11696_vm1, %v15557_v48 }
 0x4c5   :  { %v4794_v30 = vpop.f32.mrb[12].mxu1 }
 0x4c6   :  { %v10706_v49 = vpop.f32.mrb[13].mxu1 }
 0x4c7   :  { %v4797_v45 = vpop.f32.mrb[14].mxu1  ;;  %v4398_v49 = vld [vmem:[#allocation3 + $0x180] sm:$0xff] }
 0x4c8   :  { %v10707_v1 = vpop.f32.mrb[15].mxu1  ;;  %v4423_v45 = vpack.c.bf16 %v4398_v49, %v4398_v49  ;;  %v6014_v49 = vld [vmem:[#allocation3 + $0x47] sm:$0xff] }
 0x4c9   :  { %10889 = vmatmul.mubr.msk.bf16.gmra.mrb[144].mxu0 %vm4296_vm2, %v5195_v6 }
 0x4ca   :  { %10787 = vmatmul.mubr.msk.bf16.gmra.mrb[92].mxu1 %vm4296_vm2, %v4416_v55  ;;  %10892 = vmatprep.mubr.msk.bf16.mxu0 %vm11696_vm1, %v15557_v48 }
 0x4cb   :  { %10790 = vmatprep.mubr.msk.bf16.mxu1 %vm11696_vm1, %v15557_v48 }
 0x4d1   :  { %10893 = vmatmul.mubr.msk.bf16.gmra.mrb[148].mxu0 %vm4296_vm2, %v5196_v19  ;;  %v5568_v19 = vld [vmem:[#allocation3 + $0xe] sm:$0xff] }
 0x4d2   :  { %10791 = vmatmul.mubr.msk.bf16.gmra.mrb[96].mxu1 %vm4296_vm2, %v4417_v18  ;;  %10896 = vmatprep.mubr.msk.bf16.mxu0 %vm11696_vm1, %v15557_v48  ;;  %v6056_v18 = vpack.c.bf16 %v6008_v8, %v6007_v44  ;;  %v5617_v2 = vpack.c.bf16 %v5569_v56, %v5568_v19 }
 0x4d3   :  { %10794 = vmatprep.mubr.msk.bf16.mxu1 %vm11696_vm1, %v15557_v48 }
 0x4d5   :  { %v14212_v61 = vpop.f32.mrb[64].mxu0 }
 0x4d6   :  { %v10682_v7 = vpop.f32.mrb[65].mxu0 }
 0x4d7   :  { %v14214_v41 = vpop.f32.mrb[66].mxu0  ;;  %v6010_v7 = vld [vmem:[#allocation3 + $0x27] sm:$0xff] }
 0x4d8   :  { %v10683_v50 = vpop.f32.mrb[67].mxu0 }
 0x4d9   :  { %10897 = vmatmul.mubr.msk.bf16.gmra.mrb[152].mxu0 %vm4296_vm2, %v5197_v0  ;;  %v5571_v50 = vld [vmem:[#allocation3 + $0x26] sm:$0xff] }
 0x4da   :  { %10795 = vmatmul.mubr.msk.bf16.gmra.mrb[100].mxu1 %vm4296_vm2, %v4418_v14  ;;  %10900 = vmatprep.mubr.msk.bf16.mxu0 %vm11696_vm1, %v15557_v48 }
 0x4db   :  { %10798 = vmatprep.mubr.msk.bf16.mxu1 %vm11696_vm1, %v15557_v48 }
 0x4e1   :  { %10901 = vmatmul.mubr.msk.bf16.gmra.mrb[156].mxu0 %vm4296_vm2, %v5198_v23  ;;  %v5570_v23 = vld [vmem:[#allocation3 + $0x1e] sm:$0xff] }
 0x4e2   :  { %10799 = vmatmul.mubr.msk.bf16.gmra.mrb[104].mxu1 %vm4296_vm2, %v4419_v20  ;;  %10904 = vmatprep.mubr.msk.bf16.mxu0 %vm11696_vm1, %v15557_v48  ;;  %v6057_v20 = vpack.c.bf16 %v6010_v7, %v6009_v15  ;;  %v5618_v51 = vpack.c.bf16 %v5571_v50, %v5570_v23 }
 0x4e3   :  { %10802 = vmatprep.mubr.msk.bf16.mxu1 %vm11696_vm1, %v15557_v48 }
 0x4e9   :  { %10905 = vmatmul.mubr.msk.bf16.gmra.mrb[160].mxu0 %vm4296_vm2, %v5199_v3 }
 0x4ea   :  { %10803 = vmatmul.mubr.msk.bf16.gmra.mrb[108].mxu1 %vm4296_vm2, %v4420_v26  ;;  %10908 = vmatprep.mubr.msk.bf16.mxu0 %vm11696_vm1, %v15557_v48 }
 0x4eb   :  { %10806 = vmatprep.mubr.msk.bf16.mxu1 %vm11696_vm1, %v15557_v48 }
 0x4f1   :  { %10909 = vmatmul.mubr.msk.bf16.gmra.mrb[164].mxu0 %vm4296_vm2, %v5200_v24 }
 0x4f2   :  { %10807 = vmatmul.mubr.msk.bf16.gmra.mrb[112].mxu1 %vm4296_vm2, %v4421_v31  ;;  %10912 = vmatprep.mubr.msk.bf16.mxu0 %vm11696_vm1, %v15557_v48  ;;  %v6011_v31 = vld [vmem:[#allocation3 + $0x2f] sm:$0xff] }
 0x4f3   :  { %10810 = vmatprep.mubr.msk.bf16.mxu1 %vm11696_vm1, %v15557_v48  ;;  %v6058_v28 = vpack.c.bf16 %v6012_v5, %v6011_v31  ;;  %v15621_v31 = vld [vmem:[#allocation36_spill] sm:$0xff] }
 0x4f9   :  { %v4802_v22 = vpop.f32.mrb[16].mxu1  ;;  %10913 = vmatmul.mubr.msk.bf16.gmra.mrb[168].mxu0 %vm4296_vm2, %v5201_v37 }
 0x4fa   :  { %v10710_v36 = vpop.f32.mrb[17].mxu1  ;;  %10811 = vmatmul.mubr.msk.bf16.gmra.mrb[116].mxu1 %vm4296_vm2, %v4422_v58  ;;  %10916 = vmatprep.mubr.msk.bf16.mxu0 %vm11696_vm1, %v15557_v48  ;;  %v15617_v58 = vld [vmem:[#allocation32_spill] sm:$0xff] }
 0x4fb   :  { %v4805_v4 = vpop.f32.mrb[18].mxu1  ;;  %10814 = vmatprep.mubr.msk.bf16.mxu1 %vm11696_vm1, %v15557_v48 }
 0x4fc   :  { %v10711_v30 = vpop.f32.mrb[19].mxu1  ;;  %v5619_v4 = vpack.c.bf16 %v5573_v34, %v5572_v33 }
 0x501   :  { %v14246_v39 = vpop.f32.mrb[68].mxu0  ;;  %10917 = vmatmul.mubr.msk.bf16.gmra.mrb[172].mxu0 %vm4296_vm2, %v5202_v57 }
 0x502   :  { %v10686_v6 = vpop.f32.mrb[69].mxu0  ;;  %10815 = vmatmul.mubr.msk.bf16.gmra.mrb[120].mxu1 %vm4296_vm2, %v4423_v45  ;;  %11024 = vmatprep.mubr.msk.bf16.mxu0 %vm11696_vm1, %v15557_v48 }
 0x503   :  { %v14252_v1 = vpop.f32.mrb[70].mxu0  ;;  %10922 = vmatprep.mubr.msk.bf16.mxu1 %vm11696_vm1, %v15557_v48  ;;  %v5575_v6 = vld [vmem:[#allocation3 + $0x46] sm:$0xff] }
 0x504   :  { %v10687_v55 = vpop.f32.mrb[71].mxu0 }
 0x505   :  { %v15618_v55 = vld [vmem:[#allocation33_spill] sm:$0xff] }
 0x509   :  { %11025 = vmatmul.mubr.msk.bf16.vlgmr.msra.gmra.mrb[176].mxu0 %vm4296_vm2, %v6056_v18 }
 0x50a   :  { %10923 = vmatmul.mubr.msk.bf16.vlgmr.msra.gmra.mrb[124].mxu1 %vm4296_vm2, %v5617_v2  ;;  %11227 = vmatpush3.bf16.msra.mxu0 %v11570_v43  ;;  %v6013_v43 = vld [vmem:[#allocation3 + $0x3f] sm:$0xff] }
 0x50b   :  { %11125 = vmatpush3.bf16.msra.mxu1 %v11569_v12  ;;  %10926 = vmatprep.mubr.msk.bf16.mxu1 %vm11696_vm1, %v15557_v48  ;;  %v5574_v12 = vld [vmem:[#allocation3 + $0x3e] sm:$0xff]  ;;  %v6059_v2 = vpack.c.bf16 %v6014_v49, %v6013_v43 }
 0x50c   :  { %v14266_v32 = vpop.f32.mrb[72].mxu0  ;;  %11028 = vmatprep.mubr.msk.bf16.mxu0 %vm11696_vm1, %v15557_v48  ;;  %11328 = vmatprep.subr.bf16.mxu1 %v15557_v48  ;;  %v15622_v49 = vld [vmem:[#allocation9_spill] sm:$0xff] }
 0x50d   :  { %v4810_v29 = vpop.f32.mrb[20].mxu1  ;;  %v10690_v0 = vpop.f32.mrb[73].mxu0  ;;  %11430 = vmatprep.subr.bf16.mxu0 %v15557_v48 }
 0x50e   :  { %v10714_v14 = vpop.f32.mrb[21].mxu1  ;;  %v14272_v35 = vpop.f32.mrb[74].mxu0  ;;  %v15619_v29 = vld [vmem:[#allocation34_spill] sm:$0xff] }
 0x50f   :  { %v4813_v11 = vpop.f32.mrb[22].mxu1  ;;  %v10691_v40 = vpop.f32.mrb[75].mxu0  ;;  %v5620_v14 = vpack.c.bf16 %v5575_v6, %v5574_v12 }
 0x510   :  { %v10715_v27 = vpop.f32.mrb[23].mxu1  ;;  %v6016_v40 = vld [vmem:[#allocation3 + $0x57] sm:$0xff] }
 0x511   :  { %11029 = vmatmul.mubr.msk.bf16.gmra.mrb[180].mxu0 %vm4296_vm2, %v6057_v20  ;;  %v5577_v27 = vld [vmem:[#allocation3 + $0x56] sm:$0xff] }
 0x512   :  { %10927 = vmatmul.mubr.msk.bf16.gmra.mrb[128].mxu1 %vm4296_vm2, %v5618_v51  ;;  %11032 = vmatprep.mubr.msk.bf16.mxu0 %vm11696_vm1, %v15557_v48  ;;  %v15620_v51 = vld [vmem:[#allocation35_spill] sm:$0xff] }
 0x513   :  { %10930 = vmatprep.mubr.msk.bf16.mxu1 %vm11696_vm1, %v15557_v48 }
 0x514   :  { %v5321_v25 = vpop.f32.mrb[76].mxu0 }
 0x515   :  { %v4931_v3 = vpop.f32.mrb[24].mxu1  ;;  %v10822_v26 = vpop.f32.mrb[77].mxu0 }
 0x516   :  { %v4932_v63 = vadd.f32 %v4931_v3, %v15616_v46  ;;  %v10720_v21 = vpop.f32.mrb[25].mxu1  ;;  %v5324_v24 = vpop.f32.mrb[78].mxu0  ;;  %v6015_v26 = vld [vmem:[#allocation3 + $0x4f] sm:$0xff] }
 0x517   :  { %v4934_v38 = vpop.f32.mrb[26].mxu1  ;;  %v10823_v54 = vpop.f32.mrb[79].mxu0  ;;  %v6060_v21 = vpack.c.bf16 %v6016_v40, %v6015_v26 }
 0x518   :  { %v14281_v37 = vadd.f32 %v5321_v25, %v4932_v63  ;;  %v4935_v22 = vadd.f32 %v4934_v38, %v15617_v58  ;;  %v10721_v36 = vpop.f32.mrb[27].mxu1  ;;  %v5576_v63 = vld [vmem:[#allocation3 + $0x4e] sm:$0xff] }
 0x519   :  { %11033 = vmatmul.mubr.msk.bf16.gmra.mrb[184].mxu0 %vm4296_vm2, %v6058_v28  ;;  %v5621_v33 = vpack.c.bf16 %v5577_v27, %v5576_v63 }
 0x51a   :  { %v14285_v30 = vadd.f32 %v5324_v24, %v4935_v22  ;;  %10931 = vmatmul.mubr.msk.bf16.gmra.mrb[132].mxu1 %vm4296_vm2, %v5619_v4  ;;  %11036 = vmatprep.mubr.msk.bf16.mxu0 %vm11696_vm1, %v15557_v48  ;;  %v6018_v22 = vld [vmem:[#allocation3 + $0x67] sm:$0xff] }
 0x51b   :  { %10934 = vmatprep.mubr.msk.bf16.mxu1 %vm11696_vm1, %v15557_v48 }
 0x51c   :  { %v5329_v47 = vpop.f32.mrb[80].mxu0 }
 0x51d   :  { %v4939_v57 = vpop.f32.mrb[28].mxu1  ;;  %v10826_v45 = vpop.f32.mrb[81].mxu0 }
 0x51e   :  { %v4940_v8 = vadd.f32 %v4939_v57, %v15618_v55  ;;  %v10724_v56 = vpop.f32.mrb[29].mxu1  ;;  %v5332_v44 = vpop.f32.mrb[82].mxu0  ;;  %v6017_v55 = vld [vmem:[#allocation3 + $0x5f] sm:$0xff] }
 0x51f   :  { %v4942_v19 = vpop.f32.mrb[30].mxu1  ;;  %v10827_v18 = vpop.f32.mrb[83].mxu0  ;;  %v6061_v43 = vpack.c.bf16 %v6018_v22, %v6017_v55  ;;  %v6022_v22 = vld [vmem:[#allocation3 + $0x87] sm:$0xff]  ;;  %v6021_v55 = vld [vmem:[#allocation3 + $0x7f] sm:$0xff] }
 0x520   :  { %v14293_v7 = vadd.f32 %v5329_v47, %v4940_v8  ;;  %v4943_v0 = vadd.f32 %v4942_v19, %v15619_v29  ;;  %v10725_v50 = vpop.f32.mrb[31].mxu1  ;;  %v5579_v47 = vld [vmem:[#allocation3 + $0x66] sm:$0xff] }
 0x521   :  { %11037 = vmatmul.mubr.msk.bf16.gmra.mrb[188].mxu0 %vm4296_vm2, %v6059_v2  ;;  %v15623_v18 = vld [vmem:[#allocation37_spill] sm:$0xff] }
 0x522   :  { %v14297_v15 = vadd.f32 %v5332_v44, %v4943_v0  ;;  %10935 = vmatmul.mubr.msk.bf16.gmra.mrb[136].mxu1 %vm4296_vm2, %v5620_v14  ;;  %11040 = vmatprep.mubr.msk.bf16.mxu0 %vm11696_vm1, %v15557_v48  ;;  %v5578_v44 = vld [vmem:[#allocation3 + $0x5e] sm:$0xff] }
 0x523   :  { %10938 = vmatprep.mubr.msk.bf16.mxu1 %vm11696_vm1, %v15557_v48  ;;  %v5622_v29 = vpack.c.bf16 %v5579_v47, %v5578_v44  ;;  %v6020_v14 = vld [vmem:[#allocation3 + $0x77] sm:$0xff]  ;;  %v5583_v47 = vld [vmem:[#allocation3 + $0x86] sm:$0xff] }
 0x524   :  { %v5337_v11 = vpop.f32.mrb[84].mxu0  ;;  %v5582_v44 = vld [vmem:[#allocation3 + $0x7e] sm:$0xff] }
 0x525   :  { %v4947_v23 = vpop.f32.mrb[32].mxu1  ;;  %v10830_v20 = vpop.f32.mrb[85].mxu0 }
 0x526   :  { %v4948_v25 = vadd.f32 %v4947_v23, %v15620_v51  ;;  %v10728_v5 = vpop.f32.mrb[33].mxu1  ;;  %v5340_v3 = vpop.f32.mrb[86].mxu0  ;;  %v5581_v23 = vld [vmem:[#allocation3 + $0x76] sm:$0xff]  ;;  %v15624_v20 = vld [vmem:[#allocation10_spill] sm:$0xff] }
 0x527   :  { %v4950_v34 = vpop.f32.mrb[34].mxu1  ;;  %v10831_v46 = vpop.f32.mrb[87].mxu0  ;;  %v6019_v5 = vld [vmem:[#allocation3 + $0x6f] sm:$0xff] }
 0x528   :  { %v14305_v24 = vadd.f32 %v5337_v11, %v4948_v25  ;;  %v4951_v38 = vadd.f32 %v4950_v34, %v15621_v31  ;;  %v10729_v54 = vpop.f32.mrb[35].mxu1  ;;  %v5580_v34 = vld [vmem:[#allocation3 + $0x6e] sm:$0xff]  ;;  %v6062_v46 = vpack.c.bf16 %v6020_v14, %v6019_v5 }
 0x529   :  { %11041 = vmatmul.mubr.msk.bf16.gmra.mrb[192].mxu0 %vm4296_vm2, %v6060_v21  ;;  %v15625_v21 = vld [vmem:[#allocation12_spill] sm:$0xff]  ;;  %v5623_v54 = vpack.c.bf16 %v5581_v23, %v5580_v34 }
 0x52a   :  { %v14309_v28 = vadd.f32 %v5340_v3, %v4951_v38  ;;  %10939 = vmatmul.mubr.msk.bf16.gmra.mrb[140].mxu1 %vm4296_vm2, %v5621_v33  ;;  %11044 = vmatprep.mubr.msk.bf16.mxu0 %vm11696_vm1, %v15557_v48 }
 0x52b   :  { %10942 = vmatprep.mubr.msk.bf16.mxu1 %vm11696_vm1, %v15557_v48 }
 0x52c   :  { %v5345_v58 = vpop.f32.mrb[88].mxu0 }
 0x52d   :  { %v4955_v36 = vpop.f32.mrb[36].mxu1  ;;  %v10834_v4 = vpop.f32.mrb[89].mxu0 }
 0x52e   :  { %v4956_v57 = vadd.f32 %v4955_v36, %v15622_v49  ;;  %v10732_v45 = vpop.f32.mrb[37].mxu1  ;;  %v5348_v6 = vpop.f32.mrb[90].mxu0  ;;  %v15626_v49 = vld [vmem:[#allocation38_spill] sm:$0xff] }
 0x52f   :  { %v4958_v8 = vpop.f32.mrb[38].mxu1  ;;  %v10835_v56 = vpop.f32.mrb[91].mxu0 }
 0x530   :  { %v14317_v19 = vadd.f32 %v5345_v58, %v4956_v57  ;;  %v4959_v12 = vadd.f32 %v4958_v8, %v15623_v18  ;;  %v10733_v2 = vpop.f32.mrb[39].mxu1 }
 0x531   :  { %11045 = vmatmul.mubr.msk.bf16.gmra.mrb[196].mxu0 %vm4296_vm2, %v6061_v43  ;;  %v6063_v43 = vpack.c.bf16 %v6022_v22, %v6021_v55  ;;  %v15630_v55 = vld [vmem:[#allocation26_spill] sm:$0xff] }
 0x532   :  { %v14321_v0 = vadd.f32 %v5348_v6, %v4959_v12  ;;  %10943 = vmatmul.mubr.msk.bf16.gmra.mrb[144].mxu1 %vm4296_vm2, %v5622_v29  ;;  %11048 = vmatprep.mubr.msk.bf16.mxu0 %vm11696_vm1, %v15557_v48  ;;  %v15627_v12 = vld [vmem:[#allocation39_spill] sm:$0xff] }
 0x533   :  { %10946 = vmatprep.mubr.msk.bf16.mxu1 %vm11696_vm1, %v15557_v48 }
 0x534   :  { %v5353_v50 = vpop.f32.mrb[92].mxu0 }
 0x535   :  { %v4963_v11 = vpop.f32.mrb[40].mxu1  ;;  %v10838_v40 = vpop.f32.mrb[93].mxu0 }
 0x536   :  { %v4964_v27 = vadd.f32 %v4963_v11, %v15624_v20  ;;  %v10736_v51 = vpop.f32.mrb[41].mxu1  ;;  %v5356_v25 = vpop.f32.mrb[94].mxu0  ;;  %v6024_v40 = vld [vmem:[#allocation3 + $0x97] sm:$0xff] }
 0x537   :  { %v4966_v3 = vpop.f32.mrb[42].mxu1  ;;  %v10839_v26 = vpop.f32.mrb[95].mxu0  ;;  %v15628_v51 = vld [vmem:[#allocation14_spill] sm:$0xff] }
 0x538   :  { %v14329_v63 = vadd.f32 %v5353_v50, %v4964_v27  ;;  %v4967_v31 = vadd.f32 %v4966_v3, %v15625_v21  ;;  %v10737_v38 = vpop.f32.mrb[43].mxu1  ;;  %v5624_v50 = vpack.c.bf16 %v5583_v47, %v5582_v44  ;;  %v5585_v27 = vld [vmem:[#allocation3 + $0x96] sm:$0xff]  ;;  %v5584_v21 = vld [vmem:[#allocation3 + $0x8e] sm:$0xff] }
 0x539   :  { %11049 = vmatmul.mubr.msk.bf16.gmra.mrb[200].mxu0 %vm4296_vm2, %v6062_v46  ;;  %v6023_v26 = vld [vmem:[#allocation3 + $0x8f] sm:$0xff] }
 0x53a   :  { %v14333_v33 = vadd.f32 %v5356_v25, %v4967_v31  ;;  %10947 = vmatmul.mubr.msk.bf16.gmra.mrb[148].mxu1 %vm4296_vm2, %v5623_v54  ;;  %11052 = vmatprep.mubr.msk.bf16.mxu0 %vm11696_vm1, %v15557_v48  ;;  %v6064_v31 = vpack.c.bf16 %v6024_v40, %v6023_v26  ;;  %v15629_v54 = vld [vmem:[#allocation41_spill] sm:$0xff]  ;;  %v15631_v40 = vld [vmem:[#allocation47_spill] sm:$0xff] }
 0x53b   :  { %10950 = vmatprep.mubr.msk.bf16.mxu1 %vm11696_vm1, %v15557_v48 }
 0x53c   :  { %v5361_v58 = vpop.f32.mrb[96].mxu0 }
 0x53d   :  { %v4971_v36 = vpop.f32.mrb[44].mxu1  ;;  %v10842_v4 = vpop.f32.mrb[97].mxu0 }
 0x53e   :  { %v4972_v57 = vadd.f32 %v4971_v36, %v15626_v49  ;;  %v10740_v45 = vpop.f32.mrb[45].mxu1  ;;  %v5364_v6 = vpop.f32.mrb[98].mxu0  ;;  %v5625_v36 = vpack.c.bf16 %v5585_v27, %v5584_v21  ;;  %v6026_v49 = vld [vmem:[#allocation3 + $0xa7] sm:$0xff] }
 0x53f   :  { %v4974_v8 = vpop.f32.mrb[46].mxu1  ;;  %v10843_v56 = vpop.f32.mrb[99].mxu0 }
 0x540   :  { %v14341_v18 = vadd.f32 %v5361_v58, %v4972_v57  ;;  %v4975_v2 = vadd.f32 %v4974_v8, %v15627_v12  ;;  %v10741_v29 = vpop.f32.mrb[47].mxu1 }
 0x541   :  { %11053 = vmatmul.mubr.msk.bf16.gmra.mrb[204].mxu0 %vm4296_vm2, %v6063_v43  ;;  %v6025_v43 = vld [vmem:[#allocation3 + $0x9f] sm:$0xff] }
 0x542   :  { %v14345_v14 = vadd.f32 %v5364_v6, %v4975_v2  ;;  %10951 = vmatmul.mubr.msk.bf16.gmra.mrb[152].mxu1 %vm4296_vm2, %v5624_v50  ;;  %11056 = vmatprep.mubr.msk.bf16.mxu0 %vm11696_vm1, %v15557_v48  ;;  %v5587_v6 = vld [vmem:[#allocation3 + $0xa6] sm:$0xff]  ;;  %v5586_v29 = vld [vmem:[#allocation3 + $0x9e] sm:$0xff]  ;;  %v6065_v50 = vpack.c.bf16 %v6026_v49, %v6025_v43 }
 0x543   :  { %10954 = vmatprep.mubr.msk.bf16.mxu1 %vm11696_vm1, %v15557_v48  ;;  %v5626_v27 = vpack.c.bf16 %v5587_v6, %v5586_v29  ;;  %v5591_v43 = vld [vmem:[#allocation3 + $0xc6] sm:$0xff] }
 0x544   :  { %v5369_v11 = vpop.f32.mrb[100].mxu0  ;;  %v6029_v29 = vld [vmem:[#allocation3 + $0xbf] sm:$0xff] }
 0x545   :  { %v4979_v23 = vpop.f32.mrb[48].mxu1  ;;  %v10846_v20 = vpop.f32.mrb[101].mxu0 }
 0x546   :  { %v4980_v25 = vadd.f32 %v4979_v23, %v15628_v51  ;;  %v10744_v5 = vpop.f32.mrb[49].mxu1  ;;  %v5372_v3 = vpop.f32.mrb[102].mxu0 }
 0x547   :  { %v4982_v34 = vpop.f32.mrb[50].mxu1  ;;  %v10847_v46 = vpop.f32.mrb[103].mxu0  ;;  %v6028_v5 = vld [vmem:[#allocation3 + $0xb7] sm:$0xff] }
 0x548   :  { %v14353_v38 = vadd.f32 %v5369_v11, %v4980_v25  ;;  %v4983_v58 = vadd.f32 %v4982_v34, %v15629_v54  ;;  %v10745_v22 = vpop.f32.mrb[51].mxu1  ;;  %v5589_v34 = vld [vmem:[#allocation3 + $0xb6] sm:$0xff] }
 0x549   :  { %11057 = vmatmul.mubr.msk.bf16.gmra.mrb[208].mxu0 %vm4296_vm2, %v6064_v31  ;;  %v15632_v46 = vld [vmem:[#allocation28_spill] sm:$0xff] }
 0x54a   :  { %v14357_v4 = vadd.f32 %v5372_v3, %v4983_v58  ;;  %10955 = vmatmul.mubr.msk.bf16.gmra.mrb[156].mxu1 %vm4296_vm2, %v5625_v36  ;;  %11060 = vmatprep.mubr.msk.bf16.mxu0 %vm11696_vm1, %v15557_v48  ;;  %v6027_v58 = vld [vmem:[#allocation3 + $0xaf] sm:$0xff] }
 0x54b   :  { %10958 = vmatprep.mubr.msk.bf16.mxu1 %vm11696_vm1, %v15557_v48  ;;  %v6066_v49 = vpack.c.bf16 %v6028_v5, %v6027_v58 }
 0x54c   :  { %v5377_v47 = vpop.f32.mrb[104].mxu0 }
 0x54d   :  { %v4987_v57 = vpop.f32.mrb[52].mxu1  ;;  %v10850_v45 = vpop.f32.mrb[105].mxu0 }
 0x54e   :  { %v4988_v8 = vadd.f32 %v4987_v57, %v15630_v55  ;;  %v10748_v56 = vpop.f32.mrb[53].mxu1  ;;  %v5380_v44 = vpop.f32.mrb[106].mxu0 }
 0x54f   :  { %v4990_v12 = vpop.f32.mrb[54].mxu1  ;;  %v10851_v2 = vpop.f32.mrb[107].mxu0 }
 0x550   :  { %v14365_v11 = vadd.f32 %v5377_v47, %v4988_v8  ;;  %v4991_v23 = vadd.f32 %v4990_v12, %v15631_v40  ;;  %v10749_v20 = vpop.f32.mrb[55].mxu1  ;;  %v5588_v47 = vld [vmem:[#allocation3 + $0xae] sm:$0xff] }
 0x551   :  { %11061 = vmatmul.mubr.msk.bf16.gmra.mrb[212].mxu0 %vm4296_vm2, %v6065_v50  ;;  %v5627_v6 = vpack.c.bf16 %v5589_v34, %v5588_v47  ;;  %v6030_v8 = vld [vmem:[#allocation3 + $0xc7] sm:$0xff] }
 0x552   :  { %v14369_v51 = vadd.f32 %v5380_v44, %v4991_v23  ;;  %10959 = vmatmul.mubr.msk.bf16.gmra.mrb[160].mxu1 %vm4296_vm2, %v5626_v27  ;;  %11064 = vmatprep.mubr.msk.bf16.mxu0 %vm11696_vm1, %v15557_v48  ;;  %v5590_v23 = vld [vmem:[#allocation3 + $0xbe] sm:$0xff]  ;;  %v6067_v20 = vpack.c.bf16 %v6030_v8, %v6029_v29 }
 0x553   :  { %10962 = vmatprep.mubr.msk.bf16.mxu1 %vm11696_vm1, %v15557_v48 }
 0x554   :  { %v5385_v25 = vpop.f32.mrb[108].mxu0 }
 0x555   :  { %v4995_v3 = vpop.f32.mrb[56].mxu1  ;;  %v10854_v26 = vpop.f32.mrb[109].mxu0 }
 0x556   :  { %v4996_v21 = vadd.f32 %v4995_v3, %v15632_v46  ;;  %v10752_v31 = vpop.f32.mrb[57].mxu1  ;;  %v5388_v54 = vpop.f32.mrb[110].mxu0  ;;  %v6032_v3 = vld [vmem:[#allocation3 + $0xd7] sm:$0xff] }
 0x557   :  { %v4998_v22 = vpop.f32.mrb[58].mxu1  ;;  %v10855_v36 = vpop.f32.mrb[111].mxu0  ;;  %v5593_v46 = vld [vmem:[#allocation3 + $0xd6] sm:$0xff] }
 0x558   :  { %v14377_v57 = vadd.f32 %v5385_v25, %v4996_v21  ;;  %v10753_v45 = vpop.f32.mrb[59].mxu1  ;;  %v5628_v25 = vpack.c.bf16 %v5591_v43, %v5590_v23  ;;  %v6031_v54 = vld [vmem:[#allocation3 + $0xcf] sm:$0xff] }
 0x559   :  { %11065 = vmatmul.mubr.msk.bf16.gmra.mrb[216].mxu0 %vm4296_vm2, %v6066_v49  ;;  %v5592_v36 = vld [vmem:[#allocation3 + $0xce] sm:$0xff]  ;;  %v6068_v47 = vpack.c.bf16 %v6032_v3, %v6031_v54 }
 0x55a   :  { %10963 = vmatmul.mubr.msk.bf16.gmra.mrb[164].mxu1 %vm4296_vm2, %v5627_v6  ;;  %11068 = vmatprep.mubr.msk.bf16.mxu0 %vm11696_vm1, %v15557_v48  ;;  %v5629_v45 = vpack.c.bf16 %v5593_v46, %v5592_v36  ;;  %v6035_v54 = vld [vmem:[#allocation3 + $0xef] sm:$0xff] }
 0x55b   :  { %10966 = vmatprep.mubr.msk.bf16.mxu1 %vm11696_vm1, %v15557_v48  ;;  %v5596_v36 = vld [vmem:[#allocation3 + $0xee] sm:$0xff] }
 0x55c   :  { %v5393_v55 = vpop.f32.mrb[112].mxu0 }
 0x55d   :  { %v5003_v56 = vpop.f32.mrb[60].mxu1  ;;  %v10858_v44 = vpop.f32.mrb[113].mxu0  ;;  %v6034_v55 = vld [vmem:[#allocation3 + $0xe7] sm:$0xff] }
 0x55e   :  { %v10756_v12 = vpop.f32.mrb[61].mxu1  ;;  %v5396_v2 = vpop.f32.mrb[114].mxu0  ;;  %v5595_v44 = vld [vmem:[#allocation3 + $0xe6] sm:$0xff] }
 0x55f   :  { %v5006_v50 = vpop.f32.mrb[62].mxu1  ;;  %v10859_v40 = vpop.f32.mrb[115].mxu0  ;;  %v6033_v2 = vld [vmem:[#allocation3 + $0xdf] sm:$0xff] }
 0x560   :  { %v10757_v27 = vpop.f32.mrb[63].mxu1  ;;  %v5594_v40 = vld [vmem:[#allocation3 + $0xde] sm:$0xff]  ;;  %v6069_v23 = vpack.c.bf16 %v6034_v55, %v6033_v2  ;;  %v5599_v2 = vld [vmem:[#allocation3 + $0x106] sm:$0xff] }
 0x561   :  { %11069 = vmatmul.mubr.msk.bf16.gmra.mrb[220].mxu0 %vm4296_vm2, %v6067_v20  ;;  %v5630_v27 = vpack.c.bf16 %v5595_v44, %v5594_v40  ;;  %v6038_v44 = vld [vmem:[#allocation3 + $0x107] sm:$0xff] }
 0x562   :  { %10967 = vmatmul.mubr.msk.bf16.gmra.mrb[168].mxu1 %vm4296_vm2, %v5628_v25  ;;  %11072 = vmatprep.mubr.msk.bf16.mxu0 %vm11696_vm1, %v15557_v48 }
 0x563   :  { %10970 = vmatprep.mubr.msk.bf16.mxu1 %vm11696_vm1, %v15557_v48 }
 0x564   :  { %v5401_v5 = vpop.f32.mrb[116].mxu0 }
 0x565   :  { %v5011_v26 = vpop.f32.mrb[64].mxu1  ;;  %v10862_v34 = vpop.f32.mrb[117].mxu0  ;;  %v6036_v5 = vld [vmem:[#allocation3 + $0xf7] sm:$0xff] }
 0x566   :  { %v10760_v21 = vpop.f32.mrb[65].mxu1  ;;  %v5404_v31 = vpop.f32.mrb[118].mxu0  ;;  %v5597_v34 = vld [vmem:[#allocation3 + $0xf6] sm:$0xff] }
 0x567   :  { %v5014_v58 = vpop.f32.mrb[66].mxu1  ;;  %v10863_v22 = vpop.f32.mrb[119].mxu0 }
 0x568   :  { %v10761_v49 = vpop.f32.mrb[67].mxu1 }
 0x569   :  { %11073 = vmatmul.mubr.msk.bf16.gmra.mrb[224].mxu0 %vm4296_vm2, %v6068_v47  ;;  %v6070_v47 = vpack.c.bf16 %v6036_v5, %v6035_v54 }
 0x56a   :  { %10971 = vmatmul.mubr.msk.bf16.gmra.mrb[172].mxu1 %vm4296_vm2, %v5629_v45  ;;  %11076 = vmatprep.mubr.msk.bf16.mxu0 %vm11696_vm1, %v15557_v48  ;;  %v15633_v45 = vld [vmem:[#allocation16_spill] sm:$0xff] }
 0x56b   :  { %10974 = vmatprep.mubr.msk.bf16.mxu1 %vm11696_vm1, %v15557_v48 }
 0x56c   :  { %v5409_v6 = vpop.f32.mrb[120].mxu0 }
 0x56d   :  { %v5019_v8 = vpop.f32.mrb[68].mxu1  ;;  %v10866_v56 = vpop.f32.mrb[121].mxu0 }
 0x56e   :  { %v10764_v43 = vpop.f32.mrb[69].mxu1  ;;  %v5412_v12 = vpop.f32.mrb[122].mxu0  ;;  %v5631_v8 = vpack.c.bf16 %v5597_v34, %v5596_v36 }
 0x56f   :  { %v5022_v29 = vpop.f32.mrb[70].mxu1  ;;  %v10867_v50 = vpop.f32.mrb[123].mxu0 }
 0x570   :  { %v10765_v20 = vpop.f32.mrb[71].mxu1 }
 0x571   :  { %11077 = vmatmul.mubr.msk.bf16.gmra.mrb[228].mxu0 %vm4296_vm2, %v6069_v23  ;;  %v6037_v23 = vld [vmem:[#allocation3 + $0xff] sm:$0xff] }
 0x572   :  { %10975 = vmatmul.mubr.msk.bf16.gmra.mrb[176].mxu1 %vm4296_vm2, %v5630_v27  ;;  %11080 = vmatprep.mubr.msk.bf16.mxu0 %vm11696_vm1, %v15557_v48  ;;  %v6071_v5 = vpack.c.bf16 %v6038_v44, %v6037_v23 }
 0x573   :  { %10978 = vmatprep.mubr.msk.bf16.mxu1 %vm11696_vm1, %v15557_v48 }
 0x574   :  { %v5417_v25 = vpop.f32.mrb[124].mxu0 }
 0x575   :  { %v5027_v3 = vpop.f32.mrb[72].mxu1  ;;  %v10870_v26 = vpop.f32.mrb[125].mxu0 }
 0x576   :  { %v5028_v46 = vadd.f32 %v5027_v3, %v13747_v10  ;;  %v10768_v21 = vpop.f32.mrb[73].mxu1  ;;  %v5420_v31 = vpop.f32.mrb[126].mxu0 }
 0x577   :  { %v5030_v58 = vpop.f32.mrb[74].mxu1  ;;  %v10871_v22 = vpop.f32.mrb[127].mxu0 }
 0x578   :  { %v14404_v49 = vadd.f32 %v5417_v25, %v5028_v46  ;;  %v5031_v6 = vadd.f32 %v5030_v58, %v15633_v45  ;;  %v10769_v55 = vpop.f32.mrb[75].mxu1  ;;  %v5598_v25 = vld [vmem:[#allocation3 + $0xfe] sm:$0xff]  ;;  %v5601_v22 = vld [vmem:[#allocation3 + $0x116] sm:$0xff] }
 0x579   :  { %11081 = vmatmul.mubr.msk.bf16.gmra.mrb[232].mxu0 %vm4296_vm2, %v6070_v47  ;;  %v5632_v46 = vpack.c.bf16 %v5599_v2, %v5598_v25  ;;  %v6039_v45 = vld [vmem:[#allocation3 + $0x10f] sm:$0xff] }
 0x57a   :  { %v14408_v56 = vadd.f32 %v5420_v31, %v5031_v6  ;;  %10979 = vmatmul.mubr.msk.bf16.gmra.mrb[180].mxu1 %vm4296_vm2, %v5631_v8  ;;  %11084 = vmatprep.mubr.msk.bf16.mxu0 %vm11696_vm1, %v15557_v48  ;;  %v6040_v31 = vld [vmem:[#allocation3 + $0x117] sm:$0xff]  ;;  %v5600_v8 = vld [vmem:[#allocation3 + $0x10e] sm:$0xff] }
 0x57b   :  { %10982 = vmatprep.mubr.msk.bf16.mxu1 %vm11696_vm1, %v15557_v48  ;;  %v5633_v2 = vpack.c.bf16 %v5601_v22, %v5600_v8 }
 0x57c   :  { %v5425_v10 = vpop.f32.mrb[128].mxu0 }
 0x57d   :  { %v5035_v43 = vpop.f32.mrb[76].mxu1  ;;  %v10874_v12 = vpop.f32.mrb[129].mxu0 }
 0x57e   :  { %v5036_v29 = vadd.f32 %v5035_v43, %v13961_v62  ;;  %v10772_v50 = vpop.f32.mrb[77].mxu1  ;;  %v5428_v40 = vpop.f32.mrb[130].mxu0 }
 0x57f   :  { %v5038_v20 = vpop.f32.mrb[78].mxu1  ;;  %v10875_v27 = vpop.f32.mrb[131].mxu0  ;;  %v6042_v50 = vld [vmem:[#allocation3 + $0x127] sm:$0xff] }
 0x580   :  { %v14416_v3 = vadd.f32 %v5425_v10, %v5036_v29  ;;  %v5039_v26 = vadd.f32 %v5038_v20, %v13969_v60  ;;  %v10773_v34 = vpop.f32.mrb[79].mxu1  ;;  %v6072_v10 = vpack.c.bf16 %v6040_v31, %v6039_v45  ;;  %v5603_v20 = vld [vmem:[#allocation3 + $0x126] sm:$0xff] }
 0x581   :  { %11085 = vmatmul.mubr.msk.bf16.gmra.mrb[236].mxu0 %vm4296_vm2, %v6071_v5  ;;  %v6041_v5 = vld [vmem:[#allocation3 + $0x11f] sm:$0xff] }
 0x582   :  { %v14420_v21 = vadd.f32 %v5428_v40, %v5039_v26  ;;  %10983 = vmatmul.mubr.msk.bf16.gmra.mrb[184].mxu1 %vm4296_vm2, %v5632_v46  ;;  %11088 = vmatprep.mubr.msk.bf16.mxu0 %vm11696_vm1, %v15557_v48  ;;  %v5602_v46 = vld [vmem:[#allocation3 + $0x11e] sm:$0xff] }
 0x583   :  { %10986 = vmatprep.mubr.msk.bf16.mxu1 %vm11696_vm1, %v15557_v48  ;;  %v5634_v22 = vpack.c.bf16 %v5603_v20, %v5602_v46 }
 0x584   :  { %v5433_v62 = vpop.f32.mrb[132].mxu0 }
 0x585   :  { %v5043_v54 = vpop.f32.mrb[80].mxu1  ;;  %v10878_v58 = vpop.f32.mrb[133].mxu0 }
 0x586   :  { %v5044_v60 = vadd.f32 %v5043_v54, %v14090_v9  ;;  %v10776_v36 = vpop.f32.mrb[81].mxu1  ;;  %v5436_v47 = vpop.f32.mrb[134].mxu0 }
 0x587   :  { %v5046_v6 = vpop.f32.mrb[82].mxu1  ;;  %v10879_v55 = vpop.f32.mrb[135].mxu0  ;;  %v6043_v36 = vld [vmem:[#allocation3 + $0x12f] sm:$0xff] }
 0x588   :  { %v14428_v44 = vadd.f32 %v5433_v62, %v5044_v60  ;;  %v5047_v43 = vadd.f32 %v5046_v6, %v14098_v52  ;;  %v10777_v12 = vpop.f32.mrb[83].mxu1  ;;  %v6073_v62 = vpack.c.bf16 %v6042_v50, %v6041_v5  ;;  %v5604_v6 = vld [vmem:[#allocation3 + $0x12e] sm:$0xff]  ;;  %v5607_v5 = vld [vmem:[#allocation3 + $0x146] sm:$0xff] }
 0x589   :  { %11089 = vmatmul.mubr.msk.bf16.gmra.mrb[240].mxu0 %vm4296_vm2, %v6072_v10  ;;  %v6044_v10 = vld [vmem:[#allocation3 + $0x137] sm:$0xff] }
 0x58a   :  { %v14432_v29 = vadd.f32 %v5436_v47, %v5047_v43  ;;  %10987 = vmatmul.mubr.msk.bf16.gmra.mrb[188].mxu1 %vm4296_vm2, %v5633_v2  ;;  %11092 = vmatprep.mubr.msk.bf16.mxu0 %vm11696_vm1, %v15557_v48  ;;  %v5605_v2 = vld [vmem:[#allocation3 + $0x136] sm:$0xff] }
 0x58b   :  { %10990 = vmatprep.mubr.msk.bf16.mxu1 %vm11696_vm1, %v15557_v48 }
 0x58c   :  { %v5441_v9 = vpop.f32.mrb[136].mxu0 }
 0x58d   :  { %v5051_v40 = vpop.f32.mrb[84].mxu1  ;;  %v10882_v23 = vpop.f32.mrb[137].mxu0 }
 0x58e   :  { %v5052_v52 = vadd.f32 %v5051_v40, %v14160_v13  ;;  %v10780_v27 = vpop.f32.mrb[85].mxu1  ;;  %v5444_v25 = vpop.f32.mrb[138].mxu0  ;;  %v5635_v23 = vpack.c.bf16 %v5605_v2, %v5604_v6 }
 0x58f   :  { %v5054_v26 = vpop.f32.mrb[86].mxu1  ;;  %v10883_v34 = vpop.f32.mrb[139].mxu0  ;;  %v6046_v27 = vld [vmem:[#allocation3 + $0x147] sm:$0xff] }
 0x590   :  { %v14440_v31 = vadd.f32 %v5441_v9, %v5052_v52  ;;  %v5055_v54 = vadd.f32 %v5054_v26, %v14162_v59  ;;  %v10781_v58 = vpop.f32.mrb[87].mxu1  ;;  %v6074_v9 = vpack.c.bf16 %v6044_v10, %v6043_v36  ;;  %v5609_v10 = vld [vmem:[#allocation3 + $0x156] sm:$0xff] }
 0x591   :  { %11093 = vmatmul.mubr.msk.bf16.gmra.mrb[244].mxu0 %vm4296_vm2, %v6073_v62  ;;  %v6045_v62 = vld [vmem:[#allocation3 + $0x13f] sm:$0xff] }
 0x592   :  { %v14444_v60 = vadd.f32 %v5444_v25, %v5055_v54  ;;  %10991 = vmatmul.mubr.msk.bf16.gmra.mrb[192].mxu1 %vm4296_vm2, %v5634_v22  ;;  %11096 = vmatprep.mubr.msk.bf16.mxu0 %vm11696_vm1, %v15557_v48  ;;  %v5606_v22 = vld [vmem:[#allocation3 + $0x13e] sm:$0xff] }
 0x593   :  { %10994 = vmatprep.mubr.msk.bf16.mxu1 %vm11696_vm1, %v15557_v48 }
 0x594   :  { %v5449_v13 = vpop.f32.mrb[140].mxu0 }
 0x595   :  { %v5059_v47 = vpop.f32.mrb[88].mxu1  ;;  %v10886_v45 = vpop.f32.mrb[141].mxu0 }
 0x596   :  { %v5060_v59 = vadd.f32 %v5059_v47, %v14212_v61  ;;  %v10784_v55 = vpop.f32.mrb[89].mxu1  ;;  %v5452_v8 = vpop.f32.mrb[142].mxu0  ;;  %v5636_v45 = vpack.c.bf16 %v5607_v5, %v5606_v22 }
 0x597   :  { %v5062_v43 = vpop.f32.mrb[90].mxu1  ;;  %v10887_v12 = vpop.f32.mrb[143].mxu0  ;;  %v6048_v55 = vld [vmem:[#allocation3 + $0x157] sm:$0xff] }
 0x598   :  { %v5063_v50 = vadd.f32 %v5062_v43, %v14214_v41  ;;  %v10785_v40 = vpop.f32.mrb[91].mxu1  ;;  %v14453_v20 = vadd.f32 %v5449_v13, %v5060_v59  ;;  %v6075_v13 = vpack.c.bf16 %v6046_v27, %v6045_v62  ;;  %v5611_v62 = vld [vmem:[#allocation3 + $0x166] sm:$0xff] }
 0x599   :  { %11097 = vmatmul.mubr.msk.bf16.gmra.mrb[248].mxu0 %vm4296_vm2, %v6074_v9  ;;  %v6047_v9 = vld [vmem:[#allocation3 + $0x14f] sm:$0xff] }
 0x59a   :  { %10995 = vmatmul.mubr.msk.bf16.gmra.mrb[196].mxu1 %vm4296_vm2, %v5635_v23  ;;  %11100 = vmatprep.mubr.msk.bf16.mxu0 %vm11696_vm1, %v15557_v48  ;;  %v14459_v61 = vadd.f32 %v5452_v8, %v5063_v50  ;;  %v5608_v23 = vld [vmem:[#allocation3 + $0x14e] sm:$0xff] }
 0x59b   :  { %10998 = vmatprep.mubr.msk.bf16.mxu1 %vm11696_vm1, %v15557_v48 }
 0x59c   :  { %v5457_v52 = vpop.f32.mrb[144].mxu0 }
 0x59d   :  { %v5067_v25 = vpop.f32.mrb[92].mxu1  ;;  %v10890_v41 = vpop.f32.mrb[145].mxu0 }
 0x59e   :  { %v5068_v26 = vadd.f32 %v5067_v25, %v14246_v39  ;;  %v10788_v34 = vpop.f32.mrb[93].mxu1  ;;  %v5460_v46 = vpop.f32.mrb[146].mxu0  ;;  %v5637_v41 = vpack.c.bf16 %v5609_v10, %v5608_v23 }
 0x59f   :  { %v5070_v54 = vpop.f32.mrb[94].mxu1  ;;  %v10891_v58 = vpop.f32.mrb[147].mxu0  ;;  %v6050_v34 = vld [vmem:[#allocation3 + $0x167] sm:$0xff] }
 0x5a0   :  { %v5071_v36 = vadd.f32 %v5070_v54, %v14252_v1  ;;  %v10789_v47 = vpop.f32.mrb[95].mxu1  ;;  %v14465_v6 = vadd.f32 %v5457_v52, %v5068_v26  ;;  %v6076_v52 = vpack.c.bf16 %v6048_v55, %v6047_v9  ;;  %v5613_v9 = vld [vmem:[#allocation3 + $0x176] sm:$0xff] }
 0x5a1   :  { %11101 = vmatmul.mubr.msk.bf16.gmra.mrb[252].mxu0 %vm4296_vm2, %v6075_v13  ;;  %v6049_v13 = vld [vmem:[#allocation3 + $0x15f] sm:$0xff] }
 0x5a2   :  { %10999 = vmatmul.mubr.msk.bf16.gmra.mrb[200].mxu1 %vm4296_vm2, %v5636_v45  ;;  %11104 = vmatprep.mubr.msk.bf16.mxu0 %vm11696_vm1, %v15557_v48  ;;  %v14471_v39 = vadd.f32 %v5460_v46, %v5071_v36  ;;  %v5610_v45 = vld [vmem:[#allocation3 + $0x15e] sm:$0xff] }
 0x5a3   :  { %11002 = vmatprep.mubr.msk.bf16.mxu1 %vm11696_vm1, %v15557_v48 }
 0x5a4   :  { %v5465_v59 = vpop.f32.mrb[148].mxu0 }
 0x5a5   :  { %v5075_v8 = vpop.f32.mrb[96].mxu1  ;;  %v10894_v1 = vpop.f32.mrb[149].mxu0 }
 0x5a6   :  { %v5076_v43 = vadd.f32 %v5075_v8, %v14266_v32  ;;  %v10792_v12 = vpop.f32.mrb[97].mxu1  ;;  %v5468_v2 = vpop.f32.mrb[150].mxu0  ;;  %v5638_v1 = vpack.c.bf16 %v5611_v62, %v5610_v45  ;;  %v6053_v45 = vld [vmem:[#allocation3 + $0x17f] sm:$0xff] }
 0x5a7   :  { %v5078_v50 = vpop.f32.mrb[98].mxu1  ;;  %v10895_v40 = vpop.f32.mrb[151].mxu0  ;;  %v6052_v12 = vld [vmem:[#allocation3 + $0x177] sm:$0xff] }
 0x5a8   :  { %v5079_v27 = vadd.f32 %v5078_v50, %v14272_v35  ;;  %v10793_v25 = vpop.f32.mrb[99].mxu1  ;;  %v14477_v5 = vadd.f32 %v5465_v59, %v5076_v43  ;;  %v6077_v59 = vpack.c.bf16 %v6050_v34, %v6049_v13  ;;  %v5615_v13 = vld [vmem:[#allocation3 + $0x186] sm:$0xff] }
 0x5a9   :  { %11105 = vmatmul.mubr.msk.bf16.gmra.mrb[0].mxu0 %vm4296_vm2, %v6076_v52  ;;  %v6051_v52 = vld [vmem:[#allocation3 + $0x16f] sm:$0xff] }
 0x5aa   :  { %11003 = vmatmul.mubr.msk.bf16.gmra.mrb[204].mxu1 %vm4296_vm2, %v5637_v41  ;;  %11108 = vmatprep.mubr.msk.bf16.mxu0 %vm11696_vm1, %v15557_v48  ;;  %v14483_v32 = vadd.f32 %v5468_v2, %v5079_v27  ;;  %v5612_v41 = vld [vmem:[#allocation3 + $0x16e] sm:$0xff] }
 0x5ab   :  { %11006 = vmatprep.mubr.msk.bf16.mxu1 %vm11696_vm1, %v15557_v48 }
 0x5ac   :  { %v5473_v26 = vpop.f32.mrb[152].mxu0 }
 0x5ad   :  { %v5083_v46 = vpop.f32.mrb[100].mxu1  ;;  %v10898_v35 = vpop.f32.mrb[153].mxu0 }
 0x5ae   :  { %v5084_v54 = vadd.f32 %v5083_v46, %v13859_v16  ;;  %v10796_v58 = vpop.f32.mrb[101].mxu1  ;;  %v5476_v22 = vpop.f32.mrb[154].mxu0  ;;  %v5639_v35 = vpack.c.bf16 %v5613_v9, %v5612_v41 }
 0x5af   :  { %v5086_v36 = vpop.f32.mrb[102].mxu1  ;;  %v10899_v47 = vpop.f32.mrb[155].mxu0  ;;  %v6054_v58 = vld [vmem:[#allocation3 + $0x187] sm:$0xff] }
 0x5b0   :  { %v5087_v55 = vadd.f32 %v5086_v36, %v13863_v53  ;;  %v10797_v8 = vpop.f32.mrb[103].mxu1  ;;  %v14489_v10 = vadd.f32 %v5473_v26, %v5084_v54  ;;  %v6078_v26 = vpack.c.bf16 %v6052_v12, %v6051_v52 }
 0x5b1   :  { %11109 = vmatmul.mubr.msk.bf16.gmra.mrb[4].mxu0 %vm4296_vm2, %v6077_v59  ;;  %v5614_v8 = vld [vmem:[#allocation3 + $0x17e] sm:$0xff] }
 0x5b2   :  { %11007 = vmatmul.mubr.msk.bf16.gmra.mrb[208].mxu1 %vm4296_vm2, %v5638_v1  ;;  %11112 = vmatprep.mubr.msk.bf16.mxu0 %vm11696_vm1, %v15557_v48  ;;  %v14495_v16 = vadd.f32 %v5476_v22, %v5087_v55  ;;  %v6079_v1 = vpack.c.bf16 %v6054_v58, %v6053_v45  ;;  %v5640_v12 = vpack.c.bf16 %v5615_v13, %v5614_v8  ;;  %v6446_v8 = vld [vmem:[#allocation3 + $0x10] sm:$0xff] }
 0x5b3   :  { %11010 = vmatprep.mubr.msk.bf16.mxu1 %vm11696_vm1, %v15557_v48 }
 0x5b4   :  { %v5481_v43 = vpop.f32.mrb[156].mxu0 }
 0x5b5   :  { %v5091_v2 = vpop.f32.mrb[104].mxu1  ;;  %v10902_v53 = vpop.f32.mrb[157].mxu0 }
 0x5b6   :  { %v5092_v50 = vadd.f32 %v5091_v2, %v14054_v42  ;;  %v10800_v40 = vpop.f32.mrb[105].mxu1  ;;  %v5484_v23 = vpop.f32.mrb[158].mxu0  ;;  %v6055_v53 = vld [vmem:[#allocation3 + $0x18f] sm:$0xff] }
 0x5b7   :  { %v5094_v27 = vpop.f32.mrb[106].mxu1  ;;  %v10903_v25 = vpop.f32.mrb[159].mxu0  ;;  %v5616_v40 = vld [vmem:[#allocation3 + $0x18e] sm:$0xff]  ;;  %v6080_v41 = vpack.c.bf16 %v6055_v53, %v6055_v53 }
 0x5b8   :  { %v5095_v34 = vadd.f32 %v5094_v27, %v14060_v17  ;;  %v10801_v46 = vpop.f32.mrb[107].mxu1  ;;  %v14501_v62 = vadd.f32 %v5481_v43, %v5092_v50  ;;  %v6888_v53 = vld [vmem:[#allocation3 + $0x34] sm:$0xff] }
 0x5b9   :  { %11113 = vmatmul.mubr.msk.bf16.gmra.mrb[8].mxu0 %vm4296_vm2, %v6078_v26  ;;  %v6886_v46 = vld [vmem:[#allocation3 + $0x24] sm:$0xff] }
 0x5ba   :  { %11011 = vmatmul.mubr.msk.bf16.gmra.mrb[212].mxu1 %vm4296_vm2, %v5639_v35  ;;  %11116 = vmatprep.mubr.msk.bf16.mxu0 %vm11696_vm1, %v15557_v48  ;;  %v14507_v42 = vadd.f32 %v5484_v23, %v5095_v34  ;;  %v5641_v34 = vpack.c.bf16 %v5616_v40, %v5616_v40  ;;  %v6449_v40 = vld [vmem:[#allocation3 + $0x28] sm:$0xff] }
 0x5bb   :  { %11014 = vmatprep.mubr.msk.bf16.mxu1 %vm11696_vm1, %v15557_v48 }
 0x5bc   :  { %v5489_v54 = vpop.f32.mrb[160].mxu0 }
 0x5bd   :  { %v5099_v22 = vpop.f32.mrb[108].mxu1  ;;  %v10906_v17 = vpop.f32.mrb[161].mxu0 }
 0x5be   :  { %v10804_v36 = vpop.f32.mrb[109].mxu1  ;;  %v5492_v47 = vpop.f32.mrb[162].mxu0  ;;  %v6447_v22 = vld [vmem:[#allocation3 + $0x18] sm:$0xff] }
 0x5bf   :  { %v5102_v59 = vpop.f32.mrb[110].mxu1  ;;  %v10907_v55 = vpop.f32.mrb[163].mxu0  ;;  %v6885_v17 = vld [vmem:[#allocation3 + $0x1c] sm:$0xff] }
 0x5c0   :  { %v10805_v43 = vpop.f32.mrb[111].mxu1  ;;  %v11572_v47 = vld [vmem:[%s15526_s3 + $0x40] sm:$0xff]   ;;  %v6934_v45 = vpack.c.bf16 %v6886_v46, %v6885_v17 }
 0x5c1   :  { %11117 = vmatmul.mubr.msk.bf16.gmra.mrb[12].mxu0 %vm4296_vm2, %v6079_v1  ;;  %v11571_v1 = vld [vmem:[%s15526_s3 + $0x38] sm:$0xff]  }
 0x5c2   :  { %11015 = vmatmul.mubr.msk.bf16.gmra.mrb[216].mxu1 %vm4296_vm2, %v5640_v12  ;;  %11120 = vmatprep.mubr.msk.bf16.mxu0 %vm11696_vm1, %v15557_v48  ;;  %v6495_v12 = vpack.c.bf16 %v6447_v22, %v6446_v8 }
 0x5c3   :  { %11018 = vmatprep.mubr.msk.bf16.mxu1 %vm11696_vm1, %v15557_v48 }
 0x5c4   :  { %v5497_v2 = vpop.f32.mrb[164].mxu0 }
 0x5c5   :  { %v5107_v9 = vpop.f32.mrb[112].mxu1  ;;  %v10910_v50 = vpop.f32.mrb[165].mxu0 }
 0x5c6   :  { %v10808_v23 = vpop.f32.mrb[113].mxu1  ;;  %v5500_v52 = vpop.f32.mrb[166].mxu0 }
 0x5c7   :  { %v5110_v27 = vpop.f32.mrb[114].mxu1  ;;  %v10911_v25 = vpop.f32.mrb[167].mxu0 }
 0x5c8   :  { %v10809_v26 = vpop.f32.mrb[115].mxu1  ;;  %v6887_v27 = vld [vmem:[#allocation3 + $0x2c] sm:$0xff] }
 0x5c9   :  { %11121 = vmatmul.mubr.msk.bf16.gmra.mrb[16].mxu0 %vm4296_vm2, %v6080_v41  ;;  %v6448_v26 = vld [vmem:[#allocation3 + $0x20] sm:$0xff] }
 0x5ca   :  { %11019 = vmatmul.mubr.msk.bf16.gmra.mrb[220].mxu1 %vm4296_vm2, %v5641_v34  ;;  %11228 = vmatprep.mubr.msk.bf16.mxu0 %vm11696_vm1, %v15557_v48  ;;  %v6935_v34 = vpack.c.bf16 %v6888_v53, %v6887_v27 }
 0x5cb   :  { %11126 = vmatprep.mubr.msk.bf16.mxu1 %vm11696_vm1, %v15557_v48 }
 0x5cc   :  { %v5505_v35 = vpop.f32.mrb[168].mxu0 }
 0x5cd   :  { %v5115_v54 = vpop.f32.mrb[116].mxu1  ;;  %v10914_v58 = vpop.f32.mrb[169].mxu0  ;;  %v6496_v35 = vpack.c.bf16 %v6449_v40, %v6448_v26  ;;  %v6892_v40 = vld [vmem:[#allocation3 + $0x54] sm:$0xff]  ;;  %v6891_v26 = vld [vmem:[#allocation3 + $0x4c] sm:$0xff] }
 0x5ce   :  { %v10812_v13 = vpop.f32.mrb[117].mxu1  ;;  %v5508_v36 = vpop.f32.mrb[170].mxu0  ;;  %v6890_v58 = vld [vmem:[#allocation3 + $0x44] sm:$0xff] }
 0x5cf   :  { %v5118_v59 = vpop.f32.mrb[118].mxu1  ;;  %v10915_v55 = vpop.f32.mrb[171].mxu0  ;;  %v6451_v13 = vld [vmem:[#allocation3 + $0x38] sm:$0xff] }
 0x5d0   :  { %v10813_v43 = vpop.f32.mrb[119].mxu1  ;;  %v6889_v59 = vld [vmem:[#allocation3 + $0x3c] sm:$0xff] }
 0x5d1   :  { %11229 = vmatmul.mubr.msk.bf16.vlgmr.msra.gmra.mrb[20].mxu0 %vm4296_vm2, %v6934_v45  ;;  %v6936_v43 = vpack.c.bf16 %v6890_v58, %v6889_v59  ;;  %v6455_v59 = vld [vmem:[#allocation3 + $0x58] sm:$0xff] }
 0x5d2   :  { %11127 = vmatmul.mubr.msk.bf16.vlgmr.msra.gmra.mrb[224].mxu1 %vm4296_vm2, %v6495_v12  ;;  %11431 = vmatpush3.bf16.msra.mxu0 %v11572_v47 }
 0x5d3   :  { %11329 = vmatpush3.bf16.msra.mxu1 %v11571_v1  ;;  %11130 = vmatprep.mubr.msk.bf16.mxu1 %vm11696_vm1, %v15557_v48  ;;  %v6450_v1 = vld [vmem:[#allocation3 + $0x30] sm:$0xff] }
 0x5d4   :  { %v5513_v2 = vpop.f32.mrb[172].mxu0  ;;  %11232 = vmatprep.mubr.msk.bf16.mxu0 %vm11696_vm1, %v15557_v48  ;;  %v6497_v53 = vpack.c.bf16 %v6451_v13, %v6450_v1 }
 0x5d5   :  { %v5123_v9 = vpop.f32.mrb[120].mxu1  ;;  %v10918_v50 = vpop.f32.mrb[173].mxu0 }
 0x5d6   :  { %v10816_v23 = vpop.f32.mrb[121].mxu1  ;;  %v5516_v52 = vpop.f32.mrb[174].mxu0 }
 0x5d7   :  { %v5126_v25 = vpop.f32.mrb[122].mxu1  ;;  %v10919_v41 = vpop.f32.mrb[175].mxu0  ;;  %v6453_v52 = vld [vmem:[#allocation3 + $0x48] sm:$0xff] }
 0x5d8   :  { %v10817_v46 = vpop.f32.mrb[123].mxu1 }
 0x5d9   :  { %11233 = vmatmul.mubr.msk.bf16.gmra.mrb[24].mxu0 %vm4296_vm2, %v6935_v34 }
 0x5da   :  { %11131 = vmatmul.mubr.msk.bf16.gmra.mrb[228].mxu1 %vm4296_vm2, %v6496_v35  ;;  %11236 = vmatprep.mubr.msk.bf16.mxu0 %vm11696_vm1, %v15557_v48  ;;  %v6452_v35 = vld [vmem:[#allocation3 + $0x40] sm:$0xff] }
 0x5db   :  { %11134 = vmatprep.mubr.msk.bf16.mxu1 %vm11696_vm1, %v15557_v48 }
 0x5dc   :  { %v6199_v54 = vpop.f32.mrb[176].mxu0 }
 0x5dd   :  { %v5760_v22 = vpop.f32.mrb[124].mxu1  ;;  %v11026_v17 = vpop.f32.mrb[177].mxu0 }
 0x5de   :  { %v5958_v36 = vadd.f32 %v5760_v22, %v14281_v37  ;;  %v10924_v47 = vpop.f32.mrb[125].mxu1  ;;  %v6202_v45 = vpop.f32.mrb[178].mxu0  ;;  %v6498_v17 = vpack.c.bf16 %v6453_v52, %v6452_v35 }
 0x5df   :  { %v5763_v55 = vpop.f32.mrb[126].mxu1  ;;  %v11027_v8 = vpop.f32.mrb[179].mxu0  ;;  %v6894_v47 = vld [vmem:[#allocation3 + $0x64] sm:$0xff] }
 0x5e0   :  { %v5959_v12 = vadd.f32 %v5763_v55, %v14285_v30  ;;  %v10925_v2 = vpop.f32.mrb[127].mxu1  ;;  %v14543_v9 = vadd.f32 %v6199_v54, %v5958_v36  ;;  %v6937_v54 = vpack.c.bf16 %v6892_v40, %v6891_v26  ;;  %v6457_v26 = vld [vmem:[#allocation3 + $0x68] sm:$0xff] }
 0x5e1   :  { %11237 = vmatmul.mubr.msk.bf16.gmra.mrb[28].mxu0 %vm4296_vm2, %v6936_v43  ;;  %v6893_v43 = vld [vmem:[#allocation3 + $0x5c] sm:$0xff] }
 0x5e2   :  { %11135 = vmatmul.mubr.msk.bf16.gmra.mrb[232].mxu1 %vm4296_vm2, %v6497_v53  ;;  %11240 = vmatprep.mubr.msk.bf16.mxu0 %vm11696_vm1, %v15557_v48  ;;  %v14549_v37 = vadd.f32 %v6202_v45, %v5959_v12  ;;  %v6454_v53 = vld [vmem:[#allocation3 + $0x50] sm:$0xff] }
 0x5e3   :  { %11138 = vmatprep.mubr.msk.bf16.mxu1 %vm11696_vm1, %v15557_v48 }
 0x5e4   :  { %v6207_v50 = vpop.f32.mrb[180].mxu0 }
 0x5e5   :  { %v5768_v23 = vpop.f32.mrb[128].mxu1  ;;  %v11030_v30 = vpop.f32.mrb[181].mxu0 }
 0x5e6   :  { %v5960_v27 = vadd.f32 %v5768_v23, %v14293_v7  ;;  %v10928_v25 = vpop.f32.mrb[129].mxu1  ;;  %v6210_v41 = vpop.f32.mrb[182].mxu0  ;;  %v6499_v30 = vpack.c.bf16 %v6455_v59, %v6454_v53 }
 0x5e7   :  { %v5771_v34 = vpop.f32.mrb[130].mxu1  ;;  %v11031_v46 = vpop.f32.mrb[183].mxu0  ;;  %v6896_v25 = vld [vmem:[#allocation3 + $0x74] sm:$0xff] }
 0x5e8   :  { %v5961_v58 = vadd.f32 %v5771_v34, %v14297_v15  ;;  %v10929_v22 = vpop.f32.mrb[131].mxu1  ;;  %v14555_v13 = vadd.f32 %v6207_v50, %v5960_v27  ;;  %v6938_v50 = vpack.c.bf16 %v6894_v47, %v6893_v43  ;;  %v6459_v43 = vld [vmem:[#allocation3 + $0x78] sm:$0xff] }
 0x5e9   :  { %11241 = vmatmul.mubr.msk.bf16.gmra.mrb[32].mxu0 %vm4296_vm2, %v6937_v54  ;;  %v6895_v54 = vld [vmem:[#allocation3 + $0x6c] sm:$0xff] }
 0x5ea   :  { %11139 = vmatmul.mubr.msk.bf16.gmra.mrb[236].mxu1 %vm4296_vm2, %v6498_v17  ;;  %11244 = vmatprep.mubr.msk.bf16.mxu0 %vm11696_vm1, %v15557_v48  ;;  %v14561_v7 = vadd.f32 %v6210_v41, %v5961_v58  ;;  %v6456_v17 = vld [vmem:[#allocation3 + $0x60] sm:$0xff] }
 0x5eb   :  { %11142 = vmatprep.mubr.msk.bf16.mxu1 %vm11696_vm1, %v15557_v48 }
 0x5ec   :  { %v6215_v36 = vpop.f32.mrb[184].mxu0 }
 0x5ed   :  { %v5776_v45 = vpop.f32.mrb[132].mxu1  ;;  %v11034_v15 = vpop.f32.mrb[185].mxu0 }
 0x5ee   :  { %v5962_v55 = vadd.f32 %v5776_v45, %v14305_v24  ;;  %v10932_v8 = vpop.f32.mrb[133].mxu1  ;;  %v6218_v1 = vpop.f32.mrb[186].mxu0  ;;  %v6500_v15 = vpack.c.bf16 %v6457_v26, %v6456_v17 }
 0x5ef   :  { %v5779_v12 = vpop.f32.mrb[134].mxu1  ;;  %v11035_v2 = vpop.f32.mrb[187].mxu0  ;;  %v6898_v8 = vld [vmem:[#allocation3 + $0x84] sm:$0xff] }
 0x5f0   :  { %v5963_v40 = vadd.f32 %v5779_v12, %v14309_v28  ;;  %v10933_v23 = vpop.f32.mrb[135].mxu1  ;;  %v14567_v52 = vadd.f32 %v6215_v36, %v5962_v55  ;;  %v6939_v36 = vpack.c.bf16 %v6896_v25, %v6895_v54  ;;  %v6461_v54 = vld [vmem:[#allocation3 + $0x88] sm:$0xff] }
 0x5f1   :  { %11245 = vmatmul.mubr.msk.bf16.gmra.mrb[36].mxu0 %vm4296_vm2, %v6938_v50  ;;  %v6897_v50 = vld [vmem:[#allocation3 + $0x7c] sm:$0xff] }
 0x5f2   :  { %11143 = vmatmul.mubr.msk.bf16.gmra.mrb[240].mxu1 %vm4296_vm2, %v6499_v30  ;;  %11248 = vmatprep.mubr.msk.bf16.mxu0 %vm11696_vm1, %v15557_v48  ;;  %v14573_v24 = vadd.f32 %v6218_v1, %v5963_v40  ;;  %v6458_v30 = vld [vmem:[#allocation3 + $0x70] sm:$0xff] }
 0x5f3   :  { %11146 = vmatprep.mubr.msk.bf16.mxu1 %vm11696_vm1, %v15557_v48 }
 0x5f4   :  { %v6223_v27 = vpop.f32.mrb[188].mxu0 }
 0x5f5   :  { %v5784_v41 = vpop.f32.mrb[136].mxu1  ;;  %v11038_v28 = vpop.f32.mrb[189].mxu0 }
 0x5f6   :  { %v5964_v34 = vadd.f32 %v5784_v41, %v14317_v19  ;;  %v10936_v46 = vpop.f32.mrb[137].mxu1  ;;  %v6226_v35 = vpop.f32.mrb[190].mxu0  ;;  %v6501_v28 = vpack.c.bf16 %v6459_v43, %v6458_v30 }
 0x5f7   :  { %v5787_v58 = vpop.f32.mrb[138].mxu1  ;;  %v11039_v22 = vpop.f32.mrb[191].mxu0  ;;  %v6900_v46 = vld [vmem:[#allocation3 + $0x94] sm:$0xff] }
 0x5f8   :  { %v5965_v47 = vadd.f32 %v5787_v58, %v14321_v0  ;;  %v10937_v45 = vpop.f32.mrb[139].mxu1  ;;  %v14579_v59 = vadd.f32 %v6223_v27, %v5964_v34  ;;  %v6940_v27 = vpack.c.bf16 %v6898_v8, %v6897_v50  ;;  %v6463_v50 = vld [vmem:[#allocation3 + $0x98] sm:$0xff] }
 0x5f9   :  { %11249 = vmatmul.mubr.msk.bf16.gmra.mrb[40].mxu0 %vm4296_vm2, %v6939_v36  ;;  %v6899_v36 = vld [vmem:[#allocation3 + $0x8c] sm:$0xff] }
 0x5fa   :  { %11147 = vmatmul.mubr.msk.bf16.gmra.mrb[244].mxu1 %vm4296_vm2, %v6500_v15  ;;  %11252 = vmatprep.mubr.msk.bf16.mxu0 %vm11696_vm1, %v15557_v48  ;;  %v14585_v19 = vadd.f32 %v6226_v35, %v5965_v47  ;;  %v6460_v15 = vld [vmem:[#allocation3 + $0x80] sm:$0xff] }
 0x5fb   :  { %11150 = vmatprep.mubr.msk.bf16.mxu1 %vm11696_vm1, %v15557_v48 }
 0x5fc   :  { %v6231_v55 = vpop.f32.mrb[192].mxu0 }
 0x5fd   :  { %v5792_v1 = vpop.f32.mrb[140].mxu1  ;;  %v11042_v0 = vpop.f32.mrb[193].mxu0 }
 0x5fe   :  { %v5966_v12 = vadd.f32 %v5792_v1, %v14329_v63  ;;  %v10940_v2 = vpop.f32.mrb[141].mxu1  ;;  %v6234_v53 = vpop.f32.mrb[194].mxu0  ;;  %v6502_v0 = vpack.c.bf16 %v6461_v54, %v6460_v15 }
 0x5ff   :  { %v5795_v40 = vpop.f32.mrb[142].mxu1  ;;  %v11043_v23 = vpop.f32.mrb[195].mxu0  ;;  %v6902_v2 = vld [vmem:[#allocation3 + $0xa4] sm:$0xff] }
 0x600   :  { %v5967_v25 = vadd.f32 %v5795_v40, %v14333_v33  ;;  %v10941_v41 = vpop.f32.mrb[143].mxu1  ;;  %v14591_v26 = vadd.f32 %v6231_v55, %v5966_v12  ;;  %v6941_v55 = vpack.c.bf16 %v6900_v46, %v6899_v36  ;;  %v6465_v36 = vld [vmem:[#allocation3 + $0xa8] sm:$0xff] }
 0x601   :  { %11253 = vmatmul.mubr.msk.bf16.gmra.mrb[44].mxu0 %vm4296_vm2, %v6940_v27  ;;  %v6901_v27 = vld [vmem:[#allocation3 + $0x9c] sm:$0xff] }
 0x602   :  { %11151 = vmatmul.mubr.msk.bf16.gmra.mrb[248].mxu1 %vm4296_vm2, %v6501_v28  ;;  %11256 = vmatprep.mubr.msk.bf16.mxu0 %vm11696_vm1, %v15557_v48  ;;  %v14597_v63 = vadd.f32 %v6234_v53, %v5967_v25  ;;  %v6462_v28 = vld [vmem:[#allocation3 + $0x90] sm:$0xff] }
 0x603   :  { %11154 = vmatprep.mubr.msk.bf16.mxu1 %vm11696_vm1, %v15557_v48 }
 0x604   :  { %v6239_v34 = vpop.f32.mrb[196].mxu0 }
 0x605   :  { %v5800_v35 = vpop.f32.mrb[144].mxu1  ;;  %v11046_v33 = vpop.f32.mrb[197].mxu0 }
 0x606   :  { %v5968_v58 = vadd.f32 %v5800_v35, %v14341_v18  ;;  %v10944_v22 = vpop.f32.mrb[145].mxu1  ;;  %v6242_v17 = vpop.f32.mrb[198].mxu0  ;;  %v6503_v33 = vpack.c.bf16 %v6463_v50, %v6462_v28 }
 0x607   :  { %v5803_v47 = vpop.f32.mrb[146].mxu1  ;;  %v11047_v45 = vpop.f32.mrb[199].mxu0  ;;  %v6904_v22 = vld [vmem:[#allocation3 + $0xb4] sm:$0xff] }
 0x608   :  { %v5969_v8 = vadd.f32 %v5803_v47, %v14345_v14  ;;  %v10945_v1 = vpop.f32.mrb[147].mxu1  ;;  %v14603_v43 = vadd.f32 %v6239_v34, %v5968_v58  ;;  %v6942_v34 = vpack.c.bf16 %v6902_v2, %v6901_v27  ;;  %v6467_v27 = vld [vmem:[#allocation3 + $0xb8] sm:$0xff] }
 0x609   :  { %11257 = vmatmul.mubr.msk.bf16.gmra.mrb[48].mxu0 %vm4296_vm2, %v6941_v55  ;;  %v6903_v55 = vld [vmem:[#allocation3 + $0xac] sm:$0xff] }
 0x60a   :  { %11155 = vmatmul.mubr.msk.bf16.gmra.mrb[252].mxu1 %vm4296_vm2, %v6502_v0  ;;  %11260 = vmatprep.mubr.msk.bf16.mxu0 %vm11696_vm1, %v15557_v48  ;;  %v14609_v18 = vadd.f32 %v6242_v17, %v5969_v8  ;;  %v6464_v0 = vld [vmem:[#allocation3 + $0xa0] sm:$0xff] }
 0x60b   :  { %11158 = vmatprep.mubr.msk.bf16.mxu1 %vm11696_vm1, %v15557_v48 }
 0x60c   :  { %v6247_v12 = vpop.f32.mrb[200].mxu0 }
 0x60d   :  { %v5808_v53 = vpop.f32.mrb[148].mxu1  ;;  %v11050_v14 = vpop.f32.mrb[201].mxu0 }
 0x60e   :  { %v5970_v40 = vadd.f32 %v5808_v53, %v14353_v38  ;;  %v10948_v23 = vpop.f32.mrb[149].mxu1  ;;  %v6250_v30 = vpop.f32.mrb[202].mxu0  ;;  %v6504_v14 = vpack.c.bf16 %v6465_v36, %v6464_v0  ;;  %v6908_v36 = vld [vmem:[#allocation3 + $0xd4] sm:$0xff] }
 0x60f   :  { %v5811_v25 = vpop.f32.mrb[150].mxu1  ;;  %v11051_v41 = vpop.f32.mrb[203].mxu0  ;;  %v6906_v23 = vld [vmem:[#allocation3 + $0xc4] sm:$0xff] }
 0x610   :  { %v5971_v46 = vadd.f32 %v5811_v25, %v14357_v4  ;;  %v10949_v35 = vpop.f32.mrb[151].mxu1  ;;  %v14615_v54 = vadd.f32 %v6247_v12, %v5970_v40  ;;  %v6943_v12 = vpack.c.bf16 %v6904_v22, %v6903_v55 }
 0x611   :  { %11261 = vmatmul.mubr.msk.bf16.gmra.mrb[52].mxu0 %vm4296_vm2, %v6942_v34  ;;  %v6905_v34 = vld [vmem:[#allocation3 + $0xbc] sm:$0xff] }
 0x612   :  { %11159 = vmatmul.mubr.msk.bf16.gmra.mrb[0].mxu1 %vm4296_vm2, %v6503_v33  ;;  %11264 = vmatprep.mubr.msk.bf16.mxu0 %vm11696_vm1, %v15557_v48  ;;  %v14621_v38 = vadd.f32 %v6250_v30, %v5971_v46  ;;  %v6466_v33 = vld [vmem:[#allocation3 + $0xb0] sm:$0xff] }
 0x613   :  { %11162 = vmatprep.mubr.msk.bf16.mxu1 %vm11696_vm1, %v15557_v48 }
 0x614   :  { %v6255_v58 = vpop.f32.mrb[204].mxu0 }
 0x615   :  { %v5816_v17 = vpop.f32.mrb[152].mxu1  ;;  %v11054_v4 = vpop.f32.mrb[205].mxu0 }
 0x616   :  { %v5972_v47 = vadd.f32 %v5816_v17, %v14365_v11  ;;  %v10952_v45 = vpop.f32.mrb[153].mxu1  ;;  %v6258_v15 = vpop.f32.mrb[206].mxu0  ;;  %v6505_v17 = vpack.c.bf16 %v6467_v27, %v6466_v33  ;;  %v6470_v33 = vld [vmem:[#allocation3 + $0xd0] sm:$0xff] }
 0x617   :  { %v5819_v8 = vpop.f32.mrb[154].mxu1  ;;  %v11055_v1 = vpop.f32.mrb[207].mxu0 }
 0x618   :  { %v5973_v2 = vadd.f32 %v5819_v8, %v14369_v51  ;;  %v10953_v53 = vpop.f32.mrb[155].mxu1  ;;  %v14627_v50 = vadd.f32 %v6255_v58, %v5972_v47  ;;  %v6944_v58 = vpack.c.bf16 %v6906_v23, %v6905_v34  ;;  %v6907_v1 = vld [vmem:[#allocation3 + $0xcc] sm:$0xff]  ;;  %v6909_v34 = vld [vmem:[#allocation3 + $0xdc] sm:$0xff] }
 0x619   :  { %11265 = vmatmul.mubr.msk.bf16.gmra.mrb[56].mxu0 %vm4296_vm2, %v6943_v12  ;;  %v6945_v53 = vpack.c.bf16 %v6908_v36, %v6907_v1  ;;  %v6912_v36 = vld [vmem:[#allocation3 + $0xf4] sm:$0xff]  ;;  %v6911_v1 = vld [vmem:[#allocation3 + $0xec] sm:$0xff] }
 0x61a   :  { %11163 = vmatmul.mubr.msk.bf16.gmra.mrb[4].mxu1 %vm4296_vm2, %v6504_v14  ;;  %11268 = vmatprep.mubr.msk.bf16.mxu0 %vm11696_vm1, %v15557_v48  ;;  %v14633_v11 = vadd.f32 %v6258_v15, %v5973_v2  ;;  %v6469_v15 = vld [vmem:[#allocation3 + $0xc8] sm:$0xff]  ;;  %v6468_v2 = vld [vmem:[#allocation3 + $0xc0] sm:$0xff] }
 0x61b   :  { %11166 = vmatprep.mubr.msk.bf16.mxu1 %vm11696_vm1, %v15557_v48 }
 0x61c   :  { %v6263_v40 = vpop.f32.mrb[208].mxu0 }
 0x61d   :  { %v5824_v30 = vpop.f32.mrb[156].mxu1  ;;  %v11058_v51 = vpop.f32.mrb[209].mxu0 }
 0x61e   :  { %v5974_v25 = vadd.f32 %v5824_v30, %v14377_v57  ;;  %v10956_v41 = vpop.f32.mrb[157].mxu1  ;;  %v6266_v28 = vpop.f32.mrb[210].mxu0  ;;  %v6910_v30 = vld [vmem:[#allocation3 + $0xe4] sm:$0xff] }
 0x61f   :  { %v5827_v46 = vpop.f32.mrb[158].mxu1  ;;  %v11059_v35 = vpop.f32.mrb[211].mxu0 }
 0x620   :  { %v10957_v22 = vpop.f32.mrb[159].mxu1  ;;  %v14638_v4 = vadd.f32 %v6263_v40, %v5974_v25  ;;  %v6506_v40 = vpack.c.bf16 %v6469_v15, %v6468_v2  ;;  %v6471_v25 = vld [vmem:[#allocation3 + $0xd8] sm:$0xff]  ;;  %v6473_v15 = vld [vmem:[#allocation3 + $0xe8] sm:$0xff]  ;;  %v6472_v2 = vld [vmem:[#allocation3 + $0xe0] sm:$0xff] }
 0x621   :  { %11269 = vmatmul.mubr.msk.bf16.gmra.mrb[60].mxu0 %vm4296_vm2, %v6944_v58  ;;  %v6946_v58 = vpack.c.bf16 %v6910_v30, %v6909_v34  ;;  %v6914_v30 = vld [vmem:[#allocation3 + $0x104] sm:$0xff] }
 0x622   :  { %11167 = vmatmul.mubr.msk.bf16.gmra.mrb[8].mxu1 %vm4296_vm2, %v6505_v17  ;;  %11272 = vmatprep.mubr.msk.bf16.mxu0 %vm11696_vm1, %v15557_v48  ;;  %v6507_v17 = vpack.c.bf16 %v6471_v25, %v6470_v33  ;;  %v6475_v25 = vld [vmem:[#allocation3 + $0xf8] sm:$0xff] }
 0x623   :  { %11170 = vmatprep.mubr.msk.bf16.mxu1 %vm11696_vm1, %v15557_v48 }
 0x624   :  { %v6271_v57 = vpop.f32.mrb[212].mxu0 }
 0x625   :  { %v5832_v47 = vpop.f32.mrb[160].mxu1  ;;  %v11062_v45 = vpop.f32.mrb[213].mxu0 }
 0x626   :  { %v10960_v55 = vpop.f32.mrb[161].mxu1  ;;  %v6274_v8 = vpop.f32.mrb[214].mxu0 }
 0x627   :  { %v5835_v0 = vpop.f32.mrb[162].mxu1  ;;  %v11063_v12 = vpop.f32.mrb[215].mxu0 }
 0x628   :  { %v10961_v14 = vpop.f32.mrb[163].mxu1 }
 0x629   :  { %11273 = vmatmul.mubr.msk.bf16.gmra.mrb[64].mxu0 %vm4296_vm2, %v6945_v53  ;;  %v6947_v53 = vpack.c.bf16 %v6912_v36, %v6911_v1  ;;  %v6477_v1 = vld [vmem:[#allocation3 + $0x108] sm:$0xff] }
 0x62a   :  { %11171 = vmatmul.mubr.msk.bf16.gmra.mrb[12].mxu1 %vm4296_vm2, %v6506_v40  ;;  %11276 = vmatprep.mubr.msk.bf16.mxu0 %vm11696_vm1, %v15557_v48  ;;  %v6508_v40 = vpack.c.bf16 %v6473_v15, %v6472_v2  ;;  %v6916_v15 = vld [vmem:[#allocation3 + $0x114] sm:$0xff]  ;;  %v6915_v2 = vld [vmem:[#allocation3 + $0x10c] sm:$0xff] }
 0x62b   :  { %11174 = vmatprep.mubr.msk.bf16.mxu1 %vm11696_vm1, %v15557_v48 }
 0x62c   :  { %v6279_v23 = vpop.f32.mrb[216].mxu0 }
 0x62d   :  { %v5840_v51 = vpop.f32.mrb[164].mxu1  ;;  %v11066_v27 = vpop.f32.mrb[217].mxu0 }
 0x62e   :  { %v10964_v41 = vpop.f32.mrb[165].mxu1  ;;  %v6282_v28 = vpop.f32.mrb[218].mxu0 }
 0x62f   :  { %v5843_v46 = vpop.f32.mrb[166].mxu1  ;;  %v11067_v35 = vpop.f32.mrb[219].mxu0 }
 0x630   :  { %v10965_v22 = vpop.f32.mrb[167].mxu1  ;;  %v6913_v46 = vld [vmem:[#allocation3 + $0xfc] sm:$0xff] }
 0x631   :  { %11277 = vmatmul.mubr.msk.bf16.gmra.mrb[68].mxu0 %vm4296_vm2, %v6946_v58  ;;  %v6474_v58 = vld [vmem:[#allocation3 + $0xf0] sm:$0xff]  ;;  %v6948_v22 = vpack.c.bf16 %v6914_v30, %v6913_v46 }
 0x632   :  { %11175 = vmatmul.mubr.msk.bf16.gmra.mrb[16].mxu1 %vm4296_vm2, %v6507_v17  ;;  %11280 = vmatprep.mubr.msk.bf16.mxu0 %vm11696_vm1, %v15557_v48 }
 0x633   :  { %11178 = vmatprep.mubr.msk.bf16.mxu1 %vm11696_vm1, %v15557_v48 }
 0x634   :  { %v6287_v57 = vpop.f32.mrb[220].mxu0 }
 0x635   :  { %v5848_v47 = vpop.f32.mrb[168].mxu1  ;;  %v11070_v45 = vpop.f32.mrb[221].mxu0 }
 0x636   :  { %v10968_v55 = vpop.f32.mrb[169].mxu1  ;;  %v6290_v8 = vpop.f32.mrb[222].mxu0  ;;  %v6509_v47 = vpack.c.bf16 %v6475_v25, %v6474_v58 }
 0x637   :  { %v5851_v0 = vpop.f32.mrb[170].mxu1  ;;  %v11071_v12 = vpop.f32.mrb[223].mxu0 }
 0x638   :  { %v10969_v14 = vpop.f32.mrb[171].mxu1 }
 0x639   :  { %11281 = vmatmul.mubr.msk.bf16.gmra.mrb[72].mxu0 %vm4296_vm2, %v6947_v53 }
 0x63a   :  { %11179 = vmatmul.mubr.msk.bf16.gmra.mrb[20].mxu1 %vm4296_vm2, %v6508_v40  ;;  %11284 = vmatprep.mubr.msk.bf16.mxu0 %vm11696_vm1, %v15557_v48  ;;  %v6476_v40 = vld [vmem:[#allocation3 + $0x100] sm:$0xff] }
 0x63b   :  { %11182 = vmatprep.mubr.msk.bf16.mxu1 %vm11696_vm1, %v15557_v48  ;;  %v6510_v25 = vpack.c.bf16 %v6477_v1, %v6476_v40 }
 0x63c   :  { %v6295_v23 = vpop.f32.mrb[224].mxu0 }
 0x63d   :  { %v5856_v51 = vpop.f32.mrb[172].mxu1  ;;  %v11074_v27 = vpop.f32.mrb[225].mxu0 }
 0x63e   :  { %v5982_v41 = vadd.f32 %v5856_v51, %v14404_v49  ;;  %v10972_v28 = vpop.f32.mrb[173].mxu1  ;;  %v6298_v34 = vpop.f32.mrb[226].mxu0 }
 0x63f   :  { %v5859_v35 = vpop.f32.mrb[174].mxu1  ;;  %v11075_v33 = vpop.f32.mrb[227].mxu0  ;;  %v6918_v28 = vld [vmem:[#allocation3 + $0x124] sm:$0xff] }
 0x640   :  { %v14665_v17 = vadd.f32 %v6295_v23, %v5982_v41  ;;  %v5983_v57 = vadd.f32 %v5859_v35, %v14408_v56  ;;  %v10973_v36 = vpop.f32.mrb[175].mxu1  ;;  %v6949_v23 = vpack.c.bf16 %v6916_v15, %v6915_v2  ;;  %v6479_v35 = vld [vmem:[#allocation3 + $0x118] sm:$0xff] }
 0x641   :  { %11285 = vmatmul.mubr.msk.bf16.gmra.mrb[76].mxu0 %vm4296_vm2, %v6948_v22  ;;  %v6917_v22 = vld [vmem:[#allocation3 + $0x11c] sm:$0xff] }
 0x642   :  { %v14669_v45 = vadd.f32 %v6298_v34, %v5983_v57  ;;  %11183 = vmatmul.mubr.msk.bf16.gmra.mrb[24].mxu1 %vm4296_vm2, %v6509_v47  ;;  %11288 = vmatprep.mubr.msk.bf16.mxu0 %vm11696_vm1, %v15557_v48  ;;  %v6478_v47 = vld [vmem:[#allocation3 + $0x110] sm:$0xff] }
 0x643   :  { %11186 = vmatprep.mubr.msk.bf16.mxu1 %vm11696_vm1, %v15557_v48  ;;  %v6511_v1 = vpack.c.bf16 %v6479_v35, %v6478_v47 }
 0x644   :  { %v6303_v49 = vpop.f32.mrb[228].mxu0 }
 0x645   :  { %v5864_v55 = vpop.f32.mrb[176].mxu1  ;;  %v11078_v8 = vpop.f32.mrb[229].mxu0 }
 0x646   :  { %v5984_v56 = vadd.f32 %v5864_v55, %v14416_v3  ;;  %v10976_v0 = vpop.f32.mrb[177].mxu1  ;;  %v6306_v12 = vpop.f32.mrb[230].mxu0 }
 0x647   :  { %v5867_v53 = vpop.f32.mrb[178].mxu1  ;;  %v11079_v14 = vpop.f32.mrb[231].mxu0  ;;  %v6919_v0 = vld [vmem:[#allocation3 + $0x12c] sm:$0xff] }
 0x648   :  { %v14677_v30 = vadd.f32 %v6303_v49, %v5984_v56  ;;  %v5985_v51 = vadd.f32 %v5867_v53, %v14420_v21  ;;  %v10977_v27 = vpop.f32.mrb[179].mxu1  ;;  %v6950_v49 = vpack.c.bf16 %v6918_v28, %v6917_v22  ;;  %v6481_v53 = vld [vmem:[#allocation3 + $0x128] sm:$0xff] }
 0x649   :  { %11289 = vmatmul.mubr.msk.bf16.gmra.mrb[80].mxu0 %vm4296_vm2, %v6949_v23  ;;  %v6920_v23 = vld [vmem:[#allocation3 + $0x134] sm:$0xff] }
 0x64a   :  { %v14681_v41 = vadd.f32 %v6306_v12, %v5985_v51  ;;  %11187 = vmatmul.mubr.msk.bf16.gmra.mrb[28].mxu1 %vm4296_vm2, %v6510_v25  ;;  %11292 = vmatprep.mubr.msk.bf16.mxu0 %vm11696_vm1, %v15557_v48  ;;  %v6480_v25 = vld [vmem:[#allocation3 + $0x120] sm:$0xff] }
 0x64b   :  { %11190 = vmatprep.mubr.msk.bf16.mxu1 %vm11696_vm1, %v15557_v48  ;;  %v6512_v35 = vpack.c.bf16 %v6481_v53, %v6480_v25 }
 0x64c   :  { %v6311_v3 = vpop.f32.mrb[232].mxu0 }
 0x64d   :  { %v5872_v34 = vpop.f32.mrb[180].mxu1  ;;  %v11082_v46 = vpop.f32.mrb[233].mxu0 }
 0x64e   :  { %v5986_v21 = vadd.f32 %v5872_v34, %v14428_v44  ;;  %v10980_v33 = vpop.f32.mrb[181].mxu1  ;;  %v6314_v58 = vpop.f32.mrb[234].mxu0 }
 0x64f   :  { %v5875_v57 = vpop.f32.mrb[182].mxu1  ;;  %v11083_v36 = vpop.f32.mrb[235].mxu0  ;;  %v6922_v33 = vld [vmem:[#allocation3 + $0x144] sm:$0xff] }
 0x650   :  { %v14689_v15 = vadd.f32 %v6311_v3, %v5986_v21  ;;  %v5987_v55 = vadd.f32 %v5875_v57, %v14432_v29  ;;  %v10981_v8 = vpop.f32.mrb[183].mxu1  ;;  %v6951_v3 = vpack.c.bf16 %v6920_v23, %v6919_v0  ;;  %v6483_v57 = vld [vmem:[#allocation3 + $0x138] sm:$0xff] }
 0x651   :  { %11293 = vmatmul.mubr.msk.bf16.gmra.mrb[84].mxu0 %vm4296_vm2, %v6950_v49  ;;  %v6921_v49 = vld [vmem:[#allocation3 + $0x13c] sm:$0xff] }
 0x652   :  { %v14693_v56 = vadd.f32 %v6314_v58, %v5987_v55  ;;  %11191 = vmatmul.mubr.msk.bf16.gmra.mrb[32].mxu1 %vm4296_vm2, %v6511_v1  ;;  %11296 = vmatprep.mubr.msk.bf16.mxu0 %vm11696_vm1, %v15557_v48  ;;  %v6482_v1 = vld [vmem:[#allocation3 + $0x130] sm:$0xff] }
 0x653   :  { %11194 = vmatprep.mubr.msk.bf16.mxu1 %vm11696_vm1, %v15557_v48  ;;  %v6513_v53 = vpack.c.bf16 %v6483_v57, %v6482_v1 }
 0x654   :  { %v6319_v44 = vpop.f32.mrb[236].mxu0 }
 0x655   :  { %v5880_v12 = vpop.f32.mrb[184].mxu1  ;;  %v11086_v2 = vpop.f32.mrb[237].mxu0 }
 0x656   :  { %v5988_v29 = vadd.f32 %v5880_v12, %v14440_v31  ;;  %v10984_v14 = vpop.f32.mrb[185].mxu1  ;;  %v6322_v40 = vpop.f32.mrb[238].mxu0 }
 0x657   :  { %v5883_v51 = vpop.f32.mrb[186].mxu1  ;;  %v11087_v27 = vpop.f32.mrb[239].mxu0  ;;  %v6924_v14 = vld [vmem:[#allocation3 + $0x154] sm:$0xff] }
 0x658   :  { %v14701_v28 = vadd.f32 %v6319_v44, %v5988_v29  ;;  %v5989_v34 = vadd.f32 %v5883_v51, %v14444_v60  ;;  %v10985_v46 = vpop.f32.mrb[187].mxu1  ;;  %v6952_v44 = vpack.c.bf16 %v6922_v33, %v6921_v49  ;;  %v6485_v51 = vld [vmem:[#allocation3 + $0x148] sm:$0xff] }
 0x659   :  { %11297 = vmatmul.mubr.msk.bf16.gmra.mrb[88].mxu0 %vm4296_vm2, %v6951_v3  ;;  %v6923_v3 = vld [vmem:[#allocation3 + $0x14c] sm:$0xff] }
 0x65a   :  { %v14705_v21 = vadd.f32 %v6322_v40, %v5989_v34  ;;  %11195 = vmatmul.mubr.msk.bf16.gmra.mrb[36].mxu1 %vm4296_vm2, %v6512_v35  ;;  %11300 = vmatprep.mubr.msk.bf16.mxu0 %vm11696_vm1, %v15557_v48  ;;  %v6484_v35 = vld [vmem:[#allocation3 + $0x140] sm:$0xff] }
 0x65b   :  { %11198 = vmatprep.mubr.msk.bf16.mxu1 %vm11696_vm1, %v15557_v48  ;;  %v6514_v57 = vpack.c.bf16 %v6485_v51, %v6484_v35 }
 0x65c   :  { %v6327_v31 = vpop.f32.mrb[240].mxu0 }
 0x65d   :  { %v5888_v58 = vpop.f32.mrb[188].mxu1  ;;  %v11090_v22 = vpop.f32.mrb[241].mxu0 }
 0x65e   :  { %v5990_v60 = vadd.f32 %v5888_v58, %v14453_v20  ;;  %v10988_v36 = vpop.f32.mrb[189].mxu1  ;;  %v6330_v47 = vpop.f32.mrb[242].mxu0 }
 0x65f   :  { %v5891_v55 = vpop.f32.mrb[190].mxu1  ;;  %v11091_v8 = vpop.f32.mrb[243].mxu0  ;;  %v6926_v36 = vld [vmem:[#allocation3 + $0x164] sm:$0xff] }
 0x660   :  { %v14713_v0 = vadd.f32 %v6327_v31, %v5990_v60  ;;  %v5991_v12 = vadd.f32 %v5891_v55, %v14459_v61  ;;  %v10989_v2 = vpop.f32.mrb[191].mxu1  ;;  %v6953_v31 = vpack.c.bf16 %v6924_v14, %v6923_v3  ;;  %v6487_v55 = vld [vmem:[#allocation3 + $0x158] sm:$0xff] }
 0x661   :  { %11301 = vmatmul.mubr.msk.bf16.gmra.mrb[92].mxu0 %vm4296_vm2, %v6952_v44  ;;  %v6925_v44 = vld [vmem:[#allocation3 + $0x15c] sm:$0xff] }
 0x662   :  { %v14717_v29 = vadd.f32 %v6330_v47, %v5991_v12  ;;  %11199 = vmatmul.mubr.msk.bf16.gmra.mrb[40].mxu1 %vm4296_vm2, %v6513_v53  ;;  %11304 = vmatprep.mubr.msk.bf16.mxu0 %vm11696_vm1, %v15557_v48  ;;  %v6486_v53 = vld [vmem:[#allocation3 + $0x150] sm:$0xff] }
 0x663   :  { %11202 = vmatprep.mubr.msk.bf16.mxu1 %vm11696_vm1, %v15557_v48  ;;  %v6515_v51 = vpack.c.bf16 %v6487_v55, %v6486_v53 }
 0x664   :  { %v6335_v20 = vpop.f32.mrb[244].mxu0 }
 0x665   :  { %v5896_v40 = vpop.f32.mrb[192].mxu1  ;;  %v11094_v23 = vpop.f32.mrb[245].mxu0 }
 0x666   :  { %v5992_v61 = vadd.f32 %v5896_v40, %v14465_v6  ;;  %v10992_v27 = vpop.f32.mrb[193].mxu1  ;;  %v6338_v25 = vpop.f32.mrb[246].mxu0 }
 0x667   :  { %v5899_v34 = vpop.f32.mrb[194].mxu1  ;;  %v11095_v46 = vpop.f32.mrb[247].mxu0  ;;  %v6928_v27 = vld [vmem:[#allocation3 + $0x174] sm:$0xff] }
 0x668   :  { %v14725_v33 = vadd.f32 %v6335_v20, %v5992_v61  ;;  %v5993_v58 = vadd.f32 %v5899_v34, %v14471_v39  ;;  %v10993_v22 = vpop.f32.mrb[195].mxu1  ;;  %v6954_v20 = vpack.c.bf16 %v6926_v36, %v6925_v44  ;;  %v6489_v34 = vld [vmem:[#allocation3 + $0x168] sm:$0xff] }
 0x669   :  { %11305 = vmatmul.mubr.msk.bf16.gmra.mrb[96].mxu0 %vm4296_vm2, %v6953_v31  ;;  %v6927_v31 = vld [vmem:[#allocation3 + $0x16c] sm:$0xff] }
 0x66a   :  { %v14729_v60 = vadd.f32 %v6338_v25, %v5993_v58  ;;  %11203 = vmatmul.mubr.msk.bf16.gmra.mrb[44].mxu1 %vm4296_vm2, %v6514_v57  ;;  %11308 = vmatprep.mubr.msk.bf16.mxu0 %vm11696_vm1, %v15557_v48  ;;  %v6488_v57 = vld [vmem:[#allocation3 + $0x160] sm:$0xff] }
 0x66b   :  { %11206 = vmatprep.mubr.msk.bf16.mxu1 %vm11696_vm1, %v15557_v48  ;;  %v6516_v55 = vpack.c.bf16 %v6489_v34, %v6488_v57  ;;  %v6931_v57 = vld [vmem:[#allocation3 + $0x18c] sm:$0xff] }
 0x66c   :  { %v6343_v6 = vpop.f32.mrb[248].mxu0 }
 0x66d   :  { %v5904_v47 = vpop.f32.mrb[196].mxu1  ;;  %v11098_v49 = vpop.f32.mrb[249].mxu0 }
 0x66e   :  { %v5994_v39 = vadd.f32 %v5904_v47, %v14477_v5  ;;  %v10996_v8 = vpop.f32.mrb[197].mxu1  ;;  %v6346_v1 = vpop.f32.mrb[250].mxu0 }
 0x66f   :  { %v5907_v12 = vpop.f32.mrb[198].mxu1  ;;  %v11099_v2 = vpop.f32.mrb[251].mxu0  ;;  %v6930_v8 = vld [vmem:[#allocation3 + $0x184] sm:$0xff] }
 0x670   :  { %v14737_v14 = vadd.f32 %v6343_v6, %v5994_v39  ;;  %v5995_v40 = vadd.f32 %v5907_v12, %v14483_v32  ;;  %v10997_v23 = vpop.f32.mrb[199].mxu1  ;;  %v6955_v6 = vpack.c.bf16 %v6928_v27, %v6927_v31  ;;  %v6491_v12 = vld [vmem:[#allocation3 + $0x178] sm:$0xff] }
 0x671   :  { %11309 = vmatmul.mubr.msk.bf16.gmra.mrb[100].mxu0 %vm4296_vm2, %v6954_v20  ;;  %v6929_v20 = vld [vmem:[#allocation3 + $0x17c] sm:$0xff] }
 0x672   :  { %v14741_v61 = vadd.f32 %v6346_v1, %v5995_v40  ;;  %11207 = vmatmul.mubr.msk.bf16.gmra.mrb[48].mxu1 %vm4296_vm2, %v6515_v51  ;;  %11312 = vmatprep.mubr.msk.bf16.mxu0 %vm11696_vm1, %v15557_v48  ;;  %v6490_v51 = vld [vmem:[#allocation3 + $0x170] sm:$0xff] }
 0x673   :  { %11210 = vmatprep.mubr.msk.bf16.mxu1 %vm11696_vm1, %v15557_v48  ;;  %v6517_v34 = vpack.c.bf16 %v6491_v12, %v6490_v51 }
 0x674   :  { %v6351_v5 = vpop.f32.mrb[252].mxu0 }
 0x675   :  { %v5912_v25 = vpop.f32.mrb[200].mxu1  ;;  %v11102_v3 = vpop.f32.mrb[253].mxu0 }
 0x676   :  { %v5996_v32 = vadd.f32 %v5912_v25, %v14489_v10  ;;  %v11000_v46 = vpop.f32.mrb[201].mxu1  ;;  %v6354_v35 = vpop.f32.mrb[254].mxu0 }
 0x677   :  { %v5915_v58 = vpop.f32.mrb[202].mxu1  ;;  %v11103_v22 = vpop.f32.mrb[255].mxu0  ;;  %v6932_v46 = vld [vmem:[#allocation3 + $0x194] sm:$0xff] }
 0x678   :  { %v14749_v36 = vadd.f32 %v6351_v5, %v5996_v32  ;;  %v5997_v47 = vadd.f32 %v5915_v58, %v14495_v16  ;;  %v11001_v49 = vpop.f32.mrb[203].mxu1  ;;  %v6956_v5 = vpack.c.bf16 %v6930_v8, %v6929_v20  ;;  %v6493_v58 = vld [vmem:[#allocation3 + $0x188] sm:$0xff] }
 0x679   :  { %11313 = vmatmul.mubr.msk.bf16.gmra.mrb[104].mxu0 %vm4296_vm2, %v6955_v6  ;;  %v6492_v49 = vld [vmem:[#allocation3 + $0x180] sm:$0xff] }
 0x67a   :  { %v14753_v39 = vadd.f32 %v6354_v35, %v5997_v47  ;;  %11211 = vmatmul.mubr.msk.bf16.gmra.mrb[52].mxu1 %vm4296_vm2, %v6516_v55  ;;  %11316 = vmatprep.mubr.msk.bf16.mxu0 %vm11696_vm1, %v15557_v48  ;;  %v6957_v55 = vpack.c.bf16 %v6932_v46, %v6931_v57  ;;  %v6518_v8 = vpack.c.bf16 %v6493_v58, %v6492_v49 }
 0x67b   :  { %11214 = vmatprep.mubr.msk.bf16.mxu1 %vm11696_vm1, %v15557_v48 }
 0x67c   :  { %v6359_v10 = vpop.f32.mrb[0].mxu0 }
 0x67d   :  { %v5920_v1 = vpop.f32.mrb[204].mxu1  ;;  %v11106_v44 = vpop.f32.mrb[1].mxu0 }
 0x67e   :  { %v5998_v16 = vadd.f32 %v5920_v1, %v14501_v62  ;;  %v11004_v2 = vpop.f32.mrb[205].mxu1  ;;  %v6362_v53 = vpop.f32.mrb[2].mxu0  ;;  %v6933_v44 = vld [vmem:[#allocation3 + $0x19c] sm:$0xff] }
 0x67f   :  { %v5923_v40 = vpop.f32.mrb[206].mxu1  ;;  %v11107_v23 = vpop.f32.mrb[3].mxu0  ;;  %v6494_v2 = vld [vmem:[#allocation3 + $0x190] sm:$0xff]  ;;  %v6958_v51 = vpack.c.bf16 %v6933_v44, %v6933_v44 }
 0x680   :  { %v14761_v27 = vadd.f32 %v6359_v10, %v5998_v16  ;;  %v5999_v25 = vadd.f32 %v5923_v40, %v14507_v42  ;;  %v11005_v3 = vpop.f32.mrb[207].mxu1 }
 0x681   :  { %11317 = vmatmul.mubr.msk.bf16.gmra.mrb[108].mxu0 %vm4296_vm2, %v6956_v5  ;;  %v7764_v3 = vld [vmem:[#allocation3 + $0x26] sm:$0xff] }
 0x682   :  { %v14765_v32 = vadd.f32 %v6362_v53, %v5999_v25  ;;  %11215 = vmatmul.mubr.msk.bf16.gmra.mrb[56].mxu1 %vm4296_vm2, %v6517_v34  ;;  %11320 = vmatprep.mubr.msk.bf16.mxu0 %vm11696_vm1, %v15557_v48  ;;  %v6519_v25 = vpack.c.bf16 %v6494_v2, %v6494_v2 }
 0x683   :  { %11218 = vmatprep.mubr.msk.bf16.mxu1 %vm11696_vm1, %v15557_v48 }
 0x684   :  { %v6367_v62 = vpop.f32.mrb[4].mxu0 }
 0x685   :  { %v5928_v35 = vpop.f32.mrb[208].mxu1  ;;  %v11110_v31 = vpop.f32.mrb[5].mxu0  ;;  %v7325_v62 = vld [vmem:[#allocation3 + $0x25] sm:$0xff] }
 0x686   :  { %v11008_v42 = vpop.f32.mrb[209].mxu1  ;;  %v6370_v22 = vpop.f32.mrb[6].mxu0  ;;  %v7763_v31 = vld [vmem:[#allocation3 + $0x1e] sm:$0xff] }
 0x687   :  { %v5931_v6 = vpop.f32.mrb[210].mxu1  ;;  %v11111_v47 = vpop.f32.mrb[7].mxu0  ;;  %v7324_v22 = vld [vmem:[#allocation3 + $0x1d] sm:$0xff]  ;;  %v7812_v57 = vpack.c.bf16 %v7764_v3, %v7763_v31 }
 0x688   :  { %v11009_v10 = vpop.f32.mrb[211].mxu1  ;;  %v7373_v49 = vpack.c.bf16 %v7325_v62, %v7324_v22  ;;  %v7767_v22 = vld [vmem:[#allocation3 + $0x3e] sm:$0xff] }
 0x689   :  { %11321 = vmatmul.mubr.msk.bf16.gmra.mrb[112].mxu0 %vm4296_vm2, %v6957_v55 }
 0x68a   :  { %11219 = vmatmul.mubr.msk.bf16.gmra.mrb[60].mxu1 %vm4296_vm2, %v6518_v8  ;;  %11324 = vmatprep.mubr.msk.bf16.mxu0 %vm11696_vm1, %v15557_v48  ;;  %v7766_v8 = vld [vmem:[#allocation3 + $0x36] sm:$0xff] }
 0x68b   :  { %11222 = vmatprep.mubr.msk.bf16.mxu1 %vm11696_vm1, %v15557_v48 }
 0x68c   :  { %v6375_v1 = vpop.f32.mrb[8].mxu0 }
 0x68d   :  { %v5936_v12 = vpop.f32.mrb[212].mxu1  ;;  %v11114_v16 = vpop.f32.mrb[9].mxu0 }
 0x68e   :  { %v11012_v53 = vpop.f32.mrb[213].mxu1  ;;  %v6378_v20 = vpop.f32.mrb[10].mxu0  ;;  %v7327_v12 = vld [vmem:[#allocation3 + $0x35] sm:$0xff] }
 0x68f   :  { %v5939_v40 = vpop.f32.mrb[214].mxu1  ;;  %v11115_v23 = vpop.f32.mrb[11].mxu0  ;;  %v7765_v53 = vld [vmem:[#allocation3 + $0x2e] sm:$0xff] }
 0x690   :  { %v11013_v5 = vpop.f32.mrb[215].mxu1  ;;  %v7326_v23 = vld [vmem:[#allocation3 + $0x2d] sm:$0xff] }
 0x691   :  { %11325 = vmatmul.mubr.msk.bf16.gmra.mrb[116].mxu0 %vm4296_vm2, %v6958_v51  ;;  %v7813_v51 = vpack.c.bf16 %v7766_v8, %v7765_v53  ;;  %v7331_v53 = vld [vmem:[#allocation3 + $0x55] sm:$0xff] }
 0x692   :  { %11223 = vmatmul.mubr.msk.bf16.gmra.mrb[64].mxu1 %vm4296_vm2, %v6519_v25  ;;  %11432 = vmatprep.mubr.msk.bf16.mxu0 %vm11696_vm1, %v15557_v48  ;;  %v7374_v25 = vpack.c.bf16 %v7327_v12, %v7326_v23  ;;  %v7770_v12 = vld [vmem:[#allocation3 + $0x56] sm:$0xff]  ;;  %v7769_v23 = vld [vmem:[#allocation3 + $0x4e] sm:$0xff] }
 0x693   :  { %11330 = vmatprep.mubr.msk.bf16.mxu1 %vm11696_vm1, %v15557_v48 }
 0x694   :  { %v6383_v34 = vpop.f32.mrb[12].mxu0 }
 0x695   :  { %v5944_v46 = vpop.f32.mrb[216].mxu1  ;;  %v11118_v35 = vpop.f32.mrb[13].mxu0  ;;  %v7768_v34 = vld [vmem:[#allocation3 + $0x46] sm:$0xff] }
 0x696   :  { %v11016_v58 = vpop.f32.mrb[217].mxu1  ;;  %v6386_v42 = vpop.f32.mrb[14].mxu0  ;;  %v7329_v35 = vld [vmem:[#allocation3 + $0x45] sm:$0xff] }
 0x697   :  { %v5947_v6 = vpop.f32.mrb[218].mxu1  ;;  %v11119_v47 = vpop.f32.mrb[15].mxu0 }
 0x698   :  { %v11017_v55 = vpop.f32.mrb[219].mxu1  ;;  %v7328_v47 = vld [vmem:[#allocation3 + $0x3d] sm:$0xff] }
 0x699   :  { %11433 = vmatmul.mubr.msk.bf16.vlgmr.msra.gmra.mrb[120].mxu0 %vm4296_vm2, %v7812_v57 }
 0x69a   :  { %11331 = vmatmul.mubr.msk.bf16.vlgmr.msra.gmra.mrb[68].mxu1 %vm4296_vm2, %v7373_v49  ;;  %11436 = vmatprep.mubr.msk.bf16.mxu0 %vm11696_vm1, %v15557_v48  ;;  %v7814_v49 = vpack.c.bf16 %v7768_v34, %v7767_v22 }
 0x69b   :  { %11334 = vmatprep.mubr.msk.bf16.mxu1 %vm11696_vm1, %v15557_v48 }
 0x69c   :  { %v6391_v10 = vpop.f32.mrb[16].mxu0 }
 0x69d   :  { %v5952_v1 = vpop.f32.mrb[220].mxu1  ;;  %v11122_v44 = vpop.f32.mrb[17].mxu0 }
 0x69e   :  { %v11020_v16 = vpop.f32.mrb[221].mxu1  ;;  %v6394_v2 = vpop.f32.mrb[18].mxu0  ;;  %v7375_v1 = vpack.c.bf16 %v7329_v35, %v7328_v47 }
 0x69f   :  { %v5955_v20 = vpop.f32.mrb[222].mxu1  ;;  %v11123_v40 = vpop.f32.mrb[19].mxu0 }
 0x6a0   :  { %v11021_v5 = vpop.f32.mrb[223].mxu1 }
 0x6a1   :  { %11437 = vmatmul.mubr.msk.bf16.gmra.mrb[124].mxu0 %vm4296_vm2, %v7813_v51 }
 0x6a2   :  { %11335 = vmatmul.mubr.msk.bf16.gmra.mrb[72].mxu1 %vm4296_vm2, %v7374_v25  ;;  %11440 = vmatprep.mubr.msk.bf16.mxu0 %vm11696_vm1, %v15557_v48  ;;  %v7330_v25 = vld [vmem:[#allocation3 + $0x4d] sm:$0xff] }
 0x6a3   :  { %11338 = vmatprep.mubr.msk.bf16.mxu1 %vm11696_vm1, %v15557_v48  ;;  %v7376_v35 = vpack.c.bf16 %v7331_v53, %v7330_v25 }
 0x6a4   :  { %v7077_v3 = vpop.f32.mrb[20].mxu0 }
 0x6a5   :  { %v6638_v62 = vpop.f32.mrb[224].mxu1  ;;  %v11230_v46 = vpop.f32.mrb[21].mxu0 }
 0x6a6   :  { %v6836_v31 = vadd.f32 %v6638_v62, %v14543_v9  ;;  %v11128_v58 = vpop.f32.mrb[225].mxu1  ;;  %v7080_v42 = vpop.f32.mrb[22].mxu0 }
 0x6a7   :  { %v6641_v57 = vpop.f32.mrb[226].mxu1  ;;  %v11231_v6 = vpop.f32.mrb[23].mxu0  ;;  %v7772_v58 = vld [vmem:[#allocation3 + $0x66] sm:$0xff] }
 0x6a8   :  { %v14797_v55 = vadd.f32 %v7077_v3, %v6836_v31  ;;  %v6837_v10 = vadd.f32 %v6641_v57, %v14549_v37  ;;  %v11129_v8 = vpop.f32.mrb[227].mxu1  ;;  %v7815_v3 = vpack.c.bf16 %v7770_v12, %v7769_v23  ;;  %v7333_v57 = vld [vmem:[#allocation3 + $0x65] sm:$0xff] }
 0x6a9   :  { %11441 = vmatmul.mubr.msk.bf16.gmra.mrb[128].mxu0 %vm4296_vm2, %v7814_v49  ;;  %v7771_v49 = vld [vmem:[#allocation3 + $0x5e] sm:$0xff] }
 0x6aa   :  { %v14801_v44 = vadd.f32 %v7080_v42, %v6837_v10  ;;  %11339 = vmatmul.mubr.msk.bf16.gmra.mrb[76].mxu1 %vm4296_vm2, %v7375_v1  ;;  %11444 = vmatprep.mubr.msk.bf16.mxu0 %vm11696_vm1, %v15557_v48  ;;  %v7332_v1 = vld [vmem:[#allocation3 + $0x5d] sm:$0xff] }
 0x6ab   :  { %11342 = vmatprep.mubr.msk.bf16.mxu1 %vm11696_vm1, %v15557_v48  ;;  %v7377_v53 = vpack.c.bf16 %v7333_v57, %v7332_v1 }
 0x6ac   :  { %v7085_v9 = vpop.f32.mrb[24].mxu0 }
 0x6ad   :  { %v6646_v16 = vpop.f32.mrb[228].mxu1  ;;  %v11234_v2 = vpop.f32.mrb[25].mxu0 }
 0x6ae   :  { %v6838_v37 = vadd.f32 %v6646_v16, %v14555_v13  ;;  %v11132_v20 = vpop.f32.mrb[229].mxu1  ;;  %v7088_v40 = vpop.f32.mrb[26].mxu0 }
 0x6af   :  { %v6649_v51 = vpop.f32.mrb[230].mxu1  ;;  %v11235_v5 = vpop.f32.mrb[27].mxu0  ;;  %v7774_v20 = vld [vmem:[#allocation3 + $0x76] sm:$0xff] }
 0x6b0   :  { %v14809_v34 = vadd.f32 %v7085_v9, %v6838_v37  ;;  %v6839_v62 = vadd.f32 %v6649_v51, %v14561_v7  ;;  %v11133_v46 = vpop.f32.mrb[231].mxu1  ;;  %v7816_v9 = vpack.c.bf16 %v7772_v58, %v7771_v49  ;;  %v7335_v51 = vld [vmem:[#allocation3 + $0x75] sm:$0xff] }
 0x6b1   :  { %11445 = vmatmul.mubr.msk.bf16.gmra.mrb[132].mxu0 %vm4296_vm2, %v7815_v3  ;;  %v7773_v3 = vld [vmem:[#allocation3 + $0x6e] sm:$0xff] }
 0x6b2   :  { %v14813_v31 = vadd.f32 %v7088_v40, %v6839_v62  ;;  %11343 = vmatmul.mubr.msk.bf16.gmra.mrb[80].mxu1 %vm4296_vm2, %v7376_v35  ;;  %11448 = vmatprep.mubr.msk.bf16.mxu0 %vm11696_vm1, %v15557_v48  ;;  %v7334_v35 = vld [vmem:[#allocation3 + $0x6d] sm:$0xff] }
 0x6b3   :  { %11346 = vmatprep.mubr.msk.bf16.mxu1 %vm11696_vm1, %v15557_v48  ;;  %v7378_v57 = vpack.c.bf16 %v7335_v51, %v7334_v35 }
 0x6b4   :  { %v7093_v13 = vpop.f32.mrb[28].mxu0 }
 0x6b5   :  { %v6654_v42 = vpop.f32.mrb[232].mxu1  ;;  %v11238_v22 = vpop.f32.mrb[29].mxu0 }
 0x6b6   :  { %v6840_v7 = vadd.f32 %v6654_v42, %v14567_v52  ;;  %v11136_v6 = vpop.f32.mrb[233].mxu1  ;;  %v7096_v47 = vpop.f32.mrb[30].mxu0 }
 0x6b7   :  { %v6657_v10 = vpop.f32.mrb[234].mxu1  ;;  %v11239_v8 = vpop.f32.mrb[31].mxu0  ;;  %v7776_v6 = vld [vmem:[#allocation3 + $0x86] sm:$0xff] }
 0x6b8   :  { %v14821_v12 = vadd.f32 %v7093_v13, %v6840_v7  ;;  %v6841_v16 = vadd.f32 %v6657_v10, %v14573_v24  ;;  %v11137_v2 = vpop.f32.mrb[235].mxu1  ;;  %v7817_v13 = vpack.c.bf16 %v7774_v20, %v7773_v3  ;;  %v7337_v10 = vld [vmem:[#allocation3 + $0x85] sm:$0xff] }
 0x6b9   :  { %11449 = vmatmul.mubr.msk.bf16.gmra.mrb[136].mxu0 %vm4296_vm2, %v7816_v9  ;;  %v7775_v9 = vld [vmem:[#allocation3 + $0x7e] sm:$0xff] }
 0x6ba   :  { %v14825_v37 = vadd.f32 %v7096_v47, %v6841_v16  ;;  %11347 = vmatmul.mubr.msk.bf16.gmra.mrb[84].mxu1 %vm4296_vm2, %v7377_v53  ;;  %11452 = vmatprep.mubr.msk.bf16.mxu0 %vm11696_vm1, %v15557_v48  ;;  %v7336_v53 = vld [vmem:[#allocation3 + $0x7d] sm:$0xff] }
 0x6bb   :  { %11350 = vmatprep.mubr.msk.bf16.mxu1 %vm11696_vm1, %v15557_v48  ;;  %v7379_v51 = vpack.c.bf16 %v7337_v10, %v7336_v53 }
 0x6bc   :  { %v7101_v52 = vpop.f32.mrb[32].mxu0 }
 0x6bd   :  { %v6662_v40 = vpop.f32.mrb[236].mxu1  ;;  %v11242_v23 = vpop.f32.mrb[33].mxu0 }
 0x6be   :  { %v6842_v24 = vadd.f32 %v6662_v40, %v14579_v59  ;;  %v11140_v5 = vpop.f32.mrb[237].mxu1  ;;  %v7104_v25 = vpop.f32.mrb[34].mxu0 }
 0x6bf   :  { %v6665_v62 = vpop.f32.mrb[238].mxu1  ;;  %v11243_v46 = vpop.f32.mrb[35].mxu0  ;;  %v7778_v5 = vld [vmem:[#allocation3 + $0x96] sm:$0xff] }
 0x6c0   :  { %v14833_v58 = vadd.f32 %v7101_v52, %v6842_v24  ;;  %v6843_v42 = vadd.f32 %v6665_v62, %v14585_v19  ;;  %v11141_v22 = vpop.f32.mrb[239].mxu1  ;;  %v7818_v52 = vpack.c.bf16 %v7776_v6, %v7775_v9  ;;  %v7339_v62 = vld [vmem:[#allocation3 + $0x95] sm:$0xff] }
 0x6c1   :  { %11453 = vmatmul.mubr.msk.bf16.gmra.mrb[140].mxu0 %vm4296_vm2, %v7817_v13  ;;  %v7777_v13 = vld [vmem:[#allocation3 + $0x8e] sm:$0xff] }
 0x6c2   :  { %v14837_v7 = vadd.f32 %v7104_v25, %v6843_v42  ;;  %11351 = vmatmul.mubr.msk.bf16.gmra.mrb[88].mxu1 %vm4296_vm2, %v7378_v57  ;;  %11456 = vmatprep.mubr.msk.bf16.mxu0 %vm11696_vm1, %v15557_v48  ;;  %v7338_v57 = vld [vmem:[#allocation3 + $0x8d] sm:$0xff] }
 0x6c3   :  { %11354 = vmatprep.mubr.msk.bf16.mxu1 %vm11696_vm1, %v15557_v48  ;;  %v7380_v10 = vpack.c.bf16 %v7339_v62, %v7338_v57 }
 0x6c4   :  { %v7109_v59 = vpop.f32.mrb[36].mxu0 }
 0x6c5   :  { %v6670_v47 = vpop.f32.mrb[240].mxu1  ;;  %v11246_v49 = vpop.f32.mrb[37].mxu0 }
 0x6c6   :  { %v6844_v19 = vadd.f32 %v6670_v47, %v14591_v26  ;;  %v11144_v8 = vpop.f32.mrb[241].mxu1  ;;  %v7112_v1 = vpop.f32.mrb[38].mxu0 }
 0x6c7   :  { %v6673_v16 = vpop.f32.mrb[242].mxu1  ;;  %v11247_v2 = vpop.f32.mrb[39].mxu0  ;;  %v7780_v8 = vld [vmem:[#allocation3 + $0xa6] sm:$0xff] }
 0x6c8   :  { %v14845_v20 = vadd.f32 %v7109_v59, %v6844_v19  ;;  %v6845_v40 = vadd.f32 %v6673_v16, %v14597_v63  ;;  %v11145_v23 = vpop.f32.mrb[243].mxu1  ;;  %v7819_v59 = vpack.c.bf16 %v7778_v5, %v7777_v13  ;;  %v7341_v16 = vld [vmem:[#allocation3 + $0xa5] sm:$0xff] }
 0x6c9   :  { %11457 = vmatmul.mubr.msk.bf16.gmra.mrb[144].mxu0 %vm4296_vm2, %v7818_v52  ;;  %v7779_v52 = vld [vmem:[#allocation3 + $0x9e] sm:$0xff] }
 0x6ca   :  { %v14849_v24 = vadd.f32 %v7112_v1, %v6845_v40  ;;  %11355 = vmatmul.mubr.msk.bf16.gmra.mrb[92].mxu1 %vm4296_vm2, %v7379_v51  ;;  %11460 = vmatprep.mubr.msk.bf16.mxu0 %vm11696_vm1, %v15557_v48  ;;  %v7340_v51 = vld [vmem:[#allocation3 + $0x9d] sm:$0xff] }
 0x6cb   :  { %11358 = vmatprep.mubr.msk.bf16.mxu1 %vm11696_vm1, %v15557_v48  ;;  %v7381_v62 = vpack.c.bf16 %v7341_v16, %v7340_v51 }
 0x6cc   :  { %v7117_v26 = vpop.f32.mrb[40].mxu0 }
 0x6cd   :  { %v6678_v25 = vpop.f32.mrb[244].mxu1  ;;  %v11250_v3 = vpop.f32.mrb[41].mxu0 }
 0x6ce   :  { %v6846_v63 = vadd.f32 %v6678_v25, %v14603_v43  ;;  %v11148_v46 = vpop.f32.mrb[245].mxu1  ;;  %v7120_v35 = vpop.f32.mrb[42].mxu0 }
 0x6cf   :  { %v6681_v42 = vpop.f32.mrb[246].mxu1  ;;  %v11251_v22 = vpop.f32.mrb[43].mxu0  ;;  %v7782_v46 = vld [vmem:[#allocation3 + $0xb6] sm:$0xff] }
 0x6d0   :  { %v14857_v6 = vadd.f32 %v7117_v26, %v6846_v63  ;;  %v6847_v47 = vadd.f32 %v6681_v42, %v14609_v18  ;;  %v11149_v49 = vpop.f32.mrb[247].mxu1  ;;  %v7820_v26 = vpack.c.bf16 %v7780_v8, %v7779_v52  ;;  %v7343_v42 = vld [vmem:[#allocation3 + $0xb5] sm:$0xff] }
 0x6d1   :  { %11461 = vmatmul.mubr.msk.bf16.gmra.mrb[148].mxu0 %vm4296_vm2, %v7819_v59  ;;  %v7781_v59 = vld [vmem:[#allocation3 + $0xae] sm:$0xff] }
 0x6d2   :  { %v14861_v19 = vadd.f32 %v7120_v35, %v6847_v47  ;;  %11359 = vmatmul.mubr.msk.bf16.gmra.mrb[96].mxu1 %vm4296_vm2, %v7380_v10  ;;  %11464 = vmatprep.mubr.msk.bf16.mxu0 %vm11696_vm1, %v15557_v48  ;;  %v7342_v10 = vld [vmem:[#allocation3 + $0xad] sm:$0xff] }
 0x6d3   :  { %11362 = vmatprep.mubr.msk.bf16.mxu1 %vm11696_vm1, %v15557_v48  ;;  %v7382_v16 = vpack.c.bf16 %v7343_v42, %v7342_v10  ;;  %v7786_v42 = vld [vmem:[#allocation3 + $0xd6] sm:$0xff] }
 0x6d4   :  { %v7125_v43 = vpop.f32.mrb[44].mxu0 }
 0x6d5   :  { %v6686_v1 = vpop.f32.mrb[248].mxu1  ;;  %v11254_v9 = vpop.f32.mrb[45].mxu0 }
 0x6d6   :  { %v6848_v18 = vadd.f32 %v6686_v1, %v14615_v54  ;;  %v11152_v2 = vpop.f32.mrb[249].mxu1  ;;  %v7128_v53 = vpop.f32.mrb[46].mxu0 }
 0x6d7   :  { %v6689_v40 = vpop.f32.mrb[250].mxu1  ;;  %v11255_v23 = vpop.f32.mrb[47].mxu0  ;;  %v7784_v2 = vld [vmem:[#allocation3 + $0xc6] sm:$0xff] }
 0x6d8   :  { %v14869_v5 = vadd.f32 %v7125_v43, %v6848_v18  ;;  %v6849_v25 = vadd.f32 %v6689_v40, %v14621_v38  ;;  %v11153_v3 = vpop.f32.mrb[251].mxu1  ;;  %v7821_v43 = vpack.c.bf16 %v7782_v46, %v7781_v59  ;;  %v7345_v40 = vld [vmem:[#allocation3 + $0xc5] sm:$0xff] }
 0x6d9   :  { %11465 = vmatmul.mubr.msk.bf16.gmra.mrb[152].mxu0 %vm4296_vm2, %v7820_v26  ;;  %v7783_v26 = vld [vmem:[#allocation3 + $0xbe] sm:$0xff] }
 0x6da   :  { %v14873_v63 = vadd.f32 %v7128_v53, %v6849_v25  ;;  %11363 = vmatmul.mubr.msk.bf16.gmra.mrb[100].mxu1 %vm4296_vm2, %v7381_v62  ;;  %11468 = vmatprep.mubr.msk.bf16.mxu0 %vm11696_vm1, %v15557_v48  ;;  %v7344_v62 = vld [vmem:[#allocation3 + $0xbd] sm:$0xff] }
 0x6db   :  { %11366 = vmatprep.mubr.msk.bf16.mxu1 %vm11696_vm1, %v15557_v48 }
 0x6dc   :  { %v7133_v54 = vpop.f32.mrb[48].mxu0 }
 0x6dd   :  { %v6694_v35 = vpop.f32.mrb[252].mxu1  ;;  %v11258_v13 = vpop.f32.mrb[49].mxu0 }
 0x6de   :  { %v6850_v38 = vadd.f32 %v6694_v35, %v14627_v50  ;;  %v11156_v22 = vpop.f32.mrb[253].mxu1  ;;  %v7136_v57 = vpop.f32.mrb[50].mxu0  ;;  %v7383_v13 = vpack.c.bf16 %v7345_v40, %v7344_v62  ;;  %v7348_v62 = vld [vmem:[#allocation3 + $0xdd] sm:$0xff] }
 0x6df   :  { %v6697_v47 = vpop.f32.mrb[254].mxu1  ;;  %v11259_v49 = vpop.f32.mrb[51].mxu0 }
 0x6e0   :  { %v14881_v8 = vadd.f32 %v7133_v54, %v6850_v38  ;;  %v6851_v1 = vadd.f32 %v6697_v47, %v14633_v11  ;;  %v11157_v9 = vpop.f32.mrb[255].mxu1  ;;  %v7822_v54 = vpack.c.bf16 %v7784_v2, %v7783_v26  ;;  %v7785_v49 = vld [vmem:[#allocation3 + $0xce] sm:$0xff]  ;;  %v7787_v26 = vld [vmem:[#allocation3 + $0xde] sm:$0xff] }
 0x6e1   :  { %11469 = vmatmul.mubr.msk.bf16.gmra.mrb[156].mxu0 %vm4296_vm2, %v7821_v43  ;;  %v7823_v9 = vpack.c.bf16 %v7786_v42, %v7785_v49  ;;  %v7790_v42 = vld [vmem:[#allocation3 + $0xf6] sm:$0xff]  ;;  %v7789_v49 = vld [vmem:[#allocation3 + $0xee] sm:$0xff] }
 0x6e2   :  { %v14885_v18 = vadd.f32 %v7136_v57, %v6851_v1  ;;  %11367 = vmatmul.mubr.msk.bf16.gmra.mrb[104].mxu1 %vm4296_vm2, %v7382_v16  ;;  %11472 = vmatprep.mubr.msk.bf16.mxu0 %vm11696_vm1, %v15557_v48  ;;  %v7347_v57 = vld [vmem:[#allocation3 + $0xd5] sm:$0xff]  ;;  %v7346_v1 = vld [vmem:[#allocation3 + $0xcd] sm:$0xff] }
 0x6e3   :  { %11370 = vmatprep.mubr.msk.bf16.mxu1 %vm11696_vm1, %v15557_v48 }
 0x6e4   :  { %v7141_v50 = vpop.f32.mrb[52].mxu0 }
 0x6e5   :  { %v6702_v53 = vpop.f32.mrb[0].mxu1  ;;  %v11262_v52 = vpop.f32.mrb[53].mxu0 }
 0x6e6   :  { %v6852_v11 = vadd.f32 %v6702_v53, %v14638_v4  ;;  %v11160_v23 = vpop.f32.mrb[1].mxu1  ;;  %v7144_v51 = vpop.f32.mrb[54].mxu0  ;;  %v7788_v53 = vld [vmem:[#allocation3 + $0xe6] sm:$0xff] }
 0x6e7   :  { %v6705_v25 = vpop.f32.mrb[2].mxu1  ;;  %v11263_v3 = vpop.f32.mrb[55].mxu0 }
 0x6e8   :  { %v14893_v46 = vadd.f32 %v7141_v50, %v6852_v11  ;;  %v11161_v35 = vpop.f32.mrb[3].mxu1  ;;  %v7384_v50 = vpack.c.bf16 %v7347_v57, %v7346_v1  ;;  %v7349_v11 = vld [vmem:[#allocation3 + $0xe5] sm:$0xff]  ;;  %v7351_v57 = vld [vmem:[#allocation3 + $0xf5] sm:$0xff]  ;;  %v7350_v1 = vld [vmem:[#allocation3 + $0xed] sm:$0xff] }
 0x6e9   :  { %11473 = vmatmul.mubr.msk.bf16.gmra.mrb[160].mxu0 %vm4296_vm2, %v7822_v54  ;;  %v7824_v54 = vpack.c.bf16 %v7788_v53, %v7787_v26  ;;  %v7792_v53 = vld [vmem:[#allocation3 + $0x106] sm:$0xff] }
 0x6ea   :  { %11371 = vmatmul.mubr.msk.bf16.gmra.mrb[108].mxu1 %vm4296_vm2, %v7383_v13  ;;  %11476 = vmatprep.mubr.msk.bf16.mxu0 %vm11696_vm1, %v15557_v48  ;;  %v7385_v13 = vpack.c.bf16 %v7349_v11, %v7348_v62  ;;  %v7353_v11 = vld [vmem:[#allocation3 + $0x105] sm:$0xff] }
 0x6eb   :  { %11374 = vmatprep.mubr.msk.bf16.mxu1 %vm11696_vm1, %v15557_v48 }
 0x6ec   :  { %v7149_v4 = vpop.f32.mrb[56].mxu0 }
 0x6ed   :  { %v6710_v38 = vpop.f32.mrb[4].mxu1  ;;  %v11266_v22 = vpop.f32.mrb[57].mxu0 }
 0x6ee   :  { %v11164_v59 = vpop.f32.mrb[5].mxu1  ;;  %v7152_v47 = vpop.f32.mrb[58].mxu0 }
 0x6ef   :  { %v6713_v10 = vpop.f32.mrb[6].mxu1  ;;  %v11267_v43 = vpop.f32.mrb[59].mxu0 }
 0x6f0   :  { %v11165_v16 = vpop.f32.mrb[7].mxu1 }
 0x6f1   :  { %11477 = vmatmul.mubr.msk.bf16.gmra.mrb[164].mxu0 %vm4296_vm2, %v7823_v9  ;;  %v7825_v9 = vpack.c.bf16 %v7790_v42, %v7789_v49  ;;  %v7355_v49 = vld [vmem:[#allocation3 + $0x115] sm:$0xff] }
 0x6f2   :  { %11375 = vmatmul.mubr.msk.bf16.gmra.mrb[112].mxu1 %vm4296_vm2, %v7384_v50  ;;  %11480 = vmatprep.mubr.msk.bf16.mxu0 %vm11696_vm1, %v15557_v48  ;;  %v7386_v50 = vpack.c.bf16 %v7351_v57, %v7350_v1  ;;  %v7794_v57 = vld [vmem:[#allocation3 + $0x116] sm:$0xff]  ;;  %v7793_v1 = vld [vmem:[#allocation3 + $0x10e] sm:$0xff] }
 0x6f3   :  { %11378 = vmatprep.mubr.msk.bf16.mxu1 %vm11696_vm1, %v15557_v48 }
 0x6f4   :  { %v7157_v2 = vpop.f32.mrb[60].mxu0 }
 0x6f5   :  { %v6718_v52 = vpop.f32.mrb[8].mxu1  ;;  %v11270_v40 = vpop.f32.mrb[61].mxu0 }
 0x6f6   :  { %v11168_v23 = vpop.f32.mrb[9].mxu1  ;;  %v7160_v51 = vpop.f32.mrb[62].mxu0 }
 0x6f7   :  { %v6721_v25 = vpop.f32.mrb[10].mxu1  ;;  %v11271_v3 = vpop.f32.mrb[63].mxu0 }
 0x6f8   :  { %v11169_v35 = vpop.f32.mrb[11].mxu1  ;;  %v7791_v25 = vld [vmem:[#allocation3 + $0xfe] sm:$0xff] }
 0x6f9   :  { %11481 = vmatmul.mubr.msk.bf16.gmra.mrb[168].mxu0 %vm4296_vm2, %v7824_v54  ;;  %v7352_v54 = vld [vmem:[#allocation3 + $0xfd] sm:$0xff]  ;;  %v7826_v35 = vpack.c.bf16 %v7792_v53, %v7791_v25 }
 0x6fa   :  { %11379 = vmatmul.mubr.msk.bf16.gmra.mrb[116].mxu1 %vm4296_vm2, %v7385_v13  ;;  %11484 = vmatprep.mubr.msk.bf16.mxu0 %vm11696_vm1, %v15557_v48 }
 0x6fb   :  { %11382 = vmatprep.mubr.msk.bf16.mxu1 %vm11696_vm1, %v15557_v48 }
 0x6fc   :  { %v7165_v4 = vpop.f32.mrb[64].mxu0 }
 0x6fd   :  { %v6726_v38 = vpop.f32.mrb[12].mxu1  ;;  %v11274_v22 = vpop.f32.mrb[65].mxu0 }
 0x6fe   :  { %v11172_v59 = vpop.f32.mrb[13].mxu1  ;;  %v7168_v47 = vpop.f32.mrb[66].mxu0  ;;  %v7387_v38 = vpack.c.bf16 %v7353_v11, %v7352_v54 }
 0x6ff   :  { %v6729_v10 = vpop.f32.mrb[14].mxu1  ;;  %v11275_v43 = vpop.f32.mrb[67].mxu0 }
 0x700   :  { %v11173_v16 = vpop.f32.mrb[15].mxu1 }
 0x701   :  { %11485 = vmatmul.mubr.msk.bf16.gmra.mrb[172].mxu0 %vm4296_vm2, %v7825_v9 }
 0x702   :  { %11383 = vmatmul.mubr.msk.bf16.gmra.mrb[120].mxu1 %vm4296_vm2, %v7386_v50  ;;  %11488 = vmatprep.mubr.msk.bf16.mxu0 %vm11696_vm1, %v15557_v48  ;;  %v7354_v50 = vld [vmem:[#allocation3 + $0x10d] sm:$0xff] }
 0x703   :  { %11386 = vmatprep.mubr.msk.bf16.mxu1 %vm11696_vm1, %v15557_v48  ;;  %v7388_v11 = vpack.c.bf16 %v7355_v49, %v7354_v50 }
 0x704   :  { %v7173_v2 = vpop.f32.mrb[68].mxu0 }
 0x705   :  { %v6734_v52 = vpop.f32.mrb[16].mxu1  ;;  %v11278_v40 = vpop.f32.mrb[69].mxu0 }
 0x706   :  { %v6860_v23 = vadd.f32 %v6734_v52, %v14665_v17  ;;  %v11176_v51 = vpop.f32.mrb[17].mxu1  ;;  %v7176_v26 = vpop.f32.mrb[70].mxu0 }
 0x707   :  { %v6737_v3 = vpop.f32.mrb[18].mxu1  ;;  %v11279_v62 = vpop.f32.mrb[71].mxu0  ;;  %v7796_v51 = vld [vmem:[#allocation3 + $0x126] sm:$0xff] }
 0x708   :  { %v14920_v13 = vadd.f32 %v7173_v2, %v6860_v23  ;;  %v6861_v4 = vadd.f32 %v6737_v3, %v14669_v45  ;;  %v11177_v42 = vpop.f32.mrb[19].mxu1  ;;  %v7827_v2 = vpack.c.bf16 %v7794_v57, %v7793_v1  ;;  %v7357_v3 = vld [vmem:[#allocation3 + $0x125] sm:$0xff] }
 0x709   :  { %11489 = vmatmul.mubr.msk.bf16.gmra.mrb[176].mxu0 %vm4296_vm2, %v7826_v35  ;;  %v7795_v35 = vld [vmem:[#allocation3 + $0x11e] sm:$0xff] }
 0x70a   :  { %v14924_v22 = vadd.f32 %v7176_v26, %v6861_v4  ;;  %11387 = vmatmul.mubr.msk.bf16.gmra.mrb[124].mxu1 %vm4296_vm2, %v7387_v38  ;;  %11492 = vmatprep.mubr.msk.bf16.mxu0 %vm11696_vm1, %v15557_v48  ;;  %v7356_v38 = vld [vmem:[#allocation3 + $0x11d] sm:$0xff] }
 0x70b   :  { %11390 = vmatprep.mubr.msk.bf16.mxu1 %vm11696_vm1, %v15557_v48  ;;  %v7389_v49 = vpack.c.bf16 %v7357_v3, %v7356_v38 }
 0x70c   :  { %v7181_v17 = vpop.f32.mrb[72].mxu0 }
 0x70d   :  { %v6742_v59 = vpop.f32.mrb[20].mxu1  ;;  %v11282_v47 = vpop.f32.mrb[73].mxu0 }
 0x70e   :  { %v6862_v45 = vadd.f32 %v6742_v59, %v14677_v30  ;;  %v11180_v10 = vpop.f32.mrb[21].mxu1  ;;  %v7184_v43 = vpop.f32.mrb[74].mxu0 }
 0x70f   :  { %v6745_v9 = vpop.f32.mrb[22].mxu1  ;;  %v11283_v16 = vpop.f32.mrb[75].mxu0  ;;  %v7797_v10 = vld [vmem:[#allocation3 + $0x12e] sm:$0xff] }
 0x710   :  { %v14932_v53 = vadd.f32 %v7181_v17, %v6862_v45  ;;  %v6863_v52 = vadd.f32 %v6745_v9, %v14681_v41  ;;  %v11181_v40 = vpop.f32.mrb[23].mxu1  ;;  %v7828_v17 = vpack.c.bf16 %v7796_v51, %v7795_v35  ;;  %v7358_v9 = vld [vmem:[#allocation3 + $0x12d] sm:$0xff] }
 0x711   :  { %11493 = vmatmul.mubr.msk.bf16.gmra.mrb[180].mxu0 %vm4296_vm2, %v7827_v2  ;;  %v7798_v2 = vld [vmem:[#allocation3 + $0x136] sm:$0xff] }
 0x712   :  { %v14936_v23 = vadd.f32 %v7184_v43, %v6863_v52  ;;  %11391 = vmatmul.mubr.msk.bf16.gmra.mrb[128].mxu1 %vm4296_vm2, %v7388_v11  ;;  %11496 = vmatprep.mubr.msk.bf16.mxu0 %vm11696_vm1, %v15557_v48  ;;  %v7359_v11 = vld [vmem:[#allocation3 + $0x135] sm:$0xff] }
 0x713   :  { %11394 = vmatprep.mubr.msk.bf16.mxu1 %vm11696_vm1, %v15557_v48  ;;  %v7390_v3 = vpack.c.bf16 %v7359_v11, %v7358_v9 }
 0x714   :  { %v7189_v30 = vpop.f32.mrb[76].mxu0 }
 0x715   :  { %v6750_v26 = vpop.f32.mrb[24].mxu1  ;;  %v11286_v25 = vpop.f32.mrb[77].mxu0 }
 0x716   :  { %v6864_v41 = vadd.f32 %v6750_v26, %v14689_v15  ;;  %v11184_v62 = vpop.f32.mrb[25].mxu1  ;;  %v7192_v54 = vpop.f32.mrb[78].mxu0 }
 0x717   :  { %v6753_v4 = vpop.f32.mrb[26].mxu1  ;;  %v11287_v42 = vpop.f32.mrb[79].mxu0  ;;  %v7800_v62 = vld [vmem:[#allocation3 + $0x146] sm:$0xff] }
 0x718   :  { %v14944_v57 = vadd.f32 %v7189_v30, %v6864_v41  ;;  %v6865_v59 = vadd.f32 %v6753_v4, %v14693_v56  ;;  %v11185_v47 = vpop.f32.mrb[27].mxu1  ;;  %v7829_v30 = vpack.c.bf16 %v7798_v2, %v7797_v10  ;;  %v7361_v4 = vld [vmem:[#allocation3 + $0x145] sm:$0xff] }
 0x719   :  { %11497 = vmatmul.mubr.msk.bf16.gmra.mrb[184].mxu0 %vm4296_vm2, %v7828_v17  ;;  %v7799_v17 = vld [vmem:[#allocation3 + $0x13e] sm:$0xff] }
 0x71a   :  { %v14948_v45 = vadd.f32 %v7192_v54, %v6865_v59  ;;  %11395 = vmatmul.mubr.msk.bf16.gmra.mrb[132].mxu1 %vm4296_vm2, %v7389_v49  ;;  %11500 = vmatprep.mubr.msk.bf16.mxu0 %vm11696_vm1, %v15557_v48  ;;  %v7360_v49 = vld [vmem:[#allocation3 + $0x13d] sm:$0xff] }
 0x71b   :  { %11398 = vmatprep.mubr.msk.bf16.mxu1 %vm11696_vm1, %v15557_v48  ;;  %v7391_v9 = vpack.c.bf16 %v7361_v4, %v7360_v49 }
 0x71c   :  { %v7197_v15 = vpop.f32.mrb[80].mxu0 }
 0x71d   :  { %v6758_v43 = vpop.f32.mrb[28].mxu1  ;;  %v11290_v1 = vpop.f32.mrb[81].mxu0 }
 0x71e   :  { %v6866_v56 = vadd.f32 %v6758_v43, %v14701_v28  ;;  %v11188_v16 = vpop.f32.mrb[29].mxu1  ;;  %v7200_v50 = vpop.f32.mrb[82].mxu0 }
 0x71f   :  { %v6761_v52 = vpop.f32.mrb[30].mxu1  ;;  %v11291_v40 = vpop.f32.mrb[83].mxu0  ;;  %v7802_v16 = vld [vmem:[#allocation3 + $0x156] sm:$0xff] }
 0x720   :  { %v14956_v51 = vadd.f32 %v7197_v15, %v6866_v56  ;;  %v6867_v26 = vadd.f32 %v6761_v52, %v14705_v21  ;;  %v11189_v25 = vpop.f32.mrb[31].mxu1  ;;  %v7830_v15 = vpack.c.bf16 %v7800_v62, %v7799_v17  ;;  %v7363_v52 = vld [vmem:[#allocation3 + $0x155] sm:$0xff] }
 0x721   :  { %11501 = vmatmul.mubr.msk.bf16.gmra.mrb[188].mxu0 %vm4296_vm2, %v7829_v30  ;;  %v7801_v30 = vld [vmem:[#allocation3 + $0x14e] sm:$0xff] }
 0x722   :  { %v14960_v41 = vadd.f32 %v7200_v50, %v6867_v26  ;;  %11399 = vmatmul.mubr.msk.bf16.gmra.mrb[136].mxu1 %vm4296_vm2, %v7390_v3  ;;  %11504 = vmatprep.mubr.msk.bf16.mxu0 %vm11696_vm1, %v15557_v48  ;;  %v7362_v3 = vld [vmem:[#allocation3 + $0x14d] sm:$0xff] }
 0x723   :  { %11402 = vmatprep.mubr.msk.bf16.mxu1 %vm11696_vm1, %v15557_v48  ;;  %v7392_v4 = vpack.c.bf16 %v7363_v52, %v7362_v3 }
 0x724   :  { %v7205_v28 = vpop.f32.mrb[84].mxu0 }
 0x725   :  { %v6766_v54 = vpop.f32.mrb[32].mxu1  ;;  %v11294_v35 = vpop.f32.mrb[85].mxu0 }
 0x726   :  { %v6868_v21 = vadd.f32 %v6766_v54, %v14713_v0  ;;  %v11192_v42 = vpop.f32.mrb[33].mxu1  ;;  %v7208_v38 = vpop.f32.mrb[86].mxu0 }
 0x727   :  { %v6769_v59 = vpop.f32.mrb[34].mxu1  ;;  %v11295_v47 = vpop.f32.mrb[87].mxu0  ;;  %v7804_v42 = vld [vmem:[#allocation3 + $0x166] sm:$0xff] }
 0x728   :  { %v14968_v10 = vadd.f32 %v7205_v28, %v6868_v21  ;;  %v6869_v43 = vadd.f32 %v6769_v59, %v14717_v29  ;;  %v11193_v1 = vpop.f32.mrb[35].mxu1  ;;  %v7831_v28 = vpack.c.bf16 %v7802_v16, %v7801_v30  ;;  %v7365_v59 = vld [vmem:[#allocation3 + $0x165] sm:$0xff] }
 0x729   :  { %11505 = vmatmul.mubr.msk.bf16.gmra.mrb[192].mxu0 %vm4296_vm2, %v7830_v15  ;;  %v7803_v15 = vld [vmem:[#allocation3 + $0x15e] sm:$0xff] }
 0x72a   :  { %v14972_v56 = vadd.f32 %v7208_v38, %v6869_v43  ;;  %11403 = vmatmul.mubr.msk.bf16.gmra.mrb[140].mxu1 %vm4296_vm2, %v7391_v9  ;;  %11508 = vmatprep.mubr.msk.bf16.mxu0 %vm11696_vm1, %v15557_v48  ;;  %v7364_v9 = vld [vmem:[#allocation3 + $0x15d] sm:$0xff] }
 0x72b   :  { %11406 = vmatprep.mubr.msk.bf16.mxu1 %vm11696_vm1, %v15557_v48  ;;  %v7393_v52 = vpack.c.bf16 %v7365_v59, %v7364_v9 }
 0x72c   :  { %v7213_v0 = vpop.f32.mrb[88].mxu0 }
 0x72d   :  { %v6774_v50 = vpop.f32.mrb[36].mxu1  ;;  %v11298_v2 = vpop.f32.mrb[89].mxu0 }
 0x72e   :  { %v6870_v29 = vadd.f32 %v6774_v50, %v14725_v33  ;;  %v11196_v40 = vpop.f32.mrb[37].mxu1  ;;  %v7216_v11 = vpop.f32.mrb[90].mxu0 }
 0x72f   :  { %v6777_v26 = vpop.f32.mrb[38].mxu1  ;;  %v11299_v25 = vpop.f32.mrb[91].mxu0  ;;  %v7806_v40 = vld [vmem:[#allocation3 + $0x176] sm:$0xff] }
 0x730   :  { %v14980_v62 = vadd.f32 %v7213_v0, %v6870_v29  ;;  %v6871_v54 = vadd.f32 %v6777_v26, %v14729_v60  ;;  %v11197_v35 = vpop.f32.mrb[39].mxu1  ;;  %v7832_v0 = vpack.c.bf16 %v7804_v42, %v7803_v15  ;;  %v7367_v26 = vld [vmem:[#allocation3 + $0x175] sm:$0xff] }
 0x731   :  { %11509 = vmatmul.mubr.msk.bf16.gmra.mrb[196].mxu0 %vm4296_vm2, %v7831_v28  ;;  %v7805_v28 = vld [vmem:[#allocation3 + $0x16e] sm:$0xff] }
 0x732   :  { %v14984_v21 = vadd.f32 %v7216_v11, %v6871_v54  ;;  %11407 = vmatmul.mubr.msk.bf16.gmra.mrb[144].mxu1 %vm4296_vm2, %v7392_v4  ;;  %11512 = vmatprep.mubr.msk.bf16.mxu0 %vm11696_vm1, %v15557_v48  ;;  %v7366_v4 = vld [vmem:[#allocation3 + $0x16d] sm:$0xff] }
 0x733   :  { %11410 = vmatprep.mubr.msk.bf16.mxu1 %vm11696_vm1, %v15557_v48  ;;  %v7394_v59 = vpack.c.bf16 %v7367_v26, %v7366_v4  ;;  %v7809_v4 = vld [vmem:[#allocation3 + $0x18e] sm:$0xff] }
 0x734   :  { %v7221_v33 = vpop.f32.mrb[92].mxu0 }
 0x735   :  { %v6782_v38 = vpop.f32.mrb[40].mxu1  ;;  %v11302_v17 = vpop.f32.mrb[93].mxu0 }
 0x736   :  { %v6872_v60 = vadd.f32 %v6782_v38, %v14737_v14  ;;  %v11200_v47 = vpop.f32.mrb[41].mxu1  ;;  %v7224_v49 = vpop.f32.mrb[94].mxu0 }
 0x737   :  { %v6785_v43 = vpop.f32.mrb[42].mxu1  ;;  %v11303_v1 = vpop.f32.mrb[95].mxu0  ;;  %v7808_v47 = vld [vmem:[#allocation3 + $0x186] sm:$0xff] }
 0x738   :  { %v14992_v16 = vadd.f32 %v7221_v33, %v6872_v60  ;;  %v6873_v50 = vadd.f32 %v6785_v43, %v14741_v61  ;;  %v11201_v2 = vpop.f32.mrb[43].mxu1  ;;  %v7833_v33 = vpack.c.bf16 %v7806_v40, %v7805_v28  ;;  %v7369_v43 = vld [vmem:[#allocation3 + $0x185] sm:$0xff] }
 0x739   :  { %11513 = vmatmul.mubr.msk.bf16.gmra.mrb[200].mxu0 %vm4296_vm2, %v7832_v0  ;;  %v7807_v0 = vld [vmem:[#allocation3 + $0x17e] sm:$0xff] }
 0x73a   :  { %v14996_v29 = vadd.f32 %v7224_v49, %v6873_v50  ;;  %11411 = vmatmul.mubr.msk.bf16.gmra.mrb[148].mxu1 %vm4296_vm2, %v7393_v52  ;;  %11516 = vmatprep.mubr.msk.bf16.mxu0 %vm11696_vm1, %v15557_v48  ;;  %v7368_v52 = vld [vmem:[#allocation3 + $0x17d] sm:$0xff] }
 0x73b   :  { %11414 = vmatprep.mubr.msk.bf16.mxu1 %vm11696_vm1, %v15557_v48  ;;  %v7395_v26 = vpack.c.bf16 %v7369_v43, %v7368_v52 }
 0x73c   :  { %v7229_v14 = vpop.f32.mrb[96].mxu0 }
 0x73d   :  { %v6790_v11 = vpop.f32.mrb[44].mxu1  ;;  %v11306_v30 = vpop.f32.mrb[97].mxu0 }
 0x73e   :  { %v6874_v61 = vadd.f32 %v6790_v11, %v14749_v36  ;;  %v11204_v25 = vpop.f32.mrb[45].mxu1  ;;  %v7232_v3 = vpop.f32.mrb[98].mxu0 }
 0x73f   :  { %v6793_v54 = vpop.f32.mrb[46].mxu1  ;;  %v11307_v35 = vpop.f32.mrb[99].mxu0  ;;  %v7810_v25 = vld [vmem:[#allocation3 + $0x196] sm:$0xff] }
 0x740   :  { %v15004_v42 = vadd.f32 %v7229_v14, %v6874_v61  ;;  %v6875_v38 = vadd.f32 %v6793_v54, %v14753_v39  ;;  %v11205_v17 = vpop.f32.mrb[47].mxu1  ;;  %v7834_v14 = vpack.c.bf16 %v7808_v47, %v7807_v0  ;;  %v7371_v54 = vld [vmem:[#allocation3 + $0x195] sm:$0xff] }
 0x741   :  { %11517 = vmatmul.mubr.msk.bf16.gmra.mrb[204].mxu0 %vm4296_vm2, %v7833_v33  ;;  %v7370_v17 = vld [vmem:[#allocation3 + $0x18d] sm:$0xff] }
 0x742   :  { %v15008_v60 = vadd.f32 %v7232_v3, %v6875_v38  ;;  %11415 = vmatmul.mubr.msk.bf16.gmra.mrb[152].mxu1 %vm4296_vm2, %v7394_v59  ;;  %11520 = vmatprep.mubr.msk.bf16.mxu0 %vm11696_vm1, %v15557_v48  ;;  %v7835_v59 = vpack.c.bf16 %v7810_v25, %v7809_v4  ;;  %v7396_v47 = vpack.c.bf16 %v7371_v54, %v7370_v17 }
 0x743   :  { %11418 = vmatprep.mubr.msk.bf16.mxu1 %vm11696_vm1, %v15557_v48 }
 0x744   :  { %v7237_v36 = vpop.f32.mrb[100].mxu0 }
 0x745   :  { %v6798_v49 = vpop.f32.mrb[48].mxu1  ;;  %v11310_v15 = vpop.f32.mrb[101].mxu0 }
 0x746   :  { %v6876_v39 = vadd.f32 %v6798_v49, %v14761_v27  ;;  %v11208_v1 = vpop.f32.mrb[49].mxu1  ;;  %v7240_v9 = vpop.f32.mrb[102].mxu0  ;;  %v7811_v15 = vld [vmem:[#allocation3 + $0x19e] sm:$0xff] }
 0x747   :  { %v6801_v50 = vpop.f32.mrb[50].mxu1  ;;  %v11311_v2 = vpop.f32.mrb[103].mxu0  ;;  %v7372_v1 = vld [vmem:[#allocation3 + $0x19d] sm:$0xff]  ;;  %v7836_v52 = vpack.c.bf16 %v7811_v15, %v7811_v15 }
 0x748   :  { %v15016_v40 = vadd.f32 %v7237_v36, %v6876_v39  ;;  %v6877_v11 = vadd.f32 %v6801_v50, %v14765_v32  ;;  %v11209_v30 = vpop.f32.mrb[51].mxu1 }
 0x749   :  { %11521 = vmatmul.mubr.msk.bf16.gmra.mrb[208].mxu0 %vm4296_vm2, %v7834_v14  ;;  %v11573_v30 = vld [vmem:[%s15528_s5 + $0x40] sm:$0xff]  }
 0x74a   :  { %v15020_v61 = vadd.f32 %v7240_v9, %v6877_v11  ;;  %11419 = vmatmul.mubr.msk.bf16.gmra.mrb[156].mxu1 %vm4296_vm2, %v7395_v26  ;;  %11524 = vmatprep.mubr.msk.bf16.mxu0 %vm11696_vm1, %v15557_v48  ;;  %v7397_v11 = vpack.c.bf16 %v7372_v1, %v7372_v1  ;;  %v11574_v26 = vld [vmem:[%s15528_s5] sm:$0xff]  }
 0x74b   :  { %11422 = vmatprep.mubr.msk.bf16.mxu1 %vm11696_vm1, %v15557_v48  ;;  %10540 = vmatprep.subr.bf16.mxu1 %v11573_v30 }
 0x74c   :  { %v7245_v27 = vpop.f32.mrb[104].mxu0  ;;  %10541 = vmatpush3.bf16.msra.mxu1 %v11574_v26 }
 0x74d   :  { %v6806_v3 = vpop.f32.mrb[52].mxu1  ;;  %v11314_v28 = vpop.f32.mrb[105].mxu0 }
 0x74e   :  { %v11212_v32 = vpop.f32.mrb[53].mxu1  ;;  %v7248_v35 = vpop.f32.mrb[106].mxu0 }
 0x74f   :  { %v6809_v33 = vpop.f32.mrb[54].mxu1  ;;  %v11315_v38 = vpop.f32.mrb[107].mxu0 }
 0x750   :  { %v11213_v36 = vpop.f32.mrb[55].mxu1 }
 0x751   :  { %11525 = vmatmul.mubr.msk.bf16.gmra.mrb[212].mxu0 %vm4296_vm2, %v7835_v59 }
 0x752   :  { %11423 = vmatmul.mubr.msk.bf16.gmra.mrb[160].mxu1 %vm4296_vm2, %v7396_v47  ;;  %11528 = vmatprep.mubr.msk.bf16.mxu0 %vm11696_vm1, %v15557_v48 }
 0x753   :  { %11426 = vmatprep.mubr.msk.bf16.mxu1 %vm11696_vm1, %v15557_v48 }
 0x754   :  { %v7253_v49 = vpop.f32.mrb[108].mxu0 }
 0x755   :  { %v6814_v43 = vpop.f32.mrb[56].mxu1  ;;  %v11318_v39 = vpop.f32.mrb[109].mxu0 }
 0x756   :  { %v11216_v9 = vpop.f32.mrb[57].mxu1  ;;  %v7256_v0 = vpop.f32.mrb[110].mxu0 }
 0x757   :  { %v6817_v50 = vpop.f32.mrb[58].mxu1  ;;  %v11319_v2 = vpop.f32.mrb[111].mxu0 }
 0x758   :  { %v11217_v14 = vpop.f32.mrb[59].mxu1  ;;  %v15045_v2 = vld [vmem:[%s15527_s4] ss:$0 sm:$0xff] }
 0x759   :  { %11529 = vmatmul.mubr.msk.bf16.gmra.mrb[216].mxu0 %vm4296_vm2, %v7836_v52 }
 0x75a   :  { %11427 = vmatmul.mubr.msk.bf16.gmra.mrb[164].mxu1 %vm4296_vm2, %v7397_v11 }
 0x75c   :  { %v7261_v27 = vpop.f32.mrb[112].mxu0 }
 0x75d   :  { %v6822_v25 = vpop.f32.mrb[60].mxu1  ;;  %v11322_v3 = vpop.f32.mrb[113].mxu0  ;;  %v11575_v27 = vld [vmem:[%s15528_s5 + $0x48] sm:$0xff]  }
 0x75e   :  { %v11220_v28 = vpop.f32.mrb[61].mxu1  ;;  %v7264_v54 = vpop.f32.mrb[114].mxu0  ;;  %10542 = vmatprep.subr.bf16.mxu1 %v11575_v27 }
 0x75f   :  { %v6825_v32 = vpop.f32.mrb[62].mxu1  ;;  %v11323_v35 = vpop.f32.mrb[115].mxu0 }
 0x760   :  { %v11221_v4 = vpop.f32.mrb[63].mxu1 }
 0x764   :  { %v7269_v33 = vpop.f32.mrb[116].mxu0 }
 0x765   :  { %v6830_v38 = vpop.f32.mrb[64].mxu1  ;;  %v11326_v17 = vpop.f32.mrb[117].mxu0 }
 0x766   :  { %v11224_v59 = vpop.f32.mrb[65].mxu1  ;;  %v7272_v36 = vpop.f32.mrb[118].mxu0 }
 0x767   :  { %v6833_v47 = vpop.f32.mrb[66].mxu1  ;;  %v11327_v49 = vpop.f32.mrb[119].mxu0 }
 0x768   :  { %v11225_v15 = vpop.f32.mrb[67].mxu1 }
 0x76c   :  { %v7955_v43 = vpop.f32.mrb[120].mxu0 }
 0x76d   :  { %v7516_v39 = vpop.f32.mrb[68].mxu1  ;;  %v11434_v1 = vpop.f32.mrb[121].mxu0 }
 0x76e   :  { %v7714_v9 = vadd.f32 %v7516_v39, %v14797_v55  ;;  %v11332_v0 = vpop.f32.mrb[69].mxu1  ;;  %v7958_v50 = vpop.f32.mrb[122].mxu0  ;;  %v11576_v55 = vld [vmem:[%s15528_s5 + $0x8] sm:$0xff]  }
 0x76f   :  { %v7519_v52 = vpop.f32.mrb[70].mxu1  ;;  %v11435_v14 = vpop.f32.mrb[123].mxu0  ;;  %10543 = vmatpush3.bf16.msra.mxu1 %v11576_v55 }
 0x770   :  { %v8153_v11 = vadd.f32 %v7955_v43, %v7714_v9  ;;  %v7715_v30 = vadd.f32 %v7519_v52, %v14801_v44  ;;  %v11333_v26 = vpop.f32.mrb[71].mxu1 }
 0x772   :  { %v8209_v25 = vadd.f32 %v15045_v2, %v8153_v11  ;;  %v8154_v3 = vadd.f32 %v7958_v50, %v7715_v30 }
 0x774   :  { %vm8258_vm2 = vcmp.ge.f32.partialorder %v8209_v25, 0.0  ;;  %v8307_v28 = vmul.f32 0.01, %v8209_v25  ;;  %v8210_v54 = vadd.f32 %v15045_v2, %v8154_v3  ;;  %v7963_v32 = vpop.f32.mrb[124].mxu0  ;;  %v11697_v3 = vmov 1983009808  }
 0x775   :  { %v7524_v44 = vpop.f32.mrb[72].mxu1  ;;  %v11438_v35 = vpop.f32.mrb[125].mxu0 }
 0x776   :  { %v8356_v4 = vsel %vm8258_vm2, %v8209_v25, %v8307_v28  ;;  %vm8259_vm15 = vcmp.ge.f32.partialorder %v8210_v54, 0.0  ;;  %v8308_v33 = vmul.f32 0.01, %v8210_v54  ;;  %v7716_v38 = vadd.f32 %v7524_v44, %v14809_v34  ;;  %v11336_v17 = vpop.f32.mrb[73].mxu1  ;;  %v7966_v59 = vpop.f32.mrb[126].mxu0 }
 0x777   :  { %8406 = vst.msk [vmem:[#allocation4] sm:$0xff] %vm8405_vm14, %v8356_v4  ;;  %v7527_v36 = vpop.f32.mrb[74].mxu1  ;;  %v11439_v47 = vpop.f32.mrb[127].mxu0  ;;  %v8473_v28 = vunpack.c.l.s4 %v11697_v3 }
 0x778   :  { %v8357_v49 = vsel %vm8259_vm15, %v8210_v54, %v8308_v33  ;;  %v8155_v15 = vadd.f32 %v7963_v32, %v7716_v38  ;;  %v7717_v43 = vadd.f32 %v7527_v36, %v14813_v31  ;;  %v11337_v39 = vpop.f32.mrb[75].mxu1  ;;  %v8475_v54 = vlaneseq }
 0x779   :  { %8407 = vst.msk [vmem:[#allocation4 + $0x8] sm:$0xff] %vm8405_vm14, %v8357_v49  ;;  %v8474_v49 = vunpack.c.0.s8 %v8473_v28 }
 0x77a   :  { %v8211_v1 = vadd.f32 %v15045_v2, %v8155_v15  ;;  %v8156_v9 = vadd.f32 %v7966_v59, %v7717_v43  ;;  %v8476_v15 = vshrl.u32 %v8475_v54, 7 }
 0x77c   :  { %vm8260_vm3 = vcmp.ge.f32.partialorder %v8211_v1, 0.0  ;;  %v8309_v0 = vmul.f32 0.01, %v8211_v1  ;;  %v8212_v34 = vadd.f32 %v15045_v2, %v8156_v9  ;;  %v7971_v50 = vpop.f32.mrb[128].mxu0 }
 0x77d   :  { %v7532_v52 = vpop.f32.mrb[76].mxu1  ;;  %v11442_v14 = vpop.f32.mrb[129].mxu0 }
 0x77e   :  { %v8358_v11 = vsel %vm8260_vm3, %v8211_v1, %v8309_v0  ;;  %vm8261_vm4 = vcmp.ge.f32.partialorder %v8212_v34, 0.0  ;;  %v8310_v30 = vmul.f32 0.01, %v8212_v34  ;;  %v7718_v26 = vadd.f32 %v7532_v52, %v14821_v12  ;;  %v11340_v27 = vpop.f32.mrb[77].mxu1  ;;  %v7974_v31 = vpop.f32.mrb[130].mxu0 }
 0x77f   :  { %8408 = vst.msk [vmem:[#allocation4 + $0x10] sm:$0xff] %vm8405_vm14, %v8358_v11  ;;  %v7535_v55 = vpop.f32.mrb[78].mxu1  ;;  %v11443_v25 = vpop.f32.mrb[131].mxu0  ;;  %v8455_v33 = vld [vmem:[#allocation4] sm:$0x1] }
 0x780   :  { %v8359_v32 = vsel %vm8261_vm4, %v8212_v34, %v8310_v30  ;;  %v8157_v44 = vadd.f32 %v7971_v50, %v7718_v26  ;;  %v7719_v35 = vadd.f32 %v7535_v55, %v14825_v37  ;;  %v11341_v4 = vpop.f32.mrb[79].mxu1  ;;  %v8456_v17 = vld [vmem:[#allocation4 + $0x1] sm:$0x1]  ;;  %v8458_v59 = vld [vmem:[#allocation4 + $0xe] sm:$0x1] }
 0x781   :  { %8409 = vst.msk [vmem:[#allocation4 + $0x18] sm:$0xff] %vm8405_vm14, %v8359_v32  ;;  %v8459_v36 = vld [vmem:[#allocation4 + $0xf] sm:$0x1]  ;;  %v8464_v47 = vld [vmem:[#allocation4 + $0x2] sm:$0x1]  ;;  %v8457_v43 = vmax.f32 %v8455_v33, %v8456_v17 }
 0x782   :  { %v8213_v12 = vadd.f32 %v15045_v2, %v8157_v44  ;;  %v8158_v38 = vadd.f32 %v7974_v31, %v7719_v35  ;;  %v8460_v39 = vmax.f32 %v8458_v59, %v8459_v36  ;;  %v8465_v0 = vld [vmem:[#allocation4 + $0x3] sm:$0x1]  ;;  %v8484_v52 = vld [vmem:[#allocation4 + $0x4] sm:$0x1]  ;;  %v8485_v14 = vld [vmem:[#allocation4 + $0x5] sm:$0x1]  ;;  %v15070_v44 = vsub.s32 %v8474_v49, %v8476_v15 }
 0x783   :  { %v8466_v28 = vmax.f32 %v8464_v47, %v8465_v0  ;;  %v8486_v59 = vmax.f32 %v8484_v52, %v8485_v14  ;;  %v8505_v0 = vld [vmem:[#allocation4 + $0x7] sm:$0x1] }
 0x784   :  { %vm8262_vm6 = vcmp.ge.f32.partialorder %v8213_v12, 0.0  ;;  %v8311_v1 = vmul.f32 0.01, %v8213_v12  ;;  %v8214_v37 = vadd.f32 %v15045_v2, %v8158_v38  ;;  %v7979_v9 = vpop.f32.mrb[132].mxu0  ;;  %v8461_v11 = vmax.f32 %v8457_v43, %v8460_v39  ;;  %v8504_v43 = vld [vmem:[#allocation4 + $0x6] sm:$0x1] }
 0x785   :  { %v7540_v34 = vpop.f32.mrb[80].mxu1  ;;  %v11446_v50 = vpop.f32.mrb[133].mxu0  ;;  %v11578_v52 = vld [vmem:[%s15528_s5 + $0x10] sm:$0xff]  }
 0x786   :  { %v8360_v30 = vsel %vm8262_vm6, %v8213_v12, %v8311_v1  ;;  %vm8263_vm7 = vcmp.ge.f32.partialorder %v8214_v37, 0.0  ;;  %v8312_v26 = vmul.f32 0.01, %v8214_v37  ;;  %v7720_v27 = vadd.f32 %v7540_v34, %v14833_v58  ;;  %v11344_v31 = vpop.f32.mrb[81].mxu1  ;;  %v7982_v55 = vpop.f32.mrb[134].mxu0  ;;  %v11577_v50 = vld [vmem:[%s15528_s5 + $0x50] sm:$0xff]  }
 0x787   :  { %8410 = vst.msk [vmem:[#allocation4 + $0x20] sm:$0xff] %vm8405_vm14, %v8360_v30  ;;  %v7543_v25 = vpop.f32.mrb[82].mxu1  ;;  %v11447_v3 = vpop.f32.mrb[135].mxu0  ;;  %v8467_v54 = vld [vmem:[#allocation4 + $0x10] sm:$0x1]  ;;  %10544 = vmatprep.subr.bf16.mxu1 %v11577_v50 }
 0x788   :  { %v8468_v32 = vld [vmem:[#allocation4 + $0x11] sm:$0x1]  ;;  %8463 = vst.msk [vmem:[#allocation5] sm:$0x1] %vm8462_vm5, %v8461_v11  ;;  %v8361_v35 = vsel %vm8263_vm7, %v8214_v37, %v8312_v26  ;;  %v8159_v4 = vadd.f32 %v7979_v9, %v7720_v27  ;;  %v7721_v33 = vadd.f32 %v7543_v25, %v14837_v7  ;;  %v11345_v12 = vpop.f32.mrb[83].mxu1  ;;  %v8506_v3 = vmax.f32 %v8504_v43, %v8505_v0 }
 0x789   :  { %v8469_v38 = vmax.f32 %v8467_v54, %v8468_v32  ;;  %v8487_v58 = vld [vmem:[#allocation4 + $0x12] sm:$0x1]  ;;  %v8488_v17 = vld [vmem:[#allocation4 + $0x13] sm:$0x1]  ;;  %8411 = vst.msk [vmem:[#allocation4 + $0x28] sm:$0xff] %vm8405_vm14, %v8361_v35  ;;  %10545 = vmatpush3.bf16.msra.mxu1 %v11578_v52 }
 0x78a   :  { %v8489_v36 = vmax.f32 %v8487_v58, %v8488_v17  ;;  %v8507_v47 = vld [vmem:[#allocation4 + $0x14] sm:$0x1]  ;;  %v8508_v39 = vld [vmem:[#allocation4 + $0x15] sm:$0x1]  ;;  %v8215_v49 = vadd.f32 %v15045_v2, %v8159_v4  ;;  %v8160_v15 = vadd.f32 %v7982_v55, %v7721_v33  ;;  %v8524_v37 = vld [vmem:[#allocation4 + $0x8] sm:$0x1] }
 0x78b   :  { %v8470_v1 = vmax.f32 %v8466_v28, %v8469_v38  ;;  %v8525_v9 = vld [vmem:[#allocation4 + $0x9] sm:$0x1]  ;;  %v8509_v7 = vmax.f32 %v8507_v47, %v8508_v39  ;;  %v8527_v14 = vld [vmem:[#allocation4 + $0x16] sm:$0x1]  ;;  %v8528_v31 = vld [vmem:[#allocation4 + $0x17] sm:$0x1] }
 0x78c   :  { %v8490_v34 = vmax.f32 %v8486_v59, %v8489_v36  ;;  %vm8264_vm8 = vcmp.ge.f32.partialorder %v8215_v49, 0.0  ;;  %v8313_v11 = vmul.f32 0.01, %v8215_v49  ;;  %v8216_v30 = vadd.f32 %v15045_v2, %v8160_v15  ;;  %v7987_v27 = vpop.f32.mrb[136].mxu0  ;;  %v8532_v28 = vld [vmem:[#allocation4 + $0x1c] sm:$0x1] }
 0x78d   :  { %v8478_v26 = vrot.slane %v8470_v1, %v15070_v44  ;;  %v7548_v55 = vpop.f32.mrb[84].mxu1  ;;  %v11450_v25 = vpop.f32.mrb[137].mxu0  ;;  %v8533_v54 = vld [vmem:[#allocation4 + $0x1d] sm:$0x1]  ;;  %v8526_v32 = vmax.f32 %v8524_v37, %v8525_v9  ;;  %v8529_v35 = vmax.f32 %v8527_v14, %v8528_v31  ;;  %v8551_v43 = vld [vmem:[#allocation4 + $0x1e] sm:$0x1]  ;;  %v8510_v0 = vmax.f32 %v8506_v3, %v8509_v7 }
 0x78e   :  { %v8362_v4 = vsel %vm8264_vm8, %v8215_v49, %v8313_v11  ;;  %vm8265_vm9 = vcmp.ge.f32.partialorder %v8216_v30, 0.0  ;;  %v8314_v33 = vmul.f32 0.01, %v8216_v30  ;;  %v7722_v12 = vadd.f32 %v7548_v55, %v14845_v20  ;;  %v11348_v38 = vpop.f32.mrb[85].mxu1  ;;  %v7990_v58 = vpop.f32.mrb[138].mxu0 }
 0x78f   :  { %8479 = vrot.lane.b32.xlu1 %v8478_v26, %s11698_s2  ;;  %8412 = vst.msk [vmem:[#allocation4 + $0x30] sm:$0xff] %vm8405_vm14, %v8362_v4  ;;  %v7551_v17 = vpop.f32.mrb[86].mxu1  ;;  %v11451_v59 = vpop.f32.mrb[139].mxu0  ;;  %v8498_v36 = vrot.slane %v8490_v34, %v15070_v44  ;;  %v8552_v47 = vld [vmem:[#allocation4 + $0x1f] sm:$0x1]  ;;  %v8530_v39 = vmax.f32 %v8526_v32, %v8529_v35  ;;  %v8534_v50 = vmax.f32 %v8532_v28, %v8533_v54 }
 0x790   :  { %v8363_v49 = vsel %vm8265_vm9, %v8216_v30, %v8314_v33  ;;  %v8161_v15 = vadd.f32 %v7987_v27, %v7722_v12  ;;  %v7723_v1 = vadd.f32 %v7551_v17, %v14849_v24  ;;  %v11349_v20 = vpop.f32.mrb[87].mxu1  ;;  %v8535_v37 = vld [vmem:[#allocation4 + $0x2a] sm:$0x1]  ;;  %v8536_v9 = vld [vmem:[#allocation4 + $0x2b] sm:$0x1]  ;;  %v8553_v31 = vmax.f32 %v8551_v43, %v8552_v47 }
 0x791   :  { %8413 = vst.msk [vmem:[#allocation4 + $0x38] sm:$0xff] %vm8405_vm14, %v8363_v49  ;;  %v8537_v52 = vmax.f32 %v8535_v37, %v8536_v9  ;;  %v8554_v14 = vld [vmem:[#allocation4 + $0x2c] sm:$0x1]  ;;  %v8555_v11 = vld [vmem:[#allocation4 + $0x2d] sm:$0x1]  ;;  %v8518_v32 = vrot.slane %v8510_v0, %v15070_v44 }
 0x792   :  { %8531 = vst.msk [vmem:[#allocation5 + $0x2] sm:$0x1] %vm8462_vm5, %v8530_v39  ;;  %v8217_v34 = vadd.f32 %v15045_v2, %v8161_v15  ;;  %v8162_v26 = vadd.f32 %v7990_v58, %v7723_v1  ;;  %v8556_v30 = vmax.f32 %v8554_v14, %v8555_v11  ;;  %v8573_v24 = vld [vmem:[#allocation4 + $0x2e] sm:$0x1]  ;;  %v8574_v27 = vld [vmem:[#allocation4 + $0x2f] sm:$0x1] }
 0x793   :  { %8499 = vrot.lane.b32.xlu1 %v8498_v36, %s11699_s21  ;;  %v8538_v7 = vmax.f32 %v8534_v50, %v8537_v52  ;;  %v8597_v55 = vld [vmem:[#allocation4 + $0x24] sm:$0x1]  ;;  %v8598_v25 = vld [vmem:[#allocation4 + $0x25] sm:$0x1]  ;;  %v8570_v3 = vld [vmem:[#allocation4 + $0x20] sm:$0x1]  ;;  %v8575_v17 = vmax.f32 %v8573_v24, %v8574_v27 }
 0x794   :  { %vm8266_vm10 = vcmp.ge.f32.partialorder %v8217_v34, 0.0  ;;  %v8315_v28 = vmul.f32 0.01, %v8217_v34  ;;  %v8218_v54 = vadd.f32 %v15045_v2, %v8162_v26  ;;  %v7995_v35 = vpop.f32.mrb[140].mxu0  ;;  %v8571_v4 = vld [vmem:[#allocation4 + $0x21] sm:$0x1]  ;;  %v8557_v58 = vmax.f32 %v8553_v31, %v8556_v30 }
 0x795   :  { %v7556_v33 = vpop.f32.mrb[88].mxu1  ;;  %v11454_v12 = vpop.f32.mrb[141].mxu0  ;;  %v8546_v38 = vrot.slane %v8538_v7, %v15070_v44  ;;  %v8599_v1 = vmax.f32 %v8597_v55, %v8598_v25  ;;  %v8572_v37 = vmax.f32 %v8570_v3, %v8571_v4  ;;  %v8589_v11 = vld [vmem:[#allocation4 + $0x22] sm:$0x1] }
 0x796   :  { %v8364_v59 = vsel %vm8266_vm10, %v8217_v34, %v8315_v28  ;;  %vm8267_vm0 = vcmp.ge.f32.partialorder %v8218_v54, 0.0  ;;  %v8316_v36 = vmul.f32 0.01, %v8218_v54  ;;  %v7724_v43 = vadd.f32 %v7556_v33, %v14857_v6  ;;  %v11352_v47 = vpop.f32.mrb[89].mxu1  ;;  %v7998_v39 = vpop.f32.mrb[142].mxu0 }
 0x797   :  { %8519 = vrot.lane.b32.xlu1 %v8518_v32, %s11700_s22  ;;  %8414 = vst.msk [vmem:[#allocation4 + $0x40] sm:$0xff] %vm8405_vm14, %v8364_v59  ;;  %v7559_v49 = vpop.f32.mrb[90].mxu1  ;;  %8547 = vrot.lane.b32.xlu0 %v8546_v38, %s11698_s2  ;;  %v11455_v15 = vpop.f32.mrb[143].mxu0  ;;  %v8600_v20 = vld [vmem:[#allocation4 + $0x32] sm:$0x1]  ;;  %v8565_v26 = vrot.slane %v8557_v58, %v15070_v44  ;;  %v8576_v30 = vmax.f32 %v8572_v37, %v8575_v17 }
 0x798   :  { %v8601_v0 = vld [vmem:[#allocation4 + $0x33] sm:$0x1]  ;;  %v8365_v9 = vsel %vm8267_vm0, %v8218_v54, %v8316_v36  ;;  %v8163_v50 = vadd.f32 %v7995_v35, %v7724_v43  ;;  %v7725_v52 = vadd.f32 %v7559_v49, %v14861_v19  ;;  %v11353_v6 = vpop.f32.mrb[91].mxu1  ;;  %v8590_v34 = vld [vmem:[#allocation4 + $0x23] sm:$0x1] }
 0x799   :  { %v8602_v14 = vmax.f32 %v8600_v20, %v8601_v0  ;;  %8415 = vst.msk [vmem:[#allocation4 + $0x48] sm:$0xff] %vm8405_vm14, %v8365_v9  ;;  %v8592_v31 = vld [vmem:[#allocation4 + $0x30] sm:$0x1]  ;;  %v8593_v55 = vld [vmem:[#allocation4 + $0x31] sm:$0x1]  ;;  %v8591_v19 = vmax.f32 %v8589_v11, %v8590_v34  ;;  %v8584_v17 = vrot.slane %v8576_v30, %v15070_v44 }
 0x79a   :  { %v8219_v24 = vadd.f32 %v15045_v2, %v8163_v50  ;;  %v8164_v27 = vadd.f32 %v7998_v39, %v7725_v52  ;;  %v8616_v25 = vld [vmem:[#allocation4 + $0x38] sm:$0x1]  ;;  %v8617_v3 = vld [vmem:[#allocation4 + $0x39] sm:$0x1]  ;;  %v8594_v28 = vmax.f32 %v8592_v31, %v8593_v55  ;;  %v8662_v33 = vld [vmem:[#allocation4 + $0x3e] sm:$0x1] }
 0x79b   :  { %v8603_v7 = vmax.f32 %v8599_v1, %v8602_v14  ;;  %8566 = vrot.lane.b32.xlu0 %v8565_v26, %s11699_s21  ;;  %v8663_v12 = vld [vmem:[#allocation4 + $0x3f] sm:$0x1]  ;;  %v8635_v59 = vld [vmem:[#allocation4 + $0x3a] sm:$0x1]  ;;  %v8636_v36 = vld [vmem:[#allocation4 + $0x3b] sm:$0x1]  ;;  %v8618_v50 = vmax.f32 %v8616_v25, %v8617_v3 }
 0x79c   :  { %vm8268_vm11 = vcmp.ge.f32.partialorder %v8219_v24, 0.0  ;;  %v8317_v54 = vmul.f32 0.01, %v8219_v24  ;;  %v8220_v32 = vadd.f32 %v15045_v2, %v8164_v27  ;;  %v8003_v4 = vpop.f32.mrb[144].mxu0  ;;  %v8595_v43 = vmax.f32 %v8591_v19, %v8594_v28  ;;  %v15110_v20 = vld [vmem:[#allocation4 + $0x3c] sm:$0x1] }
 0x79d   :  { %v8611_v35 = vrot.slane %v8603_v7, %v15070_v44  ;;  %v7564_v38 = vpop.f32.mrb[92].mxu1  ;;  %v11458_v58 = vpop.f32.mrb[145].mxu0  ;;  %v15112_v0 = vld [vmem:[#allocation4 + $0x3d] sm:$0x1]  ;;  %v8664_v27 = vmax.f32 %v8662_v33, %v8663_v12  ;;  %v8637_v31 = vmax.f32 %v8635_v59, %v8636_v36  ;;  %v11579_v59 = vld [vmem:[%s15528_s5 + $0x58] sm:$0xff]  }
 0x79e   :  { %v8366_v47 = vsel %vm8268_vm11, %v8219_v24, %v8317_v54  ;;  %vm8269_vm12 = vcmp.ge.f32.partialorder %v8220_v32, 0.0  ;;  %v8318_v39 = vmul.f32 0.01, %v8220_v32  ;;  %v7726_v49 = vadd.f32 %v7564_v38, %v14869_v5  ;;  %v11356_v15 = vpop.f32.mrb[93].mxu1  ;;  %v8006_v1 = vpop.f32.mrb[146].mxu0  ;;  %10546 = vmatprep.subr.bf16.mxu1 %v11579_v59 }
 0x79f   :  { %8612 = vrot.lane.b32.xlu1 %v8611_v35, %s11698_s2  ;;  %8416 = vst.msk [vmem:[#allocation4 + $0x50] sm:$0xff] %vm8405_vm14, %v8366_v47  ;;  %v7567_v37 = vpop.f32.mrb[94].mxu1  ;;  %8585 = vrot.lane.b32.xlu0 %v8584_v17, %s11700_s22  ;;  %v11459_v9 = vpop.f32.mrb[147].mxu0  ;;  %v8619_v52 = vld [vmem:[#allocation4 + $0x46] sm:$0x1]  ;;  %v11580_v15 = vld [vmem:[%s15528_s5 + $0x18] sm:$0xff]  }
 0x7a0   :  { %v8620_v6 = vld [vmem:[#allocation4 + $0x47] sm:$0x1]  ;;  %8596 = vst.msk [vmem:[#allocation5 + $0x4] sm:$0x1] %vm8462_vm5, %v8595_v43  ;;  %v8367_v5 = vsel %vm8269_vm12, %v8220_v32, %v8318_v39  ;;  %v8165_v14 = vadd.f32 %v8003_v4, %v7726_v49  ;;  %v7727_v11 = vadd.f32 %v7567_v37, %v14873_v63  ;;  %v11357_v34 = vpop.f32.mrb[95].mxu1  ;;  %v8656_v43 = vmax.f32 %v15110_v20, %v15112_v0 }
 0x7a1   :  { %v8621_v26 = vmax.f32 %v8619_v52, %v8620_v6  ;;  %v8665_v30 = vld [vmem:[#allocation4 + $0x4c] sm:$0x1]  ;;  %v8666_v24 = vld [vmem:[#allocation4 + $0x4d] sm:$0x1]  ;;  %8417 = vst.msk [vmem:[#allocation4 + $0x58] sm:$0xff] %vm8405_vm14, %v8367_v5  ;;  %10547 = vmatpush3.bf16.msra.mxu1 %v11580_v15 }
 0x7a2   :  { %v8667_v7 = vmax.f32 %v8665_v30, %v8666_v24  ;;  %v8638_v55 = vld [vmem:[#allocation4 + $0x48] sm:$0x1]  ;;  %v8639_v25 = vld [vmem:[#allocation4 + $0x49] sm:$0x1]  ;;  %v8681_v3 = vld [vmem:[#allocation4 + $0x40] sm:$0x1]  ;;  %v8221_v19 = vadd.f32 %v15045_v2, %v8165_v14  ;;  %v8166_v28 = vadd.f32 %v8006_v1, %v7727_v11 }
 0x7a3   :  { %v8622_v54 = vmax.f32 %v8618_v50, %v8621_v26  ;;  %v8640_v32 = vmax.f32 %v8638_v55, %v8639_v25  ;;  %v8682_v35 = vld [vmem:[#allocation4 + $0x41] sm:$0x1]  ;;  %v8684_v4 = vld [vmem:[#allocation4 + $0x4e] sm:$0x1]  ;;  %v8685_v63 = vld [vmem:[#allocation4 + $0x4f] sm:$0x1] }
 0x7a4   :  { %v8668_v38 = vmax.f32 %v8664_v27, %v8667_v7  ;;  %v8683_v58 = vmax.f32 %v8681_v3, %v8682_v35  ;;  %v8686_v17 = vmax.f32 %v8684_v4, %v8685_v63  ;;  %v8657_v33 = vld [vmem:[#allocation4 + $0x4a] sm:$0x1]  ;;  %v8658_v12 = vld [vmem:[#allocation4 + $0x4b] sm:$0x1]  ;;  %vm8270_vm13 = vcmp.ge.f32.partialorder %v8221_v19, 0.0  ;;  %v8011_v49 = vpop.f32.mrb[148].mxu0 }
 0x7a5   :  { %v8319_v36 = vmul.f32 0.01, %v8221_v19  ;;  %v8222_v47 = vadd.f32 %v15045_v2, %v8166_v28  ;;  %v8630_v39 = vrot.slane %v8622_v54, %v15070_v44  ;;  %v7572_v1 = vpop.f32.mrb[96].mxu1  ;;  %v11462_v37 = vpop.f32.mrb[149].mxu0  ;;  %v8641_v0 = vmax.f32 %v8637_v31, %v8640_v32 }
 0x7a6   :  { %v8676_v20 = vrot.slane %v8668_v38, %v15070_v44  ;;  %v8687_v9 = vmax.f32 %v8683_v58, %v8686_v17  ;;  %v8659_v50 = vmax.f32 %v8657_v33, %v8658_v12  ;;  %v7728_v5 = vadd.f32 %v7572_v1, %v14881_v8  ;;  %v11360_v14 = vpop.f32.mrb[97].mxu1  ;;  %v8014_v11 = vpop.f32.mrb[150].mxu0  ;;  %v8701_v32 = vld [vmem:[#allocation4 + $0x55] sm:$0x1]  ;;  %v8719_v37 = vld [vmem:[#allocation4 + $0x56] sm:$0x1] }
 0x7a7   :  { %v8368_v52 = vsel %vm8270_vm13, %v8221_v19, %v8319_v36  ;;  %vm8271_vm2 = vcmp.ge.f32.partialorder %v8222_v47, 0.0  ;;  %v8320_v6 = vmul.f32 0.01, %v8222_v47  ;;  %8631 = vrot.lane.b32.xlu1 %v8630_v39, %s11699_s21  ;;  %v7575_v34 = vpop.f32.mrb[98].mxu1  ;;  %v11463_v26 = vpop.f32.mrb[151].mxu0  ;;  %v8649_v55 = vrot.slane %v8641_v0, %v15070_v44 }
 0x7a8   :  { %8418 = vst.msk [vmem:[#allocation4 + $0x60] sm:$0xff] %vm8405_vm14, %v8368_v52  ;;  %8677 = vrot.lane.b32.xlu0 %v8676_v20, %s11698_s2  ;;  %v8660_v30 = vmax.f32 %v8656_v43, %v8659_v50  ;;  %v8167_v27 = vadd.f32 %v8011_v49, %v7728_v5  ;;  %v7729_v7 = vadd.f32 %v7575_v34, %v14885_v18  ;;  %v11361_v31 = vpop.f32.mrb[99].mxu1  ;;  %v8700_v19 = vld [vmem:[#allocation4 + $0x54] sm:$0x1]  ;;  %v8720_v20 = vld [vmem:[#allocation4 + $0x57] sm:$0x1] }
 0x7a9   :  { %v8369_v24 = vsel %vm8271_vm2, %v8222_v47, %v8320_v6  ;;  %v8695_v8 = vrot.slane %v8687_v9, %v15070_v44  ;;  %v8702_v59 = vmax.f32 %v8700_v19, %v8701_v32  ;;  %v8721_v52 = vmax.f32 %v8719_v37, %v8720_v20 }
 0x7aa   :  { %8419 = vst.msk [vmem:[#allocation4 + $0x68] sm:$0xff] %vm8405_vm14, %v8369_v24  ;;  %v8223_v25 = vadd.f32 %v15045_v2, %v8167_v27  ;;  %v8168_v3 = vadd.f32 %v8014_v11, %v7729_v7 }
 0x7ab   :  { %8661 = vst.msk [vmem:[#allocation5 + $0x6] sm:$0x1] %vm8462_vm5, %v8660_v30  ;;  %8650 = vrot.lane.b32.xlu1 %v8649_v55, %s11700_s22 }
 0x7ac   :  { %8696 = vrot.lane.b32.xlu0 %v8695_v8, %s11699_s21  ;;  %vm8272_vm15 = vcmp.ge.f32.partialorder %v8223_v25, 0.0  ;;  %v8321_v28 = vmul.f32 0.01, %v8223_v25  ;;  %v8224_v18 = vadd.f32 %v15045_v2, %v8168_v3  ;;  %v8019_v54 = vpop.f32.mrb[152].mxu0 }
 0x7ad   :  { %v7580_v35 = vpop.f32.mrb[100].mxu1  ;;  %v11466_v4 = vpop.f32.mrb[153].mxu0 }
 0x7ae   :  { %v8370_v63 = vsel %vm8272_vm15, %v8223_v25, %v8321_v28  ;;  %vm8273_vm3 = vcmp.ge.f32.partialorder %v8224_v18, 0.0  ;;  %v8322_v38 = vmul.f32 0.01, %v8224_v18  ;;  %v7730_v58 = vadd.f32 %v7580_v35, %v14893_v46  ;;  %v11364_v17 = vpop.f32.mrb[101].mxu1  ;;  %v8022_v43 = vpop.f32.mrb[154].mxu0  ;;  %v11581_v25 = vld [vmem:[%s15528_s5 + $0x60] sm:$0xff]  }
 0x7af   :  { %8420 = vst.msk [vmem:[#allocation4 + $0x70] sm:$0xff] %vm8405_vm14, %v8370_v63  ;;  %v7583_v33 = vpop.f32.mrb[102].mxu1  ;;  %v11467_v12 = vpop.f32.mrb[155].mxu0  ;;  %v8703_v36 = vld [vmem:[#allocation4 + $0x62] sm:$0x1]  ;;  %10548 = vmatprep.subr.bf16.mxu1 %v11581_v25  ;;  %v11582_v28 = vld [vmem:[%s15528_s5 + $0x20] sm:$0xff]  }
 0x7b0   :  { %v8704_v47 = vld [vmem:[#allocation4 + $0x63] sm:$0x1]  ;;  %v8371_v39 = vsel %vm8273_vm3, %v8224_v18, %v8322_v38  ;;  %v8169_v49 = vadd.f32 %v8019_v54, %v7730_v58  ;;  %v11365_v15 = vpop.f32.mrb[103].mxu1  ;;  %v8722_v9 = vld [vmem:[#allocation4 + $0x64] sm:$0x1]  ;;  %v11583_v18 = vld [vmem:[%s15528_s5 + $0x68] sm:$0xff]   ;;  %10549 = vmatpush3.bf16.msra.mxu1 %v11582_v28 }
 0x7b1   :  { %v8705_v1 = vmax.f32 %v8703_v36, %v8704_v47  ;;  %8421 = vst.msk [vmem:[#allocation4 + $0x78] sm:$0xff] %vm8405_vm14, %v8371_v39  ;;  %v8723_v50 = vld [vmem:[#allocation4 + $0x65] sm:$0x1]  ;;  %v11584_v54 = vld [vmem:[%s15528_s5 + $0x28] sm:$0xff]   ;;  %10550 = vmatprep.subr.bf16.mxu1 %v11583_v18  ;;  %vm8482_vm15 = vcmask 516352   ;;  %vm8502_vm3 = vcmask 778752  }
 0x7b2   :  { %v8225_v0 = vadd.f32 %v15045_v2, %v8169_v49  ;;  %v8724_v6 = vmax.f32 %v8722_v9, %v8723_v50 }
 0x7b3   :  { %v8706_v46 = vmax.f32 %v8702_v59, %v8705_v1 }
 0x7b4   :  { %vm8274_vm4 = vcmp.ge.f32.partialorder %v8225_v0, 0.0  ;;  %v8323_v5 = vmul.f32 0.01, %v8225_v0  ;;  %v8027_v11 = vpop.f32.mrb[156].mxu0  ;;  %v8725_v30 = vmax.f32 %v8721_v52, %v8724_v6  ;;  %10551 = vmatpush3.bf16.msra.mxu1 %v11584_v54 }
 0x7b5   :  { %v8714_v14 = vrot.slane %v8706_v46, %v15070_v44  ;;  %v7588_v34 = vpop.f32.mrb[104].mxu1  ;;  %v11470_v26 = vpop.f32.mrb[157].mxu0 }
 0x7b6   :  { %v8372_v24 = vsel %vm8274_vm4, %v8225_v0, %v8323_v5  ;;  %v11368_v27 = vpop.f32.mrb[105].mxu1  ;;  %v8030_v7 = vpop.f32.mrb[158].mxu0  ;;  %8726 = vst.msk [vmem:[#allocation5 + $0x8] sm:$0x1] %vm8462_vm5, %v8725_v30  ;;  %v8784_v32 = vld [vmem:[#allocation4 + $0x70] sm:$0x1] }
 0x7b7   :  { %8715 = vrot.lane.b32.xlu0 %v8714_v14, %s11700_s22  ;;  %8422 = vst.msk [vmem:[#allocation4 + $0x80] sm:$0xff] %vm8405_vm14, %v8372_v24  ;;  %v7591_v31 = vpop.f32.mrb[106].mxu1  ;;  %v11471_v55 = vpop.f32.mrb[159].mxu0  ;;  %v8785_v35 = vld [vmem:[#allocation4 + $0x71] sm:$0x1] }
 0x7b8   :  { %v11369_v8 = vpop.f32.mrb[107].mxu1  ;;  %v8849_v3 = vld [vmem:[#allocation4 + $0x78] sm:$0x1]  ;;  %v8850_v19 = vld [vmem:[#allocation4 + $0x79] sm:$0x1]  ;;  %v8786_v17 = vmax.f32 %v8784_v32, %v8785_v35 }
 0x7b9   :  { %v8787_v63 = vld [vmem:[#allocation4 + $0x7e] sm:$0x1]  ;;  %v8788_v43 = vld [vmem:[#allocation4 + $0x7f] sm:$0x1]  ;;  %v8851_v47 = vmax.f32 %v8849_v3, %v8850_v19 }
 0x7ba   :  { %v8789_v36 = vmax.f32 %v8787_v63, %v8788_v43 }
 0x7bc   :  { %v8035_v4 = vpop.f32.mrb[160].mxu0  ;;  %v8790_v20 = vmax.f32 %v8786_v17, %v8789_v36 }
 0x7bd   :  { %v7596_v38 = vpop.f32.mrb[108].mxu1  ;;  %v11474_v58 = vpop.f32.mrb[161].mxu0 }
 0x7be   :  { %v8852_v33 = vld [vmem:[#allocation4 + $0x86] sm:$0x1]  ;;  %v8853_v12 = vld [vmem:[#allocation4 + $0x87] sm:$0x1]  ;;  %v11372_v59 = vpop.f32.mrb[109].mxu1  ;;  %v8038_v15 = vpop.f32.mrb[162].mxu0 }
 0x7bf   :  { %v8854_v39 = vmax.f32 %v8852_v33, %v8853_v12  ;;  %v7599_v49 = vpop.f32.mrb[110].mxu1  ;;  %v11475_v37 = vpop.f32.mrb[163].mxu0  ;;  %8791 = vst.msk [vmem:[#allocation5 + $0xa] sm:$0x1] %vm8462_vm5, %v8790_v20 }
 0x7c0   :  { %v11373_v1 = vpop.f32.mrb[111].mxu1 }
 0x7c1   :  { %v8855_v0 = vmax.f32 %v8851_v47, %v8854_v39 }
 0x7c3   :  { %8856 = vst.msk [vmem:[#allocation5 + $0xc] sm:$0x1] %vm8462_vm5, %v8855_v0 }
 0x7c4   :  { %v8043_v46 = vpop.f32.mrb[164].mxu0 }
 0x7c5   :  { %v7604_v9 = vpop.f32.mrb[112].mxu1  ;;  %v11478_v50 = vpop.f32.mrb[165].mxu0 }
 0x7c6   :  { %v11376_v52 = vpop.f32.mrb[113].mxu1  ;;  %v8046_v6 = vpop.f32.mrb[166].mxu0 }
 0x7c7   :  { %v7607_v5 = vpop.f32.mrb[114].mxu1  ;;  %v11479_v14 = vpop.f32.mrb[167].mxu0 }
 0x7c8   :  { %v11377_v11 = vpop.f32.mrb[115].mxu1 }
 0x7cc   :  { %v8051_v34 = vpop.f32.mrb[168].mxu0 }
 0x7cd   :  { %v7612_v26 = vpop.f32.mrb[116].mxu1  ;;  %v11482_v30 = vpop.f32.mrb[169].mxu0 }
 0x7ce   :  { %v7738_v24 = vadd.f32 %v7612_v26, %v14920_v13  ;;  %v11380_v27 = vpop.f32.mrb[117].mxu1  ;;  %v8054_v7 = vpop.f32.mrb[170].mxu0 }
 0x7cf   :  { %v7615_v31 = vpop.f32.mrb[118].mxu1  ;;  %v11483_v55 = vpop.f32.mrb[171].mxu0  ;;  %v15185_v27 = vld [vmem:[%s15527_s4] ss:$0 sm:$0xff] }
 0x7d0   :  { %v8177_v8 = vadd.f32 %v8051_v34, %v7738_v24  ;;  %v7739_v25 = vadd.f32 %v7615_v31, %v14924_v22  ;;  %v11381_v3 = vpop.f32.mrb[119].mxu1 }
 0x7d2   :  { %v8233_v19 = vadd.f32 %v15045_v2, %v8177_v8  ;;  %v8178_v28 = vadd.f32 %v8054_v7, %v7739_v25 }
 0x7d4   :  { %vm8282_vm6 = vcmp.ge.f32.partialorder %v8233_v19, 0.0  ;;  %v8331_v18 = vmul.f32 0.01, %v8233_v19  ;;  %v8234_v54 = vadd.f32 %v15045_v2, %v8178_v28  ;;  %v8059_v32 = vpop.f32.mrb[172].mxu0  ;;  %v11586_v28 = vld [vmem:[%s15528_s5 + $0x30] sm:$0xff]  }
 0x7d5   :  { %v7620_v35 = vpop.f32.mrb[120].mxu1  ;;  %v11486_v4 = vpop.f32.mrb[173].mxu0 }
 0x7d6   :  { %v8380_v63 = vsel %vm8282_vm6, %v8233_v19, %v8331_v18  ;;  %vm8283_vm7 = vcmp.ge.f32.partialorder %v8234_v54, 0.0  ;;  %v8332_v13 = vmul.f32 0.01, %v8234_v54  ;;  %v7740_v38 = vadd.f32 %v7620_v35, %v14932_v53  ;;  %v11384_v58 = vpop.f32.mrb[121].mxu1  ;;  %v8062_v17 = vpop.f32.mrb[174].mxu0 }
 0x7d7   :  { %8430 = vst.msk [vmem:[#allocation4 + $0xc0] sm:$0xff] %vm8405_vm14, %v8380_v63  ;;  %v7623_v22 = vpop.f32.mrb[122].mxu1  ;;  %v11487_v43 = vpop.f32.mrb[175].mxu0 }
 0x7d8   :  { %v8381_v33 = vsel %vm8283_vm7, %v8234_v54, %v8332_v13  ;;  %v8179_v12 = vadd.f32 %v8059_v32, %v7740_v38  ;;  %v7741_v59 = vadd.f32 %v7623_v22, %v14936_v23  ;;  %v11385_v36 = vpop.f32.mrb[123].mxu1  ;;  %vm8522_vm7 = vcmask 1041152  }
 0x7d9   :  { %8431 = vst.msk [vmem:[#allocation4 + $0xc8] sm:$0xff] %vm8405_vm14, %v8381_v33 }
 0x7da   :  { %v8235_v47 = vadd.f32 %v15045_v2, %v8179_v12  ;;  %v8180_v39 = vadd.f32 %v8062_v17, %v7741_v59 }
 0x7dc   :  { %vm8284_vm8 = vcmp.ge.f32.partialorder %v8235_v47, 0.0  ;;  %v8333_v49 = vmul.f32 0.01, %v8235_v47  ;;  %v8236_v53 = vadd.f32 %v15045_v2, %v8180_v39  ;;  %v8067_v15 = vpop.f32.mrb[176].mxu0 }
 0x7dd   :  { %v7628_v1 = vpop.f32.mrb[124].mxu1  ;;  %v11490_v37 = vpop.f32.mrb[177].mxu0 }
 0x7de   :  { %v8382_v20 = vsel %vm8284_vm8, %v8235_v47, %v8333_v49  ;;  %vm8285_vm9 = vcmp.ge.f32.partialorder %v8236_v53, 0.0  ;;  %v8334_v0 = vmul.f32 0.01, %v8236_v53  ;;  %v7742_v46 = vadd.f32 %v7628_v1, %v14944_v57  ;;  %v11388_v9 = vpop.f32.mrb[125].mxu1  ;;  %v8070_v23 = vpop.f32.mrb[178].mxu0 }
 0x7df   :  { %8432 = vst.msk [vmem:[#allocation4 + $0xd0] sm:$0xff] %vm8405_vm14, %v8382_v20  ;;  %v7631_v50 = vpop.f32.mrb[126].mxu1  ;;  %v11491_v52 = vpop.f32.mrb[179].mxu0  ;;  %v8865_v30 = vld [vmem:[#allocation4 + $0xc6] sm:$0x1] }
 0x7e0   :  { %v8383_v6 = vsel %vm8285_vm9, %v8236_v53, %v8334_v0  ;;  %v8181_v5 = vadd.f32 %v8067_v15, %v7742_v46  ;;  %v7743_v14 = vadd.f32 %v7631_v50, %v14948_v45  ;;  %v11389_v11 = vpop.f32.mrb[127].mxu1  ;;  %v8866_v24 = vld [vmem:[#allocation4 + $0xc7] sm:$0x1]  ;;  %v8884_v55 = vld [vmem:[#allocation4 + $0xc8] sm:$0x1] }
 0x7e1   :  { %8433 = vst.msk [vmem:[#allocation4 + $0xd8] sm:$0xff] %vm8405_vm14, %v8383_v6  ;;  %v8885_v45 = vld [vmem:[#allocation4 + $0xc9] sm:$0x1]  ;;  %v8857_v8 = vld [vmem:[#allocation4 + $0xc4] sm:$0x1]  ;;  %v8867_v17 = vmax.f32 %v8865_v30, %v8866_v24 }
 0x7e2   :  { %v8237_v34 = vadd.f32 %v15045_v2, %v8181_v5  ;;  %v8182_v26 = vadd.f32 %v8070_v23, %v7743_v14  ;;  %v8858_v25 = vld [vmem:[#allocation4 + $0xc5] sm:$0x1]  ;;  %v8922_v18 = vld [vmem:[#allocation4 + $0xcc] sm:$0x1]  ;;  %v8923_v54 = vld [vmem:[#allocation4 + $0xcd] sm:$0x1]  ;;  %v8886_v15 = vmax.f32 %v8884_v55, %v8885_v45 }
 0x7e3   :  { %v11585_v2 = vld [vmem:[%s15528_s5 + $0x70] sm:$0xff]   ;;  %v8903_v53 = vld [vmem:[#allocation4 + $0xca] sm:$0x1]  ;;  %v8859_v0 = vmax.f32 %v8857_v8, %v8858_v25  ;;  %v8924_v52 = vmax.f32 %v8922_v18, %v8923_v54 }
 0x7e4   :  { %vm8286_vm10 = vcmp.ge.f32.partialorder %v8237_v34, 0.0  ;;  %v8335_v57 = vmul.f32 0.01, %v8237_v34  ;;  %v8238_v7 = vadd.f32 %v15185_v27, %v8182_v26  ;;  %v8075_v31 = vpop.f32.mrb[180].mxu0  ;;  %10552 = vmatprep.subr.bf16.mxu1 %v11585_v2 }
 0x7e5   :  { %v7636_v3 = vpop.f32.mrb[128].mxu1  ;;  %v11494_v19 = vpop.f32.mrb[181].mxu0  ;;  %10553 = vmatpush3.bf16.msra.mxu1 %v11586_v28 }
 0x7e6   :  { %v8384_v32 = vsel %vm8286_vm10, %v8237_v34, %v8335_v57  ;;  %vm8287_vm0 = vcmp.ge.f32.partialorder %v8238_v7, 0.0  ;;  %v8336_v35 = vmul.f32 0.01, %v8238_v7  ;;  %v7744_v4 = vadd.f32 %v7636_v3, %v14956_v51  ;;  %v11392_v63 = vpop.f32.mrb[129].mxu1  ;;  %v8078_v13 = vpop.f32.mrb[182].mxu0 }
 0x7e7   :  { %8434 = vst.msk [vmem:[#allocation4 + $0xe0] sm:$0xff] %vm8405_vm14, %v8384_v32  ;;  %v7639_v38 = vpop.f32.mrb[130].mxu1  ;;  %v11495_v58 = vpop.f32.mrb[183].mxu0  ;;  %v8868_v22 = vld [vmem:[#allocation4 + $0xd4] sm:$0x1] }
 0x7e8   :  { %v8869_v43 = vld [vmem:[#allocation4 + $0xd5] sm:$0x1]  ;;  %v8385_v33 = vsel %vm8287_vm0, %v8238_v7, %v8336_v35  ;;  %v8183_v12 = vadd.f32 %v8075_v31, %v7744_v4  ;;  %v7745_v59 = vadd.f32 %v7639_v38, %v14960_v41  ;;  %v11393_v36 = vpop.f32.mrb[131].mxu1  ;;  %v8887_v39 = vld [vmem:[#allocation4 + $0xd6] sm:$0x1] }
 0x7e9   :  { %v8870_v47 = vmax.f32 %v8868_v22, %v8869_v43  ;;  %v8888_v49 = vld [vmem:[#allocation4 + $0xd7] sm:$0x1]  ;;  %v8904_v51 = vld [vmem:[#allocation4 + $0xcb] sm:$0x1]  ;;  %8435 = vst.msk [vmem:[#allocation4 + $0xe8] sm:$0xff] %vm8405_vm14, %v8385_v33 }
 0x7ea   :  { %v8889_v1 = vmax.f32 %v8887_v39, %v8888_v49  ;;  %v8906_v37 = vld [vmem:[#allocation4 + $0xd8] sm:$0x1]  ;;  %v8907_v20 = vld [vmem:[#allocation4 + $0xd9] sm:$0x1]  ;;  %v8860_v46 = vld [vmem:[#allocation4 + $0xd2] sm:$0x1]  ;;  %v8239_v9 = vadd.f32 %v15185_v27, %v8183_v12  ;;  %v8184_v23 = vadd.f32 %v8078_v13, %v7745_v59  ;;  %v8905_v45 = vmax.f32 %v8903_v53, %v8904_v51 }
 0x7eb   :  { %v8871_v50 = vmax.f32 %v8867_v17, %v8870_v47  ;;  %v8861_v41 = vld [vmem:[#allocation4 + $0xd3] sm:$0x1]  ;;  %v8925_v6 = vld [vmem:[#allocation4 + $0xda] sm:$0x1]  ;;  %v8926_v5 = vld [vmem:[#allocation4 + $0xdb] sm:$0x1]  ;;  %v8908_v11 = vmax.f32 %v8906_v37, %v8907_v20 }
 0x7ec   :  { %v8890_v14 = vmax.f32 %v8886_v15, %v8889_v1  ;;  %v8862_v34 = vmax.f32 %v8860_v46, %v8861_v41  ;;  %v8927_v26 = vmax.f32 %v8925_v6, %v8926_v5  ;;  %vm8288_vm11 = vcmp.ge.f32.partialorder %v8239_v9, 0.0  ;;  %v8083_v7 = vpop.f32.mrb[184].mxu0 }
 0x7ed   :  { %v8337_v30 = vmul.f32 0.01, %v8239_v9  ;;  %v8240_v24 = vadd.f32 %v15185_v27, %v8184_v23  ;;  %v8879_v57 = vrot.slane %v8871_v50, %v15070_v44  ;;  %v7644_v31 = vpop.f32.mrb[132].mxu1  ;;  %v11498_v55 = vpop.f32.mrb[185].mxu0  ;;  %v8909_v17 = vmax.f32 %v8905_v45, %v8908_v11 }
 0x7ee   :  { %v8863_v8 = vmax.f32 %v8859_v0, %v8862_v34  ;;  %v8928_v25 = vmax.f32 %v8924_v52, %v8927_v26  ;;  %v7746_v2 = vadd.f32 %v7644_v31, %v14968_v10  ;;  %v11396_v28 = vpop.f32.mrb[133].mxu1  ;;  %v8086_v18 = vpop.f32.mrb[186].mxu0  ;;  %v8898_v35 = vrot.slane %v8890_v14, %v15070_v44  ;;  %v8930_v4 = vld [vmem:[#allocation4 + $0xe0] sm:$0x1]  ;;  %v8931_v63 = vld [vmem:[#allocation4 + $0xe1] sm:$0x1] }
 0x7ef   :  { %v8386_v3 = vsel %vm8288_vm11, %v8239_v9, %v8337_v30  ;;  %vm8289_vm12 = vcmp.ge.f32.partialorder %v8240_v24, 0.0  ;;  %v8338_v19 = vmul.f32 0.01, %v8240_v24  ;;  %8880 = vrot.lane.b32.xlu1 %v8879_v57, %s11698_s2  ;;  %v7647_v54 = vpop.f32.mrb[134].mxu1  ;;  %v11499_v32 = vpop.f32.mrb[187].mxu0  ;;  %v8932_v33 = vmax.f32 %v8930_v4, %v8931_v63 }
 0x7f0   :  { %8436 = vst.msk [vmem:[#allocation4 + $0xf0] sm:$0xff] %vm8405_vm14, %v8386_v3  ;;  %v8185_v38 = vadd.f32 %v8083_v7, %v7746_v2  ;;  %v7747_v10 = vadd.f32 %v7647_v54, %v14972_v56  ;;  %v11397_v58 = vpop.f32.mrb[135].mxu1  ;;  %v8933_v22 = vld [vmem:[#allocation4 + $0xee] sm:$0x1]  ;;  %v8934_v43 = vld [vmem:[#allocation4 + $0xef] sm:$0x1]  ;;  %v8917_v56 = vrot.slane %v8909_v17, %v15070_v44 }
 0x7f1   :  { %8864 = vst.msk [vmem:[#allocation5 + $0x1] sm:$0x1] %vm8462_vm5, %v8863_v8  ;;  %8929 = vst.msk [vmem:[#allocation5 + $0x3] sm:$0x1] %vm8462_vm5, %v8928_v25  ;;  %v8387_v13 = vsel %vm8289_vm12, %v8240_v24, %v8338_v19  ;;  %v8935_v12 = vmax.f32 %v8933_v22, %v8934_v43  ;;  %v8995_v39 = vld [vmem:[#allocation4 + $0xe8] sm:$0x1] }
 0x7f2   :  { %8437 = vst.msk [vmem:[#allocation4 + $0xf8] sm:$0xff] %vm8405_vm14, %v8387_v13  ;;  %v8241_v59 = vadd.f32 %v15185_v27, %v8185_v38  ;;  %v8186_v36 = vadd.f32 %v8086_v18, %v7747_v10  ;;  %v8996_v15 = vld [vmem:[#allocation4 + $0xe9] sm:$0x1]  ;;  %v8949_v0 = vld [vmem:[#allocation4 + $0xe2] sm:$0x1] }
 0x7f3   :  { %8899 = vrot.lane.b32.xlu1 %v8898_v35, %s11699_s21  ;;  %v8936_v47 = vmax.f32 %v8932_v33, %v8935_v12  ;;  %v8950_v46 = vld [vmem:[#allocation4 + $0xe3] sm:$0x1]  ;;  %v8968_v6 = vld [vmem:[#allocation4 + $0xe4] sm:$0x1]  ;;  %v8969_v5 = vld [vmem:[#allocation4 + $0xe5] sm:$0x1]  ;;  %v8997_v34 = vmax.f32 %v8995_v39, %v8996_v15 }
 0x7f4   :  { %vm8290_vm13 = vcmp.ge.f32.partialorder %v8241_v59, 0.0  ;;  %v8339_v49 = vmul.f32 0.01, %v8241_v59  ;;  %v8242_v53 = vadd.f32 %v15185_v27, %v8186_v36  ;;  %v8091_v51 = vpop.f32.mrb[188].mxu0  ;;  %v8951_v8 = vmax.f32 %v8949_v0, %v8950_v46  ;;  %v8987_v32 = vld [vmem:[#allocation4 + $0xe6] sm:$0x1] }
 0x7f5   :  { %v7652_v1 = vpop.f32.mrb[136].mxu1  ;;  %v11502_v37 = vpop.f32.mrb[189].mxu0  ;;  %v8944_v20 = vrot.slane %v8936_v47, %v15070_v44  ;;  %v8988_v35 = vld [vmem:[#allocation4 + $0xe7] sm:$0x1] }
 0x7f6   :  { %v8388_v9 = vsel %vm8290_vm13, %v8241_v59, %v8339_v49  ;;  %vm8291_vm2 = vcmp.ge.f32.partialorder %v8242_v53, 0.0  ;;  %v8340_v23 = vmul.f32 0.01, %v8242_v53  ;;  %v7748_v50 = vadd.f32 %v7652_v1, %v14980_v62  ;;  %v11400_v41 = vpop.f32.mrb[137].mxu1  ;;  %v8094_v52 = vpop.f32.mrb[190].mxu0 }
 0x7f7   :  { %8918 = vrot.lane.b32.xlu1 %v8917_v56, %s11700_s22  ;;  %8438 = vst.msk [vmem:[#allocation4 + $0x100] sm:$0xff] %vm8405_vm14, %v8388_v9  ;;  %v7655_v14 = vpop.f32.mrb[138].mxu1  ;;  %8945 = vrot.lane.b32.xlu0 %v8944_v20, %s11698_s2  ;;  %v11503_v11 = vpop.f32.mrb[191].mxu0  ;;  %v8998_v26 = vld [vmem:[#allocation4 + $0xf6] sm:$0x1]  ;;  %v8989_v47 = vmax.f32 %v8987_v32, %v8988_v35  ;;  %v11587_v20 = vld [vmem:[%s15528_s5 + $0x78] sm:$0xff]  }
 0x7f8   :  { %v8999_v30 = vld [vmem:[#allocation4 + $0xf7] sm:$0x1]  ;;  %v8389_v24 = vsel %vm8291_vm2, %v8242_v53, %v8340_v23  ;;  %v8187_v57 = vadd.f32 %v8091_v51, %v7748_v50  ;;  %v7749_v7 = vadd.f32 %v7655_v14, %v14984_v21  ;;  %v11401_v62 = vpop.f32.mrb[139].mxu1  ;;  %v8952_v55 = vld [vmem:[#allocation4 + $0xf0] sm:$0x1]  ;;  %v8970_v21 = vmax.f32 %v8968_v6, %v8969_v5  ;;  %10554 = vmatprep.subr.bf16.mxu1 %v11587_v20 }
 0x7f9   :  { %v9000_v31 = vmax.f32 %v8998_v26, %v8999_v30  ;;  %v8953_v45 = vld [vmem:[#allocation4 + $0xf1] sm:$0x1]  ;;  %8439 = vst.msk [vmem:[#allocation4 + $0x108] sm:$0xff] %vm8405_vm14, %v8389_v24  ;;  %v8971_v3 = vld [vmem:[#allocation4 + $0xf2] sm:$0x1]  ;;  %v11588_v26 = vld [vmem:[%s15528_s5 + $0x38] sm:$0xff]  }
 0x7fa   :  { %v8954_v25 = vmax.f32 %v8952_v55, %v8953_v45  ;;  %v8972_v19 = vld [vmem:[#allocation4 + $0xf3] sm:$0x1]  ;;  %v8243_v2 = vadd.f32 %v15185_v27, %v8187_v57  ;;  %v8188_v28 = vadd.f32 %v8094_v52, %v7749_v7  ;;  %v8990_v63 = vld [vmem:[#allocation4 + $0xf4] sm:$0x1]  ;;  %v8991_v13 = vld [vmem:[#allocation4 + $0xf5] sm:$0x1]  ;;  %10555 = vmatpush3.bf16.msra.mxu1 %v11588_v26 }
 0x7fb   :  { %v9001_v18 = vmax.f32 %v8997_v34, %v9000_v31  ;;  %v8973_v54 = vmax.f32 %v8971_v3, %v8972_v19  ;;  %v9014_v59 = vld [vmem:[#allocation4 + $0xfc] sm:$0x1]  ;;  %v9015_v36 = vld [vmem:[#allocation4 + $0xfd] sm:$0x1]  ;;  %v8992_v39 = vmax.f32 %v8990_v63, %v8991_v13  ;;  %v15226_v1 = vld [vmem:[#allocation4 + $0x66] sm:$0x1] }
 0x7fc   :  { %v8955_v4 = vmax.f32 %v8951_v8, %v8954_v25  ;;  %vm8292_vm4 = vcmp.ge.f32.partialorder %v8243_v2, 0.0  ;;  %v8341_v38 = vmul.f32 0.01, %v8243_v2  ;;  %v8244_v10 = vadd.f32 %v15185_v27, %v8188_v28  ;;  %v8099_v17 = vpop.f32.mrb[192].mxu0  ;;  %v15228_v37 = vld [vmem:[#allocation4 + $0x67] sm:$0x1] }
 0x7fd   :  { %v9009_v58 = vrot.slane %v9001_v18, %v15070_v44  ;;  %v7660_v22 = vpop.f32.mrb[140].mxu1  ;;  %v11506_v33 = vpop.f32.mrb[193].mxu0  ;;  %v8974_v12 = vmax.f32 %v8970_v21, %v8973_v54  ;;  %v9034_v9 = vld [vmem:[#allocation4 + $0xff] sm:$0x1]  ;;  %v15235_v23 = vld [vmem:[#allocation4 + $0x58] sm:$0x1]  ;;  %v8993_v50 = vmax.f32 %v8989_v47, %v8992_v39  ;;  %v9016_v24 = vmax.f32 %v9014_v59, %v9015_v36 }
 0x7fe   :  { %v8963_v43 = vrot.slane %v8955_v4, %v15070_v44  ;;  %v8390_v49 = vsel %vm8292_vm4, %v8243_v2, %v8341_v38  ;;  %vm8293_vm6 = vcmp.ge.f32.partialorder %v8244_v10, 0.0  ;;  %v8342_v53 = vmul.f32 0.01, %v8244_v10  ;;  %v11404_v51 = vpop.f32.mrb[141].mxu1  ;;  %v8102_v15 = vpop.f32.mrb[194].mxu0 }
 0x7ff   :  { %v7750_v56 = vadd.f32 %v7660_v22, %v14992_v16  ;;  %9010 = vrot.lane.b32.xlu1 %v9009_v58, %s11698_s2  ;;  %8440 = vst.msk [vmem:[#allocation4 + $0x110] sm:$0xff] %vm8405_vm14, %v8390_v49  ;;  %v7663_v0 = vpop.f32.mrb[142].mxu1  ;;  %v11507_v46 = vpop.f32.mrb[195].mxu0  ;;  %v9033_v16 = vld [vmem:[#allocation4 + $0xfe] sm:$0x1]  ;;  %v8982_v30 = vrot.slane %v8974_v12, %v15070_v44  ;;  %v8732_v54 = vmax.f32 %v15226_v1, %v15228_v37 }
 0x800   :  { %8964 = vrot.lane.b32.xlu0 %v8963_v43, %s11699_s21  ;;  %v8391_v41 = vsel %vm8293_vm6, %v8244_v10, %v8342_v53  ;;  %v7751_v6 = vadd.f32 %v7663_v0, %v14996_v29  ;;  %v11405_v14 = vpop.f32.mrb[143].mxu1  ;;  %v9017_v11 = vld [vmem:[#allocation4 + $0x10a] sm:$0x1]  ;;  %v9018_v34 = vld [vmem:[#allocation4 + $0x10b] sm:$0x1]  ;;  %v9035_v28 = vmax.f32 %v9033_v16, %v9034_v9 }
 0x801   :  { %v8189_v52 = vadd.f32 %v8099_v17, %v7750_v56  ;;  %v8480_v5 = vpop.permute.xlu1 %8479  ;;  %8441 = vst.msk [vmem:[#allocation4 + $0x118] sm:$0xff] %vm8405_vm14, %v8391_v41  ;;  %v9019_v57 = vmax.f32 %v9017_v11, %v9018_v34  ;;  %v9036_v7 = vld [vmem:[#allocation4 + $0x10c] sm:$0x1]  ;;  %v9037_v62 = vld [vmem:[#allocation4 + $0x10d] sm:$0x1] }
 0x802   :  { %8483 = vst.msk [vmem:[#allocation5] sm:$0x1] %vm8482_vm15, %v8480_v5  ;;  %v8728_v29 = vld [vmem:[#allocation4 + $0x59] sm:$0x1]  ;;  %v8190_v55 = vadd.f32 %v8102_v15, %v7751_v6  ;;  %v9038_v45 = vmax.f32 %v9036_v7, %v9037_v62  ;;  %v15247_v8 = vld [vmem:[#allocation4 + $0x68] sm:$0x1] }
 0x803   :  { %8994 = vst.msk [vmem:[#allocation5 + $0x5] sm:$0x1] %vm8462_vm5, %v8993_v50  ;;  %v8245_v31 = vadd.f32 %v15185_v27, %v8189_v52  ;;  %v15249_v25 = vld [vmem:[#allocation4 + $0x69] sm:$0x1]  ;;  %v9052_v3 = vld [vmem:[#allocation4 + $0x100] sm:$0x1]  ;;  %v9020_v2 = vmax.f32 %v9016_v24, %v9019_v57  ;;  %v8729_v10 = vmax.f32 %v15235_v23, %v8728_v29 }
 0x804   :  { %v9053_v19 = vld [vmem:[#allocation4 + $0x101] sm:$0x1]  ;;  %8983 = vrot.lane.b32.xlu0 %v8982_v30, %s11700_s22  ;;  %v9060_v18 = vld [vmem:[#allocation4 + $0x102] sm:$0x1]  ;;  %v9055_v32 = vld [vmem:[#allocation4 + $0x10e] sm:$0x1]  ;;  %v8246_v21 = vadd.f32 %v15185_v27, %v8190_v55  ;;  %v9039_v12 = vmax.f32 %v9035_v28, %v9038_v45  ;;  %v8751_v52 = vmax.f32 %v15247_v8, %v15249_v25 }
 0x805   :  { %v9056_v35 = vld [vmem:[#allocation4 + $0x10f] sm:$0x1]  ;;  %vm8294_vm8 = vcmp.ge.f32.partialorder %v8245_v31, 0.0  ;;  %v8343_v4 = vmul.f32 0.01, %v8245_v31  ;;  %v8500_v63 = vpop.permute.xlu1 %8499  ;;  %v8107_v13 = vpop.f32.mrb[196].mxu0  ;;  %v9028_v33 = vrot.slane %v9020_v2, %v15070_v44  ;;  %v9054_v47 = vmax.f32 %v9052_v3, %v9053_v19 }
 0x806   :  { %v9061_v38 = vld [vmem:[#allocation4 + $0x103] sm:$0x1]  ;;  %v15256_v58 = vld [vmem:[#allocation4 + $0x6a] sm:$0x1]  ;;  %v15258_v17 = vld [vmem:[#allocation4 + $0x6b] sm:$0x1]  ;;  %v9057_v39 = vmax.f32 %v9055_v32, %v9056_v35  ;;  %v8733_v41 = vmax.f32 %v8729_v10, %v8732_v54  ;;  %v9047_v7 = vrot.slane %v9039_v12, %v15070_v44 }
 0x807   :  { %8503 = vst.msk [vmem:[#allocation5] sm:$0x1] %vm8502_vm3, %v8500_v63  ;;  %v7668_v22 = vpop.f32.mrb[144].mxu1  ;;  %v11510_v43 = vpop.f32.mrb[197].mxu0  ;;  %v9079_v59 = vld [vmem:[#allocation4 + $0x104] sm:$0x1]  ;;  %v8392_v49 = vsel %vm8294_vm8, %v8245_v31, %v8343_v4  ;;  %9029 = vrot.lane.b32.xlu1 %v9028_v33, %s11699_s21  ;;  %v9062_v9 = vmax.f32 %v9060_v18, %v9061_v38  ;;  %v8770_v31 = vmax.f32 %v15256_v58, %v15258_v17 }
 0x808   :  { %v9080_v36 = vld [vmem:[#allocation4 + $0x105] sm:$0x1]  ;;  %vm8295_vm9 = vcmp.ge.f32.partialorder %v8246_v21, 0.0  ;;  %v8344_v53 = vmul.f32 0.01, %v8246_v21  ;;  %v7752_v56 = vadd.f32 %v7668_v22, %v15004_v42  ;;  %v11408_v51 = vpop.f32.mrb[145].mxu1  ;;  %v9058_v42 = vmax.f32 %v9054_v47, %v9057_v39 }
 0x809   :  { %v8110_v15 = vpop.f32.mrb[198].mxu0  ;;  %v8746_v1 = vld [vmem:[#allocation4 + $0x5a] sm:$0x1]  ;;  %v8747_v37 = vld [vmem:[#allocation4 + $0x5b] sm:$0x1]  ;;  %8442 = vst.msk [vmem:[#allocation4 + $0x120] sm:$0xff] %vm8405_vm14, %v8392_v49  ;;  %v8520_v11 = vpop.permute.xlu1 %8519  ;;  %v9081_v62 = vmax.f32 %v9079_v59, %v9080_v36 }
 0x80a   :  { %v8765_v20 = vld [vmem:[#allocation4 + $0x5c] sm:$0x1]  ;;  %v8766_v0 = vld [vmem:[#allocation4 + $0x5d] sm:$0x1]  ;;  %v7671_v46 = vpop.f32.mrb[146].mxu1  ;;  %v11511_v16 = vpop.f32.mrb[199].mxu0  ;;  %v8393_v6 = vsel %vm8295_vm9, %v8246_v21, %v8344_v53  ;;  %v8191_v5 = vadd.f32 %v8107_v13, %v7752_v56  ;;  %v8748_v25 = vmax.f32 %v8746_v1, %v8747_v37  ;;  %v8741_v13 = vrot.slane %v8733_v41, %v15070_v44 }
 0x80b   :  { %v9063_v23 = vld [vmem:[#allocation4 + $0x110] sm:$0x1]  ;;  %v9064_v50 = vld [vmem:[#allocation4 + $0x111] sm:$0x1]  ;;  %v7753_v14 = vadd.f32 %v7671_v46, %v15008_v60  ;;  %v11409_v34 = vpop.f32.mrb[147].mxu1  ;;  %8443 = vst.msk [vmem:[#allocation4 + $0x128] sm:$0xff] %vm8405_vm14, %v8393_v6  ;;  %v8548_v57 = vpop.permute.xlu0 %8547  ;;  %9048 = vrot.lane.b32.xlu1 %v9047_v7, %s11700_s22  ;;  %v8767_v19 = vmax.f32 %v8765_v20, %v8766_v0 }
 0x80c   :  { %v9065_v26 = vmax.f32 %v9063_v23, %v9064_v50  ;;  %v9082_v30 = vld [vmem:[#allocation4 + $0x112] sm:$0x1]  ;;  %v9083_v24 = vld [vmem:[#allocation4 + $0x113] sm:$0x1]  ;;  %8523 = vst.msk [vmem:[#allocation5] sm:$0x1] %vm8522_vm7, %v8520_v11  ;;  %v8247_v60 = vadd.f32 %v15185_v27, %v8191_v5  ;;  %v8752_v38 = vmax.f32 %v8748_v25, %v8751_v52 }
 0x80d   :  { %v9084_v29 = vmax.f32 %v9082_v30, %v9083_v24  ;;  %9059 = vst.msk [vmem:[#allocation5 + $0x7] sm:$0x1] %vm8462_vm5, %v9058_v42  ;;  %v8192_v55 = vadd.f32 %v8110_v15, %v7753_v14  ;;  %v9098_v3 = vld [vmem:[#allocation4 + $0x118] sm:$0x1]  ;;  %v15279_v2 = vld [vmem:[#allocation4 + $0x80] sm:$0x1]  ;;  %v15286_v10 = vmax.f32 %v8767_v19, %v8770_v31 }
 0x80e   :  { %8550 = vst.msk [vmem:[#allocation5 + $0x2] sm:$0x1] %vm8482_vm15, %v8548_v57  ;;  %v9066_v45 = vmax.f32 %v9062_v9, %v9065_v26  ;;  %v15281_v28 = vld [vmem:[#allocation4 + $0x81] sm:$0x1]  ;;  %vm8296_vm10 = vcmp.ge.f32.partialorder %v8247_v60, 0.0  ;;  %v8115_v35 = vpop.f32.mrb[200].mxu0  ;;  %v8760_v14 = vrot.slane %v8752_v38, %v15070_v44 }
 0x80f   :  { %v9085_v8 = vmax.f32 %v9081_v62, %v9084_v29  ;;  %v8345_v18 = vmul.f32 0.01, %v8247_v60  ;;  %v8248_v54 = vadd.f32 %v15185_v27, %v8192_v55  ;;  %v9099_v4 = vld [vmem:[#allocation4 + $0x119] sm:$0x1]  ;;  %v7676_v21 = vpop.f32.mrb[148].mxu1  ;;  %v8567_v63 = vpop.permute.xlu0 %8566  ;;  %8742 = vrot.lane.b32.xlu1 %v8741_v13, %s11698_s2  ;;  %v8797_v0 = vmax.f32 %v15279_v2, %v15281_v28 }
 0x810   :  { %v9074_v32 = vrot.slane %v9066_v45, %v15070_v44  ;;  %v8792_v58 = vld [vmem:[#allocation4 + $0x72] sm:$0x1]  ;;  %v8793_v17 = vld [vmem:[#allocation4 + $0x73] sm:$0x1]  ;;  %v7754_v33 = vadd.f32 %v7676_v21, %v15016_v40  ;;  %8569 = vst.msk [vmem:[#allocation5 + $0x2] sm:$0x1] %vm8502_vm3, %v8567_v63  ;;  %v9100_v1 = vmax.f32 %v9098_v3, %v9099_v4  ;;  %v8779_v57 = vrot.slane %v15286_v10, %v15070_v44 }
 0x811   :  { %v8394_v22 = vsel %vm8296_vm10, %v8247_v60, %v8345_v18  ;;  %vm8297_vm0 = vcmp.ge.f32.partialorder %v8248_v54, 0.0  ;;  %v8346_v43 = vmul.f32 0.01, %v8248_v54  ;;  %v11412_v12 = vpop.f32.mrb[149].mxu1  ;;  %v11514_v59 = vpop.f32.mrb[201].mxu0  ;;  %v9093_v15 = vrot.slane %v9085_v8, %v15070_v44 }
 0x812   :  { %9075 = vrot.lane.b32.xlu0 %v9074_v32, %s11698_s2  ;;  %v9125_v36 = vld [vmem:[#allocation4 + $0x11c] sm:$0x1]  ;;  %v9126_v47 = vld [vmem:[#allocation4 + $0x11d] sm:$0x1]  ;;  %v15291_v39 = vld [vmem:[#allocation4 + $0x74] sm:$0x1]  ;;  %v8193_v16 = vadd.f32 %v8115_v35, %v7754_v33  ;;  %v8613_v23 = vpop.permute.xlu1 %8612  ;;  %v8794_v11 = vmax.f32 %v8792_v58, %v8793_v17 }
 0x813   :  { %v15293_v49 = vld [vmem:[#allocation4 + $0x75] sm:$0x1]  ;;  %v15295_v53 = vld [vmem:[#allocation4 + $0x82] sm:$0x1]  ;;  %v15297_v56 = vld [vmem:[#allocation4 + $0x83] sm:$0x1]  ;;  %v8395_v46 = vsel %vm8297_vm0, %v8248_v54, %v8346_v43  ;;  %v8586_v5 = vpop.permute.xlu0 %8585  ;;  %8761 = vrot.lane.b32.xlu1 %v8760_v14, %s11699_s21  ;;  %v9127_v45 = vmax.f32 %v9125_v36, %v9126_v47 }
 0x814   :  { %8444 = vst.msk [vmem:[#allocation4 + $0x130] sm:$0xff] %vm8405_vm14, %v8394_v22  ;;  %v7679_v51 = vpop.f32.mrb[150].mxu1  ;;  %v8118_v40 = vpop.f32.mrb[202].mxu0  ;;  %v9101_v37 = vld [vmem:[#allocation4 + $0x126] sm:$0x1]  ;;  %8445 = vst.msk [vmem:[#allocation4 + $0x138] sm:$0xff] %vm8405_vm14, %v8395_v46  ;;  %v8249_v30 = vadd.f32 %v15185_v27, %v8193_v16  ;;  %v8798_v55 = vmax.f32 %v8794_v11, %v8797_v0  ;;  %v8813_v8 = vmax.f32 %v15291_v39, %v15293_v49 }
 0x815   :  { %v9102_v20 = vld [vmem:[#allocation4 + $0x127] sm:$0x1]  ;;  %v7755_v9 = vadd.f32 %v7679_v51, %v15020_v61  ;;  %v11413_v50 = vpop.f32.mrb[151].mxu1  ;;  %v9128_v52 = vld [vmem:[#allocation4 + $0x12a] sm:$0x1]  ;;  %v11515_v6 = vpop.f32.mrb[203].mxu0  ;;  %v8816_v25 = vmax.f32 %v15295_v53, %v15297_v56 }
 0x816   :  { %v9103_v41 = vmax.f32 %v9101_v37, %v9102_v20  ;;  %v9129_v42 = vld [vmem:[#allocation4 + $0x12b] sm:$0x1]  ;;  %8615 = vst.msk [vmem:[#allocation5 + $0x4] sm:$0x1] %vm8482_vm15, %v8613_v23  ;;  %v9117_v26 = vld [vmem:[#allocation4 + $0x11a] sm:$0x1]  ;;  %9094 = vrot.lane.b32.xlu0 %v9093_v15, %s11699_s21 }
 0x817   :  { %v9130_v34 = vmax.f32 %v9128_v52, %v9129_v42  ;;  %v8194_v24 = vadd.f32 %v8118_v40, %v7755_v9  ;;  %8588 = vst.msk [vmem:[#allocation5 + $0x2] sm:$0x1] %vm8522_vm7, %v8586_v5  ;;  %v9147_v7 = vld [vmem:[#allocation4 + $0x12c] sm:$0x1]  ;;  %v9148_v62 = vld [vmem:[#allocation4 + $0x12d] sm:$0x1]  ;;  %8780 = vrot.lane.b32.xlu1 %v8779_v57, %s11700_s22  ;;  %v8817_v39 = vmax.f32 %v8813_v8, %v8816_v25 }
 0x818   :  { %v9104_v61 = vmax.f32 %v9100_v1, %v9103_v41  ;;  %v8833_v29 = vld [vmem:[#allocation4 + $0x84] sm:$0x1]  ;;  %v8834_v31 = vld [vmem:[#allocation4 + $0x85] sm:$0x1]  ;;  %v9118_v60 = vld [vmem:[#allocation4 + $0x11b] sm:$0x1]  ;;  %v9149_v10 = vmax.f32 %v9147_v7, %v9148_v62  ;;  %v8806_v1 = vrot.slane %v8798_v55, %v15070_v44 }
 0x819   :  { %v9144_v3 = vld [vmem:[#allocation4 + $0x11e] sm:$0x1]  ;;  %v9120_v19 = vld [vmem:[#allocation4 + $0x128] sm:$0x1]  ;;  %v9121_v2 = vld [vmem:[#allocation4 + $0x129] sm:$0x1]  ;;  %v8250_v18 = vadd.f32 %v15185_v27, %v8194_v24  ;;  %v9131_v38 = vmax.f32 %v9127_v45, %v9130_v34  ;;  %v9119_v22 = vmax.f32 %v9117_v26, %v9118_v60  ;;  %v8835_v53 = vmax.f32 %v8833_v29, %v8834_v31  ;;  %v8632_v40 = vpop.permute.xlu1 %8631 }
 0x81a   :  { %vm8298_vm11 = vcmp.ge.f32.partialorder %v8249_v30, 0.0  ;;  %v8347_v28 = vmul.f32 0.01, %v8249_v30  ;;  %v9112_v54 = vrot.slane %v9104_v61, %v15070_v44  ;;  %v8123_v32 = vpop.f32.mrb[204].mxu0  ;;  %v9145_v35 = vld [vmem:[#allocation4 + $0x11f] sm:$0x1]  ;;  %v9122_v43 = vmax.f32 %v9120_v19, %v9121_v2  ;;  %v8678_v46 = vpop.permute.xlu0 %8677 }
 0x81b   :  { %v8830_v4 = vld [vmem:[#allocation4 + $0x76] sm:$0x1]  ;;  %v8831_v21 = vld [vmem:[#allocation4 + $0x77] sm:$0x1]  ;;  %v7684_v63 = vpop.f32.mrb[152].mxu1  ;;  %v11518_v13 = vpop.f32.mrb[205].mxu0  ;;  %v9146_v49 = vmax.f32 %v9144_v3, %v9145_v35  ;;  %v9139_v16 = vrot.slane %v9131_v38, %v15070_v44  ;;  %v8825_v34 = vrot.slane %v8817_v39, %v15070_v44 }
 0x81c   :  { %v9166_v58 = vld [vmem:[#allocation4 + $0x12e] sm:$0x1]  ;;  %v9167_v17 = vld [vmem:[#allocation4 + $0x12f] sm:$0x1]  ;;  %v8396_v33 = vsel %vm8298_vm11, %v8249_v30, %v8347_v28  ;;  %vm8299_vm12 = vcmp.ge.f32.partialorder %v8250_v18, 0.0  ;;  %9113 = vrot.lane.b32.xlu0 %v9112_v54, %s11700_s22  ;;  %v11416_v27 = vpop.f32.mrb[153].mxu1  ;;  %v9123_v56 = vmax.f32 %v9119_v22, %v9122_v43  ;;  %v8832_v23 = vmax.f32 %v8830_v4, %v8831_v21 }
 0x81d   :  { %v8348_v12 = vmul.f32 0.01, %v8250_v18  ;;  %v8126_v59 = vpop.f32.mrb[206].mxu0  ;;  %8446 = vst.msk [vmem:[#allocation4 + $0x140] sm:$0xff] %vm8405_vm14, %v8396_v33  ;;  %v7687_v36 = vpop.f32.mrb[154].mxu1  ;;  %v11589_v0 = vld [vmem:[%s15528_s5 + $0xc0] sm:$0xff]   ;;  %v9150_v9 = vmax.f32 %v9146_v49, %v9149_v10  ;;  %v9168_v50 = vmax.f32 %v9166_v58, %v9167_v17  ;;  %9140 = vrot.lane.b32.xlu1 %v9139_v16, %s11698_s2 }
 0x81e   :  { %v11519_v47 = vpop.f32.mrb[207].mxu0  ;;  %v11417_v15 = vpop.f32.mrb[155].mxu1  ;;  %v9163_v37 = vld [vmem:[#allocation4 + $0x120] sm:$0x1]  ;;  %v9164_v20 = vld [vmem:[#allocation4 + $0x121] sm:$0x1]  ;;  %10562 = vmatprep.subr.bf16.mxu1 %v11589_v0  ;;  %v8836_v41 = vmax.f32 %v8832_v23, %v8835_v53 }
 0x81f   :  { %v8397_v51 = vsel %vm8299_vm12, %v8250_v18, %v8348_v12  ;;  %8634 = vst.msk [vmem:[#allocation5 + $0x4] sm:$0x1] %vm8502_vm3, %v8632_v40  ;;  %v9165_v52 = vmax.f32 %v9163_v37, %v9164_v20  ;;  %v9190_v42 = vld [vmem:[#allocation4 + $0x136] sm:$0x1]  ;;  %v9191_v6 = vld [vmem:[#allocation4 + $0x137] sm:$0x1]  ;;  %v8651_v11 = vpop.permute.xlu1 %8650  ;;  %v8697_v24 = vpop.permute.xlu0 %8696  ;;  %v9158_v61 = vrot.slane %v9150_v9, %v15070_v44 }
 0x820   :  { %8447 = vst.msk [vmem:[#allocation4 + $0x148] sm:$0xff] %vm8405_vm14, %v8397_v51  ;;  %8807 = vrot.lane.b32.xlu0 %v8806_v1, %s11698_s2  ;;  %v9247_v5 = vld [vmem:[#allocation4 + $0x13c] sm:$0x1]  ;;  %v9248_v14 = vld [vmem:[#allocation4 + $0x13d] sm:$0x1]  ;;  %v8131_v26 = vpop.f32.mrb[208].mxu0  ;;  %v8844_v25 = vrot.slane %v8836_v41, %v15070_v44  ;;  %v9192_v3 = vmax.f32 %v9190_v42, %v9191_v6 }
 0x821   :  { %9124 = vst.msk [vmem:[#allocation5 + $0x9] sm:$0x1] %vm8462_vm5, %v9123_v56  ;;  %v7692_v30 = vpop.f32.mrb[156].mxu1  ;;  %v9169_v57 = vmax.f32 %v9165_v52, %v9168_v50  ;;  %v9209_v7 = vld [vmem:[#allocation4 + $0x138] sm:$0x1]  ;;  %v11522_v31 = vpop.f32.mrb[209].mxu0  ;;  %9159 = vrot.lane.b32.xlu1 %v9158_v61, %s11699_s21  ;;  %v9249_v63 = vmax.f32 %v9247_v5, %v9248_v14 }
 0x822   :  { %8680 = vst.msk [vmem:[#allocation5 + $0x6] sm:$0x1] %vm8482_vm15, %v8678_v46  ;;  %v9210_v62 = vld [vmem:[#allocation4 + $0x139] sm:$0x1]  ;;  %v11420_v29 = vpop.f32.mrb[157].mxu1  ;;  %v8134_v8 = vpop.f32.mrb[210].mxu0 }
 0x823   :  { %8653 = vst.msk [vmem:[#allocation5 + $0x4] sm:$0x1] %vm8522_vm7, %v8651_v11  ;;  %v9182_v60 = vld [vmem:[#allocation4 + $0x134] sm:$0x1]  ;;  %v9183_v55 = vld [vmem:[#allocation4 + $0x135] sm:$0x1]  ;;  %v9177_v38 = vrot.slane %v9169_v57, %v15070_v44  ;;  %v9211_v10 = vmax.f32 %v9209_v7, %v9210_v62 }
 0x824   :  { %8699 = vst.msk [vmem:[#allocation5 + $0x6] sm:$0x1] %vm8502_vm3, %v8697_v24  ;;  %8826 = vrot.lane.b32.xlu0 %v8825_v34, %s11699_s21  ;;  %v7695_v45 = vpop.f32.mrb[158].mxu1  ;;  %v9193_v19 = vld [vmem:[#allocation4 + $0x144] sm:$0x1]  ;;  %v11523_v32 = vpop.f32.mrb[211].mxu0  ;;  %v9184_v47 = vmax.f32 %v9182_v60, %v9183_v55 }
 0x825   :  { %v9194_v2 = vld [vmem:[#allocation4 + $0x145] sm:$0x1]  ;;  %v11421_v54 = vpop.f32.mrb[159].mxu1  ;;  %v9228_v4 = vld [vmem:[#allocation4 + $0x13a] sm:$0x1]  ;;  %9178 = vrot.lane.b32.xlu1 %v9177_v38, %s11700_s22  ;;  %v8139_v56 = vpop.f32.mrb[212].mxu0 }
 0x826   :  { %v9195_v35 = vmax.f32 %v9193_v19, %v9194_v2  ;;  %v9229_v21 = vld [vmem:[#allocation4 + $0x13b] sm:$0x1]  ;;  %v9212_v58 = vld [vmem:[#allocation4 + $0x146] sm:$0x1]  ;;  %v9213_v17 = vld [vmem:[#allocation4 + $0x147] sm:$0x1] }
 0x827   :  { %v9250_v28 = vld [vmem:[#allocation4 + $0x14a] sm:$0x1]  ;;  %v9251_v18 = vld [vmem:[#allocation4 + $0x14b] sm:$0x1]  ;;  %v9231_v22 = vld [vmem:[#allocation4 + $0x148] sm:$0x1]  ;;  %v9214_v33 = vmax.f32 %v9212_v58, %v9213_v17  ;;  %v9230_v1 = vmax.f32 %v9228_v4, %v9229_v21 }
 0x828   :  { %v9252_v13 = vmax.f32 %v9250_v28, %v9251_v18  ;;  %8845 = vrot.lane.b32.xlu0 %v8844_v25, %s11700_s22  ;;  %v9196_v43 = vmax.f32 %v9192_v3, %v9195_v35  ;;  %v9232_v12 = vld [vmem:[#allocation4 + $0x149] sm:$0x1]  ;;  %v9185_v27 = vld [vmem:[#allocation4 + $0x142] sm:$0x1]  ;;  %v9186_v59 = vld [vmem:[#allocation4 + $0x143] sm:$0x1] }
 0x829   :  { %v9233_v36 = vmax.f32 %v9231_v22, %v9232_v12  ;;  %v9187_v39 = vmax.f32 %v9185_v27, %v9186_v59  ;;  %v7700_v51 = vpop.f32.mrb[160].mxu1  ;;  %v11526_v40 = vpop.f32.mrb[213].mxu0  ;;  %v9215_v15 = vmax.f32 %v9211_v10, %v9214_v33  ;;  %v11590_v17 = vld [vmem:[%s15528_s5 + $0x80] sm:$0xff]   ;;  %v11591_v33 = vld [vmem:[%s15528_s5 + $0xc8] sm:$0xff]   ;;  %v11596_v56 = vld [vmem:[%s15528_s5 + $0x98] sm:$0xff]  }
 0x82a   :  { %v9253_v49 = vmax.f32 %v9249_v63, %v9252_v13  ;;  %v9204_v53 = vrot.slane %v9196_v43, %v15070_v44  ;;  %v11424_v20 = vpop.f32.mrb[161].mxu1  ;;  %v8142_v0 = vpop.f32.mrb[214].mxu0  ;;  %v11592_v59 = vld [vmem:[%s15528_s5 + $0x88] sm:$0xff]   ;;  %v11597_v51 = vld [vmem:[%s15528_s5 + $0xe0] sm:$0xff]  }
 0x82b   :  { %v9188_v37 = vmax.f32 %v9184_v47, %v9187_v39  ;;  %v7703_v46 = vpop.f32.mrb[162].mxu1  ;;  %v11527_v16 = vpop.f32.mrb[215].mxu0  ;;  %v9234_v9 = vmax.f32 %v9230_v1, %v9233_v36  ;;  %v9223_v41 = vrot.slane %v9215_v15, %v15070_v44  ;;  %v11593_v36 = vld [vmem:[%s15528_s5 + $0xd0] sm:$0xff]   ;;  %v11598_v40 = vld [vmem:[%s15528_s5 + $0xa0] sm:$0xff]   ;;  %v11599_v15 = vld [vmem:[%s15528_s5 + $0xe8] sm:$0xff]  }
 0x82c   :  { %9254 = vst.msk [vmem:[#allocation5 + $0xd] sm:$0x1] %vm8462_vm5, %v9253_v49  ;;  %9205 = vrot.lane.b32.xlu0 %v9204_v53, %s11698_s2  ;;  %v8716_v23 = vpop.permute.xlu0 %8715  ;;  %v11425_v50 = vpop.f32.mrb[163].mxu1  ;;  %v11594_v39 = vld [vmem:[%s15528_s5 + $0x90] sm:$0xff]   ;;  %v11595_v49 = vld [vmem:[%s15528_s5 + $0xd8] sm:$0xff]   ;;  %v11600_v1 = vld [vmem:[%s15528_s5 + $0xa8] sm:$0xff]  }
 0x82d   :  { %9189 = vst.msk [vmem:[#allocation5 + $0xb] sm:$0x1] %vm8462_vm5, %v9188_v37  ;;  %v9242_v52 = vrot.slane %v9234_v9, %v15070_v44  ;;  %v8147_v42 = vpop.f32.mrb[216].mxu0  ;;  %v7708_v6 = vpop.f32.mrb[164].mxu1  ;;  %v11601_v37 = vld [vmem:[%s15528_s5 + $0xf0] sm:$0xff]   ;;  %v11603_v46 = vld [vmem:[%s15528_s5 + $0xf8] sm:$0xff]  }
 0x82e   :  { %8718 = vst.msk [vmem:[#allocation5 + $0x6] sm:$0x1] %vm8522_vm7, %v8716_v23  ;;  %v11530_v5 = vpop.f32.mrb[217].mxu0  ;;  %v11428_v14 = vpop.f32.mrb[165].mxu1  ;;  %v11602_v0 = vld [vmem:[%s15528_s5 + $0xb0] sm:$0xff]   ;;  %v11604_v9 = vld [vmem:[%s15528_s5 + $0xb8] sm:$0xff]  }
 0x82f   :  { %v8150_v11 = vpop.f32.mrb[218].mxu0  ;;  %v7711_v34 = vpop.f32.mrb[166].mxu1  ;;  %v11605_v23 = vld [vmem:[%s15528_s5 + $0x140] sm:$0xff]   ;;  %v11608_v42 = vld [vmem:[%s15528_s5 + $0x148] sm:$0xff]   ;;  %v11610_v14 = vld [vmem:[%s15528_s5 + $0x150] sm:$0xff]   ;;  %vm9963_vm5 = vcmask 74752  }
 0x830   :  { %9224 = vrot.lane.b32.xlu0 %v9223_v41, %s11699_s21  ;;  %v11531_v26 = vpop.f32.mrb[219].mxu0  ;;  %v11429_v30 = vpop.f32.mrb[167].mxu1  ;;  %v11606_v41 = vld [vmem:[%s15528_s5 + $0x100] sm:$0xff]   ;;  %v11609_v5 = vld [vmem:[%s15528_s5 + $0x108] sm:$0xff]   ;;  %v11611_v11 = vld [vmem:[%s15528_s5 + $0x110] sm:$0xff]  }
 0x831   :  { %v11612_v34 = vld [vmem:[%s15528_s5 + $0x158] sm:$0xff]   ;;  %v11614_v30 = vld [vmem:[%s15528_s5 + $0x160] sm:$0xff]  }
 0x832   :  { %v11613_v26 = vld [vmem:[%s15528_s5 + $0x118] sm:$0xff]  }
 0x834   :  { %9243 = vrot.lane.b32.xlu0 %v9242_v52, %s11700_s22 }
 0x861   :  { %v8881_v24 = vpop.permute.xlu1 %8880 }
 0x862   :  { %8883 = vst.msk [vmem:[#allocation5 + $0x1] sm:$0x1] %vm8482_vm15, %v8881_v24  ;;  %v11615_v24 = vld [vmem:[%s15528_s5 + $0x120] sm:$0xff]  }
 0x865   :  { %v8900_v61 = vpop.permute.xlu1 %8899 }
 0x866   :  { %8902 = vst.msk [vmem:[#allocation5 + $0x1] sm:$0x1] %vm8502_vm3, %v8900_v61  ;;  %v11616_v61 = vld [vmem:[%s15528_s5 + $0x168] sm:$0xff]  }
 0x869   :  { %v8919_v57 = vpop.permute.xlu1 %8918  ;;  %v8946_v7 = vpop.permute.xlu0 %8945 }
 0x86a   :  { %8921 = vst.msk [vmem:[#allocation5 + $0x1] sm:$0x1] %vm8522_vm7, %v8919_v57  ;;  %v11617_v57 = vld [vmem:[%s15528_s5 + $0x128] sm:$0xff]  }
 0x86b   :  { %8948 = vst.msk [vmem:[#allocation5 + $0x3] sm:$0x1] %vm8482_vm15, %v8946_v7  ;;  %v11618_v7 = vld [vmem:[%s15528_s5 + $0x170] sm:$0xff]  }
 0x871   :  { %v9011_v62 = vpop.permute.xlu1 %9010 }
 0x872   :  { %9013 = vst.msk [vmem:[#allocation5 + $0x5] sm:$0x1] %vm8482_vm15, %v9011_v62  ;;  %v8965_v29 = vpop.permute.xlu0 %8964  ;;  %v11619_v62 = vld [vmem:[%s15528_s5 + $0x130] sm:$0xff]  }
 0x873   :  { %8967 = vst.msk [vmem:[#allocation5 + $0x3] sm:$0x1] %vm8502_vm3, %v8965_v29  ;;  %v11620_v29 = vld [vmem:[%s15528_s5 + $0x178] sm:$0xff]  }
 0x876   :  { %v8984_v31 = vpop.permute.xlu0 %8983 }
 0x877   :  { %8986 = vst.msk [vmem:[#allocation5 + $0x3] sm:$0x1] %vm8522_vm7, %v8984_v31  ;;  %v11621_v31 = vld [vmem:[%s15528_s5 + $0x138] sm:$0xff]  }
 0x879   :  { %v9030_v60 = vpop.permute.xlu1 %9029 }
 0x87a   :  { %9032 = vst.msk [vmem:[#allocation5 + $0x5] sm:$0x1] %vm8502_vm3, %v9030_v60  ;;  %v11622_v60 = vld [vmem:[%s15528_s5 + $0x180] sm:$0xff]  }
 0x87d   :  { %v9049_v55 = vpop.permute.xlu1 %9048 }
 0x87e   :  { %9051 = vst.msk [vmem:[#allocation5 + $0x5] sm:$0x1] %vm8522_vm7, %v9049_v55 }
 0x881   :  { %v8743_v8 = vpop.permute.xlu1 %8742 }
 0x882   :  { %8745 = vst.msk [vmem:[#allocation5 + $0x8] sm:$0x1] %vm8482_vm15, %v8743_v8  ;;  %v11623_v8 = vld [vmem:[%s15528_s5 + $0x188] sm:$0xff]  }
 0x884   :  { %v9076_v45 = vpop.permute.xlu0 %9075 }
 0x885   :  { %9078 = vst.msk [vmem:[#allocation5 + $0x7] sm:$0x1] %vm8482_vm15, %v9076_v45  ;;  %v8762_v3 = vpop.permute.xlu1 %8761 }
 0x886   :  { %8764 = vst.msk [vmem:[#allocation5 + $0x8] sm:$0x1] %vm8502_vm3, %v8762_v3 }
 0x888   :  { %v9095_v25 = vpop.permute.xlu0 %9094 }
 0x889   :  { %9097 = vst.msk [vmem:[#allocation5 + $0x7] sm:$0x1] %vm8502_vm3, %v9095_v25  ;;  %v8781_v2 = vpop.permute.xlu1 %8780 }
 0x88a   :  { %8783 = vst.msk [vmem:[#allocation5 + $0x8] sm:$0x1] %vm8522_vm7, %v8781_v2  ;;  %v11626_v2 = vld [vmem:[%s15530_s7 + $0x10] sm:$0xff]  }
 0x88e   :  { %v9114_v19 = vpop.permute.xlu0 %9113 }
 0x88f   :  { %9116 = vst.msk [vmem:[#allocation5 + $0x7] sm:$0x1] %vm8522_vm7, %v9114_v19  ;;  %v9141_v18 = vpop.permute.xlu1 %9140  ;;  %v11624_v19 = vld [vmem:[%s15530_s7] sm:$0xff]  }
 0x890   :  { %9143 = vst.msk [vmem:[#allocation5 + $0x9] sm:$0x1] %vm8482_vm15, %v9141_v18 }
 0x892   :  { %v8808_v28 = vpop.permute.xlu0 %8807 }
 0x893   :  { %8810 = vst.msk [vmem:[#allocation5 + $0xa] sm:$0x1] %vm8482_vm15, %v8808_v28  ;;  %v9160_v35 = vpop.permute.xlu1 %9159  ;;  %v11627_v28 = vld [vmem:[%s15530_s7 + $0x18] sm:$0xff]  }
 0x894   :  { %9162 = vst.msk [vmem:[#allocation5 + $0x9] sm:$0x1] %vm8502_vm3, %v9160_v35 }
 0x896   :  { %v8827_v54 = vpop.permute.xlu0 %8826  ;;  %v9255_v32 = vld [vmem:[#allocation5] sm:$0xff] }
 0x897   :  { %8829 = vst.msk [vmem:[#allocation5 + $0xa] sm:$0x1] %vm8502_vm3, %v8827_v54  ;;  %v9266_v4 = vrot.slane %v9255_v32, %v15070_v44  ;;  %v9259_v21 = vcombine.high %v9255_v32, %v9255_v32  ;;  %v9179_v10 = vpop.permute.xlu1 %9178 }
 0x898   :  { %9181 = vst.msk [vmem:[#allocation5 + $0x9] sm:$0x1] %vm8522_vm7, %v9179_v10 }
 0x899   :  { %v9274_v63 = vcombine.high %v9266_v4, %v9266_v4  ;;  %v9273_v13 = vrot.slane %v9259_v21, %v15070_v44  ;;  %v9299_v43 = vpack.c.bf16 %v9266_v4, %v9266_v4  ;;  %v10248_v21 = vld [vmem:[%s15529_s6] ss:$0 sm:$0xff] }
 0x89a   :  { %v8846_v38 = vpop.permute.xlu0 %8845 }
 0x89b   :  { %8848 = vst.msk [vmem:[#allocation5 + $0xa] sm:$0x1] %vm8522_vm7, %v8846_v38  ;;  %v9300_v58 = vpack.c.bf16 %v9274_v63, %v9274_v63  ;;  %v9275_v22 = vcombine.high %v9273_v13, %v9273_v13  ;;  %v9301_v52 = vpack.c.bf16 %v9273_v13, %v9273_v13 }
 0x89d   :  { %9748 = vmatprep.mubr.bf16.mxu1 %v9300_v58  ;;  %v9302_v12 = vpack.c.bf16 %v9275_v22, %v9275_v22 }
 0x89e   :  { %9749 = vmatmul.mubr.bf16.vlgmr.msra.gmra.mrb[168].mxu1 %v9299_v43  ;;  %v9206_v27 = vpop.permute.xlu0 %9205 }
 0x89f   :  { %10563 = vmatpush3.bf16.msra.mxu1 %v11590_v17  ;;  %9208 = vst.msk [vmem:[#allocation5 + $0xb] sm:$0x1] %vm8482_vm15, %v9206_v27  ;;  %9788 = vmatprep.mubr.bf16.mxu1 %v9302_v12 }
 0x8a0   :  { %10564 = vmatprep.subr.bf16.mxu1 %v11591_v33 }
 0x8a2   :  { %v9225_v47 = vpop.permute.xlu0 %9224 }
 0x8a3   :  { %10565 = vmatpush3.bf16.msra.mxu1 %v11592_v59  ;;  %9227 = vst.msk [vmem:[#allocation5 + $0xb] sm:$0x1] %vm8502_vm3, %v9225_v47 }
 0x8a4   :  { %10566 = vmatprep.subr.bf16.mxu1 %v11593_v36 }
 0x8a6   :  { %v9244_v53 = vpop.permute.xlu0 %9243 }
 0x8a7   :  { %10567 = vmatpush3.bf16.msra.mxu1 %v11594_v39  ;;  %9246 = vst.msk [vmem:[#allocation5 + $0xb] sm:$0x1] %vm8522_vm7, %v9244_v53 }
 0x8a8   :  { %10568 = vmatprep.subr.bf16.mxu1 %v11595_v49 }
 0x8ab   :  { %10569 = vmatpush3.bf16.msra.mxu1 %v11596_v56 }
 0x8ac   :  { %10570 = vmatprep.subr.bf16.mxu1 %v11597_v51 }
 0x8ae   :  { %v9256_v20 = vld [vmem:[#allocation5 + $0x8] sm:$0x3f] }
 0x8af   :  { %10571 = vmatpush3.bf16.msra.mxu1 %v11598_v40  ;;  %v9283_v16 = vrot.slane %v9256_v20, %v15070_v44  ;;  %v9276_v55 = vcombine.high %v9256_v20, %v9256_v20 }
 0x8b0   :  { %10572 = vmatprep.subr.bf16.mxu1 %v11599_v15  ;;  %v10300_v15 = vld [vmem:[%s15531_s8] ss:$0 sm:$0xff] }
 0x8b1   :  { %v9291_v50 = vcombine.high %v9283_v16, %v9283_v16  ;;  %v9303_v45 = vpack.c.bf16 %v9283_v16, %v9283_v16  ;;  %v9290_v25 = vrot.slane %v9276_v55, %v15070_v44  ;;  %v11625_v44 = vld [vmem:[%s15530_s7 + $0x8] sm:$0xff]  }
 0x8b3   :  { %10573 = vmatpush3.bf16.msra.mxu1 %v11600_v1  ;;  %v9304_v6 = vpack.c.bf16 %v9291_v50, %v9291_v50  ;;  %v9305_v3 = vpack.c.bf16 %v9290_v25, %v9290_v25 }
 0x8b4   :  { %10574 = vmatprep.subr.bf16.mxu1 %v11601_v37 }
 0x8b7   :  { %10575 = vmatpush3.bf16.msra.mxu1 %v11602_v0 }
 0x8b8   :  { %10576 = vmatprep.subr.bf16.mxu1 %v11603_v46 }
 0x8bb   :  { %10577 = vmatpush3.bf16.msra.mxu1 %v11604_v9 }
 0x8bc   :  { %10584 = vmatprep.subr.bf16.mxu1 %v11605_v23 }
 0x8be   :  { %9789 = vmatmul.mubr.bf16.vlgmr.msra.gmra.mrb[172].mxu1 %v9301_v52 }
 0x8bf   :  { %10585 = vmatpush3.bf16.msra.mxu1 %v11606_v41  ;;  %9828 = vmatprep.mubr.bf16.mxu1 %v9304_v6 }
 0x8c0   :  { %10586 = vmatprep.subr.bf16.mxu1 %v11608_v42 }
 0x8c3   :  { %10587 = vmatpush3.bf16.msra.mxu1 %v11609_v5 }
 0x8c4   :  { %10588 = vmatprep.subr.bf16.mxu1 %v11610_v14 }
 0x8c7   :  { %10589 = vmatpush3.bf16.msra.mxu1 %v11611_v11 }
 0x8c8   :  { %10590 = vmatprep.subr.bf16.mxu1 %v11612_v34 }
 0x8cb   :  { %10591 = vmatpush3.bf16.msra.mxu1 %v11613_v26 }
 0x8cc   :  { %10592 = vmatprep.subr.bf16.mxu1 %v11614_v30 }
 0x8cf   :  { %10593 = vmatpush3.bf16.msra.mxu1 %v11615_v24 }
 0x8d0   :  { %10594 = vmatprep.subr.bf16.mxu1 %v11616_v61 }
 0x8d3   :  { %10595 = vmatpush3.bf16.msra.mxu1 %v11617_v57 }
 0x8d4   :  { %10596 = vmatprep.subr.bf16.mxu1 %v11618_v7 }
 0x8d7   :  { %10597 = vmatpush3.bf16.msra.mxu1 %v11619_v62 }
 0x8d8   :  { %10598 = vmatprep.subr.bf16.mxu1 %v11620_v29 }
 0x8db   :  { %10599 = vmatpush3.bf16.msra.mxu1 %v11621_v31 }
 0x8dc   :  { %11532 = vmatprep.subr.bf16.mxu1 %v15557_v48 }
 0x8de   :  { %9829 = vmatmul.mubr.bf16.vlgmr.msra.gmra.mrb[176].mxu1 %v9303_v45 }
 0x8df   :  { %11533 = vmatpush3.bf16.msra.mxu1 %v11622_v60  ;;  %11536 = vmatprep.mubr.msk.bf16.mxu1 %vm11696_vm1, %v15557_v48 }
 0x8e0   :  { %11534 = vmatprep.subr.bf16.mxu1 %v15557_v48 }
 0x8e3   :  { %11535 = vmatpush3.bf16.msra.mxu1 %v11623_v8 }
 0x8e4   :  { %11540 = vmatprep.subr.bf16.mxu1 %v15557_v48 }
 0x8e6   :  { %11537 = vmatmul.mubr.msk.bf16.vlgmr.msra.gmra.mrb[180].mxu1 %vm8405_vm14, %v9305_v3  ;;  %vm9919_vm14 = vcmask 523264  }
 0x8e7   :  { %11548 = vmatprep.mubr.msk.bf16.mxu1 %vm11696_vm1, %v15557_v48  ;;  %11541 = vmatpush3.bf16.msra.mxu1 %v11624_v19 }
 0x8e8   :  { %11542 = vmatprep.subr.bf16.mxu1 %v15557_v48 }
 0x8eb   :  { %11543 = vmatpush3.bf16.msra.mxu1 %v11625_v44 }
 0x8ec   :  { %11544 = vmatprep.subr.bf16.mxu1 %v15557_v48 }
 0x8ef   :  { %11545 = vmatpush3.bf16.msra.mxu1 %v11626_v2 }
 0x8f0   :  { %11546 = vmatprep.subr.bf16.mxu1 %v15557_v48 }
 0x8f3   :  { %11547 = vmatpush3.bf16.msra.mxu1 %v11627_v28 }
 0x971   :  { %v10556_v18 = vpop.f32.mrb[168].mxu1 }
 0x972   :  { %v10557_v54 = vpop.f32.mrb[169].mxu1 }
 0x973   :  { %v10558_v32 = vadd.f32 %v10557_v54, %v10556_v18  ;;  %v10559_v35 = vpop.f32.mrb[170].mxu1 }
 0x974   :  { %v10560_v4 = vpop.f32.mrb[171].mxu1 }
 0x975   :  { %v9751_v38 = vadd.f32 %v10558_v32, %v10248_v21 }
 0x991   :  { %v10578_v63 = vpop.f32.mrb[172].mxu1 }
 0x992   :  { %v10579_v13 = vpop.f32.mrb[173].mxu1 }
 0x993   :  { %v10580_v10 = vadd.f32 %v10579_v13, %v10578_v63  ;;  %v10581_v58 = vpop.f32.mrb[174].mxu1 }
 0x994   :  { %v10582_v17 = vpop.f32.mrb[175].mxu1 }
 0x995   :  { %v9791_v22 = vadd.f32 %v10580_v10, %v9751_v38 }
 0x9b1   :  { %v10600_v43 = vpop.f32.mrb[176].mxu1 }
 0x9b2   :  { %v10601_v33 = vpop.f32.mrb[177].mxu1 }
 0x9b3   :  { %v10602_v48 = vadd.f32 %v10601_v33, %v10600_v43  ;;  %v10603_v12 = vpop.f32.mrb[178].mxu1 }
 0x9b4   :  { %v10604_v27 = vpop.f32.mrb[179].mxu1 }
 0x9b5   :  { %v9831_v59 = vadd.f32 %v10602_v48, %v9791_v22 }
 0x9b9   :  { %v9870_v36 = vpop.f32.mrb[180].mxu1 }
 0x9ba   :  { %v9871_v47 = vadd.f32 %v9870_v36, %v9831_v59  ;;  %v11538_v39 = vpop.f32.mrb[181].mxu1 }
 0x9bb   :  { %v9873_v49 = vpop.f32.mrb[182].mxu1 }
 0x9bc   :  { %vm9876_vm1 = vcmp.ge.f32.partialorder %v9871_v47, 0.0  ;;  %v9877_v53 = vmul.f32 0.01, %v9871_v47  ;;  %v11539_v56 = vpop.f32.mrb[183].mxu1 }
 0x9be   :  { %v9878_v51 = vsel %vm9876_vm1, %v9871_v47, %v9877_v53 }
 0x9bf   :  { %v9879_v40 = vpack.c.bf16 %v9878_v51, %v9878_v51 }
 0x9c1   :  { %11549 = vmatmul.mubr.msk.bf16.vlgmr.msra.gmra.mrb[184].mxu1 %vm9919_vm14, %v9879_v40 }
 0xa94   :  { %v9957_v1 = vpop.f32.mrb[184].mxu1 }
 0xa95   :  { %v9958_v37 = vadd.f32 %v10300_v15, %v9957_v1  ;;  %v11550_v20 = vpop.f32.mrb[185].mxu1 }
 0xa96   :  { %v9960_v0 = vpop.f32.mrb[186].mxu1 }
 0xa97   :  { %v11551_v46 = vpop.f32.mrb[187].mxu1  ;;  %9964 = vst.msk [vmem:[#allocation6] sm:$0x3] %vm9963_vm5, %v9958_v37 }
 0xa98   :  { %11681 = shalt.err (!%p11678_p4)
}
 0xa99   :  { %s11682_s8 = scalar_lea.hbm %s15532_s9, 32 }
 0xa9a   :  { %p11683_p5 = scmp.ne.s32.totalorder %s15532_s9, %s11682_s8  ;;  %p11686_p6 = scmp.lt.u32.totalorder %s11682_s8, %s15532_s9 }
 0xa9c   :  { %p11688_p7 = pnand %p11686_p6, %p11683_p5 }
 0xa9e   :  { %11691 = shalt.err (!%p11688_p7)
}
 0xa9f   :  { %9974 = dma.vmem_to_hbm [thread:$0]  %s9972_s1, 32, %s15532_s9, [#allocation7]  }
 0xaa0   :  { %11692 = dma.done.wait [#allocation7], 32  }
 0xaa1   :  { %11693 = vsyncadd [#allocation7], 4294967264 }
 0xaa2   :  { %9978 = vsyncpa [#allocation7], 1 }

</bundles_post_ra>
